<compile_context>
chip_gen: v6e
topology: v6e:2x2x1
jax: 0.10.0
libtpu: 0.0.40
codegen_flags: <defaults>
</compile_context>

<pallas_src>
import functools

import jax
import jax.numpy as jnp
from jax import lax
from jax.experimental import pallas as pl
from jax.experimental.pallas import tpu as pltpu


# ------------------------- static problem dimensions ------------------------
N = 2                               # batch
H = W = 16                          # spatial (required by fc1 = 64*6*6)
C_IN, C1, C2 = 3, 32, 64            # channels
KH = KW = 3                         # conv kernel
OH1, OW1 = H - 2, W - 2             # 14, 14   conv1 output
OH2, OW2 = OH1 - 2, OW1 - 2         # 12, 12   conv2 output
PH, PW = OH2 // 2, OW2 // 2         # 6, 6     pooled output
FEAT = C2 * PH * PW                 # 2304
HID, NCLS = 128, 10

# Row bookkeeping: every activation lives in VMEM scratch as a 2-D
# (rows, channels) matrix with a fixed per-image pitch of H*W (=256) rows and
# an intra-image row pitch of W (=16) per image row.  With that pitch, the rows
# needed by conv tap (i, j) for all valid output pixels of ALL images form one
# contiguous slice starting at offset i*W + j.
PITCH = H * W                       # 256 rows per image (x, y1, y2 scratch)
L1 = (OH1 - 1) * W + OW1            # 222 conv1 rows per image
L2 = (OH2 - 1) * W + OW2            # 188 conv2 rows per image
SLAB1 = (N - 1) * PITCH + L1        # 478 rows written by conv1 (whole batch)
SLAB2 = (N - 1) * PITCH + L2        # 444 rows written by conv2 (whole batch)
# Rows with w >= OW (and the inter-image gap) hold harmless finite "garbage"
# computed from real data at wrapped positions; they are never read when
# producing valid outputs.


# --------------------------------- kernel -----------------------------------

def _simple_cnn_kernel(x_ref, w1_ref, b1_ref, w2_ref, b2_ref,
                       wf1_ref, bf1_ref, wf2_ref, bf2_ref,
                       o_ref, y1_ref, y2_ref, flat_ref):
    # ---- conv1 (3x3, VALID, stride 1) + ReLU: 9 batch-wide tap matmuls ----
    acc = None
    for t in range(KH * KW):
        i, j = divmod(t, KW)
        off = i * W + j
        lhs = x_ref[off: off + SLAB1, :]                      # (478, 3)
        rhs = w1_ref[t * C_IN: (t + 1) * C_IN, :]             # (3, 32)
        d = jnp.dot(lhs, rhs, preferred_element_type=jnp.float32)
        acc = d if acc is None else acc + d
    y1_ref[0:SLAB1, :] = jnp.maximum(acc + b1_ref[...], 0.0)

    # ---- conv2 (3x3, VALID, stride 1) + ReLU ----
    acc = None
    for t in range(KH * KW):
        i, j = divmod(t, KW)
        off = i * W + j
        lhs = y1_ref[off: off + SLAB2, :]                     # (444, 32)
        rhs = w2_ref[t * C1: (t + 1) * C1, :]                 # (32, 64)
        d = jnp.dot(lhs, rhs, preferred_element_type=jnp.float32)
        acc = d if acc is None else acc + d
    y2_ref[0:SLAB2, :] = jnp.maximum(acc + b2_ref[...], 0.0)

    # ---- max_pool2d(2) + flatten (NHWC order, matching the repacked fc1) ----
    for n in range(N):
        for ph in range(PH):
            r = n * PITCH + (2 * ph) * W
            top = y2_ref[r: r + OW2, :]                       # (12, 64)
            bot = y2_ref[r + W: r + W + OW2, :]               # (12, 64)
            v = jnp.maximum(top, bot)                         # vertical 2-max
            hmax = jnp.maximum(v[:OW2 - 1, :], v[1:, :])      # (11, 64); row 2*pw
            colbase = ph * PW * C2
            for pw in range(PW):
                flat_ref[n: n + 1,
                         colbase + pw * C2: colbase + (pw + 1) * C2] = \
                    hmax[2 * pw: 2 * pw + 1, :]

    # ---- fc1 + ReLU -> fc2 -> log_softmax (stable LSE) ----
    h = jnp.dot(flat_ref[...], wf1_ref[...], preferred_element_type=jnp.float32)
    h = jnp.maximum(h + bf1_ref[...], 0.0)
    z = jnp.dot(h, wf2_ref[...], preferred_element_type=jnp.float32) + bf2_ref[...]
    zmax = jnp.max(z, axis=-1, keepdims=True)
    lse = jnp.log(jnp.sum(jnp.exp(z - zmax), axis=-1, keepdims=True)) + zmax
    o_ref[...] = (z - lse).astype(o_ref.dtype)


_VMEM = functools.partial(pl.BlockSpec, memory_space=pltpu.MemorySpace.VMEM)


def _fused_forward_call(x2d, prep):
    return pl.pallas_call(
        _simple_cnn_kernel,
        out_shape=jax.ShapeDtypeStruct((N, NCLS), jnp.float32),
        in_specs=[_VMEM() for _ in range(9)],
        out_specs=_VMEM(),
        scratch_shapes=[
            pltpu.VMEM((N * PITCH, C1), jnp.float32),   # conv1 activations
            pltpu.VMEM((N * PITCH, C2), jnp.float32),   # conv2 activations
            pltpu.VMEM((N, FEAT), jnp.float32),         # pooled + flattened
        ],
    )(x2d, prep['w1'], prep['b1'], prep['w2'], prep['b2'],
      prep['wf1'], prep['bf1'], prep['wf2'], prep['bf2'])


def simple_cnn_forward(prep, x_nchw):
    # Only per-call glue: NCHW -> channel-last row matrix (n*H*W + h*W + w, c).
    x2d = jnp.transpose(x_nchw, (0, 2, 3, 1)).reshape(N * H * W, C_IN)
    return _fused_forward_call(x2d, prep)


# ----------------------- one-time parameter repacking -----------------------

def prepare_params(params):
    """Repack PyTorch-layout params into the kernel's layout (done once)."""
    return {
        # conv weights OIHW -> (kh*kw*cin, cout), rows ordered (i, j, cin).
        'w1': params['conv1_w'].transpose(2, 3, 1, 0).reshape(KH * KW * C_IN, C1),
        'b1': params['conv1_b'].reshape(1, C1),
        'w2': params['conv2_w'].transpose(2, 3, 1, 0).reshape(KH * KW * C1, C2),
        'b2': params['conv2_b'].reshape(1, C2),
        # fc1 (out, 2304) with NCHW feature order -> (2304, out) with the
        # kernel's NHWC flatten order (ph, pw, c): identical numerics.
        'wf1': params['fc1_w'].reshape(HID, C2, PH, PW)
                               .transpose(2, 3, 1, 0).reshape(FEAT, HID),
        'bf1': params['fc1_b'].reshape(1, HID),
        'wf2': params['fc2_w'].T,
        'bf2': params['fc2_b'].reshape(1, NCLS),
    }


# --------------------------- deterministic params ---------------------------

def init_params(key):
    ks = jax.random.split(key, 8)

    def u(k, shape, fan_in):
        bound = 1.0 / jnp.sqrt(jnp.float32(fan_in))
        return jax.random.uniform(k, shape, jnp.float32, -bound, bound)

    return {
        'conv1_w': u(ks[0], (C1, C_IN, KH, KW), C_IN * KH * KW),   # PyTorch OIHW
        'conv1_b': u(ks[1], (C1,), C_IN * KH * KW),
        'conv2_w': u(ks[2], (C2, C1, KH, KW), C1 * KH * KW),
        'conv2_b': u(ks[3], (C2,), C1 * KH * KW),
        'fc1_w': u(ks[4], (HID, FEAT), FEAT),                      # PyTorch (out, in)
        'fc1_b': u(ks[5], (HID,), FEAT),
        'fc2_w': u(ks[6], (NCLS, HID), HID),
        'fc2_b': u(ks[7], (NCLS,), HID),
    }


# ------------------------------ plain-JAX ref --------------------------------

def reference_forward(params, x_nchw):
    def conv(x, w, b):
        y = lax.conv_general_dilated(x, w, (1, 1), 'VALID',
                                     dimension_numbers=('NCHW', 'OIHW', 'NCHW'))
        return y + b[None, :, None, None]

    y = jax.nn.relu(conv(x_nchw, params['conv1_w'], params['conv1_b']))
    y = jax.nn.relu(conv(y, params['conv2_w'], params['conv2_b']))
    y = lax.reduce_window(y, -jnp.inf, lax.max, (1, 1, 2, 2), (1, 1, 2, 2), 'VALID')
    y = y.reshape(y.shape[0], -1)
    y = jax.nn.relu(y @ params['fc1_w'].T + params['fc1_b'])
    y = y @ params['fc2_w'].T + params['fc2_b']
    return jax.nn.log_softmax(y, axis=1)


if __name__ == "__main__":
    key = jax.random.PRNGKey(0)
    pkey, xkey = jax.random.split(key)
    params = init_params(pkey)
    prep = prepare_params(params)                       # one-time repack

    x = jax.random.normal(xkey, (N, C_IN, H, W), jnp.float32)   # NCHW, like PyTorch

    fwd = jax.jit(simple_cnn_forward)
    out = jax.block_until_ready(fwd(prep, x))

    ref = reference_forward(params, x)
    assert out.shape == (N, NCLS), out.shape
    assert bool(jnp.all(jnp.isfinite(out)))
    assert bool(jnp.allclose(out, ref, atol=1e-4, rtol=1e-4)), \
        float(jnp.max(jnp.abs(out - ref)))

    print("KERNEL_OK")
</pallas_src>

<mosaic_0001>
module attributes {stable_mosaic.version = 11 : i64} {
  func.func @_simple_cnn_kernel(%arg0: memref<512x3xf32, #tpu.memory_space<vmem>>, %arg1: memref<27x32xf32, #tpu.memory_space<vmem>>, %arg2: memref<1x32xf32, #tpu.memory_space<vmem>>, %arg3: memref<288x64xf32, #tpu.memory_space<vmem>>, %arg4: memref<1x64xf32, #tpu.memory_space<vmem>>, %arg5: memref<2304x128xf32, #tpu.memory_space<vmem>>, %arg6: memref<1x128xf32, #tpu.memory_space<vmem>>, %arg7: memref<128x10xf32, #tpu.memory_space<vmem>>, %arg8: memref<1x10xf32, #tpu.memory_space<vmem>>, %arg9: memref<2x10xf32, #tpu.memory_space<vmem>>, %arg10: memref<512x32xf32, #tpu.memory_space<vmem>>, %arg11: memref<512x64xf32, #tpu.memory_space<vmem>>, %arg12: memref<2x2304xf32, #tpu.memory_space<vmem>>) attributes {dimension_semantics = [], scalar_prefetch = 0 : i64, scratch_operands = 3 : i64, tpu.core_type = #tpu.core_type<tc>} {
    %c0 = arith.constant 0 : index
    %c0_0 = arith.constant 0 : index
    %0 = vector.load %arg0[%c0, %c0_0] : memref<512x3xf32, #tpu.memory_space<vmem>>, vector<478x3xf32>
    %c0_1 = arith.constant 0 : index
    %c0_2 = arith.constant 0 : index
    %1 = vector.load %arg1[%c0_1, %c0_2] : memref<27x32xf32, #tpu.memory_space<vmem>>, vector<3x32xf32>
    %cst = arith.constant dense<0.000000e+00> : vector<478x32xf32>
    %2 = tpu.matmul %0, %1, %cst {dimension_numbers = #tpu.dot_dimension_numbers<[1], [0], [0], [1], [0, 0, 1, 1], [], []>} : vector<478x3xf32>, vector<3x32xf32>, vector<478x32xf32> -> vector<478x32xf32>
    %c1 = arith.constant 1 : index
    %c0_3 = arith.constant 0 : index
    %3 = vector.load %arg0[%c1, %c0_3] : memref<512x3xf32, #tpu.memory_space<vmem>>, vector<478x3xf32>
    %c3 = arith.constant 3 : index
    %c0_4 = arith.constant 0 : index
    %4 = vector.load %arg1[%c3, %c0_4] : memref<27x32xf32, #tpu.memory_space<vmem>>, vector<3x32xf32>
    %cst_5 = arith.constant dense<0.000000e+00> : vector<478x32xf32>
    %5 = tpu.matmul %3, %4, %cst_5 {dimension_numbers = #tpu.dot_dimension_numbers<[1], [0], [0], [1], [0, 0, 1, 1], [], []>} : vector<478x3xf32>, vector<3x32xf32>, vector<478x32xf32> -> vector<478x32xf32>
    %6 = arith.addf %2, %5 : vector<478x32xf32>
    %c2 = arith.constant 2 : index
    %c0_6 = arith.constant 0 : index
    %7 = vector.load %arg0[%c2, %c0_6] : memref<512x3xf32, #tpu.memory_space<vmem>>, vector<478x3xf32>
    %c6 = arith.constant 6 : index
    %c0_7 = arith.constant 0 : index
    %8 = vector.load %arg1[%c6, %c0_7] : memref<27x32xf32, #tpu.memory_space<vmem>>, vector<3x32xf32>
    %cst_8 = arith.constant dense<0.000000e+00> : vector<478x32xf32>
    %9 = tpu.matmul %7, %8, %cst_8 {dimension_numbers = #tpu.dot_dimension_numbers<[1], [0], [0], [1], [0, 0, 1, 1], [], []>} : vector<478x3xf32>, vector<3x32xf32>, vector<478x32xf32> -> vector<478x32xf32>
    %10 = arith.addf %6, %9 : vector<478x32xf32>
    %c16 = arith.constant 16 : index
    %c0_9 = arith.constant 0 : index
    %11 = vector.load %arg0[%c16, %c0_9] : memref<512x3xf32, #tpu.memory_space<vmem>>, vector<478x3xf32>
    %c9 = arith.constant 9 : index
    %c0_10 = arith.constant 0 : index
    %12 = vector.load %arg1[%c9, %c0_10] : memref<27x32xf32, #tpu.memory_space<vmem>>, vector<3x32xf32>
    %cst_11 = arith.constant dense<0.000000e+00> : vector<478x32xf32>
    %13 = tpu.matmul %11, %12, %cst_11 {dimension_numbers = #tpu.dot_dimension_numbers<[1], [0], [0], [1], [0, 0, 1, 1], [], []>} : vector<478x3xf32>, vector<3x32xf32>, vector<478x32xf32> -> vector<478x32xf32>
    %14 = arith.addf %10, %13 : vector<478x32xf32>
    %c17 = arith.constant 17 : index
    %c0_12 = arith.constant 0 : index
    %15 = vector.load %arg0[%c17, %c0_12] : memref<512x3xf32, #tpu.memory_space<vmem>>, vector<478x3xf32>
    %c12 = arith.constant 12 : index
    %c0_13 = arith.constant 0 : index
    %16 = vector.load %arg1[%c12, %c0_13] : memref<27x32xf32, #tpu.memory_space<vmem>>, vector<3x32xf32>
    %cst_14 = arith.constant dense<0.000000e+00> : vector<478x32xf32>
    %17 = tpu.matmul %15, %16, %cst_14 {dimension_numbers = #tpu.dot_dimension_numbers<[1], [0], [0], [1], [0, 0, 1, 1], [], []>} : vector<478x3xf32>, vector<3x32xf32>, vector<478x32xf32> -> vector<478x32xf32>
    %18 = arith.addf %14, %17 : vector<478x32xf32>
    %c18 = arith.constant 18 : index
    %c0_15 = arith.constant 0 : index
    %19 = vector.load %arg0[%c18, %c0_15] : memref<512x3xf32, #tpu.memory_space<vmem>>, vector<478x3xf32>
    %c15 = arith.constant 15 : index
    %c0_16 = arith.constant 0 : index
    %20 = vector.load %arg1[%c15, %c0_16] : memref<27x32xf32, #tpu.memory_space<vmem>>, vector<3x32xf32>
    %cst_17 = arith.constant dense<0.000000e+00> : vector<478x32xf32>
    %21 = tpu.matmul %19, %20, %cst_17 {dimension_numbers = #tpu.dot_dimension_numbers<[1], [0], [0], [1], [0, 0, 1, 1], [], []>} : vector<478x3xf32>, vector<3x32xf32>, vector<478x32xf32> -> vector<478x32xf32>
    %22 = arith.addf %18, %21 : vector<478x32xf32>
    %c32 = arith.constant 32 : index
    %c0_18 = arith.constant 0 : index
    %23 = vector.load %arg0[%c32, %c0_18] : memref<512x3xf32, #tpu.memory_space<vmem>>, vector<478x3xf32>
    %c18_19 = arith.constant 18 : index
    %c0_20 = arith.constant 0 : index
    %24 = vector.load %arg1[%c18_19, %c0_20] : memref<27x32xf32, #tpu.memory_space<vmem>>, vector<3x32xf32>
    %cst_21 = arith.constant dense<0.000000e+00> : vector<478x32xf32>
    %25 = tpu.matmul %23, %24, %cst_21 {dimension_numbers = #tpu.dot_dimension_numbers<[1], [0], [0], [1], [0, 0, 1, 1], [], []>} : vector<478x3xf32>, vector<3x32xf32>, vector<478x32xf32> -> vector<478x32xf32>
    %26 = arith.addf %22, %25 : vector<478x32xf32>
    %c33 = arith.constant 33 : index
    %c0_22 = arith.constant 0 : index
    %27 = vector.load %arg0[%c33, %c0_22] : memref<512x3xf32, #tpu.memory_space<vmem>>, vector<478x3xf32>
    %c21 = arith.constant 21 : index
    %c0_23 = arith.constant 0 : index
    %28 = vector.load %arg1[%c21, %c0_23] : memref<27x32xf32, #tpu.memory_space<vmem>>, vector<3x32xf32>
    %cst_24 = arith.constant dense<0.000000e+00> : vector<478x32xf32>
    %29 = tpu.matmul %27, %28, %cst_24 {dimension_numbers = #tpu.dot_dimension_numbers<[1], [0], [0], [1], [0, 0, 1, 1], [], []>} : vector<478x3xf32>, vector<3x32xf32>, vector<478x32xf32> -> vector<478x32xf32>
    %30 = arith.addf %26, %29 : vector<478x32xf32>
    %c34 = arith.constant 34 : index
    %c0_25 = arith.constant 0 : index
    %31 = vector.load %arg0[%c34, %c0_25] : memref<512x3xf32, #tpu.memory_space<vmem>>, vector<478x3xf32>
    %c24 = arith.constant 24 : index
    %c0_26 = arith.constant 0 : index
    %32 = vector.load %arg1[%c24, %c0_26] : memref<27x32xf32, #tpu.memory_space<vmem>>, vector<3x32xf32>
    %cst_27 = arith.constant dense<0.000000e+00> : vector<478x32xf32>
    %33 = tpu.matmul %31, %32, %cst_27 {dimension_numbers = #tpu.dot_dimension_numbers<[1], [0], [0], [1], [0, 0, 1, 1], [], []>} : vector<478x3xf32>, vector<3x32xf32>, vector<478x32xf32> -> vector<478x32xf32>
    %34 = arith.addf %30, %33 : vector<478x32xf32>
    %c0_28 = arith.constant 0 : index
    %c0_29 = arith.constant 0 : index
    %35 = vector.load %arg2[%c0_28, %c0_29] : memref<1x32xf32, #tpu.memory_space<vmem>>, vector<1x32xf32>
    %36 = vector.broadcast %35 : vector<1x32xf32> to vector<478x32xf32>
    %37 = arith.addf %34, %36 : vector<478x32xf32>
    %cst_30 = arith.constant 0.000000e+00 : f32
    %38 = vector.broadcast %cst_30 : f32 to vector<478x32xf32>
    %39 = arith.maximumf %37, %38 : vector<478x32xf32>
    %c0_31 = arith.constant 0 : index
    %c0_32 = arith.constant 0 : index
    %40 = vector.load %arg10[%c0_31, %c0_32] : memref<512x32xf32, #tpu.memory_space<vmem>>, vector<478x32xf32>
    tpu.vector_store %arg10[%c0_31, %c0_32], %39 {strides = array<i32>} : memref<512x32xf32, #tpu.memory_space<vmem>>, vector<478x32xf32>,
    %c0_33 = arith.constant 0 : index
    %c0_34 = arith.constant 0 : index
    %41 = vector.load %arg10[%c0_33, %c0_34] : memref<512x32xf32, #tpu.memory_space<vmem>>, vector<444x32xf32>
    %c0_35 = arith.constant 0 : index
    %c0_36 = arith.constant 0 : index
    %42 = vector.load %arg3[%c0_35, %c0_36] : memref<288x64xf32, #tpu.memory_space<vmem>>, vector<32x64xf32>
    %cst_37 = arith.constant dense<0.000000e+00> : vector<444x64xf32>
    %43 = tpu.matmul %41, %42, %cst_37 {dimension_numbers = #tpu.dot_dimension_numbers<[1], [0], [0], [1], [0, 0, 1, 1], [], []>} : vector<444x32xf32>, vector<32x64xf32>, vector<444x64xf32> -> vector<444x64xf32>
    %c1_38 = arith.constant 1 : index
    %c0_39 = arith.constant 0 : index
    %44 = vector.load %arg10[%c1_38, %c0_39] : memref<512x32xf32, #tpu.memory_space<vmem>>, vector<444x32xf32>
    %c32_40 = arith.constant 32 : index
    %c0_41 = arith.constant 0 : index
    %45 = vector.load %arg3[%c32_40, %c0_41] : memref<288x64xf32, #tpu.memory_space<vmem>>, vector<32x64xf32>
    %cst_42 = arith.constant dense<0.000000e+00> : vector<444x64xf32>
    %46 = tpu.matmul %44, %45, %cst_42 {dimension_numbers = #tpu.dot_dimension_numbers<[1], [0], [0], [1], [0, 0, 1, 1], [], []>} : vector<444x32xf32>, vector<32x64xf32>, vector<444x64xf32> -> vector<444x64xf32>
    %47 = arith.addf %43, %46 : vector<444x64xf32>
    %c2_43 = arith.constant 2 : index
    %c0_44 = arith.constant 0 : index
    %48 = vector.load %arg10[%c2_43, %c0_44] : memref<512x32xf32, #tpu.memory_space<vmem>>, vector<444x32xf32>
    %c64 = arith.constant 64 : index
    %c0_45 = arith.constant 0 : index
    %49 = vector.load %arg3[%c64, %c0_45] : memref<288x64xf32, #tpu.memory_space<vmem>>, vector<32x64xf32>
    %cst_46 = arith.constant dense<0.000000e+00> : vector<444x64xf32>
    %50 = tpu.matmul %48, %49, %cst_46 {dimension_numbers = #tpu.dot_dimension_numbers<[1], [0], [0], [1], [0, 0, 1, 1], [], []>} : vector<444x32xf32>, vector<32x64xf32>, vector<444x64xf32> -> vector<444x64xf32>
    %51 = arith.addf %47, %50 : vector<444x64xf32>
    %c16_47 = arith.constant 16 : index
    %c0_48 = arith.constant 0 : index
    %52 = vector.load %arg10[%c16_47, %c0_48] : memref<512x32xf32, #tpu.memory_space<vmem>>, vector<444x32xf32>
    %c96 = arith.constant 96 : index
    %c0_49 = arith.constant 0 : index
    %53 = vector.load %arg3[%c96, %c0_49] : memref<288x64xf32, #tpu.memory_space<vmem>>, vector<32x64xf32>
    %cst_50 = arith.constant dense<0.000000e+00> : vector<444x64xf32>
    %54 = tpu.matmul %52, %53, %cst_50 {dimension_numbers = #tpu.dot_dimension_numbers<[1], [0], [0], [1], [0, 0, 1, 1], [], []>} : vector<444x32xf32>, vector<32x64xf32>, vector<444x64xf32> -> vector<444x64xf32>
    %55 = arith.addf %51, %54 : vector<444x64xf32>
    %c17_51 = arith.constant 17 : index
    %c0_52 = arith.constant 0 : index
    %56 = vector.load %arg10[%c17_51, %c0_52] : memref<512x32xf32, #tpu.memory_space<vmem>>, vector<444x32xf32>
    %c128 = arith.constant 128 : index
    %c0_53 = arith.constant 0 : index
    %57 = vector.load %arg3[%c128, %c0_53] : memref<288x64xf32, #tpu.memory_space<vmem>>, vector<32x64xf32>
    %cst_54 = arith.constant dense<0.000000e+00> : vector<444x64xf32>
    %58 = tpu.matmul %56, %57, %cst_54 {dimension_numbers = #tpu.dot_dimension_numbers<[1], [0], [0], [1], [0, 0, 1, 1], [], []>} : vector<444x32xf32>, vector<32x64xf32>, vector<444x64xf32> -> vector<444x64xf32>
    %59 = arith.addf %55, %58 : vector<444x64xf32>
    %c18_55 = arith.constant 18 : index
    %c0_56 = arith.constant 0 : index
    %60 = vector.load %arg10[%c18_55, %c0_56] : memref<512x32xf32, #tpu.memory_space<vmem>>, vector<444x32xf32>
    %c160 = arith.constant 160 : index
    %c0_57 = arith.constant 0 : index
    %61 = vector.load %arg3[%c160, %c0_57] : memref<288x64xf32, #tpu.memory_space<vmem>>, vector<32x64xf32>
    %cst_58 = arith.constant dense<0.000000e+00> : vector<444x64xf32>
    %62 = tpu.matmul %60, %61, %cst_58 {dimension_numbers = #tpu.dot_dimension_numbers<[1], [0], [0], [1], [0, 0, 1, 1], [], []>} : vector<444x32xf32>, vector<32x64xf32>, vector<444x64xf32> -> vector<444x64xf32>
    %63 = arith.addf %59, %62 : vector<444x64xf32>
    %c32_59 = arith.constant 32 : index
    %c0_60 = arith.constant 0 : index
    %64 = vector.load %arg10[%c32_59, %c0_60] : memref<512x32xf32, #tpu.memory_space<vmem>>, vector<444x32xf32>
    %c192 = arith.constant 192 : index
    %c0_61 = arith.constant 0 : index
    %65 = vector.load %arg3[%c192, %c0_61] : memref<288x64xf32, #tpu.memory_space<vmem>>, vector<32x64xf32>
    %cst_62 = arith.constant dense<0.000000e+00> : vector<444x64xf32>
    %66 = tpu.matmul %64, %65, %cst_62 {dimension_numbers = #tpu.dot_dimension_numbers<[1], [0], [0], [1], [0, 0, 1, 1], [], []>} : vector<444x32xf32>, vector<32x64xf32>, vector<444x64xf32> -> vector<444x64xf32>
    %67 = arith.addf %63, %66 : vector<444x64xf32>
    %c33_63 = arith.constant 33 : index
    %c0_64 = arith.constant 0 : index
    %68 = vector.load %arg10[%c33_63, %c0_64] : memref<512x32xf32, #tpu.memory_space<vmem>>, vector<444x32xf32>
    %c224 = arith.constant 224 : index
    %c0_65 = arith.constant 0 : index
    %69 = vector.load %arg3[%c224, %c0_65] : memref<288x64xf32, #tpu.memory_space<vmem>>, vector<32x64xf32>
    %cst_66 = arith.constant dense<0.000000e+00> : vector<444x64xf32>
    %70 = tpu.matmul %68, %69, %cst_66 {dimension_numbers = #tpu.dot_dimension_numbers<[1], [0], [0], [1], [0, 0, 1, 1], [], []>} : vector<444x32xf32>, vector<32x64xf32>, vector<444x64xf32> -> vector<444x64xf32>
    %71 = arith.addf %67, %70 : vector<444x64xf32>
    %c34_67 = arith.constant 34 : index
    %c0_68 = arith.constant 0 : index
    %72 = vector.load %arg10[%c34_67, %c0_68] : memref<512x32xf32, #tpu.memory_space<vmem>>, vector<444x32xf32>
    %c256 = arith.constant 256 : index
    %c0_69 = arith.constant 0 : index
    %73 = vector.load %arg3[%c256, %c0_69] : memref<288x64xf32, #tpu.memory_space<vmem>>, vector<32x64xf32>
    %cst_70 = arith.constant dense<0.000000e+00> : vector<444x64xf32>
    %74 = tpu.matmul %72, %73, %cst_70 {dimension_numbers = #tpu.dot_dimension_numbers<[1], [0], [0], [1], [0, 0, 1, 1], [], []>} : vector<444x32xf32>, vector<32x64xf32>, vector<444x64xf32> -> vector<444x64xf32>
    %75 = arith.addf %71, %74 : vector<444x64xf32>
    %c0_71 = arith.constant 0 : index
    %c0_72 = arith.constant 0 : index
    %76 = vector.load %arg4[%c0_71, %c0_72] : memref<1x64xf32, #tpu.memory_space<vmem>>, vector<1x64xf32>
    %77 = vector.broadcast %76 : vector<1x64xf32> to vector<444x64xf32>
    %78 = arith.addf %75, %77 : vector<444x64xf32>
    %cst_73 = arith.constant 0.000000e+00 : f32
    %79 = vector.broadcast %cst_73 : f32 to vector<444x64xf32>
    %80 = arith.maximumf %78, %79 : vector<444x64xf32>
    %c0_74 = arith.constant 0 : index
    %c0_75 = arith.constant 0 : index
    %81 = vector.load %arg11[%c0_74, %c0_75] : memref<512x64xf32, #tpu.memory_space<vmem>>, vector<444x64xf32>
    tpu.vector_store %arg11[%c0_74, %c0_75], %80 {strides = array<i32>} : memref<512x64xf32, #tpu.memory_space<vmem>>, vector<444x64xf32>,
    %c0_76 = arith.constant 0 : index
    %c0_77 = arith.constant 0 : index
    %82 = vector.load %arg11[%c0_76, %c0_77] : memref<512x64xf32, #tpu.memory_space<vmem>>, vector<12x64xf32>
    %c16_78 = arith.constant 16 : index
    %c0_79 = arith.constant 0 : index
    %83 = vector.load %arg11[%c16_78, %c0_79] : memref<512x64xf32, #tpu.memory_space<vmem>>, vector<12x64xf32>
    %84 = arith.maximumf %82, %83 : vector<12x64xf32>
    %85 = vector.extract_strided_slice %84 {offsets = [0, 0], sizes = [11, 64], strides = [1, 1]} : vector<12x64xf32> to vector<11x64xf32>
    %86 = vector.extract_strided_slice %84 {offsets = [1, 0], sizes = [11, 64], strides = [1, 1]} : vector<12x64xf32> to vector<11x64xf32>
    %87 = arith.maximumf %85, %86 : vector<11x64xf32>
    %88 = vector.extract_strided_slice %87 {offsets = [0, 0], sizes = [1, 64], strides = [1, 1]} : vector<11x64xf32> to vector<1x64xf32>
    %c0_80 = arith.constant 0 : index
    %c0_81 = arith.constant 0 : index
    %89 = vector.load %arg12[%c0_80, %c0_81] : memref<2x2304xf32, #tpu.memory_space<vmem>>, vector<1x64xf32>
    tpu.vector_store %arg12[%c0_80, %c0_81], %88 {strides = array<i32>} : memref<2x2304xf32, #tpu.memory_space<vmem>>, vector<1x64xf32>,
    %90 = vector.extract_strided_slice %87 {offsets = [2, 0], sizes = [1, 64], strides = [1, 1]} : vector<11x64xf32> to vector<1x64xf32>
    %c0_82 = arith.constant 0 : index
    %c64_83 = arith.constant 64 : index
    %91 = vector.load %arg12[%c0_82, %c64_83] : memref<2x2304xf32, #tpu.memory_space<vmem>>, vector<1x64xf32>
    tpu.vector_store %arg12[%c0_82, %c64_83], %90 {strides = array<i32>} : memref<2x2304xf32, #tpu.memory_space<vmem>>, vector<1x64xf32>,
    %92 = vector.extract_strided_slice %87 {offsets = [4, 0], sizes = [1, 64], strides = [1, 1]} : vector<11x64xf32> to vector<1x64xf32>
    %c0_84 = arith.constant 0 : index
    %c128_85 = arith.constant 128 : index
    %93 = vector.load %arg12[%c0_84, %c128_85] : memref<2x2304xf32, #tpu.memory_space<vmem>>, vector<1x64xf32>
    tpu.vector_store %arg12[%c0_84, %c128_85], %92 {strides = array<i32>} : memref<2x2304xf32, #tpu.memory_space<vmem>>, vector<1x64xf32>,
    %94 = vector.extract_strided_slice %87 {offsets = [6, 0], sizes = [1, 64], strides = [1, 1]} : vector<11x64xf32> to vector<1x64xf32>
    %c0_86 = arith.constant 0 : index
    %c192_87 = arith.constant 192 : index
    %95 = vector.load %arg12[%c0_86, %c192_87] : memref<2x2304xf32, #tpu.memory_space<vmem>>, vector<1x64xf32>
    tpu.vector_store %arg12[%c0_86, %c192_87], %94 {strides = array<i32>} : memref<2x2304xf32, #tpu.memory_space<vmem>>, vector<1x64xf32>,
    %96 = vector.extract_strided_slice %87 {offsets = [8, 0], sizes = [1, 64], strides = [1, 1]} : vector<11x64xf32> to vector<1x64xf32>
    %c0_88 = arith.constant 0 : index
    %c256_89 = arith.constant 256 : index
    %97 = vector.load %arg12[%c0_88, %c256_89] : memref<2x2304xf32, #tpu.memory_space<vmem>>, vector<1x64xf32>
    tpu.vector_store %arg12[%c0_88, %c256_89], %96 {strides = array<i32>} : memref<2x2304xf32, #tpu.memory_space<vmem>>, vector<1x64xf32>,
    %98 = vector.extract_strided_slice %87 {offsets = [10, 0], sizes = [1, 64], strides = [1, 1]} : vector<11x64xf32> to vector<1x64xf32>
    %c0_90 = arith.constant 0 : index
    %c320 = arith.constant 320 : index
    %99 = vector.load %arg12[%c0_90, %c320] : memref<2x2304xf32, #tpu.memory_space<vmem>>, vector<1x64xf32>
    tpu.vector_store %arg12[%c0_90, %c320], %98 {strides = array<i32>} : memref<2x2304xf32, #tpu.memory_space<vmem>>, vector<1x64xf32>,
    %c32_91 = arith.constant 32 : index
    %c0_92 = arith.constant 0 : index
    %100 = vector.load %arg11[%c32_91, %c0_92] : memref<512x64xf32, #tpu.memory_space<vmem>>, vector<12x64xf32>
    %c48 = arith.constant 48 : index
    %c0_93 = arith.constant 0 : index
    %101 = vector.load %arg11[%c48, %c0_93] : memref<512x64xf32, #tpu.memory_space<vmem>>, vector<12x64xf32>
    %102 = arith.maximumf %100, %101 : vector<12x64xf32>
    %103 = vector.extract_strided_slice %102 {offsets = [0, 0], sizes = [11, 64], strides = [1, 1]} : vector<12x64xf32> to vector<11x64xf32>
    %104 = vector.extract_strided_slice %102 {offsets = [1, 0], sizes = [11, 64], strides = [1, 1]} : vector<12x64xf32> to vector<11x64xf32>
    %105 = arith.maximumf %103, %104 : vector<11x64xf32>
    %106 = vector.extract_strided_slice %105 {offsets = [0, 0], sizes = [1, 64], strides = [1, 1]} : vector<11x64xf32> to vector<1x64xf32>
    %c0_94 = arith.constant 0 : index
    %c384 = arith.constant 384 : index
    %107 = vector.load %arg12[%c0_94, %c384] : memref<2x2304xf32, #tpu.memory_space<vmem>>, vector<1x64xf32>
    tpu.vector_store %arg12[%c0_94, %c384], %106 {strides = array<i32>} : memref<2x2304xf32, #tpu.memory_space<vmem>>, vector<1x64xf32>,
    %108 = vector.extract_strided_slice %105 {offsets = [2, 0], sizes = [1, 64], strides = [1, 1]} : vector<11x64xf32> to vector<1x64xf32>
    %c0_95 = arith.constant 0 : index
    %c448 = arith.constant 448 : index
    %109 = vector.load %arg12[%c0_95, %c448] : memref<2x2304xf32, #tpu.memory_space<vmem>>, vector<1x64xf32>
    tpu.vector_store %arg12[%c0_95, %c448], %108 {strides = array<i32>} : memref<2x2304xf32, #tpu.memory_space<vmem>>, vector<1x64xf32>,
    %110 = vector.extract_strided_slice %105 {offsets = [4, 0], sizes = [1, 64], strides = [1, 1]} : vector<11x64xf32> to vector<1x64xf32>
    %c0_96 = arith.constant 0 : index
    %c512 = arith.constant 512 : index
    %111 = vector.load %arg12[%c0_96, %c512] : memref<2x2304xf32, #tpu.memory_space<vmem>>, vector<1x64xf32>
    tpu.vector_store %arg12[%c0_96, %c512], %110 {strides = array<i32>} : memref<2x2304xf32, #tpu.memory_space<vmem>>, vector<1x64xf32>,
    %112 = vector.extract_strided_slice %105 {offsets = [6, 0], sizes = [1, 64], strides = [1, 1]} : vector<11x64xf32> to vector<1x64xf32>
    %c0_97 = arith.constant 0 : index
    %c576 = arith.constant 576 : index
    %113 = vector.load %arg12[%c0_97, %c576] : memref<2x2304xf32, #tpu.memory_space<vmem>>, vector<1x64xf32>
    tpu.vector_store %arg12[%c0_97, %c576], %112 {strides = array<i32>} : memref<2x2304xf32, #tpu.memory_space<vmem>>, vector<1x64xf32>,
    %114 = vector.extract_strided_slice %105 {offsets = [8, 0], sizes = [1, 64], strides = [1, 1]} : vector<11x64xf32> to vector<1x64xf32>
    %c0_98 = arith.constant 0 : index
    %c640 = arith.constant 640 : index
    %115 = vector.load %arg12[%c0_98, %c640] : memref<2x2304xf32, #tpu.memory_space<vmem>>, vector<1x64xf32>
    tpu.vector_store %arg12[%c0_98, %c640], %114 {strides = array<i32>} : memref<2x2304xf32, #tpu.memory_space<vmem>>, vector<1x64xf32>,
    %116 = vector.extract_strided_slice %105 {offsets = [10, 0], sizes = [1, 64], strides = [1, 1]} : vector<11x64xf32> to vector<1x64xf32>
    %c0_99 = arith.constant 0 : index
    %c704 = arith.constant 704 : index
    %117 = vector.load %arg12[%c0_99, %c704] : memref<2x2304xf32, #tpu.memory_space<vmem>>, vector<1x64xf32>
    tpu.vector_store %arg12[%c0_99, %c704], %116 {strides = array<i32>} : memref<2x2304xf32, #tpu.memory_space<vmem>>, vector<1x64xf32>,
    %c64_100 = arith.constant 64 : index
    %c0_101 = arith.constant 0 : index
    %118 = vector.load %arg11[%c64_100, %c0_101] : memref<512x64xf32, #tpu.memory_space<vmem>>, vector<12x64xf32>
    %c80 = arith.constant 80 : index
    %c0_102 = arith.constant 0 : index
    %119 = vector.load %arg11[%c80, %c0_102] : memref<512x64xf32, #tpu.memory_space<vmem>>, vector<12x64xf32>
    %120 = arith.maximumf %118, %119 : vector<12x64xf32>
    %121 = vector.extract_strided_slice %120 {offsets = [0, 0], sizes = [11, 64], strides = [1, 1]} : vector<12x64xf32> to vector<11x64xf32>
    %122 = vector.extract_strided_slice %120 {offsets = [1, 0], sizes = [11, 64], strides = [1, 1]} : vector<12x64xf32> to vector<11x64xf32>
    %123 = arith.maximumf %121, %122 : vector<11x64xf32>
    %124 = vector.extract_strided_slice %123 {offsets = [0, 0], sizes = [1, 64], strides = [1, 1]} : vector<11x64xf32> to vector<1x64xf32>
    %c0_103 = arith.constant 0 : index
    %c768 = arith.constant 768 : index
    %125 = vector.load %arg12[%c0_103, %c768] : memref<2x2304xf32, #tpu.memory_space<vmem>>, vector<1x64xf32>
    tpu.vector_store %arg12[%c0_103, %c768], %124 {strides = array<i32>} : memref<2x2304xf32, #tpu.memory_space<vmem>>, vector<1x64xf32>,
    %126 = vector.extract_strided_slice %123 {offsets = [2, 0], sizes = [1, 64], strides = [1, 1]} : vector<11x64xf32> to vector<1x64xf32>
    %c0_104 = arith.constant 0 : index
    %c832 = arith.constant 832 : index
    %127 = vector.load %arg12[%c0_104, %c832] : memref<2x2304xf32, #tpu.memory_space<vmem>>, vector<1x64xf32>
    tpu.vector_store %arg12[%c0_104, %c832], %126 {strides = array<i32>} : memref<2x2304xf32, #tpu.memory_space<vmem>>, vector<1x64xf32>,
    %128 = vector.extract_strided_slice %123 {offsets = [4, 0], sizes = [1, 64], strides = [1, 1]} : vector<11x64xf32> to vector<1x64xf32>
    %c0_105 = arith.constant 0 : index
    %c896 = arith.constant 896 : index
    %129 = vector.load %arg12[%c0_105, %c896] : memref<2x2304xf32, #tpu.memory_space<vmem>>, vector<1x64xf32>
    tpu.vector_store %arg12[%c0_105, %c896], %128 {strides = array<i32>} : memref<2x2304xf32, #tpu.memory_space<vmem>>, vector<1x64xf32>,
    %130 = vector.extract_strided_slice %123 {offsets = [6, 0], sizes = [1, 64], strides = [1, 1]} : vector<11x64xf32> to vector<1x64xf32>
    %c0_106 = arith.constant 0 : index
    %c960 = arith.constant 960 : index
    %131 = vector.load %arg12[%c0_106, %c960] : memref<2x2304xf32, #tpu.memory_space<vmem>>, vector<1x64xf32>
    tpu.vector_store %arg12[%c0_106, %c960], %130 {strides = array<i32>} : memref<2x2304xf32, #tpu.memory_space<vmem>>, vector<1x64xf32>,
    %132 = vector.extract_strided_slice %123 {offsets = [8, 0], sizes = [1, 64], strides = [1, 1]} : vector<11x64xf32> to vector<1x64xf32>
    %c0_107 = arith.constant 0 : index
    %c1024 = arith.constant 1024 : index
    %133 = vector.load %arg12[%c0_107, %c1024] : memref<2x2304xf32, #tpu.memory_space<vmem>>, vector<1x64xf32>
    tpu.vector_store %arg12[%c0_107, %c1024], %132 {strides = array<i32>} : memref<2x2304xf32, #tpu.memory_space<vmem>>, vector<1x64xf32>,
    %134 = vector.extract_strided_slice %123 {offsets = [10, 0], sizes = [1, 64], strides = [1, 1]} : vector<11x64xf32> to vector<1x64xf32>
    %c0_108 = arith.constant 0 : index
    %c1088 = arith.constant 1088 : index
    %135 = vector.load %arg12[%c0_108, %c1088] : memref<2x2304xf32, #tpu.memory_space<vmem>>, vector<1x64xf32>
    tpu.vector_store %arg12[%c0_108, %c1088], %134 {strides = array<i32>} : memref<2x2304xf32, #tpu.memory_space<vmem>>, vector<1x64xf32>,
    %c96_109 = arith.constant 96 : index
    %c0_110 = arith.constant 0 : index
    %136 = vector.load %arg11[%c96_109, %c0_110] : memref<512x64xf32, #tpu.memory_space<vmem>>, vector<12x64xf32>
    %c112 = arith.constant 112 : index
    %c0_111 = arith.constant 0 : index
    %137 = vector.load %arg11[%c112, %c0_111] : memref<512x64xf32, #tpu.memory_space<vmem>>, vector<12x64xf32>
    %138 = arith.maximumf %136, %137 : vector<12x64xf32>
    %139 = vector.extract_strided_slice %138 {offsets = [0, 0], sizes = [11, 64], strides = [1, 1]} : vector<12x64xf32> to vector<11x64xf32>
    %140 = vector.extract_strided_slice %138 {offsets = [1, 0], sizes = [11, 64], strides = [1, 1]} : vector<12x64xf32> to vector<11x64xf32>
    %141 = arith.maximumf %139, %140 : vector<11x64xf32>
    %142 = vector.extract_strided_slice %141 {offsets = [0, 0], sizes = [1, 64], strides = [1, 1]} : vector<11x64xf32> to vector<1x64xf32>
    %c0_112 = arith.constant 0 : index
    %c1152 = arith.constant 1152 : index
    %143 = vector.load %arg12[%c0_112, %c1152] : memref<2x2304xf32, #tpu.memory_space<vmem>>, vector<1x64xf32>
    tpu.vector_store %arg12[%c0_112, %c1152], %142 {strides = array<i32>} : memref<2x2304xf32, #tpu.memory_space<vmem>>, vector<1x64xf32>,
    %144 = vector.extract_strided_slice %141 {offsets = [2, 0], sizes = [1, 64], strides = [1, 1]} : vector<11x64xf32> to vector<1x64xf32>
    %c0_113 = arith.constant 0 : index
    %c1216 = arith.constant 1216 : index
    %145 = vector.load %arg12[%c0_113, %c1216] : memref<2x2304xf32, #tpu.memory_space<vmem>>, vector<1x64xf32>
    tpu.vector_store %arg12[%c0_113, %c1216], %144 {strides = array<i32>} : memref<2x2304xf32, #tpu.memory_space<vmem>>, vector<1x64xf32>,
    %146 = vector.extract_strided_slice %141 {offsets = [4, 0], sizes = [1, 64], strides = [1, 1]} : vector<11x64xf32> to vector<1x64xf32>
    %c0_114 = arith.constant 0 : index
    %c1280 = arith.constant 1280 : index
    %147 = vector.load %arg12[%c0_114, %c1280] : memref<2x2304xf32, #tpu.memory_space<vmem>>, vector<1x64xf32>
    tpu.vector_store %arg12[%c0_114, %c1280], %146 {strides = array<i32>} : memref<2x2304xf32, #tpu.memory_space<vmem>>, vector<1x64xf32>,
    %148 = vector.extract_strided_slice %141 {offsets = [6, 0], sizes = [1, 64], strides = [1, 1]} : vector<11x64xf32> to vector<1x64xf32>
    %c0_115 = arith.constant 0 : index
    %c1344 = arith.constant 1344 : index
    %149 = vector.load %arg12[%c0_115, %c1344] : memref<2x2304xf32, #tpu.memory_space<vmem>>, vector<1x64xf32>
    tpu.vector_store %arg12[%c0_115, %c1344], %148 {strides = array<i32>} : memref<2x2304xf32, #tpu.memory_space<vmem>>, vector<1x64xf32>,
    %150 = vector.extract_strided_slice %141 {offsets = [8, 0], sizes = [1, 64], strides = [1, 1]} : vector<11x64xf32> to vector<1x64xf32>
    %c0_116 = arith.constant 0 : index
    %c1408 = arith.constant 1408 : index
    %151 = vector.load %arg12[%c0_116, %c1408] : memref<2x2304xf32, #tpu.memory_space<vmem>>, vector<1x64xf32>
    tpu.vector_store %arg12[%c0_116, %c1408], %150 {strides = array<i32>} : memref<2x2304xf32, #tpu.memory_space<vmem>>, vector<1x64xf32>,
    %152 = vector.extract_strided_slice %141 {offsets = [10, 0], sizes = [1, 64], strides = [1, 1]} : vector<11x64xf32> to vector<1x64xf32>
    %c0_117 = arith.constant 0 : index
    %c1472 = arith.constant 1472 : index
    %153 = vector.load %arg12[%c0_117, %c1472] : memref<2x2304xf32, #tpu.memory_space<vmem>>, vector<1x64xf32>
    tpu.vector_store %arg12[%c0_117, %c1472], %152 {strides = array<i32>} : memref<2x2304xf32, #tpu.memory_space<vmem>>, vector<1x64xf32>,
    %c128_118 = arith.constant 128 : index
    %c0_119 = arith.constant 0 : index
    %154 = vector.load %arg11[%c128_118, %c0_119] : memref<512x64xf32, #tpu.memory_space<vmem>>, vector<12x64xf32>
    %c144 = arith.constant 144 : index
    %c0_120 = arith.constant 0 : index
    %155 = vector.load %arg11[%c144, %c0_120] : memref<512x64xf32, #tpu.memory_space<vmem>>, vector<12x64xf32>
    %156 = arith.maximumf %154, %155 : vector<12x64xf32>
    %157 = vector.extract_strided_slice %156 {offsets = [0, 0], sizes = [11, 64], strides = [1, 1]} : vector<12x64xf32> to vector<11x64xf32>
    %158 = vector.extract_strided_slice %156 {offsets = [1, 0], sizes = [11, 64], strides = [1, 1]} : vector<12x64xf32> to vector<11x64xf32>
    %159 = arith.maximumf %157, %158 : vector<11x64xf32>
    %160 = vector.extract_strided_slice %159 {offsets = [0, 0], sizes = [1, 64], strides = [1, 1]} : vector<11x64xf32> to vector<1x64xf32>
    %c0_121 = arith.constant 0 : index
    %c1536 = arith.constant 1536 : index
    %161 = vector.load %arg12[%c0_121, %c1536] : memref<2x2304xf32, #tpu.memory_space<vmem>>, vector<1x64xf32>
    tpu.vector_store %arg12[%c0_121, %c1536], %160 {strides = array<i32>} : memref<2x2304xf32, #tpu.memory_space<vmem>>, vector<1x64xf32>,
    %162 = vector.extract_strided_slice %159 {offsets = [2, 0], sizes = [1, 64], strides = [1, 1]} : vector<11x64xf32> to vector<1x64xf32>
    %c0_122 = arith.constant 0 : index
    %c1600 = arith.constant 1600 : index
    %163 = vector.load %arg12[%c0_122, %c1600] : memref<2x2304xf32, #tpu.memory_space<vmem>>, vector<1x64xf32>
    tpu.vector_store %arg12[%c0_122, %c1600], %162 {strides = array<i32>} : memref<2x2304xf32, #tpu.memory_space<vmem>>, vector<1x64xf32>,
    %164 = vector.extract_strided_slice %159 {offsets = [4, 0], sizes = [1, 64], strides = [1, 1]} : vector<11x64xf32> to vector<1x64xf32>
    %c0_123 = arith.constant 0 : index
    %c1664 = arith.constant 1664 : index
    %165 = vector.load %arg12[%c0_123, %c1664] : memref<2x2304xf32, #tpu.memory_space<vmem>>, vector<1x64xf32>
    tpu.vector_store %arg12[%c0_123, %c1664], %164 {strides = array<i32>} : memref<2x2304xf32, #tpu.memory_space<vmem>>, vector<1x64xf32>,
    %166 = vector.extract_strided_slice %159 {offsets = [6, 0], sizes = [1, 64], strides = [1, 1]} : vector<11x64xf32> to vector<1x64xf32>
    %c0_124 = arith.constant 0 : index
    %c1728 = arith.constant 1728 : index
    %167 = vector.load %arg12[%c0_124, %c1728] : memref<2x2304xf32, #tpu.memory_space<vmem>>, vector<1x64xf32>
    tpu.vector_store %arg12[%c0_124, %c1728], %166 {strides = array<i32>} : memref<2x2304xf32, #tpu.memory_space<vmem>>, vector<1x64xf32>,
    %168 = vector.extract_strided_slice %159 {offsets = [8, 0], sizes = [1, 64], strides = [1, 1]} : vector<11x64xf32> to vector<1x64xf32>
    %c0_125 = arith.constant 0 : index
    %c1792 = arith.constant 1792 : index
    %169 = vector.load %arg12[%c0_125, %c1792] : memref<2x2304xf32, #tpu.memory_space<vmem>>, vector<1x64xf32>
    tpu.vector_store %arg12[%c0_125, %c1792], %168 {strides = array<i32>} : memref<2x2304xf32, #tpu.memory_space<vmem>>, vector<1x64xf32>,
    %170 = vector.extract_strided_slice %159 {offsets = [10, 0], sizes = [1, 64], strides = [1, 1]} : vector<11x64xf32> to vector<1x64xf32>
    %c0_126 = arith.constant 0 : index
    %c1856 = arith.constant 1856 : index
    %171 = vector.load %arg12[%c0_126, %c1856] : memref<2x2304xf32, #tpu.memory_space<vmem>>, vector<1x64xf32>
    tpu.vector_store %arg12[%c0_126, %c1856], %170 {strides = array<i32>} : memref<2x2304xf32, #tpu.memory_space<vmem>>, vector<1x64xf32>,
    %c160_127 = arith.constant 160 : index
    %c0_128 = arith.constant 0 : index
    %172 = vector.load %arg11[%c160_127, %c0_128] : memref<512x64xf32, #tpu.memory_space<vmem>>, vector<12x64xf32>
    %c176 = arith.constant 176 : index
    %c0_129 = arith.constant 0 : index
    %173 = vector.load %arg11[%c176, %c0_129] : memref<512x64xf32, #tpu.memory_space<vmem>>, vector<12x64xf32>
    %174 = arith.maximumf %172, %173 : vector<12x64xf32>
    %175 = vector.extract_strided_slice %174 {offsets = [0, 0], sizes = [11, 64], strides = [1, 1]} : vector<12x64xf32> to vector<11x64xf32>
    %176 = vector.extract_strided_slice %174 {offsets = [1, 0], sizes = [11, 64], strides = [1, 1]} : vector<12x64xf32> to vector<11x64xf32>
    %177 = arith.maximumf %175, %176 : vector<11x64xf32>
    %178 = vector.extract_strided_slice %177 {offsets = [0, 0], sizes = [1, 64], strides = [1, 1]} : vector<11x64xf32> to vector<1x64xf32>
    %c0_130 = arith.constant 0 : index
    %c1920 = arith.constant 1920 : index
    %179 = vector.load %arg12[%c0_130, %c1920] : memref<2x2304xf32, #tpu.memory_space<vmem>>, vector<1x64xf32>
    tpu.vector_store %arg12[%c0_130, %c1920], %178 {strides = array<i32>} : memref<2x2304xf32, #tpu.memory_space<vmem>>, vector<1x64xf32>,
    %180 = vector.extract_strided_slice %177 {offsets = [2, 0], sizes = [1, 64], strides = [1, 1]} : vector<11x64xf32> to vector<1x64xf32>
    %c0_131 = arith.constant 0 : index
    %c1984 = arith.constant 1984 : index
    %181 = vector.load %arg12[%c0_131, %c1984] : memref<2x2304xf32, #tpu.memory_space<vmem>>, vector<1x64xf32>
    tpu.vector_store %arg12[%c0_131, %c1984], %180 {strides = array<i32>} : memref<2x2304xf32, #tpu.memory_space<vmem>>, vector<1x64xf32>,
    %182 = vector.extract_strided_slice %177 {offsets = [4, 0], sizes = [1, 64], strides = [1, 1]} : vector<11x64xf32> to vector<1x64xf32>
    %c0_132 = arith.constant 0 : index
    %c2048 = arith.constant 2048 : index
    %183 = vector.load %arg12[%c0_132, %c2048] : memref<2x2304xf32, #tpu.memory_space<vmem>>, vector<1x64xf32>
    tpu.vector_store %arg12[%c0_132, %c2048], %182 {strides = array<i32>} : memref<2x2304xf32, #tpu.memory_space<vmem>>, vector<1x64xf32>,
    %184 = vector.extract_strided_slice %177 {offsets = [6, 0], sizes = [1, 64], strides = [1, 1]} : vector<11x64xf32> to vector<1x64xf32>
    %c0_133 = arith.constant 0 : index
    %c2112 = arith.constant 2112 : index
    %185 = vector.load %arg12[%c0_133, %c2112] : memref<2x2304xf32, #tpu.memory_space<vmem>>, vector<1x64xf32>
    tpu.vector_store %arg12[%c0_133, %c2112], %184 {strides = array<i32>} : memref<2x2304xf32, #tpu.memory_space<vmem>>, vector<1x64xf32>,
    %186 = vector.extract_strided_slice %177 {offsets = [8, 0], sizes = [1, 64], strides = [1, 1]} : vector<11x64xf32> to vector<1x64xf32>
    %c0_134 = arith.constant 0 : index
    %c2176 = arith.constant 2176 : index
    %187 = vector.load %arg12[%c0_134, %c2176] : memref<2x2304xf32, #tpu.memory_space<vmem>>, vector<1x64xf32>
    tpu.vector_store %arg12[%c0_134, %c2176], %186 {strides = array<i32>} : memref<2x2304xf32, #tpu.memory_space<vmem>>, vector<1x64xf32>,
    %188 = vector.extract_strided_slice %177 {offsets = [10, 0], sizes = [1, 64], strides = [1, 1]} : vector<11x64xf32> to vector<1x64xf32>
    %c0_135 = arith.constant 0 : index
    %c2240 = arith.constant 2240 : index
    %189 = vector.load %arg12[%c0_135, %c2240] : memref<2x2304xf32, #tpu.memory_space<vmem>>, vector<1x64xf32>
    tpu.vector_store %arg12[%c0_135, %c2240], %188 {strides = array<i32>} : memref<2x2304xf32, #tpu.memory_space<vmem>>, vector<1x64xf32>,
    %c256_136 = arith.constant 256 : index
    %c0_137 = arith.constant 0 : index
    %190 = vector.load %arg11[%c256_136, %c0_137] : memref<512x64xf32, #tpu.memory_space<vmem>>, vector<12x64xf32>
    %c272 = arith.constant 272 : index
    %c0_138 = arith.constant 0 : index
    %191 = vector.load %arg11[%c272, %c0_138] : memref<512x64xf32, #tpu.memory_space<vmem>>, vector<12x64xf32>
    %192 = arith.maximumf %190, %191 : vector<12x64xf32>
    %193 = vector.extract_strided_slice %192 {offsets = [0, 0], sizes = [11, 64], strides = [1, 1]} : vector<12x64xf32> to vector<11x64xf32>
    %194 = vector.extract_strided_slice %192 {offsets = [1, 0], sizes = [11, 64], strides = [1, 1]} : vector<12x64xf32> to vector<11x64xf32>
    %195 = arith.maximumf %193, %194 : vector<11x64xf32>
    %196 = vector.extract_strided_slice %195 {offsets = [0, 0], sizes = [1, 64], strides = [1, 1]} : vector<11x64xf32> to vector<1x64xf32>
    %c1_139 = arith.constant 1 : index
    %c0_140 = arith.constant 0 : index
    %197 = vector.load %arg12[%c1_139, %c0_140] : memref<2x2304xf32, #tpu.memory_space<vmem>>, vector<1x64xf32>
    tpu.vector_store %arg12[%c1_139, %c0_140], %196 {strides = array<i32>} : memref<2x2304xf32, #tpu.memory_space<vmem>>, vector<1x64xf32>,
    %198 = vector.extract_strided_slice %195 {offsets = [2, 0], sizes = [1, 64], strides = [1, 1]} : vector<11x64xf32> to vector<1x64xf32>
    %c1_141 = arith.constant 1 : index
    %c64_142 = arith.constant 64 : index
    %199 = vector.load %arg12[%c1_141, %c64_142] : memref<2x2304xf32, #tpu.memory_space<vmem>>, vector<1x64xf32>
    tpu.vector_store %arg12[%c1_141, %c64_142], %198 {strides = array<i32>} : memref<2x2304xf32, #tpu.memory_space<vmem>>, vector<1x64xf32>,
    %200 = vector.extract_strided_slice %195 {offsets = [4, 0], sizes = [1, 64], strides = [1, 1]} : vector<11x64xf32> to vector<1x64xf32>
    %c1_143 = arith.constant 1 : index
    %c128_144 = arith.constant 128 : index
    %201 = vector.load %arg12[%c1_143, %c128_144] : memref<2x2304xf32, #tpu.memory_space<vmem>>, vector<1x64xf32>
    tpu.vector_store %arg12[%c1_143, %c128_144], %200 {strides = array<i32>} : memref<2x2304xf32, #tpu.memory_space<vmem>>, vector<1x64xf32>,
    %202 = vector.extract_strided_slice %195 {offsets = [6, 0], sizes = [1, 64], strides = [1, 1]} : vector<11x64xf32> to vector<1x64xf32>
    %c1_145 = arith.constant 1 : index
    %c192_146 = arith.constant 192 : index
    %203 = vector.load %arg12[%c1_145, %c192_146] : memref<2x2304xf32, #tpu.memory_space<vmem>>, vector<1x64xf32>
    tpu.vector_store %arg12[%c1_145, %c192_146], %202 {strides = array<i32>} : memref<2x2304xf32, #tpu.memory_space<vmem>>, vector<1x64xf32>,
    %204 = vector.extract_strided_slice %195 {offsets = [8, 0], sizes = [1, 64], strides = [1, 1]} : vector<11x64xf32> to vector<1x64xf32>
    %c1_147 = arith.constant 1 : index
    %c256_148 = arith.constant 256 : index
    %205 = vector.load %arg12[%c1_147, %c256_148] : memref<2x2304xf32, #tpu.memory_space<vmem>>, vector<1x64xf32>
    tpu.vector_store %arg12[%c1_147, %c256_148], %204 {strides = array<i32>} : memref<2x2304xf32, #tpu.memory_space<vmem>>, vector<1x64xf32>,
    %206 = vector.extract_strided_slice %195 {offsets = [10, 0], sizes = [1, 64], strides = [1, 1]} : vector<11x64xf32> to vector<1x64xf32>
    %c1_149 = arith.constant 1 : index
    %c320_150 = arith.constant 320 : index
    %207 = vector.load %arg12[%c1_149, %c320_150] : memref<2x2304xf32, #tpu.memory_space<vmem>>, vector<1x64xf32>
    tpu.vector_store %arg12[%c1_149, %c320_150], %206 {strides = array<i32>} : memref<2x2304xf32, #tpu.memory_space<vmem>>, vector<1x64xf32>,
    %c288 = arith.constant 288 : index
    %c0_151 = arith.constant 0 : index
    %208 = vector.load %arg11[%c288, %c0_151] : memref<512x64xf32, #tpu.memory_space<vmem>>, vector<12x64xf32>
    %c304 = arith.constant 304 : index
    %c0_152 = arith.constant 0 : index
    %209 = vector.load %arg11[%c304, %c0_152] : memref<512x64xf32, #tpu.memory_space<vmem>>, vector<12x64xf32>
    %210 = arith.maximumf %208, %209 : vector<12x64xf32>
    %211 = vector.extract_strided_slice %210 {offsets = [0, 0], sizes = [11, 64], strides = [1, 1]} : vector<12x64xf32> to vector<11x64xf32>
    %212 = vector.extract_strided_slice %210 {offsets = [1, 0], sizes = [11, 64], strides = [1, 1]} : vector<12x64xf32> to vector<11x64xf32>
    %213 = arith.maximumf %211, %212 : vector<11x64xf32>
    %214 = vector.extract_strided_slice %213 {offsets = [0, 0], sizes = [1, 64], strides = [1, 1]} : vector<11x64xf32> to vector<1x64xf32>
    %c1_153 = arith.constant 1 : index
    %c384_154 = arith.constant 384 : index
    %215 = vector.load %arg12[%c1_153, %c384_154] : memref<2x2304xf32, #tpu.memory_space<vmem>>, vector<1x64xf32>
    tpu.vector_store %arg12[%c1_153, %c384_154], %214 {strides = array<i32>} : memref<2x2304xf32, #tpu.memory_space<vmem>>, vector<1x64xf32>,
    %216 = vector.extract_strided_slice %213 {offsets = [2, 0], sizes = [1, 64], strides = [1, 1]} : vector<11x64xf32> to vector<1x64xf32>
    %c1_155 = arith.constant 1 : index
    %c448_156 = arith.constant 448 : index
    %217 = vector.load %arg12[%c1_155, %c448_156] : memref<2x2304xf32, #tpu.memory_space<vmem>>, vector<1x64xf32>
    tpu.vector_store %arg12[%c1_155, %c448_156], %216 {strides = array<i32>} : memref<2x2304xf32, #tpu.memory_space<vmem>>, vector<1x64xf32>,
    %218 = vector.extract_strided_slice %213 {offsets = [4, 0], sizes = [1, 64], strides = [1, 1]} : vector<11x64xf32> to vector<1x64xf32>
    %c1_157 = arith.constant 1 : index
    %c512_158 = arith.constant 512 : index
    %219 = vector.load %arg12[%c1_157, %c512_158] : memref<2x2304xf32, #tpu.memory_space<vmem>>, vector<1x64xf32>
    tpu.vector_store %arg12[%c1_157, %c512_158], %218 {strides = array<i32>} : memref<2x2304xf32, #tpu.memory_space<vmem>>, vector<1x64xf32>,
    %220 = vector.extract_strided_slice %213 {offsets = [6, 0], sizes = [1, 64], strides = [1, 1]} : vector<11x64xf32> to vector<1x64xf32>
    %c1_159 = arith.constant 1 : index
    %c576_160 = arith.constant 576 : index
    %221 = vector.load %arg12[%c1_159, %c576_160] : memref<2x2304xf32, #tpu.memory_space<vmem>>, vector<1x64xf32>
    tpu.vector_store %arg12[%c1_159, %c576_160], %220 {strides = array<i32>} : memref<2x2304xf32, #tpu.memory_space<vmem>>, vector<1x64xf32>,
    %222 = vector.extract_strided_slice %213 {offsets = [8, 0], sizes = [1, 64], strides = [1, 1]} : vector<11x64xf32> to vector<1x64xf32>
    %c1_161 = arith.constant 1 : index
    %c640_162 = arith.constant 640 : index
    %223 = vector.load %arg12[%c1_161, %c640_162] : memref<2x2304xf32, #tpu.memory_space<vmem>>, vector<1x64xf32>
    tpu.vector_store %arg12[%c1_161, %c640_162], %222 {strides = array<i32>} : memref<2x2304xf32, #tpu.memory_space<vmem>>, vector<1x64xf32>,
    %224 = vector.extract_strided_slice %213 {offsets = [10, 0], sizes = [1, 64], strides = [1, 1]} : vector<11x64xf32> to vector<1x64xf32>
    %c1_163 = arith.constant 1 : index
    %c704_164 = arith.constant 704 : index
    %225 = vector.load %arg12[%c1_163, %c704_164] : memref<2x2304xf32, #tpu.memory_space<vmem>>, vector<1x64xf32>
    tpu.vector_store %arg12[%c1_163, %c704_164], %224 {strides = array<i32>} : memref<2x2304xf32, #tpu.memory_space<vmem>>, vector<1x64xf32>,
    %c320_165 = arith.constant 320 : index
    %c0_166 = arith.constant 0 : index
    %226 = vector.load %arg11[%c320_165, %c0_166] : memref<512x64xf32, #tpu.memory_space<vmem>>, vector<12x64xf32>
    %c336 = arith.constant 336 : index
    %c0_167 = arith.constant 0 : index
    %227 = vector.load %arg11[%c336, %c0_167] : memref<512x64xf32, #tpu.memory_space<vmem>>, vector<12x64xf32>
    %228 = arith.maximumf %226, %227 : vector<12x64xf32>
    %229 = vector.extract_strided_slice %228 {offsets = [0, 0], sizes = [11, 64], strides = [1, 1]} : vector<12x64xf32> to vector<11x64xf32>
    %230 = vector.extract_strided_slice %228 {offsets = [1, 0], sizes = [11, 64], strides = [1, 1]} : vector<12x64xf32> to vector<11x64xf32>
    %231 = arith.maximumf %229, %230 : vector<11x64xf32>
    %232 = vector.extract_strided_slice %231 {offsets = [0, 0], sizes = [1, 64], strides = [1, 1]} : vector<11x64xf32> to vector<1x64xf32>
    %c1_168 = arith.constant 1 : index
    %c768_169 = arith.constant 768 : index
    %233 = vector.load %arg12[%c1_168, %c768_169] : memref<2x2304xf32, #tpu.memory_space<vmem>>, vector<1x64xf32>
    tpu.vector_store %arg12[%c1_168, %c768_169], %232 {strides = array<i32>} : memref<2x2304xf32, #tpu.memory_space<vmem>>, vector<1x64xf32>,
    %234 = vector.extract_strided_slice %231 {offsets = [2, 0], sizes = [1, 64], strides = [1, 1]} : vector<11x64xf32> to vector<1x64xf32>
    %c1_170 = arith.constant 1 : index
    %c832_171 = arith.constant 832 : index
    %235 = vector.load %arg12[%c1_170, %c832_171] : memref<2x2304xf32, #tpu.memory_space<vmem>>, vector<1x64xf32>
    tpu.vector_store %arg12[%c1_170, %c832_171], %234 {strides = array<i32>} : memref<2x2304xf32, #tpu.memory_space<vmem>>, vector<1x64xf32>,
    %236 = vector.extract_strided_slice %231 {offsets = [4, 0], sizes = [1, 64], strides = [1, 1]} : vector<11x64xf32> to vector<1x64xf32>
    %c1_172 = arith.constant 1 : index
    %c896_173 = arith.constant 896 : index
    %237 = vector.load %arg12[%c1_172, %c896_173] : memref<2x2304xf32, #tpu.memory_space<vmem>>, vector<1x64xf32>
    tpu.vector_store %arg12[%c1_172, %c896_173], %236 {strides = array<i32>} : memref<2x2304xf32, #tpu.memory_space<vmem>>, vector<1x64xf32>,
    %238 = vector.extract_strided_slice %231 {offsets = [6, 0], sizes = [1, 64], strides = [1, 1]} : vector<11x64xf32> to vector<1x64xf32>
    %c1_174 = arith.constant 1 : index
    %c960_175 = arith.constant 960 : index
    %239 = vector.load %arg12[%c1_174, %c960_175] : memref<2x2304xf32, #tpu.memory_space<vmem>>, vector<1x64xf32>
    tpu.vector_store %arg12[%c1_174, %c960_175], %238 {strides = array<i32>} : memref<2x2304xf32, #tpu.memory_space<vmem>>, vector<1x64xf32>,
    %240 = vector.extract_strided_slice %231 {offsets = [8, 0], sizes = [1, 64], strides = [1, 1]} : vector<11x64xf32> to vector<1x64xf32>
    %c1_176 = arith.constant 1 : index
    %c1024_177 = arith.constant 1024 : index
    %241 = vector.load %arg12[%c1_176, %c1024_177] : memref<2x2304xf32, #tpu.memory_space<vmem>>, vector<1x64xf32>
    tpu.vector_store %arg12[%c1_176, %c1024_177], %240 {strides = array<i32>} : memref<2x2304xf32, #tpu.memory_space<vmem>>, vector<1x64xf32>,
    %242 = vector.extract_strided_slice %231 {offsets = [10, 0], sizes = [1, 64], strides = [1, 1]} : vector<11x64xf32> to vector<1x64xf32>
    %c1_178 = arith.constant 1 : index
    %c1088_179 = arith.constant 1088 : index
    %243 = vector.load %arg12[%c1_178, %c1088_179] : memref<2x2304xf32, #tpu.memory_space<vmem>>, vector<1x64xf32>
    tpu.vector_store %arg12[%c1_178, %c1088_179], %242 {strides = array<i32>} : memref<2x2304xf32, #tpu.memory_space<vmem>>, vector<1x64xf32>,
    %c352 = arith.constant 352 : index
    %c0_180 = arith.constant 0 : index
    %244 = vector.load %arg11[%c352, %c0_180] : memref<512x64xf32, #tpu.memory_space<vmem>>, vector<12x64xf32>
    %c368 = arith.constant 368 : index
    %c0_181 = arith.constant 0 : index
    %245 = vector.load %arg11[%c368, %c0_181] : memref<512x64xf32, #tpu.memory_space<vmem>>, vector<12x64xf32>
    %246 = arith.maximumf %244, %245 : vector<12x64xf32>
    %247 = vector.extract_strided_slice %246 {offsets = [0, 0], sizes = [11, 64], strides = [1, 1]} : vector<12x64xf32> to vector<11x64xf32>
    %248 = vector.extract_strided_slice %246 {offsets = [1, 0], sizes = [11, 64], strides = [1, 1]} : vector<12x64xf32> to vector<11x64xf32>
    %249 = arith.maximumf %247, %248 : vector<11x64xf32>
    %250 = vector.extract_strided_slice %249 {offsets = [0, 0], sizes = [1, 64], strides = [1, 1]} : vector<11x64xf32> to vector<1x64xf32>
    %c1_182 = arith.constant 1 : index
    %c1152_183 = arith.constant 1152 : index
    %251 = vector.load %arg12[%c1_182, %c1152_183] : memref<2x2304xf32, #tpu.memory_space<vmem>>, vector<1x64xf32>
    tpu.vector_store %arg12[%c1_182, %c1152_183], %250 {strides = array<i32>} : memref<2x2304xf32, #tpu.memory_space<vmem>>, vector<1x64xf32>,
    %252 = vector.extract_strided_slice %249 {offsets = [2, 0], sizes = [1, 64], strides = [1, 1]} : vector<11x64xf32> to vector<1x64xf32>
    %c1_184 = arith.constant 1 : index
    %c1216_185 = arith.constant 1216 : index
    %253 = vector.load %arg12[%c1_184, %c1216_185] : memref<2x2304xf32, #tpu.memory_space<vmem>>, vector<1x64xf32>
    tpu.vector_store %arg12[%c1_184, %c1216_185], %252 {strides = array<i32>} : memref<2x2304xf32, #tpu.memory_space<vmem>>, vector<1x64xf32>,
    %254 = vector.extract_strided_slice %249 {offsets = [4, 0], sizes = [1, 64], strides = [1, 1]} : vector<11x64xf32> to vector<1x64xf32>
    %c1_186 = arith.constant 1 : index
    %c1280_187 = arith.constant 1280 : index
    %255 = vector.load %arg12[%c1_186, %c1280_187] : memref<2x2304xf32, #tpu.memory_space<vmem>>, vector<1x64xf32>
    tpu.vector_store %arg12[%c1_186, %c1280_187], %254 {strides = array<i32>} : memref<2x2304xf32, #tpu.memory_space<vmem>>, vector<1x64xf32>,
    %256 = vector.extract_strided_slice %249 {offsets = [6, 0], sizes = [1, 64], strides = [1, 1]} : vector<11x64xf32> to vector<1x64xf32>
    %c1_188 = arith.constant 1 : index
    %c1344_189 = arith.constant 1344 : index
    %257 = vector.load %arg12[%c1_188, %c1344_189] : memref<2x2304xf32, #tpu.memory_space<vmem>>, vector<1x64xf32>
    tpu.vector_store %arg12[%c1_188, %c1344_189], %256 {strides = array<i32>} : memref<2x2304xf32, #tpu.memory_space<vmem>>, vector<1x64xf32>,
    %258 = vector.extract_strided_slice %249 {offsets = [8, 0], sizes = [1, 64], strides = [1, 1]} : vector<11x64xf32> to vector<1x64xf32>
    %c1_190 = arith.constant 1 : index
    %c1408_191 = arith.constant 1408 : index
    %259 = vector.load %arg12[%c1_190, %c1408_191] : memref<2x2304xf32, #tpu.memory_space<vmem>>, vector<1x64xf32>
    tpu.vector_store %arg12[%c1_190, %c1408_191], %258 {strides = array<i32>} : memref<2x2304xf32, #tpu.memory_space<vmem>>, vector<1x64xf32>,
    %260 = vector.extract_strided_slice %249 {offsets = [10, 0], sizes = [1, 64], strides = [1, 1]} : vector<11x64xf32> to vector<1x64xf32>
    %c1_192 = arith.constant 1 : index
    %c1472_193 = arith.constant 1472 : index
    %261 = vector.load %arg12[%c1_192, %c1472_193] : memref<2x2304xf32, #tpu.memory_space<vmem>>, vector<1x64xf32>
    tpu.vector_store %arg12[%c1_192, %c1472_193], %260 {strides = array<i32>} : memref<2x2304xf32, #tpu.memory_space<vmem>>, vector<1x64xf32>,
    %c384_194 = arith.constant 384 : index
    %c0_195 = arith.constant 0 : index
    %262 = vector.load %arg11[%c384_194, %c0_195] : memref<512x64xf32, #tpu.memory_space<vmem>>, vector<12x64xf32>
    %c400 = arith.constant 400 : index
    %c0_196 = arith.constant 0 : index
    %263 = vector.load %arg11[%c400, %c0_196] : memref<512x64xf32, #tpu.memory_space<vmem>>, vector<12x64xf32>
    %264 = arith.maximumf %262, %263 : vector<12x64xf32>
    %265 = vector.extract_strided_slice %264 {offsets = [0, 0], sizes = [11, 64], strides = [1, 1]} : vector<12x64xf32> to vector<11x64xf32>
    %266 = vector.extract_strided_slice %264 {offsets = [1, 0], sizes = [11, 64], strides = [1, 1]} : vector<12x64xf32> to vector<11x64xf32>
    %267 = arith.maximumf %265, %266 : vector<11x64xf32>
    %268 = vector.extract_strided_slice %267 {offsets = [0, 0], sizes = [1, 64], strides = [1, 1]} : vector<11x64xf32> to vector<1x64xf32>
    %c1_197 = arith.constant 1 : index
    %c1536_198 = arith.constant 1536 : index
    %269 = vector.load %arg12[%c1_197, %c1536_198] : memref<2x2304xf32, #tpu.memory_space<vmem>>, vector<1x64xf32>
    tpu.vector_store %arg12[%c1_197, %c1536_198], %268 {strides = array<i32>} : memref<2x2304xf32, #tpu.memory_space<vmem>>, vector<1x64xf32>,
    %270 = vector.extract_strided_slice %267 {offsets = [2, 0], sizes = [1, 64], strides = [1, 1]} : vector<11x64xf32> to vector<1x64xf32>
    %c1_199 = arith.constant 1 : index
    %c1600_200 = arith.constant 1600 : index
    %271 = vector.load %arg12[%c1_199, %c1600_200] : memref<2x2304xf32, #tpu.memory_space<vmem>>, vector<1x64xf32>
    tpu.vector_store %arg12[%c1_199, %c1600_200], %270 {strides = array<i32>} : memref<2x2304xf32, #tpu.memory_space<vmem>>, vector<1x64xf32>,
    %272 = vector.extract_strided_slice %267 {offsets = [4, 0], sizes = [1, 64], strides = [1, 1]} : vector<11x64xf32> to vector<1x64xf32>
    %c1_201 = arith.constant 1 : index
    %c1664_202 = arith.constant 1664 : index
    %273 = vector.load %arg12[%c1_201, %c1664_202] : memref<2x2304xf32, #tpu.memory_space<vmem>>, vector<1x64xf32>
    tpu.vector_store %arg12[%c1_201, %c1664_202], %272 {strides = array<i32>} : memref<2x2304xf32, #tpu.memory_space<vmem>>, vector<1x64xf32>,
    %274 = vector.extract_strided_slice %267 {offsets = [6, 0], sizes = [1, 64], strides = [1, 1]} : vector<11x64xf32> to vector<1x64xf32>
    %c1_203 = arith.constant 1 : index
    %c1728_204 = arith.constant 1728 : index
    %275 = vector.load %arg12[%c1_203, %c1728_204] : memref<2x2304xf32, #tpu.memory_space<vmem>>, vector<1x64xf32>
    tpu.vector_store %arg12[%c1_203, %c1728_204], %274 {strides = array<i32>} : memref<2x2304xf32, #tpu.memory_space<vmem>>, vector<1x64xf32>,
    %276 = vector.extract_strided_slice %267 {offsets = [8, 0], sizes = [1, 64], strides = [1, 1]} : vector<11x64xf32> to vector<1x64xf32>
    %c1_205 = arith.constant 1 : index
    %c1792_206 = arith.constant 1792 : index
    %277 = vector.load %arg12[%c1_205, %c1792_206] : memref<2x2304xf32, #tpu.memory_space<vmem>>, vector<1x64xf32>
    tpu.vector_store %arg12[%c1_205, %c1792_206], %276 {strides = array<i32>} : memref<2x2304xf32, #tpu.memory_space<vmem>>, vector<1x64xf32>,
    %278 = vector.extract_strided_slice %267 {offsets = [10, 0], sizes = [1, 64], strides = [1, 1]} : vector<11x64xf32> to vector<1x64xf32>
    %c1_207 = arith.constant 1 : index
    %c1856_208 = arith.constant 1856 : index
    %279 = vector.load %arg12[%c1_207, %c1856_208] : memref<2x2304xf32, #tpu.memory_space<vmem>>, vector<1x64xf32>
    tpu.vector_store %arg12[%c1_207, %c1856_208], %278 {strides = array<i32>} : memref<2x2304xf32, #tpu.memory_space<vmem>>, vector<1x64xf32>,
    %c416 = arith.constant 416 : index
    %c0_209 = arith.constant 0 : index
    %280 = vector.load %arg11[%c416, %c0_209] : memref<512x64xf32, #tpu.memory_space<vmem>>, vector<12x64xf32>
    %c432 = arith.constant 432 : index
    %c0_210 = arith.constant 0 : index
    %281 = vector.load %arg11[%c432, %c0_210] : memref<512x64xf32, #tpu.memory_space<vmem>>, vector<12x64xf32>
    %282 = arith.maximumf %280, %281 : vector<12x64xf32>
    %283 = vector.extract_strided_slice %282 {offsets = [0, 0], sizes = [11, 64], strides = [1, 1]} : vector<12x64xf32> to vector<11x64xf32>
    %284 = vector.extract_strided_slice %282 {offsets = [1, 0], sizes = [11, 64], strides = [1, 1]} : vector<12x64xf32> to vector<11x64xf32>
    %285 = arith.maximumf %283, %284 : vector<11x64xf32>
    %286 = vector.extract_strided_slice %285 {offsets = [0, 0], sizes = [1, 64], strides = [1, 1]} : vector<11x64xf32> to vector<1x64xf32>
    %c1_211 = arith.constant 1 : index
    %c1920_212 = arith.constant 1920 : index
    %287 = vector.load %arg12[%c1_211, %c1920_212] : memref<2x2304xf32, #tpu.memory_space<vmem>>, vector<1x64xf32>
    tpu.vector_store %arg12[%c1_211, %c1920_212], %286 {strides = array<i32>} : memref<2x2304xf32, #tpu.memory_space<vmem>>, vector<1x64xf32>,
    %288 = vector.extract_strided_slice %285 {offsets = [2, 0], sizes = [1, 64], strides = [1, 1]} : vector<11x64xf32> to vector<1x64xf32>
    %c1_213 = arith.constant 1 : index
    %c1984_214 = arith.constant 1984 : index
    %289 = vector.load %arg12[%c1_213, %c1984_214] : memref<2x2304xf32, #tpu.memory_space<vmem>>, vector<1x64xf32>
    tpu.vector_store %arg12[%c1_213, %c1984_214], %288 {strides = array<i32>} : memref<2x2304xf32, #tpu.memory_space<vmem>>, vector<1x64xf32>,
    %290 = vector.extract_strided_slice %285 {offsets = [4, 0], sizes = [1, 64], strides = [1, 1]} : vector<11x64xf32> to vector<1x64xf32>
    %c1_215 = arith.constant 1 : index
    %c2048_216 = arith.constant 2048 : index
    %291 = vector.load %arg12[%c1_215, %c2048_216] : memref<2x2304xf32, #tpu.memory_space<vmem>>, vector<1x64xf32>
    tpu.vector_store %arg12[%c1_215, %c2048_216], %290 {strides = array<i32>} : memref<2x2304xf32, #tpu.memory_space<vmem>>, vector<1x64xf32>,
    %292 = vector.extract_strided_slice %285 {offsets = [6, 0], sizes = [1, 64], strides = [1, 1]} : vector<11x64xf32> to vector<1x64xf32>
    %c1_217 = arith.constant 1 : index
    %c2112_218 = arith.constant 2112 : index
    %293 = vector.load %arg12[%c1_217, %c2112_218] : memref<2x2304xf32, #tpu.memory_space<vmem>>, vector<1x64xf32>
    tpu.vector_store %arg12[%c1_217, %c2112_218], %292 {strides = array<i32>} : memref<2x2304xf32, #tpu.memory_space<vmem>>, vector<1x64xf32>,
    %294 = vector.extract_strided_slice %285 {offsets = [8, 0], sizes = [1, 64], strides = [1, 1]} : vector<11x64xf32> to vector<1x64xf32>
    %c1_219 = arith.constant 1 : index
    %c2176_220 = arith.constant 2176 : index
    %295 = vector.load %arg12[%c1_219, %c2176_220] : memref<2x2304xf32, #tpu.memory_space<vmem>>, vector<1x64xf32>
    tpu.vector_store %arg12[%c1_219, %c2176_220], %294 {strides = array<i32>} : memref<2x2304xf32, #tpu.memory_space<vmem>>, vector<1x64xf32>,
    %296 = vector.extract_strided_slice %285 {offsets = [10, 0], sizes = [1, 64], strides = [1, 1]} : vector<11x64xf32> to vector<1x64xf32>
    %c1_221 = arith.constant 1 : index
    %c2240_222 = arith.constant 2240 : index
    %297 = vector.load %arg12[%c1_221, %c2240_222] : memref<2x2304xf32, #tpu.memory_space<vmem>>, vector<1x64xf32>
    tpu.vector_store %arg12[%c1_221, %c2240_222], %296 {strides = array<i32>} : memref<2x2304xf32, #tpu.memory_space<vmem>>, vector<1x64xf32>,
    %c0_223 = arith.constant 0 : index
    %c0_224 = arith.constant 0 : index
    %298 = vector.load %arg12[%c0_223, %c0_224] : memref<2x2304xf32, #tpu.memory_space<vmem>>, vector<2x2304xf32>
    %c0_225 = arith.constant 0 : index
    %c0_226 = arith.constant 0 : index
    %299 = vector.load %arg5[%c0_225, %c0_226] : memref<2304x128xf32, #tpu.memory_space<vmem>>, vector<2304x128xf32>
    %cst_227 = arith.constant dense<0.000000e+00> : vector<2x128xf32>
    %300 = tpu.matmul %298, %299, %cst_227 {dimension_numbers = #tpu.dot_dimension_numbers<[1], [0], [0], [1], [0, 0, 1, 1], [], []>} : vector<2x2304xf32>, vector<2304x128xf32>, vector<2x128xf32> -> vector<2x128xf32>
    %c0_228 = arith.constant 0 : index
    %c0_229 = arith.constant 0 : index
    %301 = vector.load %arg6[%c0_228, %c0_229] : memref<1x128xf32, #tpu.memory_space<vmem>>, vector<1x128xf32>
    %302 = vector.broadcast %301 : vector<1x128xf32> to vector<2x128xf32>
    %303 = arith.addf %300, %302 : vector<2x128xf32>
    %cst_230 = arith.constant 0.000000e+00 : f32
    %304 = vector.broadcast %cst_230 : f32 to vector<2x128xf32>
    %305 = arith.maximumf %303, %304 : vector<2x128xf32>
    %c0_231 = arith.constant 0 : index
    %c0_232 = arith.constant 0 : index
    %306 = vector.load %arg7[%c0_231, %c0_232] : memref<128x10xf32, #tpu.memory_space<vmem>>, vector<128x10xf32>
    %cst_233 = arith.constant dense<0.000000e+00> : vector<2x10xf32>
    %307 = tpu.matmul %305, %306, %cst_233 {dimension_numbers = #tpu.dot_dimension_numbers<[1], [0], [0], [1], [0, 0, 1, 1], [], []>} : vector<2x128xf32>, vector<128x10xf32>, vector<2x10xf32> -> vector<2x10xf32>
    %c0_234 = arith.constant 0 : index
    %c0_235 = arith.constant 0 : index
    %308 = vector.load %arg8[%c0_234, %c0_235] : memref<1x10xf32, #tpu.memory_space<vmem>>, vector<1x10xf32>
    %309 = vector.broadcast %308 : vector<1x10xf32> to vector<2x10xf32>
    %310 = arith.addf %307, %309 : vector<2x10xf32>
    %cst_236 = arith.constant dense<0xFF800000> : vector<2xf32>
    %311 = vector.multi_reduction <maximumf>, %310, %cst_236 [1] : vector<2x10xf32> to vector<2xf32>
    %312 = vector.shape_cast %311 : vector<2xf32> to vector<2x1xf32>
    %313 = vector.broadcast %312 : vector<2x1xf32> to vector<2x10xf32>
    %314 = arith.subf %310, %313 : vector<2x10xf32>
    %315 = math.exp %314 : vector<2x10xf32>
    %cst_237 = arith.constant dense<0.000000e+00> : vector<2xf32>
    %316 = vector.multi_reduction <add>, %315, %cst_237 [1] : vector<2x10xf32> to vector<2xf32>
    %317 = vector.shape_cast %316 : vector<2xf32> to vector<2x1xf32>
    %318 = math.log %317 : vector<2x1xf32>
    %319 = arith.addf %318, %312 : vector<2x1xf32>
    %320 = vector.broadcast %319 : vector<2x1xf32> to vector<2x10xf32>
    %321 = arith.subf %310, %320 : vector<2x10xf32>
    %c0_238 = arith.constant 0 : index
    %c0_239 = arith.constant 0 : index
    %322 = vector.load %arg9[%c0_238, %c0_239] : memref<2x10xf32, #tpu.memory_space<vmem>>, vector<2x10xf32>
    tpu.vector_store %arg9[%c0_238, %c0_239], %321 {strides = array<i32>} : memref<2x10xf32, #tpu.memory_space<vmem>>, vector<2x10xf32>,
    return
  }
}

</mosaic_0001>

<bundles_post_ra>
// kernel: simple_cnn_forward.1
= control target key start
LH: loop header
LB: loop body
LE: loop exit
PB: predicated region body
PF: predicated region fallthrough
CT: control target
= control target key end

     0   :  { %14 = vsyncpa [#allocation6], 0  ;;  %s24375_s0 = inlined_call_operand.vmem [shape: f32[512,3], index: 0, kind: input, shape index: {}]   ;;  %s24376_s1 = inlined_call_operand.hbm [shape: f32[27,32], index: 1, kind: input, shape index: {}]   ;;  %s24377_s2 = inlined_call_operand.hbm [shape: f32[1,32], index: 2, kind: input, shape index: {}]   ;;  %s24378_s3 = inlined_call_operand.vmem [shape: f32[288,64], index: 3, kind: input, shape index: {}]   ;;  %s24379_s4 = inlined_call_operand.hbm [shape: f32[1,64], index: 4, kind: input, shape index: {}]   ;;  %s24380_s5 = inlined_call_operand.hbm [shape: f32[2304,128], index: 5, kind: input, shape index: {}]   ;;  %s24381_s6 = inlined_call_operand.hbm [shape: f32[1,128], index: 6, kind: input, shape index: {}]   ;;  %s24382_s7 = inlined_call_operand.vmem [shape: f32[128,10], index: 7, kind: input, shape index: {}]   ;;  %s24383_s8 = inlined_call_operand.hbm [shape: f32[1,10], index: 8, kind: input, shape index: {}]   ;;  %s24384_s9 = inlined_call_operand.hbm [shape: f32[2,10], index: 9, kind: output, shape index: {}]  }
   0x1   :  { %15 = vsyncpa [#allocation9], 0 }
   0x2   :  { %16 = vsyncpa [#allocation12], 0 }
   0x3   :  { %17 = vsyncpa [#allocation15], 0 }
   0x4   :  { %18 = vsyncpa [#allocation7], 0  ;;  %s18138_s30 = smov [#allocation8]  }
   0x5   :  { %s39_s10 = sshll.u32 %s18138_s30, 4  ;;  %s40_s10 = int_to_ptr.vmem [resolvable:$true] %s39_s10 }
   0x6   :  { %s17996_s11 = scalar_lea.vmem %s40_s10, 16  ;;  %s18000_s12 = scalar_lea.vmem %s40_s10, 32 }
   0x7   :  { %p17997_p0 = scmp.ne.s32.totalorder %s40_s10, %s17996_s11  ;;  %p18001_p1 = scmp.lt.s32.totalorder %s40_s10, %s40_s10 }
   0x8   :  { %p18002_p2 = scmp.lt.s32.totalorder %s18000_s12, %s17996_s11 }
   0xa   :  { %p18003_p3 = por %p18002_p2, %p18001_p1 }
   0xc   :  { %p18004_p4 = pnand %p18003_p3, %p17997_p0 }
   0xe   :  { %18007 = shalt.err (!%p18004_p4)
}
   0xf   :  { %42 = dma.hbm_to_vmem [thread:$0]  %s24377_s2, 16, %s40_s10, [#allocation9]  }
  0x10   :  { %s18139_s15 = smov [#allocation11]   ;;  %s18140_s17 = smov [#allocation5]  }
  0x11   :  { %s60_s16 = sshll.u32 %s18139_s15, 4  ;;  %s26_s18 = sshll.u32 %s18140_s17, 4  ;;  %s61_s16 = int_to_ptr.vmem [resolvable:$true] %s60_s16  ;;  %s27_s18 = int_to_ptr.vmem [resolvable:$true] %s26_s18 }
  0x12   :  { %s18016_s19 = scalar_lea.vmem %s61_s16, 36864  ;;  %p18021_p6 = scmp.lt.s32.totalorder %s61_s16, %s61_s16 }
  0x13   :  { %p18017_p5 = scmp.ne.s32.totalorder %s61_s16, %s18016_s19  ;;  %p18022_p7 = scmp.lt.s32.totalorder %s18016_s19, %s18016_s19 }
  0x15   :  { %p18023_p8 = por %p18022_p7, %p18021_p6 }
  0x17   :  { %p18024_p9 = pnand %p18023_p8, %p18017_p5 }
  0x19   :  { %18027 = shalt.err (!%p18024_p9)
}
  0x1a   :  { %s18141_s20 = smov 128   ;;  %s18142_s21 = smov 8  }
  0x1b   :  { %66 = dma.hbm_to_vmem [thread:$0]  %s24380_s5, 36864, %s61_s16, [#allocation12], %s18141_s20, %s18141_s20, %s18142_s21  }
  0x1c   :  { %s18036_s2 = scalar_lea.vmem %s27_s18, 512  ;;  %p18041_p11 = scmp.lt.s32.totalorder %s27_s18, %s27_s18 }
  0x1d   :  { %p18037_p10 = scmp.ne.s32.totalorder %s27_s18, %s18036_s2  ;;  %p18042_p12 = scmp.lt.s32.totalorder %s18036_s2, %s18036_s2 }
  0x1f   :  { %p18043_p13 = por %p18042_p12, %p18041_p11 }
  0x21   :  { %p18044_p0 = pnand %p18043_p13, %p18037_p10 }
  0x23   :  { %18047 = shalt.err (!%p18044_p0)
}
  0x24   :  { %32 = dma.hbm_to_vmem [thread:$0]  %s24376_s1, 512, %s27_s18, [#allocation6], %s18141_s20, %s18141_s20, %s18142_s21  }
  0x25   :  { %s18143_s26 = smov [#allocation10]   ;;  %s18144_s28 = smov [#allocation13]  }
  0x26   :  { %s51_s27 = sshll.u32 %s18143_s26, 4  ;;  %s73_s29 = sshll.u32 %s18144_s28, 4  ;;  %s52_s27 = int_to_ptr.vmem [resolvable:$true] %s51_s27  ;;  %s74_s29 = int_to_ptr.vmem [resolvable:$true] %s73_s29 }
  0x27   :  { %s18056_s30 = scalar_lea.vmem %s52_s27, 16  ;;  %s18060_s5 = scalar_lea.vmem %s52_s27, 32 }
  0x28   :  { %p18057_p1 = scmp.ne.s32.totalorder %s52_s27, %s18056_s30  ;;  %p18061_p2 = scmp.lt.s32.totalorder %s52_s27, %s52_s27 }
  0x29   :  { %p18062_p3 = scmp.lt.s32.totalorder %s18060_s5, %s18056_s30 }
  0x2b   :  { %p18063_p4 = por %p18062_p3, %p18061_p2 }
  0x2d   :  { %p18064_p5 = pnand %p18063_p4, %p18057_p1 }
  0x2f   :  { %18067 = shalt.err (!%p18064_p5)
}
  0x30   :  { %54 = dma.hbm_to_vmem [thread:$0]  %s24379_s4, 16, %s52_s27, [#allocation9]  }
  0x31   :  { %s18076_s12 = scalar_lea.vmem %s74_s29, 16  ;;  %s18080_s1 = scalar_lea.vmem %s74_s29, 32 }
  0x32   :  { %p18077_p6 = scmp.ne.s32.totalorder %s74_s29, %s18076_s12  ;;  %p18081_p7 = scmp.lt.s32.totalorder %s74_s29, %s74_s29 }
  0x33   :  { %p18082_p8 = scmp.lt.s32.totalorder %s18080_s1, %s18076_s12 }
  0x35   :  { %p18083_p9 = por %p18082_p8, %p18081_p7 }
  0x37   :  { %p18084_p10 = pnand %p18083_p9, %p18077_p6 }
  0x39   :  { %18087 = shalt.err (!%p18084_p10)
}
  0x3a   :  { %76 = dma.hbm_to_vmem [thread:$0]  %s24381_s6, 16, %s74_s29, [#allocation12]  }
  0x3b   :  { %s18145_s15 = smov [#allocation14]  }
  0x3c   :  { %s85_s16 = sshll.u32 %s18145_s15, 4  ;;  %s86_s16 = int_to_ptr.vmem [resolvable:$true] %s85_s16 }
  0x3d   :  { %s18096_s17 = scalar_lea.vmem %s86_s16, 16  ;;  %s18100_s18 = scalar_lea.vmem %s86_s16, 32 }
  0x3e   :  { %p18097_p11 = scmp.ne.s32.totalorder %s86_s16, %s18096_s17  ;;  %p18101_p12 = scmp.lt.s32.totalorder %s86_s16, %s86_s16 }
  0x3f   :  { %p18102_p13 = scmp.lt.s32.totalorder %s18100_s18, %s18096_s17 }
  0x41   :  { %p18103_p0 = por %p18102_p13, %p18101_p12 }
  0x43   :  { %p18104_p1 = pnand %p18103_p0, %p18097_p11 }
  0x45   :  { %18107 = shalt.err (!%p18104_p1)
}
  0x46   :  { %88 = dma.hbm_to_vmem [thread:$0]  %s24383_s8, 16, %s86_s16, [#allocation15]  }
  0x47   :  { %18128 = dma.done.wait [#allocation6], 512  }
  0x48   :  { %18129 = vsyncadd [#allocation6], 4294966784 }
  0x49   :  { %18130 = dma.done.wait [#allocation9], 32  }
  0x4a   :  { %18131 = vsyncadd [#allocation9], 4294967264 }
  0x4b   :  { %18132 = dma.done.wait [#allocation12], 36880  }
  0x4c   :  { %18133 = vsyncadd [#allocation12], 4294930416 }
  0x4d   :  { %18134 = dma.done.wait [#allocation15], 16  }
  0x4e   :  { %18135 = vsyncadd [#allocation15], 4294967280  ;;  %vm410_vm0 = vcmask 1042432   ;;  %v228_v0 = vld [vmem:[#allocation5 + $0x3] sm:$0x7]  ;;  %vm229_vm1 = vcmask 23552  }
  0x4f   :  { %v168_v1 = vld [vmem:[%s24375_s0 + $0x1] sm:$0xff]  ;;  %v226_v2 = vld [vmem:[%s24375_s0 + $0x1d1] sm:$0xff]  ;;  %16259 = vmatprep.subr.msk.mxu0 %vm410_vm0, %v228_v0  ;;  %17950 = vmatprep.subr.msk.mxu1 %vm410_vm0, %v228_v0  ;;  %v169_v3 = vld [vmem:[%s24375_s0 + $0x9] sm:$0xff]  ;;  %vm6137_vm2 = vcmask 261120   ;;  %vm6197_vm3 = vcmask 259072   ;;  %vm11867_vm4 = vcmask 523264  }
  0x50   :  { %v227_v4 = vld [vmem:[%s24375_s0 + $0x1d9] sm:$0x3f]  ;;  %16260 = vmatpush3.msk.msra.mxu0 %vm410_vm0, %v228_v0  ;;  %17951 = vmatpush3.msk.msra.mxu1 %vm410_vm0, %v228_v0  ;;  %v1387_v5 = vld [vmem:[#allocation5 + $0x6] sm:$0x7]  ;;  %v167_v6 = vld [vmem:[#allocation5] sm:$0x7] }
  0x51   :  { %16261 = vmatprep.mubr.msk.f32.mxu0 %vm229_vm1, %v168_v1  ;;  %16348 = vmatprep.mubr.msk.f32.mxu1 %vm229_vm1, %v226_v2  ;;  %v170_v7 = vld [vmem:[%s24375_s0 + $0x11] sm:$0xff]  ;;  %v107_v8 = vld [vmem:[%s24375_s0] sm:$0xff]  ;;  %v108_v10 = vld [vmem:[%s24375_s0 + $0x8] sm:$0xff]  ;;  %vm11933_vm5 = vcmask 1046528   ;;  %vm11941_vm6 = vcmask 516096   ;;  %vm11923_vm7 = vcmask 519168  }
  0x52   :  { %16262 = vmatmul.mubr.msk.f32.vlgmr.msra.gmra.mxu0 %vm229_vm1, %v169_v3  ;;  %16349 = vmatmul.mubr.msk.f32.vlgmr.msra.gmra.mxu1 %vm229_vm1, %v227_v4  ;;  %v171_v9 = vld [vmem:[%s24375_s0 + $0x19] sm:$0xff]  ;;  %v172_v11 = vld [vmem:[%s24375_s0 + $0x21] sm:$0xff]  ;;  %v18261_v12 = vld [vmem:[%s24375_s0 + $0x10] sm:$0xff]  ;;  %vm11955_vm8 = vcmask 1040896   ;;  %vm18149_vm9 = vmmov 0   ;;  %vm13747_vm10 = vcmask 74752  }
  0x53   :  { %16443 = vmatprep.subr.msk.mxu0 %vm410_vm0, %v1387_v5  ;;  %16351 = vmatprep.subr.msk.mxu1 %vm410_vm0, %v167_v6  ;;  %v173_v13 = vld [vmem:[%s24375_s0 + $0x29] sm:$0xff]  ;;  %v18276_v14 = vld [vmem:[%s24375_s0 + $0x18] sm:$0xff]  ;;  %v18284_v16 = vld [vmem:[%s24375_s0 + $0x20] sm:$0xff] }
  0x54   :  { %16444 = vmatpush3.msk.msra.mxu0 %vm410_vm0, %v1387_v5  ;;  %16264 = vmatprep.mubr.msk.f32.mxu0 %vm229_vm1, %v170_v7  ;;  %v174_v15 = vld [vmem:[%s24375_s0 + $0x31] sm:$0xff]  ;;  %v175_v17 = vld [vmem:[%s24375_s0 + $0x39] sm:$0xff]  ;;  %v18298_v18 = vld [vmem:[%s24375_s0 + $0x28] sm:$0xff] }
  0x55   :  { %16352 = vmatpush3.msk.msra.mxu1 %vm410_vm0, %v167_v6  ;;  %16353 = vmatprep.mubr.msk.f32.mxu1 %vm229_vm1, %v107_v8  ;;  %v176_v19 = vld [vmem:[%s24375_s0 + $0x41] sm:$0xff]  ;;  %v18306_v20 = vld [vmem:[%s24375_s0 + $0x30] sm:$0xff]  ;;  %v18320_v22 = vld [vmem:[%s24375_s0 + $0x38] sm:$0xff] }
  0x56   :  { %16265 = vmatmul.mubr.msk.f32.gmra.mxu0 %vm229_vm1, %v171_v9  ;;  %16354 = vmatmul.mubr.msk.f32.vlgmr.msra.gmra.mxu1 %vm229_vm1, %v108_v10  ;;  %v177_v21 = vld [vmem:[%s24375_s0 + $0x49] sm:$0xff]  ;;  %v178_v23 = vld [vmem:[%s24375_s0 + $0x51] sm:$0xff]  ;;  %v18328_v24 = vld [vmem:[%s24375_s0 + $0x40] sm:$0xff] }
  0x57   :  { %16267 = vmatprep.mubr.msk.f32.mxu0 %vm229_vm1, %v172_v11  ;;  %16356 = vmatprep.mubr.msk.f32.mxu1 %vm229_vm1, %v18261_v12  ;;  %v179_v25 = vld [vmem:[%s24375_s0 + $0x59] sm:$0xff]  ;;  %v18342_v26 = vld [vmem:[%s24375_s0 + $0x48] sm:$0xff]  ;;  %v18350_v28 = vld [vmem:[%s24375_s0 + $0x50] sm:$0xff] }
  0x58   :  { %v180_v27 = vld [vmem:[%s24375_s0 + $0x61] sm:$0xff]  ;;  %v181_v29 = vld [vmem:[%s24375_s0 + $0x69] sm:$0xff]  ;;  %v18364_v30 = vld [vmem:[%s24375_s0 + $0x58] sm:$0xff] }
  0x59   :  { %v182_v31 = vld [vmem:[%s24375_s0 + $0x71] sm:$0xff]  ;;  %v18372_v32 = vld [vmem:[%s24375_s0 + $0x60] sm:$0xff]  ;;  %v18386_v34 = vld [vmem:[%s24375_s0 + $0x68] sm:$0xff] }
  0x5a   :  { %16268 = vmatmul.mubr.msk.f32.gmra.mxu0 %vm229_vm1, %v173_v13  ;;  %16357 = vmatmul.mubr.msk.f32.gmra.mxu1 %vm229_vm1, %v18276_v14  ;;  %v183_v33 = vld [vmem:[%s24375_s0 + $0x79] sm:$0xff]  ;;  %v184_v35 = vld [vmem:[%s24375_s0 + $0x81] sm:$0xff]  ;;  %v18394_v36 = vld [vmem:[%s24375_s0 + $0x70] sm:$0xff] }
  0x5b   :  { %16270 = vmatprep.mubr.msk.f32.mxu0 %vm229_vm1, %v174_v15  ;;  %16359 = vmatprep.mubr.msk.f32.mxu1 %vm229_vm1, %v18284_v16  ;;  %v185_v37 = vld [vmem:[%s24375_s0 + $0x89] sm:$0xff]  ;;  %v18408_v38 = vld [vmem:[%s24375_s0 + $0x78] sm:$0xff]  ;;  %v18416_v40 = vld [vmem:[%s24375_s0 + $0x80] sm:$0xff] }
  0x5c   :  { %v186_v39 = vld [vmem:[%s24375_s0 + $0x91] sm:$0xff]  ;;  %v187_v41 = vld [vmem:[%s24375_s0 + $0x99] sm:$0xff]  ;;  %v18430_v42 = vld [vmem:[%s24375_s0 + $0x88] sm:$0xff] }
  0x5d   :  { %v188_v43 = vld [vmem:[%s24375_s0 + $0xa1] sm:$0xff]  ;;  %v18438_v44 = vld [vmem:[%s24375_s0 + $0x90] sm:$0xff]  ;;  %v2056_v45 = vld [vmem:[#allocation5 + $0x9] sm:$0x7] }
  0x5e   :  { %16271 = vmatmul.mubr.msk.f32.gmra.mxu0 %vm229_vm1, %v175_v17  ;;  %16360 = vmatmul.mubr.msk.f32.gmra.mxu1 %vm229_vm1, %v18298_v18  ;;  %v189_v46 = vld [vmem:[%s24375_s0 + $0xa9] sm:$0xff]  ;;  %v18452_v47 = vld [vmem:[%s24375_s0 + $0x98] sm:$0xff]  ;;  %v18462_v50 = vld [vmem:[%s24375_s0 + $0xa0] sm:$0xff] }
  0x5f   :  { %16273 = vmatprep.mubr.msk.f32.mxu0 %vm229_vm1, %v176_v19  ;;  %16362 = vmatprep.mubr.msk.f32.mxu1 %vm229_vm1, %v18306_v20  ;;  %v18454_v48 = vld [vmem:[#allocation5 + $0xc] sm:$0x7]  ;;  %v191_v51 = vld [vmem:[%s24375_s0 + $0xb9] sm:$0xff]  ;;  %v18480_v52 = vld [vmem:[%s24375_s0 + $0xa8] sm:$0xff] }
  0x60   :  { %v190_v49 = vld [vmem:[%s24375_s0 + $0xb1] sm:$0xff]  ;;  %16535 = vmatprep.subr.msk.mxu1 %vm410_vm0, %v2056_v45  ;;  %16627 = vmatprep.subr.msk.mxu0 %vm410_vm0, %v18454_v48  ;;  %v192_v53 = vld [vmem:[%s24375_s0 + $0xc1] sm:$0xff]  ;;  %v193_v55 = vld [vmem:[%s24375_s0 + $0xc9] sm:$0xff] }
  0x61   :  { %16536 = vmatpush3.msk.msra.mxu1 %vm410_vm0, %v2056_v45  ;;  %v18488_v54 = vld [vmem:[%s24375_s0 + $0xb0] sm:$0xff]  ;;  %v18502_v56 = vld [vmem:[%s24375_s0 + $0xb8] sm:$0xff]  ;;  %v18510_v58 = vld [vmem:[%s24375_s0 + $0xc0] sm:$0xff] }
  0x62   :  { %16274 = vmatmul.mubr.msk.f32.gmra.mxu0 %vm229_vm1, %v177_v21  ;;  %16363 = vmatmul.mubr.msk.f32.gmra.mxu1 %vm229_vm1, %v18320_v22  ;;  %v194_v57 = vld [vmem:[%s24375_s0 + $0xd1] sm:$0xff]  ;;  %v195_v59 = vld [vmem:[%s24375_s0 + $0xd9] sm:$0xff]  ;;  %v18524_v60 = vld [vmem:[%s24375_s0 + $0xc8] sm:$0xff] }
  0x63   :  { %16276 = vmatprep.mubr.msk.f32.mxu0 %vm229_vm1, %v178_v23  ;;  %16365 = vmatprep.mubr.msk.f32.mxu1 %vm229_vm1, %v18328_v24  ;;  %v196_v61 = vld [vmem:[%s24375_s0 + $0xe1] sm:$0xff]  ;;  %v18532_v62 = vld [vmem:[%s24375_s0 + $0xd0] sm:$0xff]  ;;  %v18546_v0 = vld [vmem:[%s24375_s0 + $0xd8] sm:$0xff] }
  0x64   :  { %v197_v63 = vld [vmem:[%s24375_s0 + $0xe9] sm:$0xff]  ;;  %v198_v1 = vld [vmem:[%s24375_s0 + $0xf1] sm:$0xff]  ;;  %v18554_v2 = vld [vmem:[%s24375_s0 + $0xe0] sm:$0xff] }
  0x65   :  { %v199_v3 = vld [vmem:[%s24375_s0 + $0xf9] sm:$0xff]  ;;  %v18568_v4 = vld [vmem:[%s24375_s0 + $0xe8] sm:$0xff]  ;;  %v18576_v6 = vld [vmem:[%s24375_s0 + $0xf0] sm:$0xff] }
  0x66   :  { %16277 = vmatmul.mubr.msk.f32.gmra.mxu0 %vm229_vm1, %v179_v25  ;;  %16366 = vmatmul.mubr.msk.f32.gmra.mxu1 %vm229_vm1, %v18342_v26  ;;  %v200_v5 = vld [vmem:[%s24375_s0 + $0x101] sm:$0xff]  ;;  %v201_v7 = vld [vmem:[%s24375_s0 + $0x109] sm:$0xff]  ;;  %v18590_v8 = vld [vmem:[%s24375_s0 + $0xf8] sm:$0xff] }
  0x67   :  { %16279 = vmatprep.mubr.msk.f32.mxu0 %vm229_vm1, %v180_v27  ;;  %16368 = vmatprep.mubr.msk.f32.mxu1 %vm229_vm1, %v18350_v28  ;;  %v202_v9 = vld [vmem:[%s24375_s0 + $0x111] sm:$0xff]  ;;  %v18598_v10 = vld [vmem:[%s24375_s0 + $0x100] sm:$0xff]  ;;  %v18612_v13 = vld [vmem:[%s24375_s0 + $0x108] sm:$0xff] }
  0x68   :  { %v203_v11 = vld [vmem:[%s24375_s0 + $0x119] sm:$0xff]  ;;  %v204_v15 = vld [vmem:[%s24375_s0 + $0x121] sm:$0xff]  ;;  %v18620_v17 = vld [vmem:[%s24375_s0 + $0x110] sm:$0xff] }
  0x69   :  { %v205_v19 = vld [vmem:[%s24375_s0 + $0x129] sm:$0xff]  ;;  %v18634_v21 = vld [vmem:[%s24375_s0 + $0x118] sm:$0xff]  ;;  %v18642_v25 = vld [vmem:[%s24375_s0 + $0x120] sm:$0xff] }
  0x6a   :  { %16280 = vmatmul.mubr.msk.f32.gmra.mxu0 %vm229_vm1, %v181_v29  ;;  %16369 = vmatmul.mubr.msk.f32.gmra.mxu1 %vm229_vm1, %v18364_v30  ;;  %v206_v23 = vld [vmem:[%s24375_s0 + $0x131] sm:$0xff]  ;;  %v207_v27 = vld [vmem:[%s24375_s0 + $0x139] sm:$0xff]  ;;  %v18656_v29 = vld [vmem:[%s24375_s0 + $0x128] sm:$0xff] }
  0x6b   :  { %16282 = vmatprep.mubr.msk.f32.mxu0 %vm229_vm1, %v182_v31  ;;  %16371 = vmatprep.mubr.msk.f32.mxu1 %vm229_vm1, %v18372_v32  ;;  %v208_v31 = vld [vmem:[%s24375_s0 + $0x141] sm:$0xff] }
  0x6c   :  { %v18700_v45 = vld [vmem:[%s24375_s0 + $0x148] sm:$0xff] }
  0x6e   :  { %16283 = vmatmul.mubr.msk.f32.gmra.mxu0 %vm229_vm1, %v183_v33  ;;  %16372 = vmatmul.mubr.msk.f32.gmra.mxu1 %vm229_vm1, %v18386_v34  ;;  %v18664_v33 = vld [vmem:[%s24375_s0 + $0x130] sm:$0xff] }
  0x6f   :  { %16285 = vmatprep.mubr.msk.f32.mxu0 %vm229_vm1, %v184_v35  ;;  %16374 = vmatprep.mubr.msk.f32.mxu1 %vm229_vm1, %v18394_v36  ;;  %v209_v35 = vld [vmem:[%s24375_s0 + $0x149] sm:$0xff] }
  0x72   :  { %16286 = vmatmul.mubr.msk.f32.gmra.mxu0 %vm229_vm1, %v185_v37  ;;  %16375 = vmatmul.mubr.msk.f32.gmra.mxu1 %vm229_vm1, %v18408_v38  ;;  %v18678_v37 = vld [vmem:[%s24375_s0 + $0x138] sm:$0xff] }
  0x73   :  { %16288 = vmatprep.mubr.msk.f32.mxu0 %vm229_vm1, %v186_v39  ;;  %16377 = vmatprep.mubr.msk.f32.mxu1 %vm229_vm1, %v18416_v40  ;;  %v210_v39 = vld [vmem:[%s24375_s0 + $0x151] sm:$0xff] }
  0x76   :  { %16289 = vmatmul.mubr.msk.f32.gmra.mxu0 %vm229_vm1, %v187_v41  ;;  %16378 = vmatmul.mubr.msk.f32.gmra.mxu1 %vm229_vm1, %v18430_v42  ;;  %v18686_v41 = vld [vmem:[%s24375_s0 + $0x140] sm:$0xff] }
  0x77   :  { %16291 = vmatprep.mubr.msk.f32.mxu0 %vm229_vm1, %v188_v43  ;;  %16380 = vmatprep.mubr.msk.f32.mxu1 %vm229_vm1, %v18438_v44  ;;  %v211_v43 = vld [vmem:[%s24375_s0 + $0x159] sm:$0xff] }
  0x7a   :  { %16292 = vmatmul.mubr.msk.f32.gmra.mxu0 %vm229_vm1, %v189_v46  ;;  %16381 = vmatmul.mubr.msk.f32.gmra.mxu1 %vm229_vm1, %v18452_v47  ;;  %v212_v46 = vld [vmem:[%s24375_s0 + $0x161] sm:$0xff] }
  0x7b   :  { %16294 = vmatprep.mubr.msk.f32.mxu0 %vm229_vm1, %v190_v49  ;;  %16383 = vmatprep.mubr.msk.f32.mxu1 %vm229_vm1, %v18462_v50  ;;  %v18708_v49 = vld [vmem:[%s24375_s0 + $0x150] sm:$0xff] }
  0x7e   :  { %16295 = vmatmul.mubr.msk.f32.gmra.mxu0 %vm229_vm1, %v191_v51  ;;  %16384 = vmatmul.mubr.msk.f32.gmra.mxu1 %vm229_vm1, %v18480_v52  ;;  %v213_v51 = vld [vmem:[%s24375_s0 + $0x169] sm:$0xff] }
  0x7f   :  { %16297 = vmatprep.mubr.msk.f32.mxu0 %vm229_vm1, %v192_v53  ;;  %16386 = vmatprep.mubr.msk.f32.mxu1 %vm229_vm1, %v18488_v54  ;;  %v18722_v53 = vld [vmem:[%s24375_s0 + $0x158] sm:$0xff] }
  0x82   :  { %16298 = vmatmul.mubr.msk.f32.gmra.mxu0 %vm229_vm1, %v193_v55  ;;  %16387 = vmatmul.mubr.msk.f32.gmra.mxu1 %vm229_vm1, %v18502_v56  ;;  %v214_v55 = vld [vmem:[%s24375_s0 + $0x171] sm:$0xff] }
  0x83   :  { %16300 = vmatprep.mubr.msk.f32.mxu0 %vm229_vm1, %v194_v57  ;;  %16389 = vmatprep.mubr.msk.f32.mxu1 %vm229_vm1, %v18510_v58  ;;  %v18730_v57 = vld [vmem:[%s24375_s0 + $0x160] sm:$0xff] }
  0x86   :  { %16301 = vmatmul.mubr.msk.f32.gmra.mxu0 %vm229_vm1, %v195_v59  ;;  %16390 = vmatmul.mubr.msk.f32.gmra.mxu1 %vm229_vm1, %v18524_v60  ;;  %v215_v59 = vld [vmem:[%s24375_s0 + $0x179] sm:$0xff] }
  0x87   :  { %16303 = vmatprep.mubr.msk.f32.mxu0 %vm229_vm1, %v196_v61  ;;  %16392 = vmatprep.mubr.msk.f32.mxu1 %vm229_vm1, %v18532_v62  ;;  %v18744_v61 = vld [vmem:[%s24375_s0 + $0x168] sm:$0xff] }
  0x8a   :  { %16304 = vmatmul.mubr.msk.f32.gmra.mxu0 %vm229_vm1, %v197_v63  ;;  %16393 = vmatmul.mubr.msk.f32.gmra.mxu1 %vm229_vm1, %v18546_v0  ;;  %v216_v63 = vld [vmem:[%s24375_s0 + $0x181] sm:$0xff] }
  0x8b   :  { %16306 = vmatprep.mubr.msk.f32.mxu0 %vm229_vm1, %v198_v1  ;;  %16395 = vmatprep.mubr.msk.f32.mxu1 %vm229_vm1, %v18554_v2  ;;  %v18752_v1 = vld [vmem:[%s24375_s0 + $0x170] sm:$0xff] }
  0x8e   :  { %16307 = vmatmul.mubr.msk.f32.gmra.mxu0 %vm229_vm1, %v199_v3  ;;  %16396 = vmatmul.mubr.msk.f32.gmra.mxu1 %vm229_vm1, %v18568_v4  ;;  %v217_v3 = vld [vmem:[%s24375_s0 + $0x189] sm:$0xff] }
  0x8f   :  { %16309 = vmatprep.mubr.msk.f32.mxu0 %vm229_vm1, %v200_v5  ;;  %16398 = vmatprep.mubr.msk.f32.mxu1 %vm229_vm1, %v18576_v6  ;;  %v18766_v5 = vld [vmem:[%s24375_s0 + $0x178] sm:$0xff] }
  0x92   :  { %16310 = vmatmul.mubr.msk.f32.gmra.mxu0 %vm229_vm1, %v201_v7  ;;  %16399 = vmatmul.mubr.msk.f32.gmra.mxu1 %vm229_vm1, %v18590_v8  ;;  %v218_v7 = vld [vmem:[%s24375_s0 + $0x191] sm:$0xff] }
  0x93   :  { %16312 = vmatprep.mubr.msk.f32.mxu0 %vm229_vm1, %v202_v9  ;;  %16401 = vmatprep.mubr.msk.f32.mxu1 %vm229_vm1, %v18598_v10  ;;  %v18774_v9 = vld [vmem:[%s24375_s0 + $0x180] sm:$0xff] }
  0x96   :  { %16313 = vmatmul.mubr.msk.f32.gmra.mxu0 %vm229_vm1, %v203_v11  ;;  %16402 = vmatmul.mubr.msk.f32.gmra.mxu1 %vm229_vm1, %v18612_v13  ;;  %v219_v11 = vld [vmem:[%s24375_s0 + $0x199] sm:$0xff] }
  0x97   :  { %16315 = vmatprep.mubr.msk.f32.mxu0 %vm229_vm1, %v204_v15  ;;  %16404 = vmatprep.mubr.msk.f32.mxu1 %vm229_vm1, %v18620_v17  ;;  %v18788_v15 = vld [vmem:[%s24375_s0 + $0x188] sm:$0xff] }
  0x9a   :  { %16316 = vmatmul.mubr.msk.f32.gmra.mxu0 %vm229_vm1, %v205_v19  ;;  %16405 = vmatmul.mubr.msk.f32.gmra.mxu1 %vm229_vm1, %v18634_v21  ;;  %v220_v19 = vld [vmem:[%s24375_s0 + $0x1a1] sm:$0xff] }
  0x9b   :  { %16318 = vmatprep.mubr.msk.f32.mxu0 %vm229_vm1, %v206_v23  ;;  %16407 = vmatprep.mubr.msk.f32.mxu1 %vm229_vm1, %v18642_v25  ;;  %v18796_v23 = vld [vmem:[%s24375_s0 + $0x190] sm:$0xff] }
  0x9e   :  { %16319 = vmatmul.mubr.msk.f32.gmra.mxu0 %vm229_vm1, %v207_v27  ;;  %16408 = vmatmul.mubr.msk.f32.gmra.mxu1 %vm229_vm1, %v18656_v29  ;;  %v221_v27 = vld [vmem:[%s24375_s0 + $0x1a9] sm:$0xff] }
  0x9f   :  { %16321 = vmatprep.mubr.msk.f32.mxu0 %vm229_vm1, %v208_v31  ;;  %16410 = vmatprep.mubr.msk.f32.mxu1 %vm229_vm1, %v18664_v33  ;;  %v18810_v31 = vld [vmem:[%s24375_s0 + $0x198] sm:$0xff] }
  0xa2   :  { %16322 = vmatmul.mubr.msk.f32.gmra.mxu0 %vm229_vm1, %v209_v35  ;;  %16411 = vmatmul.mubr.msk.f32.gmra.mxu1 %vm229_vm1, %v18678_v37  ;;  %v222_v35 = vld [vmem:[%s24375_s0 + $0x1b1] sm:$0xff] }
  0xa3   :  { %16324 = vmatprep.mubr.msk.f32.mxu0 %vm229_vm1, %v210_v39  ;;  %16413 = vmatprep.mubr.msk.f32.mxu1 %vm229_vm1, %v18686_v41  ;;  %v18818_v39 = vld [vmem:[%s24375_s0 + $0x1a0] sm:$0xff] }
  0xa6   :  { %16325 = vmatmul.mubr.msk.f32.gmra.mxu0 %vm229_vm1, %v211_v43  ;;  %16414 = vmatmul.mubr.msk.f32.gmra.mxu1 %vm229_vm1, %v18700_v45  ;;  %v223_v43 = vld [vmem:[%s24375_s0 + $0x1b9] sm:$0xff] }
  0xa7   :  { %16327 = vmatprep.mubr.msk.f32.mxu0 %vm229_vm1, %v212_v46  ;;  %16416 = vmatprep.mubr.msk.f32.mxu1 %vm229_vm1, %v18708_v49  ;;  %v18832_v46 = vld [vmem:[%s24375_s0 + $0x1a8] sm:$0xff] }
  0xaa   :  { %16328 = vmatmul.mubr.msk.f32.gmra.mxu0 %vm229_vm1, %v213_v51  ;;  %16417 = vmatmul.mubr.msk.f32.gmra.mxu1 %vm229_vm1, %v18722_v53  ;;  %v224_v51 = vld [vmem:[%s24375_s0 + $0x1c1] sm:$0xff] }
  0xab   :  { %16330 = vmatprep.mubr.msk.f32.mxu0 %vm229_vm1, %v214_v55  ;;  %16419 = vmatprep.mubr.msk.f32.mxu1 %vm229_vm1, %v18730_v57  ;;  %v18840_v55 = vld [vmem:[%s24375_s0 + $0x1b0] sm:$0xff] }
  0xae   :  { %16331 = vmatmul.mubr.msk.f32.gmra.mxu0 %vm229_vm1, %v215_v59  ;;  %16420 = vmatmul.mubr.msk.f32.gmra.mxu1 %vm229_vm1, %v18744_v61  ;;  %v3394_v59 = vld [vmem:[#allocation5 + $0xf] sm:$0x7] }
  0xaf   :  { %16333 = vmatprep.mubr.msk.f32.mxu0 %vm229_vm1, %v216_v63  ;;  %16422 = vmatprep.mubr.msk.f32.mxu1 %vm229_vm1, %v18752_v1  ;;  %v225_v63 = vld [vmem:[%s24375_s0 + $0x1c9] sm:$0xff] }
  0xb0   :  { %16719 = vmatprep.subr.msk.mxu1 %vm410_vm0, %v3394_v59 }
  0xb2   :  { %16334 = vmatmul.mubr.msk.f32.gmra.mxu0 %vm229_vm1, %v217_v3  ;;  %16423 = vmatmul.mubr.msk.f32.gmra.mxu1 %vm229_vm1, %v18766_v5  ;;  %v18854_v3 = vld [vmem:[%s24375_s0 + $0x1b8] sm:$0xff] }
  0xb3   :  { %16336 = vmatprep.mubr.msk.f32.mxu0 %vm229_vm1, %v218_v7  ;;  %16425 = vmatprep.mubr.msk.f32.mxu1 %vm229_vm1, %v18774_v9  ;;  %v18859_v7 = vld [vmem:[%s24375_s0 + $0x1c0] sm:$0xff] }
  0xb6   :  { %16337 = vmatmul.mubr.msk.f32.gmra.mxu0 %vm229_vm1, %v219_v11  ;;  %16426 = vmatmul.mubr.msk.f32.gmra.mxu1 %vm229_vm1, %v18788_v15  ;;  %v1327_v11 = vld [vmem:[%s24375_s0 + $0x2] sm:$0xff] }
  0xb7   :  { %16339 = vmatprep.mubr.msk.f32.mxu0 %vm229_vm1, %v220_v19  ;;  %16428 = vmatprep.mubr.msk.f32.mxu1 %vm229_vm1, %v18796_v23  ;;  %v18874_v19 = vld [vmem:[%s24375_s0 + $0x1c8] sm:$0xff] }
  0xba   :  { %16340 = vmatmul.mubr.msk.f32.gmra.mxu0 %vm229_vm1, %v221_v27  ;;  %16429 = vmatmul.mubr.msk.f32.gmra.mxu1 %vm229_vm1, %v18810_v31  ;;  %v1328_v27 = vld [vmem:[%s24375_s0 + $0xa] sm:$0xff] }
  0xbb   :  { %16342 = vmatprep.mubr.msk.f32.mxu0 %vm229_vm1, %v222_v35  ;;  %16431 = vmatprep.mubr.msk.f32.mxu1 %vm229_vm1, %v18818_v39  ;;  %v18882_v35 = vld [vmem:[%s24375_s0 + $0x1d0] sm:$0xff] }
  0xbe   :  { %16343 = vmatmul.mubr.msk.f32.gmra.mxu0 %vm229_vm1, %v223_v43  ;;  %16432 = vmatmul.mubr.msk.f32.gmra.mxu1 %vm229_vm1, %v18832_v46  ;;  %v18887_v43 = vld [vmem:[%s24375_s0 + $0x12] sm:$0xff] }
  0xbf   :  { %16345 = vmatprep.mubr.msk.f32.mxu0 %vm229_vm1, %v224_v51  ;;  %16434 = vmatprep.mubr.msk.f32.mxu1 %vm229_vm1, %v18840_v55  ;;  %24466 = vst [vmem:[#allocation22_spill] sm:$0xff] %v18887_v43  ;;  %v18889_v51 = vld [vmem:[#allocation5 + $0x12] sm:$0x7] }
  0xc2   :  { %16346 = vmatmul.mubr.msk.f32.gmra.mxu0 %vm229_vm1, %v225_v63  ;;  %16435 = vmatmul.mubr.msk.f32.gmra.mxu1 %vm229_vm1, %v18854_v3  ;;  %v166_v63 = vld [vmem:[%s24375_s0 + $0x1d8] sm:$0x3f] }
  0xc3   :  { %16437 = vmatprep.mubr.msk.f32.mxu1 %vm229_vm1, %v18859_v7  ;;  %16445 = vmatprep.mubr.msk.f32.mxu0 %vm229_vm1, %v1327_v11  ;;  %v18904_v11 = vld [vmem:[%s24375_s0 + $0x1a] sm:$0xff] }
  0xc6   :  { %16438 = vmatmul.mubr.msk.f32.gmra.mxu1 %vm229_vm1, %v18874_v19  ;;  %16446 = vmatmul.mubr.msk.f32.vlgmr.msra.gmra.mxu0 %vm229_vm1, %v1328_v27  ;;  %v18911_v27 = vld [vmem:[%s24375_s0 + $0x22] sm:$0xff] }
  0xc7   :  { %16628 = vmatpush3.msk.msra.mxu0 %vm410_vm0, %v18454_v48  ;;  %16440 = vmatprep.mubr.msk.f32.mxu1 %vm229_vm1, %v18882_v35  ;;  %v18925_v48 = vld [vmem:[%s24375_s0 + $0x2a] sm:$0xff] }
  0xc8   :  { %16448 = vmatprep.mubr.msk.f32.mxu0 %vm229_vm1, %v18887_v43  ;;  %16811 = vmatprep.subr.msk.mxu0 %vm410_vm0, %v18889_v51  ;;  %v18930_v43 = vld [vmem:[%s24375_s0 + $0x32] sm:$0xff] }
  0xca   :  { %16441 = vmatmul.mubr.msk.f32.gmra.mxu1 %vm229_vm1, %v166_v63  ;;  %16449 = vmatmul.mubr.msk.f32.gmra.mxu0 %vm229_vm1, %v18904_v11  ;;  %v18948_v63 = vld [vmem:[%s24375_s0 + $0x42] sm:$0xff] }
  0xcb   :  { %16451 = vmatprep.mubr.msk.f32.mxu0 %vm229_vm1, %v18911_v27  ;;  %16537 = vmatprep.mubr.msk.f32.mxu1 %vm229_vm1, %v18261_v12  ;;  %v18943_v12 = vld [vmem:[%s24375_s0 + $0x3a] sm:$0xff] }
  0xce   :  { %16452 = vmatmul.mubr.msk.f32.gmra.mxu0 %vm229_vm1, %v18925_v48  ;;  %16538 = vmatmul.mubr.msk.f32.vlgmr.msra.gmra.mxu1 %vm229_vm1, %v18276_v14  ;;  %v18962_v14 = vld [vmem:[%s24375_s0 + $0x4a] sm:$0xff] }
  0xcf   :  { %16454 = vmatprep.mubr.msk.f32.mxu0 %vm229_vm1, %v18930_v43  ;;  %16540 = vmatprep.mubr.msk.f32.mxu1 %vm229_vm1, %v18284_v16  ;;  %v18967_v16 = vld [vmem:[%s24375_s0 + $0x52] sm:$0xff] }
  0xd0   :  { %16720 = vmatpush3.msk.msra.mxu1 %vm410_vm0, %v3394_v59 }
  0xd2   :  { %16455 = vmatmul.mubr.msk.f32.gmra.mxu0 %vm229_vm1, %v18943_v12  ;;  %16541 = vmatmul.mubr.msk.f32.gmra.mxu1 %vm229_vm1, %v18298_v18  ;;  %v18980_v18 = vld [vmem:[%s24375_s0 + $0x5a] sm:$0xff] }
  0xd3   :  { %16457 = vmatprep.mubr.msk.f32.mxu0 %vm229_vm1, %v18948_v63  ;;  %16543 = vmatprep.mubr.msk.f32.mxu1 %vm229_vm1, %v18306_v20  ;;  %v18985_v20 = vld [vmem:[%s24375_s0 + $0x62] sm:$0xff] }
  0xd6   :  { %16458 = vmatmul.mubr.msk.f32.gmra.mxu0 %vm229_vm1, %v18962_v14  ;;  %16544 = vmatmul.mubr.msk.f32.gmra.mxu1 %vm229_vm1, %v18320_v22  ;;  %v18998_v22 = vld [vmem:[%s24375_s0 + $0x6a] sm:$0xff] }
  0xd7   :  { %16460 = vmatprep.mubr.msk.f32.mxu0 %vm229_vm1, %v18967_v16  ;;  %16546 = vmatprep.mubr.msk.f32.mxu1 %vm229_vm1, %v18328_v24  ;;  %v19003_v24 = vld [vmem:[%s24375_s0 + $0x72] sm:$0xff] }
  0xda   :  { %16461 = vmatmul.mubr.msk.f32.gmra.mxu0 %vm229_vm1, %v18980_v18  ;;  %16547 = vmatmul.mubr.msk.f32.gmra.mxu1 %vm229_vm1, %v18342_v26  ;;  %v19016_v26 = vld [vmem:[%s24375_s0 + $0x7a] sm:$0xff] }
  0xdb   :  { %16463 = vmatprep.mubr.msk.f32.mxu0 %vm229_vm1, %v18985_v20  ;;  %16549 = vmatprep.mubr.msk.f32.mxu1 %vm229_vm1, %v18350_v28  ;;  %v19021_v28 = vld [vmem:[%s24375_s0 + $0x82] sm:$0xff] }
  0xde   :  { %16464 = vmatmul.mubr.msk.f32.gmra.mxu0 %vm229_vm1, %v18998_v22  ;;  %16550 = vmatmul.mubr.msk.f32.gmra.mxu1 %vm229_vm1, %v18364_v30  ;;  %v19034_v30 = vld [vmem:[%s24375_s0 + $0x8a] sm:$0xff] }
  0xdf   :  { %16466 = vmatprep.mubr.msk.f32.mxu0 %vm229_vm1, %v19003_v24  ;;  %16552 = vmatprep.mubr.msk.f32.mxu1 %vm229_vm1, %v18372_v32  ;;  %v19039_v32 = vld [vmem:[%s24375_s0 + $0x92] sm:$0xff] }
  0xe2   :  { %16467 = vmatmul.mubr.msk.f32.gmra.mxu0 %vm229_vm1, %v19016_v26  ;;  %16553 = vmatmul.mubr.msk.f32.gmra.mxu1 %vm229_vm1, %v18386_v34  ;;  %v19052_v34 = vld [vmem:[%s24375_s0 + $0x9a] sm:$0xff] }
  0xe3   :  { %16469 = vmatprep.mubr.msk.f32.mxu0 %vm229_vm1, %v19021_v28  ;;  %16555 = vmatprep.mubr.msk.f32.mxu1 %vm229_vm1, %v18394_v36  ;;  %v19057_v36 = vld [vmem:[%s24375_s0 + $0xa2] sm:$0xff] }
  0xe6   :  { %16470 = vmatmul.mubr.msk.f32.gmra.mxu0 %vm229_vm1, %v19034_v30  ;;  %16556 = vmatmul.mubr.msk.f32.gmra.mxu1 %vm229_vm1, %v18408_v38  ;;  %v19070_v38 = vld [vmem:[%s24375_s0 + $0xaa] sm:$0xff] }
  0xe7   :  { %16472 = vmatprep.mubr.msk.f32.mxu0 %vm229_vm1, %v19039_v32  ;;  %16558 = vmatprep.mubr.msk.f32.mxu1 %vm229_vm1, %v18416_v40  ;;  %v19075_v40 = vld [vmem:[%s24375_s0 + $0xb2] sm:$0xff] }
  0xea   :  { %16473 = vmatmul.mubr.msk.f32.gmra.mxu0 %vm229_vm1, %v19052_v34  ;;  %16559 = vmatmul.mubr.msk.f32.gmra.mxu1 %vm229_vm1, %v18430_v42  ;;  %v19088_v42 = vld [vmem:[%s24375_s0 + $0xba] sm:$0xff] }
  0xeb   :  { %16475 = vmatprep.mubr.msk.f32.mxu0 %vm229_vm1, %v19057_v36  ;;  %16561 = vmatprep.mubr.msk.f32.mxu1 %vm229_vm1, %v18438_v44  ;;  %v19093_v44 = vld [vmem:[%s24375_s0 + $0xc2] sm:$0xff] }
  0xee   :  { %16476 = vmatmul.mubr.msk.f32.gmra.mxu0 %vm229_vm1, %v19070_v38  ;;  %16562 = vmatmul.mubr.msk.f32.gmra.mxu1 %vm229_vm1, %v18452_v47  ;;  %v19106_v47 = vld [vmem:[%s24375_s0 + $0xca] sm:$0xff] }
  0xef   :  { %16478 = vmatprep.mubr.msk.f32.mxu0 %vm229_vm1, %v19075_v40  ;;  %16564 = vmatprep.mubr.msk.f32.mxu1 %vm229_vm1, %v18462_v50  ;;  %v19111_v50 = vld [vmem:[%s24375_s0 + $0xd2] sm:$0xff] }
  0xf2   :  { %16479 = vmatmul.mubr.msk.f32.gmra.mxu0 %vm229_vm1, %v19088_v42  ;;  %16565 = vmatmul.mubr.msk.f32.gmra.mxu1 %vm229_vm1, %v18480_v52  ;;  %v19124_v52 = vld [vmem:[%s24375_s0 + $0xda] sm:$0xff] }
  0xf3   :  { %16481 = vmatprep.mubr.msk.f32.mxu0 %vm229_vm1, %v19093_v44  ;;  %16567 = vmatprep.mubr.msk.f32.mxu1 %vm229_vm1, %v18488_v54  ;;  %v19129_v54 = vld [vmem:[%s24375_s0 + $0xe2] sm:$0xff] }
  0xf6   :  { %16482 = vmatmul.mubr.msk.f32.gmra.mxu0 %vm229_vm1, %v19106_v47  ;;  %16568 = vmatmul.mubr.msk.f32.gmra.mxu1 %vm229_vm1, %v18502_v56  ;;  %v19142_v56 = vld [vmem:[%s24375_s0 + $0xea] sm:$0xff] }
  0xf7   :  { %16484 = vmatprep.mubr.msk.f32.mxu0 %vm229_vm1, %v19111_v50  ;;  %16570 = vmatprep.mubr.msk.f32.mxu1 %vm229_vm1, %v18510_v58  ;;  %v19147_v58 = vld [vmem:[%s24375_s0 + $0xf2] sm:$0xff] }
  0xfa   :  { %16485 = vmatmul.mubr.msk.f32.gmra.mxu0 %vm229_vm1, %v19124_v52  ;;  %16571 = vmatmul.mubr.msk.f32.gmra.mxu1 %vm229_vm1, %v18524_v60  ;;  %v19160_v60 = vld [vmem:[%s24375_s0 + $0xfa] sm:$0xff] }
  0xfb   :  { %16487 = vmatprep.mubr.msk.f32.mxu0 %vm229_vm1, %v19129_v54  ;;  %16573 = vmatprep.mubr.msk.f32.mxu1 %vm229_vm1, %v18532_v62  ;;  %v19165_v62 = vld [vmem:[%s24375_s0 + $0x102] sm:$0xff] }
  0xfe   :  { %16488 = vmatmul.mubr.msk.f32.gmra.mxu0 %vm229_vm1, %v19142_v56  ;;  %16574 = vmatmul.mubr.msk.f32.gmra.mxu1 %vm229_vm1, %v18546_v0  ;;  %v19178_v0 = vld [vmem:[%s24375_s0 + $0x10a] sm:$0xff] }
  0xff   :  { %16490 = vmatprep.mubr.msk.f32.mxu0 %vm229_vm1, %v19147_v58  ;;  %16576 = vmatprep.mubr.msk.f32.mxu1 %vm229_vm1, %v18554_v2  ;;  %v19183_v2 = vld [vmem:[%s24375_s0 + $0x112] sm:$0xff] }
 0x102   :  { %16491 = vmatmul.mubr.msk.f32.gmra.mxu0 %vm229_vm1, %v19160_v60  ;;  %16577 = vmatmul.mubr.msk.f32.gmra.mxu1 %vm229_vm1, %v18568_v4  ;;  %v19196_v4 = vld [vmem:[%s24375_s0 + $0x11a] sm:$0xff] }
 0x103   :  { %16493 = vmatprep.mubr.msk.f32.mxu0 %vm229_vm1, %v19165_v62  ;;  %16579 = vmatprep.mubr.msk.f32.mxu1 %vm229_vm1, %v18576_v6  ;;  %v19201_v6 = vld [vmem:[%s24375_s0 + $0x122] sm:$0xff] }
 0x104   :  { %24467 = vst [vmem:[#allocation23_spill] sm:$0xff] %v19201_v6 }
 0x106   :  { %16494 = vmatmul.mubr.msk.f32.gmra.mxu0 %vm229_vm1, %v19178_v0  ;;  %16580 = vmatmul.mubr.msk.f32.gmra.mxu1 %vm229_vm1, %v18590_v8  ;;  %v19214_v8 = vld [vmem:[%s24375_s0 + $0x12a] sm:$0xff] }
 0x107   :  { %16496 = vmatprep.mubr.msk.f32.mxu0 %vm229_vm1, %v19183_v2  ;;  %16582 = vmatprep.mubr.msk.f32.mxu1 %vm229_vm1, %v18598_v10  ;;  %24468 = vst [vmem:[#allocation24_spill] sm:$0xff] %v19214_v8  ;;  %v19219_v10 = vld [vmem:[%s24375_s0 + $0x132] sm:$0xff] }
 0x108   :  { %24469 = vst [vmem:[#allocation25_spill] sm:$0xff] %v19219_v10 }
 0x10a   :  { %16497 = vmatmul.mubr.msk.f32.gmra.mxu0 %vm229_vm1, %v19196_v4  ;;  %16583 = vmatmul.mubr.msk.f32.gmra.mxu1 %vm229_vm1, %v18612_v13  ;;  %v19232_v13 = vld [vmem:[%s24375_s0 + $0x13a] sm:$0xff] }
 0x10b   :  { %16499 = vmatprep.mubr.msk.f32.mxu0 %vm229_vm1, %v19201_v6  ;;  %16585 = vmatprep.mubr.msk.f32.mxu1 %vm229_vm1, %v18620_v17  ;;  %24470 = vst [vmem:[#allocation26_spill] sm:$0xff] %v19232_v13  ;;  %v19237_v17 = vld [vmem:[%s24375_s0 + $0x142] sm:$0xff] }
 0x10c   :  { %24471 = vst [vmem:[#allocation27_spill] sm:$0xff] %v19237_v17 }
 0x10e   :  { %16500 = vmatmul.mubr.msk.f32.gmra.mxu0 %vm229_vm1, %v19214_v8  ;;  %16586 = vmatmul.mubr.msk.f32.gmra.mxu1 %vm229_vm1, %v18634_v21  ;;  %v19252_v21 = vld [vmem:[%s24375_s0 + $0x14a] sm:$0xff] }
 0x10f   :  { %16502 = vmatprep.mubr.msk.f32.mxu0 %vm229_vm1, %v19219_v10  ;;  %16588 = vmatprep.mubr.msk.f32.mxu1 %vm229_vm1, %v18642_v25  ;;  %24473 = vst [vmem:[#allocation29_spill] sm:$0xff] %v19252_v21 }
 0x112   :  { %v16263_v59 = vpop.f32.mrf.mxu0  ;;  %v19239_v8 = vpop.f32.mrf.mxu1  ;;  %16503 = vmatmul.mubr.msk.f32.gmra.mxu0 %vm229_vm1, %v19232_v13  ;;  %16589 = vmatmul.mubr.msk.f32.gmra.mxu1 %vm229_vm1, %v18656_v29 }
 0x113   :  { %24472 = vst [vmem:[#allocation28_spill] sm:$0xff] %v19239_v8  ;;  %16505 = vmatprep.mubr.msk.f32.mxu0 %vm229_vm1, %v19237_v17  ;;  %16591 = vmatprep.mubr.msk.f32.mxu1 %vm229_vm1, %v18664_v33  ;;  %v19259_v8 = vld [vmem:[%s24375_s0 + $0x152] sm:$0xff] }
 0x114   :  { %v480_v25 = vpop.f32.mrf.mxu0  ;;  %v19254_v10 = vpop.f32.mrf.mxu1  ;;  %24475 = vst [vmem:[#allocation31_spill] sm:$0xff] %v19259_v8 }
 0x115   :  { %24474 = vst [vmem:[#allocation30_spill] sm:$0xff] %v19254_v10  ;;  %v19274_v10 = vld [vmem:[%s24375_s0 + $0x15a] sm:$0xff] }
 0x116   :  { %v16266_v29 = vpop.f32.mrf.mxu0  ;;  %v16355_v13 = vpop.f32.mrf.mxu1  ;;  %16506 = vmatmul.mubr.msk.f32.gmra.mxu0 %vm229_vm1, %v19252_v21  ;;  %16592 = vmatmul.mubr.msk.f32.gmra.mxu1 %vm229_vm1, %v18678_v37  ;;  %24476 = vst [vmem:[#allocation32_spill] sm:$0xff] %v19274_v10  ;;  %v19279_v21 = vld [vmem:[%s24375_s0 + $0x162] sm:$0xff] }
 0x117   :  { %v19265_v33 = vadd.f32 %v16355_v13, %v16263_v59  ;;  %16508 = vmatprep.mubr.msk.f32.mxu0 %vm229_vm1, %v19259_v8  ;;  %16594 = vmatprep.mubr.msk.f32.mxu1 %vm229_vm1, %v18686_v41  ;;  %24477 = vst [vmem:[#allocation33_spill] sm:$0xff] %v19279_v21 }
 0x118   :  { %v490_v17 = vpop.f32.mrf.mxu0  ;;  %v1028_v6 = vpop.f32.mrf.mxu1 }
 0x119   :  { %v19281_v37 = vadd.f32 %v1028_v6, %v480_v25  ;;  %v19296_v6 = vld [vmem:[%s24375_s0 + $0x16a] sm:$0xff] }
 0x11a   :  { %v16269_v13 = vpop.f32.mrf.mxu0  ;;  %v16358_v59 = vpop.f32.mrf.mxu1  ;;  %16509 = vmatmul.mubr.msk.f32.gmra.mxu0 %vm229_vm1, %v19274_v10  ;;  %16595 = vmatmul.mubr.msk.f32.gmra.mxu1 %vm229_vm1, %v18700_v45  ;;  %24478 = vst [vmem:[#allocation34_spill] sm:$0xff] %v19296_v6  ;;  %v19301_v10 = vld [vmem:[%s24375_s0 + $0x172] sm:$0xff] }
 0x11b   :  { %v19287_v41 = vadd.f32 %v16358_v59, %v16266_v29  ;;  %16511 = vmatprep.mubr.msk.f32.mxu0 %vm229_vm1, %v19279_v21  ;;  %16597 = vmatprep.mubr.msk.f32.mxu1 %vm229_vm1, %v18708_v49  ;;  %24479 = vst [vmem:[#allocation35_spill] sm:$0xff] %v19301_v10 }
 0x11c   :  { %v500_v25 = vpop.f32.mrf.mxu0  ;;  %v1038_v8 = vpop.f32.mrf.mxu1 }
 0x11d   :  { %v19303_v45 = vadd.f32 %v1038_v8, %v490_v17  ;;  %v19318_v8 = vld [vmem:[%s24375_s0 + $0x17a] sm:$0xff] }
 0x11e   :  { %v16272_v29 = vpop.f32.mrf.mxu0  ;;  %v16361_v59 = vpop.f32.mrf.mxu1  ;;  %16512 = vmatmul.mubr.msk.f32.gmra.mxu0 %vm229_vm1, %v19296_v6  ;;  %16598 = vmatmul.mubr.msk.f32.gmra.mxu1 %vm229_vm1, %v18722_v53  ;;  %24480 = vst [vmem:[#allocation36_spill] sm:$0xff] %v19318_v8  ;;  %v19323_v6 = vld [vmem:[%s24375_s0 + $0x182] sm:$0xff] }
 0x11f   :  { %v19309_v49 = vadd.f32 %v16361_v59, %v16269_v13  ;;  %16514 = vmatprep.mubr.msk.f32.mxu0 %vm229_vm1, %v19301_v10  ;;  %16600 = vmatprep.mubr.msk.f32.mxu1 %vm229_vm1, %v18730_v57  ;;  %24481 = vst [vmem:[#allocation37_spill] sm:$0xff] %v19323_v6 }
 0x120   :  { %v510_v17 = vpop.f32.mrf.mxu0  ;;  %v1048_v21 = vpop.f32.mrf.mxu1 }
 0x121   :  { %v19325_v53 = vadd.f32 %v1048_v21, %v500_v25  ;;  %v19340_v21 = vld [vmem:[%s24375_s0 + $0x18a] sm:$0xff] }
 0x122   :  { %v16275_v13 = vpop.f32.mrf.mxu0  ;;  %v16364_v59 = vpop.f32.mrf.mxu1  ;;  %16515 = vmatmul.mubr.msk.f32.gmra.mxu0 %vm229_vm1, %v19318_v8  ;;  %16601 = vmatmul.mubr.msk.f32.gmra.mxu1 %vm229_vm1, %v18744_v61  ;;  %24482 = vst [vmem:[#allocation38_spill] sm:$0xff] %v19340_v21  ;;  %v19345_v8 = vld [vmem:[%s24375_s0 + $0x192] sm:$0xff] }
 0x123   :  { %v19331_v57 = vadd.f32 %v16364_v59, %v16272_v29  ;;  %16517 = vmatprep.mubr.msk.f32.mxu0 %vm229_vm1, %v19323_v6  ;;  %16603 = vmatprep.mubr.msk.f32.mxu1 %vm229_vm1, %v18752_v1  ;;  %24483 = vst [vmem:[#allocation39_spill] sm:$0xff] %v19345_v8 }
 0x124   :  { %v520_v25 = vpop.f32.mrf.mxu0  ;;  %v1058_v10 = vpop.f32.mrf.mxu1 }
 0x125   :  { %v19347_v61 = vadd.f32 %v1058_v10, %v510_v17  ;;  %v19362_v10 = vld [vmem:[%s24375_s0 + $0x19a] sm:$0xff] }
 0x126   :  { %v16278_v29 = vpop.f32.mrf.mxu0  ;;  %v16367_v59 = vpop.f32.mrf.mxu1  ;;  %16518 = vmatmul.mubr.msk.f32.gmra.mxu0 %vm229_vm1, %v19340_v21  ;;  %16604 = vmatmul.mubr.msk.f32.gmra.mxu1 %vm229_vm1, %v18766_v5  ;;  %24484 = vst [vmem:[#allocation40_spill] sm:$0xff] %v19362_v10  ;;  %v19367_v21 = vld [vmem:[%s24375_s0 + $0x1a2] sm:$0xff] }
 0x127   :  { %v19353_v1 = vadd.f32 %v16367_v59, %v16275_v13  ;;  %16520 = vmatprep.mubr.msk.f32.mxu0 %vm229_vm1, %v19345_v8  ;;  %16606 = vmatprep.mubr.msk.f32.mxu1 %vm229_vm1, %v18774_v9  ;;  %24485 = vst [vmem:[#allocation41_spill] sm:$0xff] %v19367_v21 }
 0x128   :  { %v530_v17 = vpop.f32.mrf.mxu0  ;;  %v1068_v6 = vpop.f32.mrf.mxu1 }
 0x129   :  { %v19369_v5 = vadd.f32 %v1068_v6, %v520_v25  ;;  %v19384_v6 = vld [vmem:[%s24375_s0 + $0x1aa] sm:$0xff] }
 0x12a   :  { %v16281_v13 = vpop.f32.mrf.mxu0  ;;  %v16370_v59 = vpop.f32.mrf.mxu1  ;;  %16521 = vmatmul.mubr.msk.f32.gmra.mxu0 %vm229_vm1, %v19362_v10  ;;  %16607 = vmatmul.mubr.msk.f32.gmra.mxu1 %vm229_vm1, %v18788_v15  ;;  %24486 = vst [vmem:[#allocation42_spill] sm:$0xff] %v19384_v6  ;;  %v19389_v10 = vld [vmem:[%s24375_s0 + $0x1b2] sm:$0xff] }
 0x12b   :  { %v19375_v9 = vadd.f32 %v16370_v59, %v16278_v29  ;;  %16523 = vmatprep.mubr.msk.f32.mxu0 %vm229_vm1, %v19367_v21  ;;  %16609 = vmatprep.mubr.msk.f32.mxu1 %vm229_vm1, %v18796_v23  ;;  %24487 = vst [vmem:[#allocation43_spill] sm:$0xff] %v19389_v10 }
 0x12c   :  { %v540_v25 = vpop.f32.mrf.mxu0  ;;  %v1078_v8 = vpop.f32.mrf.mxu1 }
 0x12d   :  { %v19391_v15 = vadd.f32 %v1078_v8, %v530_v17  ;;  %v19406_v8 = vld [vmem:[%s24375_s0 + $0x1ba] sm:$0xff] }
 0x12e   :  { %v16284_v29 = vpop.f32.mrf.mxu0  ;;  %v16373_v59 = vpop.f32.mrf.mxu1  ;;  %16524 = vmatmul.mubr.msk.f32.gmra.mxu0 %vm229_vm1, %v19384_v6  ;;  %16610 = vmatmul.mubr.msk.f32.gmra.mxu1 %vm229_vm1, %v18810_v31  ;;  %24488 = vst [vmem:[#allocation44_spill] sm:$0xff] %v19406_v8  ;;  %v19411_v6 = vld [vmem:[%s24375_s0 + $0x1c2] sm:$0xff] }
 0x12f   :  { %v19397_v23 = vadd.f32 %v16373_v59, %v16281_v13  ;;  %16526 = vmatprep.mubr.msk.f32.mxu0 %vm229_vm1, %v19389_v10  ;;  %16612 = vmatprep.mubr.msk.f32.mxu1 %vm229_vm1, %v18818_v39  ;;  %24489 = vst [vmem:[#allocation45_spill] sm:$0xff] %v19411_v6 }
 0x130   :  { %v550_v17 = vpop.f32.mrf.mxu0  ;;  %v1088_v21 = vpop.f32.mrf.mxu1 }
 0x131   :  { %v19413_v31 = vadd.f32 %v1088_v21, %v540_v25  ;;  %v19428_v21 = vld [vmem:[%s24375_s0 + $0x1ca] sm:$0xff] }
 0x132   :  { %v16287_v13 = vpop.f32.mrf.mxu0  ;;  %v16376_v59 = vpop.f32.mrf.mxu1  ;;  %16527 = vmatmul.mubr.msk.f32.gmra.mxu0 %vm229_vm1, %v19406_v8  ;;  %16613 = vmatmul.mubr.msk.f32.gmra.mxu1 %vm229_vm1, %v18832_v46  ;;  %24490 = vst [vmem:[#allocation46_spill] sm:$0xff] %v19428_v21  ;;  %v19433_v8 = vld [vmem:[%s24375_s0 + $0x1d2] sm:$0xff] }
 0x133   :  { %v19419_v39 = vadd.f32 %v16376_v59, %v16284_v29  ;;  %16529 = vmatprep.mubr.msk.f32.mxu0 %vm229_vm1, %v19411_v6  ;;  %16615 = vmatprep.mubr.msk.f32.mxu1 %vm229_vm1, %v18840_v55  ;;  %24491 = vst [vmem:[#allocation47_spill] sm:$0xff] %v19433_v8  ;;  %v19437_v29 = vld [vmem:[#allocation5 + $0x15] sm:$0x7] }
 0x134   :  { %v560_v25 = vpop.f32.mrf.mxu0  ;;  %v1098_v10 = vpop.f32.mrf.mxu1  ;;  %16903 = vmatprep.subr.msk.mxu1 %vm410_vm0, %v19437_v29 }
 0x135   :  { %v19435_v46 = vadd.f32 %v1098_v10, %v550_v17  ;;  %v1386_v10 = vld [vmem:[%s24375_s0 + $0x1da] sm:$0x3f] }
 0x136   :  { %v16290_v59 = vpop.f32.mrf.mxu0  ;;  %v16379_v6 = vpop.f32.mrf.mxu1  ;;  %16530 = vmatmul.mubr.msk.f32.gmra.mxu0 %vm229_vm1, %v19428_v21  ;;  %16616 = vmatmul.mubr.msk.f32.gmra.mxu1 %vm229_vm1, %v18854_v3  ;;  %v2665_v21 = vld [vmem:[%s24375_s0 + $0x11] sm:$0xff] }
 0x137   :  { %24492 = vst [vmem:[#allocation48_spill] sm:$0xff] %v19435_v46  ;;  %v19443_v55 = vadd.f32 %v16379_v6, %v16287_v13  ;;  %16532 = vmatprep.mubr.msk.f32.mxu0 %vm229_vm1, %v19433_v8  ;;  %16618 = vmatprep.mubr.msk.f32.mxu1 %vm229_vm1, %v18859_v7  ;;  %v2053_v8 = vld [vmem:[%s24375_s0 + $0x1d8] sm:$0xff] }
 0x138   :  { %v570_v17 = vpop.f32.mrf.mxu0  ;;  %v1108_v46 = vpop.f32.mrf.mxu1 }
 0x139   :  { %v19457_v3 = vadd.f32 %v1108_v46, %v560_v25  ;;  %v2666_v25 = vld [vmem:[%s24375_s0 + $0x19] sm:$0xff] }
 0x13a   :  { %v16293_v6 = vpop.f32.mrf.mxu0  ;;  %v16382_v13 = vpop.f32.mrf.mxu1  ;;  %16533 = vmatmul.mubr.msk.f32.gmra.mxu0 %vm229_vm1, %v1386_v10  ;;  %16619 = vmatmul.mubr.msk.f32.gmra.mxu1 %vm229_vm1, %v18874_v19  ;;  %v2054_v19 = vld [vmem:[%s24375_s0 + $0x1e0] sm:$0xff] }
 0x13b   :  { %24493 = vst [vmem:[#allocation49_spill] sm:$0xff] %v19457_v3  ;;  %v19462_v7 = vadd.f32 %v16382_v13, %v16290_v59  ;;  %16621 = vmatprep.mubr.msk.f32.mxu1 %vm229_vm1, %v18882_v35  ;;  %16629 = vmatprep.mubr.msk.f32.mxu0 %vm229_vm1, %v2665_v21  ;;  %v19481_v35 = vld [vmem:[%s24375_s0 + $0x21] sm:$0xff]  ;;  %v19483_v21 = vld [vmem:[#allocation5 + $0x18] sm:$0x7] }
 0x13c   :  { %v580_v46 = vpop.f32.mrf.mxu0  ;;  %v1118_v10 = vpop.f32.mrf.mxu1  ;;  %24496 = vst [vmem:[#allocation52_spill] sm:$0xff] %v19481_v35  ;;  %24497 = vst [vmem:[#allocation53_spill] sm:$0xff] %v19483_v21 }
 0x13d   :  { %24494 = vst [vmem:[#allocation50_spill] sm:$0xff] %v19462_v7  ;;  %v19476_v59 = vadd.f32 %v1118_v10, %v570_v17  ;;  %v2055_v17 = vld [vmem:[%s24375_s0 + $0x1e8] sm:$0x3f] }
 0x13e   :  { %v16296_v13 = vpop.f32.mrf.mxu0  ;;  %v16385_v7 = vpop.f32.mrf.mxu1  ;;  %16622 = vmatmul.mubr.msk.f32.gmra.mxu1 %vm229_vm1, %v2053_v8  ;;  %16630 = vmatmul.mubr.msk.f32.vlgmr.msra.gmra.mxu0 %vm229_vm1, %v2666_v25  ;;  %v19498_v10 = vld [vmem:[%s24375_s0 + $0x29] sm:$0xff] }
 0x13f   :  { %24495 = vst [vmem:[#allocation51_spill] sm:$0xff] %v19476_v59  ;;  %v19487_v3 = vadd.f32 %v16385_v7, %v16293_v6  ;;  %16812 = vmatpush3.msk.msra.mxu0 %vm410_vm0, %v18889_v51  ;;  %16624 = vmatprep.mubr.msk.f32.mxu1 %vm229_vm1, %v2054_v19  ;;  %24498 = vst [vmem:[#allocation54_spill] sm:$0xff] %v19498_v10  ;;  %v19505_v51 = vld [vmem:[%s24375_s0 + $0x31] sm:$0xff] }
 0x140   :  { %v590_v59 = vpop.f32.mrf.mxu0  ;;  %v1128_v8 = vpop.f32.mrf.mxu1  ;;  %16632 = vmatprep.mubr.msk.f32.mxu0 %vm229_vm1, %v19481_v35  ;;  %24499 = vst [vmem:[#allocation55_spill] sm:$0xff] %v19505_v51  ;;  %16995 = vmatprep.subr.msk.mxu0 %vm410_vm0, %v19483_v21  ;;  %v24500_v35 = vld [vmem:[#allocation22_spill] sm:$0xff] }
 0x141   :  { %v19509_v6 = vadd.f32 %v1128_v8, %v580_v46  ;;  %v19523_v46 = vld [vmem:[%s24375_s0 + $0x39] sm:$0xff] }
 0x142   :  { %v16299_v7 = vpop.f32.mrf.mxu0  ;;  %v16388_v25 = vpop.f32.mrf.mxu1  ;;  %16625 = vmatmul.mubr.msk.f32.gmra.mxu1 %vm229_vm1, %v2055_v17  ;;  %16633 = vmatmul.mubr.msk.f32.gmra.mxu0 %vm229_vm1, %v19498_v10  ;;  %24501 = vst [vmem:[#allocation22_spill] sm:$0xff] %v19523_v46  ;;  %v19528_v17 = vld [vmem:[%s24375_s0 + $0x41] sm:$0xff] }
 0x143   :  { %v19514_v19 = vadd.f32 %v16388_v25, %v16296_v13  ;;  %16635 = vmatprep.mubr.msk.f32.mxu0 %vm229_vm1, %v19505_v51  ;;  %16721 = vmatprep.mubr.msk.f32.mxu1 %vm229_vm1, %v24500_v35 }
 0x144   :  { %v600_v8 = vpop.f32.mrf.mxu0  ;;  %v1138_v21 = vpop.f32.mrf.mxu1 }
 0x145   :  { %v19530_v13 = vadd.f32 %v1138_v21, %v590_v59  ;;  %v19545_v59 = vld [vmem:[%s24375_s0 + $0x49] sm:$0xff] }
 0x146   :  { %v16302_v25 = vpop.f32.mrf.mxu0  ;;  %v16391_v10 = vpop.f32.mrf.mxu1  ;;  %16636 = vmatmul.mubr.msk.f32.gmra.mxu0 %vm229_vm1, %v19523_v46  ;;  %16722 = vmatmul.mubr.msk.f32.vlgmr.msra.gmra.mxu1 %vm229_vm1, %v18904_v11  ;;  %24502 = vst [vmem:[#allocation56_spill] sm:$0xff] %v19545_v59  ;;  %v19550_v46 = vld [vmem:[%s24375_s0 + $0x51] sm:$0xff] }
 0x147   :  { %v19536_v35 = vadd.f32 %v16391_v10, %v16299_v7  ;;  %16638 = vmatprep.mubr.msk.f32.mxu0 %vm229_vm1, %v19528_v17  ;;  %16724 = vmatprep.mubr.msk.f32.mxu1 %vm229_vm1, %v18911_v27  ;;  %24503 = vst [vmem:[#allocation57_spill] sm:$0xff] %v19550_v46 }
 0x148   :  { %v610_v21 = vpop.f32.mrf.mxu0  ;;  %v1148_v51 = vpop.f32.mrf.mxu1  ;;  %16904 = vmatpush3.msk.msra.mxu1 %vm410_vm0, %v19437_v29  ;;  %v19569_v29 = vld [vmem:[%s24375_s0 + $0x59] sm:$0xff] }
 0x149   :  { %v19554_v11 = vadd.f32 %v1148_v51, %v600_v8  ;;  %24504 = vst [vmem:[#allocation58_spill] sm:$0xff] %v19569_v29 }
 0x14a   :  { %v16305_v10 = vpop.f32.mrf.mxu0  ;;  %v16394_v7 = vpop.f32.mrf.mxu1  ;;  %16639 = vmatmul.mubr.msk.f32.gmra.mxu0 %vm229_vm1, %v19545_v59  ;;  %16725 = vmatmul.mubr.msk.f32.gmra.mxu1 %vm229_vm1, %v18925_v48  ;;  %v19574_v59 = vld [vmem:[%s24375_s0 + $0x61] sm:$0xff] }
 0x14b   :  { %v19560_v27 = vadd.f32 %v16394_v7, %v16302_v25  ;;  %16641 = vmatprep.mubr.msk.f32.mxu0 %vm229_vm1, %v19550_v46  ;;  %16727 = vmatprep.mubr.msk.f32.mxu1 %vm229_vm1, %v18930_v43  ;;  %24505 = vst [vmem:[#allocation59_spill] sm:$0xff] %v19574_v59 }
 0x14c   :  { %v620_v51 = vpop.f32.mrf.mxu0  ;;  %v1158_v8 = vpop.f32.mrf.mxu1 }
 0x14d   :  { %v19576_v48 = vadd.f32 %v1158_v8, %v610_v21  ;;  %v19591_v21 = vld [vmem:[%s24375_s0 + $0x69] sm:$0xff] }
 0x14e   :  { %v16308_v25 = vpop.f32.mrf.mxu0  ;;  %v16397_v7 = vpop.f32.mrf.mxu1  ;;  %16642 = vmatmul.mubr.msk.f32.gmra.mxu0 %vm229_vm1, %v19569_v29  ;;  %16728 = vmatmul.mubr.msk.f32.gmra.mxu1 %vm229_vm1, %v18943_v12  ;;  %24506 = vst [vmem:[#allocation60_spill] sm:$0xff] %v19591_v21  ;;  %v19596_v29 = vld [vmem:[%s24375_s0 + $0x71] sm:$0xff] }
 0x14f   :  { %v19582_v43 = vadd.f32 %v16397_v7, %v16305_v10  ;;  %16644 = vmatprep.mubr.msk.f32.mxu0 %vm229_vm1, %v19574_v59  ;;  %16730 = vmatprep.mubr.msk.f32.mxu1 %vm229_vm1, %v18948_v63  ;;  %24507 = vst [vmem:[#allocation61_spill] sm:$0xff] %v19596_v29 }
 0x150   :  { %v630_v8 = vpop.f32.mrf.mxu0  ;;  %v1168_v46 = vpop.f32.mrf.mxu1 }
 0x151   :  { %v19598_v12 = vadd.f32 %v1168_v46, %v620_v51  ;;  %v19613_v46 = vld [vmem:[%s24375_s0 + $0x79] sm:$0xff] }
 0x152   :  { %v16311_v10 = vpop.f32.mrf.mxu0  ;;  %v16400_v7 = vpop.f32.mrf.mxu1  ;;  %16645 = vmatmul.mubr.msk.f32.gmra.mxu0 %vm229_vm1, %v19591_v21  ;;  %16731 = vmatmul.mubr.msk.f32.gmra.mxu1 %vm229_vm1, %v18962_v14  ;;  %24508 = vst [vmem:[#allocation62_spill] sm:$0xff] %v19613_v46  ;;  %v19618_v21 = vld [vmem:[%s24375_s0 + $0x81] sm:$0xff] }
 0x153   :  { %v19604_v63 = vadd.f32 %v16400_v7, %v16308_v25  ;;  %16647 = vmatprep.mubr.msk.f32.mxu0 %vm229_vm1, %v19596_v29  ;;  %16733 = vmatprep.mubr.msk.f32.mxu1 %vm229_vm1, %v18967_v16  ;;  %24509 = vst [vmem:[#allocation63_spill] sm:$0xff] %v19618_v21 }
 0x154   :  { %v640_v51 = vpop.f32.mrf.mxu0  ;;  %v1178_v59 = vpop.f32.mrf.mxu1 }
 0x155   :  { %v19620_v14 = vadd.f32 %v1178_v59, %v630_v8  ;;  %v19635_v59 = vld [vmem:[%s24375_s0 + $0x89] sm:$0xff] }
 0x156   :  { %v16314_v25 = vpop.f32.mrf.mxu0  ;;  %v16403_v7 = vpop.f32.mrf.mxu1  ;;  %16648 = vmatmul.mubr.msk.f32.gmra.mxu0 %vm229_vm1, %v19613_v46  ;;  %16734 = vmatmul.mubr.msk.f32.gmra.mxu1 %vm229_vm1, %v18980_v18  ;;  %24510 = vst [vmem:[#allocation64_spill] sm:$0xff] %v19635_v59  ;;  %v19640_v46 = vld [vmem:[%s24375_s0 + $0x91] sm:$0xff] }
 0x157   :  { %v19626_v16 = vadd.f32 %v16403_v7, %v16311_v10  ;;  %16650 = vmatprep.mubr.msk.f32.mxu0 %vm229_vm1, %v19618_v21  ;;  %16736 = vmatprep.mubr.msk.f32.mxu1 %vm229_vm1, %v18985_v20  ;;  %24511 = vst [vmem:[#allocation65_spill] sm:$0xff] %v19640_v46 }
 0x158   :  { %v650_v8 = vpop.f32.mrf.mxu0  ;;  %v1188_v29 = vpop.f32.mrf.mxu1 }
 0x159   :  { %v19642_v18 = vadd.f32 %v1188_v29, %v640_v51  ;;  %v19657_v29 = vld [vmem:[%s24375_s0 + $0x99] sm:$0xff] }
 0x15a   :  { %v16317_v10 = vpop.f32.mrf.mxu0  ;;  %v16406_v7 = vpop.f32.mrf.mxu1  ;;  %16651 = vmatmul.mubr.msk.f32.gmra.mxu0 %vm229_vm1, %v19635_v59  ;;  %16737 = vmatmul.mubr.msk.f32.gmra.mxu1 %vm229_vm1, %v18998_v22  ;;  %24512 = vst [vmem:[#allocation66_spill] sm:$0xff] %v19657_v29  ;;  %v19662_v59 = vld [vmem:[%s24375_s0 + $0xa1] sm:$0xff] }
 0x15b   :  { %v19648_v20 = vadd.f32 %v16406_v7, %v16314_v25  ;;  %16653 = vmatprep.mubr.msk.f32.mxu0 %vm229_vm1, %v19640_v46  ;;  %16739 = vmatprep.mubr.msk.f32.mxu1 %vm229_vm1, %v19003_v24  ;;  %24513 = vst [vmem:[#allocation67_spill] sm:$0xff] %v19662_v59 }
 0x15c   :  { %v660_v51 = vpop.f32.mrf.mxu0  ;;  %v1198_v21 = vpop.f32.mrf.mxu1 }
 0x15d   :  { %v19664_v22 = vadd.f32 %v1198_v21, %v650_v8  ;;  %v19679_v21 = vld [vmem:[%s24375_s0 + $0xa9] sm:$0xff] }
 0x15e   :  { %v16320_v25 = vpop.f32.mrf.mxu0  ;;  %v16409_v7 = vpop.f32.mrf.mxu1  ;;  %16654 = vmatmul.mubr.msk.f32.gmra.mxu0 %vm229_vm1, %v19657_v29  ;;  %16740 = vmatmul.mubr.msk.f32.gmra.mxu1 %vm229_vm1, %v19016_v26  ;;  %24514 = vst [vmem:[#allocation68_spill] sm:$0xff] %v19679_v21  ;;  %v19684_v29 = vld [vmem:[%s24375_s0 + $0xb1] sm:$0xff] }
 0x15f   :  { %v19670_v24 = vadd.f32 %v16409_v7, %v16317_v10  ;;  %16656 = vmatprep.mubr.msk.f32.mxu0 %vm229_vm1, %v19662_v59  ;;  %16742 = vmatprep.mubr.msk.f32.mxu1 %vm229_vm1, %v19021_v28  ;;  %24515 = vst [vmem:[#allocation69_spill] sm:$0xff] %v19684_v29 }
 0x160   :  { %v670_v8 = vpop.f32.mrf.mxu0  ;;  %v1208_v46 = vpop.f32.mrf.mxu1 }
 0x161   :  { %v19686_v26 = vadd.f32 %v1208_v46, %v660_v51  ;;  %v19701_v46 = vld [vmem:[%s24375_s0 + $0xb9] sm:$0xff] }
 0x162   :  { %v16323_v10 = vpop.f32.mrf.mxu0  ;;  %v16412_v7 = vpop.f32.mrf.mxu1  ;;  %16657 = vmatmul.mubr.msk.f32.gmra.mxu0 %vm229_vm1, %v19679_v21  ;;  %16743 = vmatmul.mubr.msk.f32.gmra.mxu1 %vm229_vm1, %v19034_v30  ;;  %24516 = vst [vmem:[#allocation70_spill] sm:$0xff] %v19701_v46  ;;  %v19706_v21 = vld [vmem:[%s24375_s0 + $0xc1] sm:$0xff] }
 0x163   :  { %v19692_v28 = vadd.f32 %v16412_v7, %v16320_v25  ;;  %16659 = vmatprep.mubr.msk.f32.mxu0 %vm229_vm1, %v19684_v29  ;;  %16745 = vmatprep.mubr.msk.f32.mxu1 %vm229_vm1, %v19039_v32  ;;  %24517 = vst [vmem:[#allocation71_spill] sm:$0xff] %v19706_v21 }
 0x164   :  { %v680_v51 = vpop.f32.mrf.mxu0  ;;  %v1218_v59 = vpop.f32.mrf.mxu1 }
 0x165   :  { %v19708_v30 = vadd.f32 %v1218_v59, %v670_v8  ;;  %v19723_v59 = vld [vmem:[%s24375_s0 + $0xc9] sm:$0xff] }
 0x166   :  { %v16326_v25 = vpop.f32.mrf.mxu0  ;;  %v16415_v7 = vpop.f32.mrf.mxu1  ;;  %16660 = vmatmul.mubr.msk.f32.gmra.mxu0 %vm229_vm1, %v19701_v46  ;;  %16746 = vmatmul.mubr.msk.f32.gmra.mxu1 %vm229_vm1, %v19052_v34  ;;  %24518 = vst [vmem:[#allocation72_spill] sm:$0xff] %v19723_v59  ;;  %v19728_v46 = vld [vmem:[%s24375_s0 + $0xd1] sm:$0xff] }
 0x167   :  { %v19714_v32 = vadd.f32 %v16415_v7, %v16323_v10  ;;  %16662 = vmatprep.mubr.msk.f32.mxu0 %vm229_vm1, %v19706_v21  ;;  %16748 = vmatprep.mubr.msk.f32.mxu1 %vm229_vm1, %v19057_v36  ;;  %24519 = vst [vmem:[#allocation73_spill] sm:$0xff] %v19728_v46 }
 0x168   :  { %v690_v8 = vpop.f32.mrf.mxu0  ;;  %v1228_v29 = vpop.f32.mrf.mxu1 }
 0x169   :  { %v19730_v34 = vadd.f32 %v1228_v29, %v680_v51  ;;  %v19745_v29 = vld [vmem:[%s24375_s0 + $0xd9] sm:$0xff] }
 0x16a   :  { %v16329_v10 = vpop.f32.mrf.mxu0  ;;  %v16418_v7 = vpop.f32.mrf.mxu1  ;;  %16663 = vmatmul.mubr.msk.f32.gmra.mxu0 %vm229_vm1, %v19723_v59  ;;  %16749 = vmatmul.mubr.msk.f32.gmra.mxu1 %vm229_vm1, %v19070_v38  ;;  %24520 = vst [vmem:[#allocation74_spill] sm:$0xff] %v19745_v29  ;;  %v19750_v59 = vld [vmem:[%s24375_s0 + $0xe1] sm:$0xff] }
 0x16b   :  { %v19736_v36 = vadd.f32 %v16418_v7, %v16326_v25  ;;  %16665 = vmatprep.mubr.msk.f32.mxu0 %vm229_vm1, %v19728_v46  ;;  %16751 = vmatprep.mubr.msk.f32.mxu1 %vm229_vm1, %v19075_v40  ;;  %24521 = vst [vmem:[#allocation75_spill] sm:$0xff] %v19750_v59 }
 0x16c   :  { %v700_v51 = vpop.f32.mrf.mxu0  ;;  %v1238_v21 = vpop.f32.mrf.mxu1 }
 0x16d   :  { %v19752_v38 = vadd.f32 %v1238_v21, %v690_v8  ;;  %v19767_v21 = vld [vmem:[%s24375_s0 + $0xe9] sm:$0xff] }
 0x16e   :  { %v16332_v25 = vpop.f32.mrf.mxu0  ;;  %v16421_v7 = vpop.f32.mrf.mxu1  ;;  %16666 = vmatmul.mubr.msk.f32.gmra.mxu0 %vm229_vm1, %v19745_v29  ;;  %16752 = vmatmul.mubr.msk.f32.gmra.mxu1 %vm229_vm1, %v19088_v42  ;;  %24522 = vst [vmem:[#allocation76_spill] sm:$0xff] %v19767_v21  ;;  %v19772_v29 = vld [vmem:[%s24375_s0 + $0xf1] sm:$0xff] }
 0x16f   :  { %v19758_v40 = vadd.f32 %v16421_v7, %v16329_v10  ;;  %16668 = vmatprep.mubr.msk.f32.mxu0 %vm229_vm1, %v19750_v59  ;;  %16754 = vmatprep.mubr.msk.f32.mxu1 %vm229_vm1, %v19093_v44  ;;  %24523 = vst [vmem:[#allocation77_spill] sm:$0xff] %v19772_v29 }
 0x170   :  { %v710_v8 = vpop.f32.mrf.mxu0  ;;  %v1248_v46 = vpop.f32.mrf.mxu1 }
 0x171   :  { %v19774_v42 = vadd.f32 %v1248_v46, %v700_v51  ;;  %v19789_v46 = vld [vmem:[%s24375_s0 + $0xf9] sm:$0xff] }
 0x172   :  { %v16335_v10 = vpop.f32.mrf.mxu0  ;;  %v16424_v7 = vpop.f32.mrf.mxu1  ;;  %16669 = vmatmul.mubr.msk.f32.gmra.mxu0 %vm229_vm1, %v19767_v21  ;;  %16755 = vmatmul.mubr.msk.f32.gmra.mxu1 %vm229_vm1, %v19106_v47  ;;  %24524 = vst [vmem:[#allocation78_spill] sm:$0xff] %v19789_v46  ;;  %v19794_v21 = vld [vmem:[%s24375_s0 + $0x101] sm:$0xff] }
 0x173   :  { %v19780_v44 = vadd.f32 %v16424_v7, %v16332_v25  ;;  %16671 = vmatprep.mubr.msk.f32.mxu0 %vm229_vm1, %v19772_v29  ;;  %16757 = vmatprep.mubr.msk.f32.mxu1 %vm229_vm1, %v19111_v50  ;;  %24525 = vst [vmem:[#allocation79_spill] sm:$0xff] %v19794_v21 }
 0x174   :  { %v720_v51 = vpop.f32.mrf.mxu0  ;;  %v1258_v59 = vpop.f32.mrf.mxu1 }
 0x175   :  { %v19796_v47 = vadd.f32 %v1258_v59, %v710_v8  ;;  %v19811_v59 = vld [vmem:[%s24375_s0 + $0x109] sm:$0xff] }
 0x176   :  { %v16338_v25 = vpop.f32.mrf.mxu0  ;;  %v16427_v7 = vpop.f32.mrf.mxu1  ;;  %16672 = vmatmul.mubr.msk.f32.gmra.mxu0 %vm229_vm1, %v19789_v46  ;;  %16758 = vmatmul.mubr.msk.f32.gmra.mxu1 %vm229_vm1, %v19124_v52  ;;  %24526 = vst [vmem:[#allocation80_spill] sm:$0xff] %v19811_v59  ;;  %v19816_v46 = vld [vmem:[%s24375_s0 + $0x111] sm:$0xff] }
 0x177   :  { %v19802_v50 = vadd.f32 %v16427_v7, %v16335_v10  ;;  %16674 = vmatprep.mubr.msk.f32.mxu0 %vm229_vm1, %v19794_v21  ;;  %16760 = vmatprep.mubr.msk.f32.mxu1 %vm229_vm1, %v19129_v54  ;;  %24527 = vst [vmem:[#allocation81_spill] sm:$0xff] %v19816_v46 }
 0x178   :  { %v730_v8 = vpop.f32.mrf.mxu0  ;;  %v1268_v29 = vpop.f32.mrf.mxu1 }
 0x179   :  { %v19818_v52 = vadd.f32 %v1268_v29, %v720_v51  ;;  %v19833_v29 = vld [vmem:[%s24375_s0 + $0x119] sm:$0xff] }
 0x17a   :  { %v16341_v10 = vpop.f32.mrf.mxu0  ;;  %v16430_v7 = vpop.f32.mrf.mxu1  ;;  %16675 = vmatmul.mubr.msk.f32.gmra.mxu0 %vm229_vm1, %v19811_v59  ;;  %16761 = vmatmul.mubr.msk.f32.gmra.mxu1 %vm229_vm1, %v19142_v56  ;;  %24528 = vst [vmem:[#allocation82_spill] sm:$0xff] %v19833_v29  ;;  %v19838_v59 = vld [vmem:[%s24375_s0 + $0x121] sm:$0xff] }
 0x17b   :  { %v19824_v54 = vadd.f32 %v16430_v7, %v16338_v25  ;;  %16677 = vmatprep.mubr.msk.f32.mxu0 %vm229_vm1, %v19816_v46  ;;  %16763 = vmatprep.mubr.msk.f32.mxu1 %vm229_vm1, %v19147_v58  ;;  %24529 = vst [vmem:[#allocation83_spill] sm:$0xff] %v19838_v59 }
 0x17c   :  { %v740_v51 = vpop.f32.mrf.mxu0  ;;  %v1278_v21 = vpop.f32.mrf.mxu1 }
 0x17d   :  { %v19840_v56 = vadd.f32 %v1278_v21, %v730_v8  ;;  %v19855_v21 = vld [vmem:[%s24375_s0 + $0x129] sm:$0xff] }
 0x17e   :  { %v16344_v25 = vpop.f32.mrf.mxu0  ;;  %v16433_v7 = vpop.f32.mrf.mxu1  ;;  %16678 = vmatmul.mubr.msk.f32.gmra.mxu0 %vm229_vm1, %v19833_v29  ;;  %16764 = vmatmul.mubr.msk.f32.gmra.mxu1 %vm229_vm1, %v19160_v60  ;;  %24530 = vst [vmem:[#allocation84_spill] sm:$0xff] %v19855_v21  ;;  %v19860_v29 = vld [vmem:[%s24375_s0 + $0x131] sm:$0xff] }
 0x17f   :  { %v19846_v58 = vadd.f32 %v16433_v7, %v16341_v10  ;;  %16680 = vmatprep.mubr.msk.f32.mxu0 %vm229_vm1, %v19838_v59  ;;  %16766 = vmatprep.mubr.msk.f32.mxu1 %vm229_vm1, %v19165_v62  ;;  %24531 = vst [vmem:[#allocation85_spill] sm:$0xff] %v19860_v29 }
 0x180   :  { %v750_v8 = vpop.f32.mrf.mxu0  ;;  %v1288_v46 = vpop.f32.mrf.mxu1 }
 0x181   :  { %v19862_v60 = vadd.f32 %v1288_v46, %v740_v51  ;;  %v19877_v46 = vld [vmem:[%s24375_s0 + $0x139] sm:$0xff] }
 0x182   :  { %v16347_v10 = vpop.f32.mrf.mxu0  ;;  %v16436_v7 = vpop.f32.mrf.mxu1  ;;  %16681 = vmatmul.mubr.msk.f32.gmra.mxu0 %vm229_vm1, %v19855_v21  ;;  %16767 = vmatmul.mubr.msk.f32.gmra.mxu1 %vm229_vm1, %v19178_v0  ;;  %24533 = vst [vmem:[#allocation87_spill] sm:$0xff] %v19877_v46  ;;  %v19882_v21 = vld [vmem:[%s24375_s0 + $0x141] sm:$0xff] }
 0x183   :  { %v19868_v62 = vadd.f32 %v16436_v7, %v16344_v25  ;;  %16683 = vmatprep.mubr.msk.f32.mxu0 %vm229_vm1, %v19860_v29  ;;  %16769 = vmatprep.mubr.msk.f32.mxu1 %vm229_vm1, %v19183_v2  ;;  %24534 = vst [vmem:[#allocation88_spill] sm:$0xff] %v19882_v21 }
 0x184   :  { %v760_v51 = vpop.f32.mrf.mxu0  ;;  %v1298_v59 = vpop.f32.mrf.mxu1 }
 0x185   :  { %24532 = vst [vmem:[#allocation86_spill] sm:$0xff] %v19868_v62  ;;  %v19884_v0 = vadd.f32 %v1298_v59, %v750_v8  ;;  %v24536_v62 = vld [vmem:[#allocation23_spill] sm:$0xff]  ;;  %v19900_v59 = vld [vmem:[%s24375_s0 + $0x149] sm:$0xff] }
 0x186   :  { %v16439_v25 = vpop.f32.mrf.mxu1  ;;  %v16447_v7 = vpop.f32.mrf.mxu0  ;;  %16684 = vmatmul.mubr.msk.f32.gmra.mxu0 %vm229_vm1, %v19877_v46  ;;  %16770 = vmatmul.mubr.msk.f32.gmra.mxu1 %vm229_vm1, %v19196_v4  ;;  %24537 = vst [vmem:[#allocation23_spill] sm:$0xff] %v19900_v59  ;;  %v19905_v4 = vld [vmem:[%s24375_s0 + $0x151] sm:$0xff] }
 0x187   :  { %v19890_v2 = vadd.f32 %v16439_v25, %v16347_v10  ;;  %v1937_v29 = vadd.f32 %v16447_v7, %v19265_v33  ;;  %16686 = vmatprep.mubr.msk.f32.mxu0 %vm229_vm1, %v19882_v21  ;;  %16772 = vmatprep.mubr.msk.f32.mxu1 %vm229_vm1, %v24536_v62  ;;  %24538 = vst [vmem:[#allocation90_spill] sm:$0xff] %v19905_v4  ;;  %v24540_v62 = vld [vmem:[#allocation24_spill] sm:$0xff] }
 0x188   :  { %v1308_v8 = vpop.f32.mrf.mxu1  ;;  %v1637_v46 = vpop.f32.mrf.mxu0 }
 0x189   :  { %24535 = vst [vmem:[#allocation89_spill] sm:$0xff] %v19890_v2  ;;  %v19907_v10 = vadd.f32 %v1308_v8, %v760_v51  ;;  %v1936_v33 = vadd.f32 %v1637_v46, %v19281_v37  ;;  %v24541_v2 = vld [vmem:[#allocation25_spill] sm:$0xff]  ;;  %v19924_v37 = vld [vmem:[%s24375_s0 + $0x159] sm:$0xff] }
 0x18a   :  { %v19910_v25 = vpop.f32.mrf.mxu1  ;;  %v16450_v7 = vpop.f32.mrf.mxu0  ;;  %16687 = vmatmul.mubr.msk.f32.gmra.mxu0 %vm229_vm1, %v19900_v59  ;;  %16773 = vmatmul.mubr.msk.f32.gmra.mxu1 %vm229_vm1, %v24540_v62  ;;  %24542 = vst [vmem:[#allocation24_spill] sm:$0xff] %v19924_v37  ;;  %v19931_v8 = vld [vmem:[%s24375_s0 + $0x161] sm:$0xff] }
 0x18b   :  { %24539 = vst [vmem:[#allocation91_spill] sm:$0xff] %v19907_v10  ;;  %v1939_v21 = vadd.f32 %v16450_v7, %v19287_v41  ;;  %16689 = vmatprep.mubr.msk.f32.mxu0 %vm229_vm1, %v19905_v4  ;;  %16775 = vmatprep.mubr.msk.f32.mxu1 %vm229_vm1, %v24541_v2  ;;  %24544 = vst [vmem:[#allocation92_spill] sm:$0xff] %v19931_v8  ;;  %v24545_v2 = vld [vmem:[#allocation26_spill] sm:$0xff]  ;;  %v24551_v10 = vld [vmem:[#allocation31_spill] sm:$0xff] }
 0x18c   :  { %v19926_v46 = vpop.f32.mrf.mxu1  ;;  %v1647_v51 = vpop.f32.mrf.mxu0 }
 0x18d   :  { %24543 = vst [vmem:[#allocation25_spill] sm:$0xff] %v19926_v46  ;;  %v1938_v41 = vadd.f32 %v1647_v51, %v19303_v45  ;;  %v24547_v46 = vld [vmem:[#allocation27_spill] sm:$0xff]  ;;  %v19948_v45 = vld [vmem:[%s24375_s0 + $0x169] sm:$0xff] }
 0x18e   :  { %v16453_v7 = vpop.f32.mrf.mxu0  ;;  %v16539_v62 = vpop.f32.mrf.mxu1  ;;  %16690 = vmatmul.mubr.msk.f32.gmra.mxu0 %vm229_vm1, %v19924_v37  ;;  %16776 = vmatmul.mubr.msk.f32.gmra.mxu1 %vm229_vm1, %v24545_v2  ;;  %24548 = vst [vmem:[#allocation27_spill] sm:$0xff] %v19948_v45  ;;  %v19953_v2 = vld [vmem:[%s24375_s0 + $0x171] sm:$0xff] }
 0x18f   :  { %v1941_v4 = vadd.f32 %v16453_v7, %v19309_v49  ;;  %v19939_v59 = vadd.f32 %v16539_v62, %v1937_v29  ;;  %16692 = vmatprep.mubr.msk.f32.mxu0 %vm229_vm1, %v19931_v8  ;;  %16778 = vmatprep.mubr.msk.f32.mxu1 %vm229_vm1, %v24547_v46  ;;  %24549 = vst [vmem:[#allocation93_spill] sm:$0xff] %v19953_v2  ;;  %v24550_v46 = vld [vmem:[#allocation29_spill] sm:$0xff] }
 0x190   :  { %v1657_v51 = vpop.f32.mrf.mxu0  ;;  %v2306_v37 = vpop.f32.mrf.mxu1 }
 0x191   :  { %24546 = vst [vmem:[#allocation26_spill] sm:$0xff] %v19939_v59  ;;  %v1940_v49 = vadd.f32 %v1657_v51, %v19325_v53  ;;  %v19956_v29 = vadd.f32 %v2306_v37, %v1936_v33  ;;  %v19972_v53 = vld [vmem:[%s24375_s0 + $0x179] sm:$0xff]  ;;  %v19977_v51 = vld [vmem:[%s24375_s0 + $0x181] sm:$0xff] }
 0x192   :  { %v16456_v7 = vpop.f32.mrf.mxu0  ;;  %v16542_v62 = vpop.f32.mrf.mxu1  ;;  %16693 = vmatmul.mubr.msk.f32.gmra.mxu0 %vm229_vm1, %v19948_v45  ;;  %16779 = vmatmul.mubr.msk.f32.gmra.mxu1 %vm229_vm1, %v24550_v46  ;;  %24552 = vst [vmem:[#allocation29_spill] sm:$0xff] %v19972_v53  ;;  %24553 = vst [vmem:[#allocation31_spill] sm:$0xff] %v19977_v51  ;;  %v24555_v45 = vld [vmem:[#allocation33_spill] sm:$0xff] }
 0x193   :  { %v1943_v8 = vadd.f32 %v16456_v7, %v19331_v57  ;;  %v19963_v59 = vadd.f32 %v16542_v62, %v1939_v21  ;;  %16695 = vmatprep.mubr.msk.f32.mxu0 %vm229_vm1, %v19953_v2  ;;  %16781 = vmatprep.mubr.msk.f32.mxu1 %vm229_vm1, %v24551_v10  ;;  %v24554_v10 = vld [vmem:[#allocation32_spill] sm:$0xff] }
 0x194   :  { %v1667_v33 = vpop.f32.mrf.mxu0  ;;  %v2316_v37 = vpop.f32.mrf.mxu1 }
 0x195   :  { %v1942_v57 = vadd.f32 %v1667_v33, %v19347_v61  ;;  %v19980_v21 = vadd.f32 %v2316_v37, %v1938_v41  ;;  %v19996_v61 = vld [vmem:[%s24375_s0 + $0x189] sm:$0xff]  ;;  %v20001_v37 = vld [vmem:[%s24375_s0 + $0x191] sm:$0xff] }
 0x196   :  { %v16459_v7 = vpop.f32.mrf.mxu0  ;;  %v16545_v62 = vpop.f32.mrf.mxu1  ;;  %16696 = vmatmul.mubr.msk.f32.gmra.mxu0 %vm229_vm1, %v19972_v53  ;;  %16782 = vmatmul.mubr.msk.f32.gmra.mxu1 %vm229_vm1, %v24554_v10  ;;  %24556 = vst [vmem:[#allocation32_spill] sm:$0xff] %v19996_v61  ;;  %24557 = vst [vmem:[#allocation33_spill] sm:$0xff] %v20001_v37  ;;  %v24559_v53 = vld [vmem:[#allocation35_spill] sm:$0xff] }
 0x197   :  { %v1945_v46 = vadd.f32 %v16459_v7, %v19353_v1  ;;  %v19987_v2 = vadd.f32 %v16545_v62, %v1941_v4  ;;  %16698 = vmatprep.mubr.msk.f32.mxu0 %vm229_vm1, %v19977_v51  ;;  %16784 = vmatprep.mubr.msk.f32.mxu1 %vm229_vm1, %v24555_v45  ;;  %v24558_v45 = vld [vmem:[#allocation34_spill] sm:$0xff] }
 0x198   :  { %v1677_v41 = vpop.f32.mrf.mxu0  ;;  %v2326_v33 = vpop.f32.mrf.mxu1 }
 0x199   :  { %v1944_v1 = vadd.f32 %v1677_v41, %v19369_v5  ;;  %v20004_v4 = vadd.f32 %v2326_v33, %v1940_v49  ;;  %v20020_v5 = vld [vmem:[%s24375_s0 + $0x199] sm:$0xff]  ;;  %v20025_v33 = vld [vmem:[%s24375_s0 + $0x1a1] sm:$0xff] }
 0x19a   :  { %v16462_v7 = vpop.f32.mrf.mxu0  ;;  %v16548_v62 = vpop.f32.mrf.mxu1  ;;  %16699 = vmatmul.mubr.msk.f32.gmra.mxu0 %vm229_vm1, %v19996_v61  ;;  %16785 = vmatmul.mubr.msk.f32.gmra.mxu1 %vm229_vm1, %v24558_v45  ;;  %24560 = vst [vmem:[#allocation34_spill] sm:$0xff] %v20020_v5  ;;  %24561 = vst [vmem:[#allocation35_spill] sm:$0xff] %v20025_v33  ;;  %v24563_v61 = vld [vmem:[#allocation37_spill] sm:$0xff] }
 0x19b   :  { %v1947_v10 = vadd.f32 %v16462_v7, %v19375_v9  ;;  %v20011_v51 = vadd.f32 %v16548_v62, %v1943_v8  ;;  %16701 = vmatprep.mubr.msk.f32.mxu0 %vm229_vm1, %v20001_v37  ;;  %16787 = vmatprep.mubr.msk.f32.mxu1 %vm229_vm1, %v24559_v53  ;;  %v24562_v53 = vld [vmem:[#allocation36_spill] sm:$0xff] }
 0x19c   :  { %v1687_v49 = vpop.f32.mrf.mxu0  ;;  %v2336_v41 = vpop.f32.mrf.mxu1 }
 0x19d   :  { %v1946_v9 = vadd.f32 %v1687_v49, %v19391_v15  ;;  %v20028_v8 = vadd.f32 %v2336_v41, %v1942_v57  ;;  %v20044_v15 = vld [vmem:[%s24375_s0 + $0x1a9] sm:$0xff]  ;;  %v20049_v41 = vld [vmem:[%s24375_s0 + $0x1b1] sm:$0xff] }
 0x19e   :  { %v16465_v7 = vpop.f32.mrf.mxu0  ;;  %v16551_v62 = vpop.f32.mrf.mxu1  ;;  %16702 = vmatmul.mubr.msk.f32.gmra.mxu0 %vm229_vm1, %v20020_v5  ;;  %16788 = vmatmul.mubr.msk.f32.gmra.mxu1 %vm229_vm1, %v24562_v53  ;;  %24564 = vst [vmem:[#allocation36_spill] sm:$0xff] %v20044_v15  ;;  %24565 = vst [vmem:[#allocation37_spill] sm:$0xff] %v20049_v41  ;;  %v24568_v5 = vld [vmem:[#allocation39_spill] sm:$0xff] }
 0x19f   :  { %v1949_v45 = vadd.f32 %v16465_v7, %v19397_v23  ;;  %v20035_v37 = vadd.f32 %v16551_v62, %v1945_v46  ;;  %16704 = vmatprep.mubr.msk.f32.mxu0 %vm229_vm1, %v20025_v33  ;;  %16790 = vmatprep.mubr.msk.f32.mxu1 %vm229_vm1, %v24563_v61  ;;  %v24566_v61 = vld [vmem:[#allocation38_spill] sm:$0xff] }
 0x1a0   :  { %v1697_v57 = vpop.f32.mrf.mxu0  ;;  %v2346_v49 = vpop.f32.mrf.mxu1 }
 0x1a1   :  { %v1948_v23 = vadd.f32 %v1697_v57, %v19413_v31  ;;  %v20052_v46 = vadd.f32 %v2346_v49, %v1944_v1  ;;  %v20068_v31 = vld [vmem:[%s24375_s0 + $0x1b9] sm:$0xff]  ;;  %v20073_v49 = vld [vmem:[%s24375_s0 + $0x1c1] sm:$0xff] }
 0x1a2   :  { %v16468_v7 = vpop.f32.mrf.mxu0  ;;  %v16554_v62 = vpop.f32.mrf.mxu1  ;;  %16705 = vmatmul.mubr.msk.f32.gmra.mxu0 %vm229_vm1, %v20044_v15  ;;  %16791 = vmatmul.mubr.msk.f32.gmra.mxu1 %vm229_vm1, %v24566_v61  ;;  %24569 = vst [vmem:[#allocation39_spill] sm:$0xff] %v20068_v31  ;;  %24570 = vst [vmem:[#allocation94_spill] sm:$0xff] %v20073_v49 }
 0x1a3   :  { %v1951_v53 = vadd.f32 %v16468_v7, %v19419_v39  ;;  %v20059_v33 = vadd.f32 %v16554_v62, %v1947_v10  ;;  %16707 = vmatprep.mubr.msk.f32.mxu0 %vm229_vm1, %v20049_v41  ;;  %16793 = vmatprep.mubr.msk.f32.mxu1 %vm229_vm1, %v24568_v5  ;;  %v24571_v39 = vld [vmem:[#allocation48_spill] sm:$0xff] }
 0x1a4   :  { %v1707_v1 = vpop.f32.mrf.mxu0  ;;  %v2356_v57 = vpop.f32.mrf.mxu1  ;;  %v24573_v5 = vld [vmem:[#allocation40_spill] sm:$0xff] }
 0x1a5   :  { %24567 = vst [vmem:[#allocation38_spill] sm:$0xff] %v20059_v33  ;;  %v1950_v10 = vadd.f32 %v1707_v1, %v24571_v39  ;;  %v20076_v7 = vadd.f32 %v2356_v57, %v1946_v9  ;;  %v24575_v33 = vld [vmem:[#allocation41_spill] sm:$0xff]  ;;  %v20097_v39 = vld [vmem:[%s24375_s0 + $0x1d1] sm:$0xff] }
 0x1a6   :  { %v16471_v62 = vpop.f32.mrf.mxu0  ;;  %v16557_v61 = vpop.f32.mrf.mxu1  ;;  %16708 = vmatmul.mubr.msk.f32.gmra.mxu0 %vm229_vm1, %v20068_v31  ;;  %16794 = vmatmul.mubr.msk.f32.gmra.mxu1 %vm229_vm1, %v24573_v5  ;;  %v20092_v9 = vld [vmem:[%s24375_s0 + $0x1c9] sm:$0xff]  ;;  %24577 = vst [vmem:[#allocation95_spill] sm:$0xff] %v20097_v39 }
 0x1a7   :  { %24572 = vst [vmem:[#allocation48_spill] sm:$0xff] %v20076_v7  ;;  %v1953_v41 = vadd.f32 %v16471_v62, %v19443_v55  ;;  %v20083_v15 = vadd.f32 %v16557_v61, %v1949_v45  ;;  %16710 = vmatprep.mubr.msk.f32.mxu0 %vm229_vm1, %v20073_v49  ;;  %16796 = vmatprep.mubr.msk.f32.mxu1 %vm229_vm1, %v24575_v33  ;;  %24576 = vst [vmem:[#allocation41_spill] sm:$0xff] %v20092_v9  ;;  %v24578_v55 = vld [vmem:[#allocation49_spill] sm:$0xff]  ;;  %v24579_v33 = vld [vmem:[#allocation42_spill] sm:$0xff] }
 0x1a8   :  { %v1717_v1 = vpop.f32.mrf.mxu0  ;;  %v2366_v57 = vpop.f32.mrf.mxu1  ;;  %v24580_v49 = vld [vmem:[#allocation50_spill] sm:$0xff]  ;;  %v24582_v7 = vld [vmem:[#allocation43_spill] sm:$0xff] }
 0x1a9   :  { %24574 = vst [vmem:[#allocation40_spill] sm:$0xff] %v20083_v15  ;;  %v1952_v45 = vadd.f32 %v1717_v1, %v24578_v55  ;;  %v20100_v62 = vadd.f32 %v2366_v57, %v1948_v23  ;;  %v20116_v23 = vld [vmem:[%s24375_s0 + $0x1d9] sm:$0xff]  ;;  %v20121_v55 = vld [vmem:[%s24375_s0 + $0x1e1] sm:$0xff] }
 0x1aa   :  { %v16474_v61 = vpop.f32.mrf.mxu0  ;;  %v16560_v5 = vpop.f32.mrf.mxu1  ;;  %16711 = vmatmul.mubr.msk.f32.gmra.mxu0 %vm229_vm1, %v20092_v9  ;;  %16797 = vmatmul.mubr.msk.f32.gmra.mxu1 %vm229_vm1, %v24579_v33  ;;  %24583 = vst [vmem:[#allocation42_spill] sm:$0xff] %v20116_v23  ;;  %24584 = vst [vmem:[#allocation50_spill] sm:$0xff] %v20121_v55 }
 0x1ab   :  { %v1955_v31 = vadd.f32 %v16474_v61, %v24580_v49  ;;  %v20107_v15 = vadd.f32 %v16560_v5, %v1951_v53  ;;  %16713 = vmatprep.mubr.msk.f32.mxu0 %vm229_vm1, %v20097_v39  ;;  %16799 = vmatprep.mubr.msk.f32.mxu1 %vm229_vm1, %v24582_v7  ;;  %v24585_v53 = vld [vmem:[#allocation51_spill] sm:$0xff]  ;;  %v24586_v7 = vld [vmem:[#allocation44_spill] sm:$0xff] }
 0x1ac   :  { %v1727_v1 = vpop.f32.mrf.mxu0  ;;  %v2376_v57 = vpop.f32.mrf.mxu1 }
 0x1ad   :  { %24581 = vst [vmem:[#allocation49_spill] sm:$0xff] %v20107_v15  ;;  %v1954_v49 = vadd.f32 %v1727_v1, %v24585_v53  ;;  %v20124_v61 = vadd.f32 %v2376_v57, %v1950_v10  ;;  %v24587_v15 = vld [vmem:[#allocation45_spill] sm:$0xff] }
 0x1ae   :  { %v16477_v5 = vpop.f32.mrf.mxu0  ;;  %v16563_v33 = vpop.f32.mrf.mxu1  ;;  %16714 = vmatmul.mubr.msk.f32.gmra.mxu0 %vm229_vm1, %v20116_v23  ;;  %16800 = vmatmul.mubr.msk.f32.gmra.mxu1 %vm229_vm1, %v24586_v7  ;;  %v2724_v10 = vld [vmem:[%s24375_s0 + $0x1e9] sm:$0x3f]  ;;  %v4003_v53 = vld [vmem:[%s24375_s0 + $0x20] sm:$0xff]  ;;  %v24590_v23 = vld [vmem:[#allocation47_spill] sm:$0xff] }
 0x1af   :  { %v1957_v39 = vadd.f32 %v16477_v5, %v19487_v3  ;;  %v20131_v9 = vadd.f32 %v16563_v33, %v1953_v41  ;;  %16716 = vmatprep.mubr.msk.f32.mxu0 %vm229_vm1, %v20121_v55  ;;  %16802 = vmatprep.mubr.msk.f32.mxu1 %vm229_vm1, %v24587_v15  ;;  %v24588_v7 = vld [vmem:[#allocation46_spill] sm:$0xff] }
 0x1b0   :  { %v1737_v1 = vpop.f32.mrf.mxu0  ;;  %v2386_v57 = vpop.f32.mrf.mxu1 }
 0x1b1   :  { %v1956_v3 = vadd.f32 %v1737_v1, %v19509_v6  ;;  %v20144_v41 = vadd.f32 %v2386_v57, %v1952_v45  ;;  %v3391_v6 = vld [vmem:[%s24375_s0 + $0x1da] sm:$0xff]  ;;  %v4004_v45 = vld [vmem:[%s24375_s0 + $0x28] sm:$0xff] }
 0x1b2   :  { %v16480_v5 = vpop.f32.mrf.mxu0  ;;  %v16566_v33 = vpop.f32.mrf.mxu1  ;;  %16717 = vmatmul.mubr.msk.f32.gmra.mxu0 %vm229_vm1, %v2724_v10  ;;  %16803 = vmatmul.mubr.msk.f32.gmra.mxu1 %vm229_vm1, %v24588_v7 }
 0x1b3   :  { %v1959_v15 = vadd.f32 %v16480_v5, %v19514_v19  ;;  %v20150_v55 = vadd.f32 %v16566_v33, %v1955_v31  ;;  %16805 = vmatprep.mubr.msk.f32.mxu1 %vm229_vm1, %v24590_v23  ;;  %16813 = vmatprep.mubr.msk.f32.mxu0 %vm229_vm1, %v4003_v53  ;;  %v3392_v19 = vld [vmem:[%s24375_s0 + $0x1e2] sm:$0xff]  ;;  %v4005_v23 = vld [vmem:[%s24375_s0 + $0x30] sm:$0xff] }
 0x1b4   :  { %v1747_v10 = vpop.f32.mrf.mxu0  ;;  %v2396_v1 = vpop.f32.mrf.mxu1 }
 0x1b5   :  { %24589 = vst [vmem:[#allocation43_spill] sm:$0xff] %v20150_v55  ;;  %v1958_v31 = vadd.f32 %v1747_v10, %v19530_v13  ;;  %v20165_v57 = vadd.f32 %v2396_v1, %v1954_v49  ;;  %v24591_v55 = vld [vmem:[#allocation53_spill] sm:$0xff]  ;;  %v4006_v49 = vld [vmem:[%s24375_s0 + $0x38] sm:$0xff] }
 0x1b6   :  { %v16483_v53 = vpop.f32.mrf.mxu0  ;;  %v16569_v5 = vpop.f32.mrf.mxu1  ;;  %16806 = vmatmul.mubr.msk.f32.gmra.mxu1 %vm229_vm1, %v3391_v6  ;;  %16814 = vmatmul.mubr.msk.f32.vlgmr.msra.gmra.mxu0 %vm229_vm1, %v4004_v45  ;;  %v3393_v13 = vld [vmem:[%s24375_s0 + $0x1ea] sm:$0x3f] }
 0x1b7   :  { %v1961_v33 = vadd.f32 %v16483_v53, %v19536_v35  ;;  %v20173_v7 = vadd.f32 %v16569_v5, %v1957_v39  ;;  %16996 = vmatpush3.msk.msra.mxu0 %vm410_vm0, %v24591_v55  ;;  %16808 = vmatprep.mubr.msk.f32.mxu1 %vm229_vm1, %v3392_v19  ;;  %v4007_v35 = vld [vmem:[%s24375_s0 + $0x40] sm:$0xff] }
 0x1b8   :  { %v1757_v6 = vpop.f32.mrf.mxu0  ;;  %v2406_v10 = vpop.f32.mrf.mxu1  ;;  %16816 = vmatprep.mubr.msk.f32.mxu0 %vm229_vm1, %v4005_v23  ;;  %v24592_v23 = vld [vmem:[#allocation52_spill] sm:$0xff] }
 0x1b9   :  { %v1960_v39 = vadd.f32 %v1757_v6, %v19554_v11  ;;  %v20189_v55 = vadd.f32 %v2406_v10, %v1956_v3  ;;  %v4008_v11 = vld [vmem:[%s24375_s0 + $0x48] sm:$0xff] }
 0x1ba   :  { %v16486_v45 = vpop.f32.mrf.mxu0  ;;  %v16572_v1 = vpop.f32.mrf.mxu1  ;;  %16809 = vmatmul.mubr.msk.f32.gmra.mxu1 %vm229_vm1, %v3393_v13  ;;  %16817 = vmatmul.mubr.msk.f32.gmra.mxu0 %vm229_vm1, %v4006_v49  ;;  %v4009_v13 = vld [vmem:[%s24375_s0 + $0x50] sm:$0xff] }
 0x1bb   :  { %v1963_v19 = vadd.f32 %v16486_v45, %v19560_v27  ;;  %v20194_v53 = vadd.f32 %v16572_v1, %v1959_v15  ;;  %16819 = vmatprep.mubr.msk.f32.mxu0 %vm229_vm1, %v4007_v35  ;;  %16905 = vmatprep.mubr.msk.f32.mxu1 %vm229_vm1, %v24592_v23  ;;  %v24593_v10 = vld [vmem:[#allocation54_spill] sm:$0xff]  ;;  %v24594_v1 = vld [vmem:[#allocation55_spill] sm:$0xff] }
 0x1bc   :  { %v1767_v3 = vpop.f32.mrf.mxu0  ;;  %v2416_v5 = vpop.f32.mrf.mxu1 }
 0x1bd   :  { %v1962_v49 = vadd.f32 %v1767_v3, %v19576_v48  ;;  %v20206_v27 = vadd.f32 %v2416_v5, %v1958_v31  ;;  %v4010_v48 = vld [vmem:[%s24375_s0 + $0x58] sm:$0xff] }
 0x1be   :  { %v16489_v15 = vpop.f32.mrf.mxu0  ;;  %v16575_v6 = vpop.f32.mrf.mxu1  ;;  %16820 = vmatmul.mubr.msk.f32.gmra.mxu0 %vm229_vm1, %v4008_v11  ;;  %16906 = vmatmul.mubr.msk.f32.vlgmr.msra.gmra.mxu1 %vm229_vm1, %v24593_v10  ;;  %v4011_v11 = vld [vmem:[%s24375_s0 + $0x60] sm:$0xff] }
 0x1bf   :  { %v1965_v35 = vadd.f32 %v16489_v15, %v19582_v43  ;;  %v20212_v45 = vadd.f32 %v16575_v6, %v1961_v33  ;;  %16822 = vmatprep.mubr.msk.f32.mxu0 %vm229_vm1, %v4009_v13  ;;  %16908 = vmatprep.mubr.msk.f32.mxu1 %vm229_vm1, %v24594_v1  ;;  %v24595_v13 = vld [vmem:[#allocation22_spill] sm:$0xff] }
 0x1c0   :  { %v1777_v31 = vpop.f32.mrf.mxu0  ;;  %v2426_v23 = vpop.f32.mrf.mxu1  ;;  %v4013_v1 = vld [vmem:[%s24375_s0 + $0x70] sm:$0xff] }
 0x1c1   :  { %v1964_v3 = vadd.f32 %v1777_v31, %v19598_v12  ;;  %v20224_v43 = vadd.f32 %v2426_v23, %v1960_v39  ;;  %v4012_v12 = vld [vmem:[%s24375_s0 + $0x68] sm:$0xff]  ;;  %v24596_v23 = vld [vmem:[#allocation56_spill] sm:$0xff] }
 0x1c2   :  { %v16492_v33 = vpop.f32.mrf.mxu0  ;;  %v16578_v5 = vpop.f32.mrf.mxu1  ;;  %16823 = vmatmul.mubr.msk.f32.gmra.mxu0 %vm229_vm1, %v4010_v48  ;;  %16909 = vmatmul.mubr.msk.f32.gmra.mxu1 %vm229_vm1, %v24595_v13  ;;  %v4015_v13 = vld [vmem:[%s24375_s0 + $0x80] sm:$0xff] }
 0x1c3   :  { %v1967_v15 = vadd.f32 %v16492_v33, %v19604_v63  ;;  %v20230_v6 = vadd.f32 %v16578_v5, %v1963_v19  ;;  %16825 = vmatprep.mubr.msk.f32.mxu0 %vm229_vm1, %v4011_v11  ;;  %16911 = vmatprep.mubr.msk.f32.mxu1 %vm229_vm1, %v19528_v17  ;;  %v24597_v33 = vld [vmem:[#allocation57_spill] sm:$0xff] }
 0x1c4   :  { %v1787_v39 = vpop.f32.mrf.mxu0  ;;  %v2436_v10 = vpop.f32.mrf.mxu1 }
 0x1c5   :  { %v1966_v48 = vadd.f32 %v1787_v39, %v19620_v14  ;;  %v20242_v63 = vadd.f32 %v2436_v10, %v1962_v49  ;;  %v4014_v14 = vld [vmem:[%s24375_s0 + $0x78] sm:$0xff]  ;;  %v24598_v10 = vld [vmem:[#allocation58_spill] sm:$0xff] }
 0x1c6   :  { %v16495_v19 = vpop.f32.mrf.mxu0  ;;  %v16581_v31 = vpop.f32.mrf.mxu1  ;;  %16826 = vmatmul.mubr.msk.f32.gmra.mxu0 %vm229_vm1, %v4012_v12  ;;  %16912 = vmatmul.mubr.msk.f32.gmra.mxu1 %vm229_vm1, %v24596_v23 }
 0x1c7   :  { %v1969_v17 = vadd.f32 %v16495_v19, %v19626_v16  ;;  %v20248_v11 = vadd.f32 %v16581_v31, %v1965_v35  ;;  %16828 = vmatprep.mubr.msk.f32.mxu0 %vm229_vm1, %v4013_v1  ;;  %16914 = vmatprep.mubr.msk.f32.mxu1 %vm229_vm1, %v24597_v33  ;;  %v24599_v31 = vld [vmem:[#allocation59_spill] sm:$0xff] }
 0x1c8   :  { %v1797_v49 = vpop.f32.mrf.mxu0  ;;  %v2446_v5 = vpop.f32.mrf.mxu1  ;;  %v4017_v33 = vld [vmem:[%s24375_s0 + $0x90] sm:$0xff] }
 0x1c9   :  { %v1968_v12 = vadd.f32 %v1797_v49, %v19642_v18  ;;  %v20260_v16 = vadd.f32 %v2446_v5, %v1964_v3  ;;  %v4016_v18 = vld [vmem:[%s24375_s0 + $0x88] sm:$0xff]  ;;  %v24600_v5 = vld [vmem:[#allocation60_spill] sm:$0xff] }
 0x1ca   :  { %v16498_v35 = vpop.f32.mrf.mxu0  ;;  %v16584_v39 = vpop.f32.mrf.mxu1  ;;  %16829 = vmatmul.mubr.msk.f32.gmra.mxu0 %vm229_vm1, %v4014_v14  ;;  %16915 = vmatmul.mubr.msk.f32.gmra.mxu1 %vm229_vm1, %v24598_v10 }
 0x1cb   :  { %v1971_v1 = vadd.f32 %v16498_v35, %v19648_v20  ;;  %v20266_v19 = vadd.f32 %v16584_v39, %v1967_v15  ;;  %16831 = vmatprep.mubr.msk.f32.mxu0 %vm229_vm1, %v4015_v13  ;;  %16917 = vmatprep.mubr.msk.f32.mxu1 %vm229_vm1, %v24599_v31  ;;  %v24601_v39 = vld [vmem:[#allocation61_spill] sm:$0xff] }
 0x1cc   :  { %v1807_v3 = vpop.f32.mrf.mxu0  ;;  %v2456_v23 = vpop.f32.mrf.mxu1  ;;  %v4019_v31 = vld [vmem:[%s24375_s0 + $0xa0] sm:$0xff] }
 0x1cd   :  { %v1970_v14 = vadd.f32 %v1807_v3, %v19664_v22  ;;  %v20278_v20 = vadd.f32 %v2456_v23, %v1966_v48  ;;  %v4018_v22 = vld [vmem:[%s24375_s0 + $0x98] sm:$0xff]  ;;  %v24602_v23 = vld [vmem:[#allocation62_spill] sm:$0xff] }
 0x1ce   :  { %v16501_v15 = vpop.f32.mrf.mxu0  ;;  %v16587_v49 = vpop.f32.mrf.mxu1  ;;  %16832 = vmatmul.mubr.msk.f32.gmra.mxu0 %vm229_vm1, %v4016_v18  ;;  %16918 = vmatmul.mubr.msk.f32.gmra.mxu1 %vm229_vm1, %v24600_v5 }
 0x1cf   :  { %v1973_v13 = vadd.f32 %v16501_v15, %v19670_v24  ;;  %v20284_v35 = vadd.f32 %v16587_v49, %v1969_v17  ;;  %16834 = vmatprep.mubr.msk.f32.mxu0 %vm229_vm1, %v4017_v33  ;;  %16920 = vmatprep.mubr.msk.f32.mxu1 %vm229_vm1, %v24601_v39  ;;  %v24603_v49 = vld [vmem:[#allocation63_spill] sm:$0xff] }
 0x1d0   :  { %v1817_v48 = vpop.f32.mrf.mxu0  ;;  %v2466_v10 = vpop.f32.mrf.mxu1  ;;  %v4021_v39 = vld [vmem:[%s24375_s0 + $0xb0] sm:$0xff] }
 0x1d1   :  { %v1972_v18 = vadd.f32 %v1817_v48, %v19686_v26  ;;  %v20296_v24 = vadd.f32 %v2466_v10, %v1968_v12  ;;  %v4020_v26 = vld [vmem:[%s24375_s0 + $0xa8] sm:$0xff]  ;;  %v24604_v10 = vld [vmem:[#allocation64_spill] sm:$0xff] }
 0x1d2   :  { %v16504_v17 = vpop.f32.mrf.mxu0  ;;  %v16590_v3 = vpop.f32.mrf.mxu1  ;;  %16835 = vmatmul.mubr.msk.f32.gmra.mxu0 %vm229_vm1, %v4018_v22  ;;  %16921 = vmatmul.mubr.msk.f32.gmra.mxu1 %vm229_vm1, %v24602_v23 }
 0x1d3   :  { %v1975_v33 = vadd.f32 %v16504_v17, %v19692_v28  ;;  %v20302_v15 = vadd.f32 %v16590_v3, %v1971_v1  ;;  %16837 = vmatprep.mubr.msk.f32.mxu0 %vm229_vm1, %v4019_v31  ;;  %16923 = vmatprep.mubr.msk.f32.mxu1 %vm229_vm1, %v24603_v49  ;;  %v24605_v3 = vld [vmem:[#allocation65_spill] sm:$0xff] }
 0x1d4   :  { %v1827_v12 = vpop.f32.mrf.mxu0  ;;  %v2476_v5 = vpop.f32.mrf.mxu1  ;;  %v4023_v49 = vld [vmem:[%s24375_s0 + $0xc0] sm:$0xff] }
 0x1d5   :  { %v1974_v22 = vadd.f32 %v1827_v12, %v19708_v30  ;;  %v20314_v28 = vadd.f32 %v2476_v5, %v1970_v14  ;;  %v4022_v30 = vld [vmem:[%s24375_s0 + $0xb8] sm:$0xff]  ;;  %v24606_v5 = vld [vmem:[#allocation66_spill] sm:$0xff] }
 0x1d6   :  { %v16507_v1 = vpop.f32.mrf.mxu0  ;;  %v16593_v48 = vpop.f32.mrf.mxu1  ;;  %16838 = vmatmul.mubr.msk.f32.gmra.mxu0 %vm229_vm1, %v4020_v26  ;;  %16924 = vmatmul.mubr.msk.f32.gmra.mxu1 %vm229_vm1, %v24604_v10 }
 0x1d7   :  { %v1977_v31 = vadd.f32 %v16507_v1, %v19714_v32  ;;  %v20320_v17 = vadd.f32 %v16593_v48, %v1973_v13  ;;  %16840 = vmatprep.mubr.msk.f32.mxu0 %vm229_vm1, %v4021_v39  ;;  %16926 = vmatprep.mubr.msk.f32.mxu1 %vm229_vm1, %v24605_v3  ;;  %v24607_v48 = vld [vmem:[#allocation67_spill] sm:$0xff] }
 0x1d8   :  { %v1837_v14 = vpop.f32.mrf.mxu0  ;;  %v2486_v23 = vpop.f32.mrf.mxu1  ;;  %v4025_v3 = vld [vmem:[%s24375_s0 + $0xd0] sm:$0xff] }
 0x1d9   :  { %v1976_v26 = vadd.f32 %v1837_v14, %v19730_v34  ;;  %v20332_v32 = vadd.f32 %v2486_v23, %v1972_v18  ;;  %v4024_v34 = vld [vmem:[%s24375_s0 + $0xc8] sm:$0xff]  ;;  %v24608_v23 = vld [vmem:[#allocation68_spill] sm:$0xff] }
 0x1da   :  { %v16510_v13 = vpop.f32.mrf.mxu0  ;;  %v16596_v12 = vpop.f32.mrf.mxu1  ;;  %16841 = vmatmul.mubr.msk.f32.gmra.mxu0 %vm229_vm1, %v4022_v30  ;;  %16927 = vmatmul.mubr.msk.f32.gmra.mxu1 %vm229_vm1, %v24606_v5 }
 0x1db   :  { %v1979_v39 = vadd.f32 %v16510_v13, %v19736_v36  ;;  %v20338_v1 = vadd.f32 %v16596_v12, %v1975_v33  ;;  %16843 = vmatprep.mubr.msk.f32.mxu0 %vm229_vm1, %v4023_v49  ;;  %16929 = vmatprep.mubr.msk.f32.mxu1 %vm229_vm1, %v24607_v48  ;;  %v24609_v12 = vld [vmem:[#allocation69_spill] sm:$0xff] }
 0x1dc   :  { %v1847_v18 = vpop.f32.mrf.mxu0  ;;  %v2496_v10 = vpop.f32.mrf.mxu1  ;;  %v4027_v48 = vld [vmem:[%s24375_s0 + $0xe0] sm:$0xff] }
 0x1dd   :  { %v1978_v30 = vadd.f32 %v1847_v18, %v19752_v38  ;;  %v20350_v36 = vadd.f32 %v2496_v10, %v1974_v22  ;;  %v4026_v38 = vld [vmem:[%s24375_s0 + $0xd8] sm:$0xff]  ;;  %v24610_v10 = vld [vmem:[#allocation70_spill] sm:$0xff] }
 0x1de   :  { %v16513_v33 = vpop.f32.mrf.mxu0  ;;  %v16599_v14 = vpop.f32.mrf.mxu1  ;;  %16844 = vmatmul.mubr.msk.f32.gmra.mxu0 %vm229_vm1, %v4024_v34  ;;  %16930 = vmatmul.mubr.msk.f32.gmra.mxu1 %vm229_vm1, %v24608_v23 }
 0x1df   :  { %v1981_v49 = vadd.f32 %v16513_v33, %v19758_v40  ;;  %v20356_v13 = vadd.f32 %v16599_v14, %v1977_v31  ;;  %16846 = vmatprep.mubr.msk.f32.mxu0 %vm229_vm1, %v4025_v3  ;;  %16932 = vmatprep.mubr.msk.f32.mxu1 %vm229_vm1, %v24609_v12  ;;  %v24611_v14 = vld [vmem:[#allocation71_spill] sm:$0xff] }
 0x1e0   :  { %v1857_v22 = vpop.f32.mrf.mxu0  ;;  %v2506_v5 = vpop.f32.mrf.mxu1  ;;  %v4029_v12 = vld [vmem:[%s24375_s0 + $0xf0] sm:$0xff] }
 0x1e1   :  { %v1980_v34 = vadd.f32 %v1857_v22, %v19774_v42  ;;  %v20368_v40 = vadd.f32 %v2506_v5, %v1976_v26  ;;  %v4028_v42 = vld [vmem:[%s24375_s0 + $0xe8] sm:$0xff]  ;;  %v24612_v5 = vld [vmem:[#allocation72_spill] sm:$0xff] }
 0x1e2   :  { %v16516_v31 = vpop.f32.mrf.mxu0  ;;  %v16602_v18 = vpop.f32.mrf.mxu1  ;;  %16847 = vmatmul.mubr.msk.f32.gmra.mxu0 %vm229_vm1, %v4026_v38  ;;  %16933 = vmatmul.mubr.msk.f32.gmra.mxu1 %vm229_vm1, %v24610_v10 }
 0x1e3   :  { %v1983_v3 = vadd.f32 %v16516_v31, %v19780_v44  ;;  %v20374_v33 = vadd.f32 %v16602_v18, %v1979_v39  ;;  %16849 = vmatprep.mubr.msk.f32.mxu0 %vm229_vm1, %v4027_v48  ;;  %16935 = vmatprep.mubr.msk.f32.mxu1 %vm229_vm1, %v24611_v14  ;;  %v24613_v18 = vld [vmem:[#allocation73_spill] sm:$0xff] }
 0x1e4   :  { %v1867_v26 = vpop.f32.mrf.mxu0  ;;  %v2516_v23 = vpop.f32.mrf.mxu1  ;;  %v4031_v14 = vld [vmem:[%s24375_s0 + $0x100] sm:$0xff] }
 0x1e5   :  { %v1982_v38 = vadd.f32 %v1867_v26, %v19796_v47  ;;  %v20386_v44 = vadd.f32 %v2516_v23, %v1978_v30  ;;  %v4030_v47 = vld [vmem:[%s24375_s0 + $0xf8] sm:$0xff]  ;;  %v24614_v23 = vld [vmem:[#allocation74_spill] sm:$0xff] }
 0x1e6   :  { %v16519_v39 = vpop.f32.mrf.mxu0  ;;  %v16605_v22 = vpop.f32.mrf.mxu1  ;;  %16850 = vmatmul.mubr.msk.f32.gmra.mxu0 %vm229_vm1, %v4028_v42  ;;  %16936 = vmatmul.mubr.msk.f32.gmra.mxu1 %vm229_vm1, %v24612_v5 }
 0x1e7   :  { %v1985_v48 = vadd.f32 %v16519_v39, %v19802_v50  ;;  %v20392_v31 = vadd.f32 %v16605_v22, %v1981_v49  ;;  %16852 = vmatprep.mubr.msk.f32.mxu0 %vm229_vm1, %v4029_v12  ;;  %16938 = vmatprep.mubr.msk.f32.mxu1 %vm229_vm1, %v24613_v18  ;;  %v24615_v22 = vld [vmem:[#allocation75_spill] sm:$0xff] }
 0x1e8   :  { %v1877_v30 = vpop.f32.mrf.mxu0  ;;  %v2526_v10 = vpop.f32.mrf.mxu1  ;;  %v4033_v18 = vld [vmem:[%s24375_s0 + $0x110] sm:$0xff] }
 0x1e9   :  { %v1984_v42 = vadd.f32 %v1877_v30, %v19818_v52  ;;  %v20404_v50 = vadd.f32 %v2526_v10, %v1980_v34  ;;  %v4032_v52 = vld [vmem:[%s24375_s0 + $0x108] sm:$0xff]  ;;  %v24616_v10 = vld [vmem:[#allocation76_spill] sm:$0xff] }
 0x1ea   :  { %v16522_v49 = vpop.f32.mrf.mxu0  ;;  %v16608_v26 = vpop.f32.mrf.mxu1  ;;  %16853 = vmatmul.mubr.msk.f32.gmra.mxu0 %vm229_vm1, %v4030_v47  ;;  %16939 = vmatmul.mubr.msk.f32.gmra.mxu1 %vm229_vm1, %v24614_v23 }
 0x1eb   :  { %v1987_v12 = vadd.f32 %v16522_v49, %v19824_v54  ;;  %v20410_v39 = vadd.f32 %v16608_v26, %v1983_v3  ;;  %16855 = vmatprep.mubr.msk.f32.mxu0 %vm229_vm1, %v4031_v14  ;;  %16941 = vmatprep.mubr.msk.f32.mxu1 %vm229_vm1, %v24615_v22  ;;  %v24618_v26 = vld [vmem:[#allocation77_spill] sm:$0xff] }
 0x1ec   :  { %v1887_v34 = vpop.f32.mrf.mxu0  ;;  %v2536_v5 = vpop.f32.mrf.mxu1  ;;  %v4035_v22 = vld [vmem:[%s24375_s0 + $0x120] sm:$0xff] }
 0x1ed   :  { %v1986_v47 = vadd.f32 %v1887_v34, %v19840_v56  ;;  %v20422_v54 = vadd.f32 %v2536_v5, %v1982_v38  ;;  %v4034_v56 = vld [vmem:[%s24375_s0 + $0x118] sm:$0xff]  ;;  %v24620_v5 = vld [vmem:[#allocation78_spill] sm:$0xff] }
 0x1ee   :  { %v16525_v3 = vpop.f32.mrf.mxu0  ;;  %v16611_v30 = vpop.f32.mrf.mxu1  ;;  %16856 = vmatmul.mubr.msk.f32.gmra.mxu0 %vm229_vm1, %v4032_v52  ;;  %16942 = vmatmul.mubr.msk.f32.gmra.mxu1 %vm229_vm1, %v24616_v10  ;;  %v24623_v10 = vld [vmem:[#allocation79_spill] sm:$0xff] }
 0x1ef   :  { %v1989_v14 = vadd.f32 %v16525_v3, %v19846_v58  ;;  %v20428_v49 = vadd.f32 %v16611_v30, %v1985_v48  ;;  %16858 = vmatprep.mubr.msk.f32.mxu0 %vm229_vm1, %v4033_v18  ;;  %16944 = vmatprep.mubr.msk.f32.mxu1 %vm229_vm1, %v24618_v26  ;;  %v24621_v18 = vld [vmem:[#allocation86_spill] sm:$0xff] }
 0x1f0   :  { %v1897_v38 = vpop.f32.mrf.mxu0  ;;  %v2546_v23 = vpop.f32.mrf.mxu1 }
 0x1f1   :  { %24617 = vst [vmem:[#allocation51_spill] sm:$0xff] %v20428_v49  ;;  %v1988_v52 = vadd.f32 %v1897_v38, %v19862_v60  ;;  %v20440_v58 = vadd.f32 %v2546_v23, %v1984_v42  ;;  %v4036_v60 = vld [vmem:[%s24375_s0 + $0x128] sm:$0xff] }
 0x1f2   :  { %v16528_v48 = vpop.f32.mrf.mxu0  ;;  %v16614_v34 = vpop.f32.mrf.mxu1  ;;  %16859 = vmatmul.mubr.msk.f32.gmra.mxu0 %vm229_vm1, %v4034_v56  ;;  %16945 = vmatmul.mubr.msk.f32.gmra.mxu1 %vm229_vm1, %v24620_v5  ;;  %v4037_v56 = vld [vmem:[%s24375_s0 + $0x130] sm:$0xff] }
 0x1f3   :  { %24619 = vst [vmem:[#allocation44_spill] sm:$0xff] %v20440_v58  ;;  %v1991_v3 = vadd.f32 %v16528_v48, %v24621_v18  ;;  %v20446_v30 = vadd.f32 %v16614_v34, %v1987_v12  ;;  %16861 = vmatprep.mubr.msk.f32.mxu0 %vm229_vm1, %v4035_v22  ;;  %16947 = vmatprep.mubr.msk.f32.mxu1 %vm229_vm1, %v24623_v10  ;;  %v24625_v22 = vld [vmem:[#allocation80_spill] sm:$0xff]  ;;  %v24626_v34 = vld [vmem:[#allocation89_spill] sm:$0xff] }
 0x1f4   :  { %v1907_v42 = vpop.f32.mrf.mxu0  ;;  %v2556_v26 = vpop.f32.mrf.mxu1  ;;  %v24628_v10 = vld [vmem:[#allocation81_spill] sm:$0xff] }
 0x1f5   :  { %24622 = vst [vmem:[#allocation45_spill] sm:$0xff] %v20446_v30  ;;  %v1990_v38 = vadd.f32 %v1907_v42, %v19884_v0  ;;  %v20458_v23 = vadd.f32 %v2556_v26, %v1986_v47  ;;  %v4038_v0 = vld [vmem:[%s24375_s0 + $0x138] sm:$0xff] }
 0x1f6   :  { %v16531_v12 = vpop.f32.mrf.mxu0  ;;  %v16617_v48 = vpop.f32.mrf.mxu1  ;;  %16862 = vmatmul.mubr.msk.f32.gmra.mxu0 %vm229_vm1, %v4036_v60  ;;  %16948 = vmatmul.mubr.msk.f32.gmra.mxu1 %vm229_vm1, %v24625_v22  ;;  %v4039_v60 = vld [vmem:[%s24375_s0 + $0x140] sm:$0xff] }
 0x1f7   :  { %24624 = vst [vmem:[#allocation46_spill] sm:$0xff] %v20458_v23  ;;  %v1993_v5 = vadd.f32 %v16531_v12, %v24626_v34  ;;  %v20464_v18 = vadd.f32 %v16617_v48, %v1989_v14  ;;  %16864 = vmatprep.mubr.msk.f32.mxu0 %vm229_vm1, %v4037_v56  ;;  %16950 = vmatprep.mubr.msk.f32.mxu1 %vm229_vm1, %v24628_v10  ;;  %v24629_v26 = vld [vmem:[#allocation28_spill] sm:$0xff]  ;;  %v24630_v14 = vld [vmem:[#allocation91_spill] sm:$0xff]  ;;  %v24631_v10 = vld [vmem:[#allocation82_spill] sm:$0xff] }
 0x1f8   :  { %v1917_v47 = vpop.f32.mrf.mxu0  ;;  %v2566_v42 = vpop.f32.mrf.mxu1  ;;  %v1324_v12 = vadd.f32 %v19910_v25, %v24629_v26  ;;  %v24633_v23 = vld [vmem:[#allocation25_spill] sm:$0xff]  ;;  %v24634_v25 = vld [vmem:[#allocation83_spill] sm:$0xff] }
 0x1f9   :  { %24627 = vst [vmem:[#allocation47_spill] sm:$0xff] %v20464_v18  ;;  %v1992_v48 = vadd.f32 %v1917_v47, %v24630_v14  ;;  %v20478_v22 = vadd.f32 %v2566_v42, %v1988_v52  ;;  %v24632_v18 = vld [vmem:[#allocation30_spill] sm:$0xff] }
 0x1fa   :  { %v16534_v56 = vpop.f32.mrf.mxu0  ;;  %v16620_v34 = vpop.f32.mrf.mxu1  ;;  %16865 = vmatmul.mubr.msk.f32.gmra.mxu0 %vm229_vm1, %v4038_v0  ;;  %16951 = vmatmul.mubr.msk.f32.gmra.mxu1 %vm229_vm1, %v24631_v10  ;;  %v1319_v30 = vadd.f32 %v24633_v23, %v24632_v18  ;;  %v4040_v52 = vld [vmem:[%s24375_s0 + $0x148] sm:$0xff]  ;;  %v4041_v42 = vld [vmem:[%s24375_s0 + $0x150] sm:$0xff] }
 0x1fb   :  { %v1995_v58 = vadd.f32 %v16534_v56, %v1324_v12  ;;  %v20485_v49 = vadd.f32 %v16620_v34, %v1991_v3  ;;  %16867 = vmatprep.mubr.msk.f32.mxu0 %vm229_vm1, %v4039_v60  ;;  %16953 = vmatprep.mubr.msk.f32.mxu1 %vm229_vm1, %v24634_v25  ;;  %v24635_v60 = vld [vmem:[#allocation84_spill] sm:$0xff]  ;;  %v24636_v14 = vld [vmem:[#allocation26_spill] sm:$0xff]  ;;  %v24637_v34 = vld [vmem:[#allocation85_spill] sm:$0xff] }
 0x1fc   :  { %v1927_v47 = vpop.f32.mrf.mxu0  ;;  %v2576_v0 = vpop.f32.mrf.mxu1  ;;  %v4043_v25 = vld [vmem:[%s24375_s0 + $0x160] sm:$0xff] }
 0x1fd   :  { %v1994_v26 = vadd.f32 %v1927_v47, %v1319_v30  ;;  %v20496_v23 = vadd.f32 %v2576_v0, %v1990_v38  ;;  %v4042_v30 = vld [vmem:[%s24375_s0 + $0x158] sm:$0xff] }
 0x1fe   :  { %v16623_v3 = vpop.f32.mrf.mxu1  ;;  %v16631_v18 = vpop.f32.mrf.mxu0  ;;  %16868 = vmatmul.mubr.msk.f32.gmra.mxu0 %vm229_vm1, %v4040_v52  ;;  %16954 = vmatmul.mubr.msk.f32.gmra.mxu1 %vm229_vm1, %v24635_v60  ;;  %v24639_v60 = vld [vmem:[#allocation88_spill] sm:$0xff] }
 0x1ff   :  { %v20501_v12 = vadd.f32 %v16623_v3, %v1993_v5  ;;  %v3275_v56 = vadd.f32 %v16631_v18, %v24636_v14  ;;  %16870 = vmatprep.mubr.msk.f32.mxu0 %vm229_vm1, %v4041_v42  ;;  %16956 = vmatprep.mubr.msk.f32.mxu1 %vm229_vm1, %v24637_v34  ;;  %v24638_v42 = vld [vmem:[#allocation87_spill] sm:$0xff] }
 0x200   :  { %v2586_v38 = vpop.f32.mrf.mxu1  ;;  %v2975_v10 = vpop.f32.mrf.mxu0  ;;  %v4045_v34 = vld [vmem:[%s24375_s0 + $0x170] sm:$0xff] }
 0x201   :  { %v20513_v52 = vadd.f32 %v2586_v38, %v1992_v48  ;;  %v3274_v5 = vadd.f32 %v2975_v10, %v19956_v29  ;;  %v4044_v29 = vld [vmem:[%s24375_s0 + $0x168] sm:$0xff]  ;;  %v24640_v10 = vld [vmem:[#allocation23_spill] sm:$0xff] }
 0x202   :  { %v16626_v47 = vpop.f32.mrf.mxu1  ;;  %v16634_v0 = vpop.f32.mrf.mxu0  ;;  %16871 = vmatmul.mubr.msk.f32.gmra.mxu0 %vm229_vm1, %v4042_v30  ;;  %16957 = vmatmul.mubr.msk.f32.gmra.mxu1 %vm229_vm1, %v24638_v42 }
 0x203   :  { %v20519_v3 = vadd.f32 %v16626_v47, %v1995_v58  ;;  %v3277_v18 = vadd.f32 %v16634_v0, %v19963_v59  ;;  %16873 = vmatprep.mubr.msk.f32.mxu0 %vm229_vm1, %v4043_v25  ;;  %16959 = vmatprep.mubr.msk.f32.mxu1 %vm229_vm1, %v24639_v60  ;;  %v24641_v0 = vld [vmem:[#allocation90_spill] sm:$0xff]  ;;  %v4047_v60 = vld [vmem:[%s24375_s0 + $0x180] sm:$0xff] }
 0x204   :  { %v2596_v48 = vpop.f32.mrf.mxu1  ;;  %v2985_v14 = vpop.f32.mrf.mxu0 }
 0x205   :  { %v20531_v30 = vadd.f32 %v2596_v48, %v1994_v26  ;;  %v3276_v58 = vadd.f32 %v2985_v14, %v19980_v21  ;;  %v4046_v21 = vld [vmem:[%s24375_s0 + $0x178] sm:$0xff] }
 0x206   :  { %v16637_v59 = vpop.f32.mrf.mxu0  ;;  %v16723_v38 = vpop.f32.mrf.mxu1  ;;  %16874 = vmatmul.mubr.msk.f32.gmra.mxu0 %vm229_vm1, %v4044_v29  ;;  %16960 = vmatmul.mubr.msk.f32.gmra.mxu1 %vm229_vm1, %v24640_v10  ;;  %v24642_v14 = vld [vmem:[#allocation24_spill] sm:$0xff] }
 0x207   :  { %v3279_v25 = vadd.f32 %v16637_v59, %v19987_v2  ;;  %v20538_v47 = vadd.f32 %v16723_v38, %v3275_v56  ;;  %16876 = vmatprep.mubr.msk.f32.mxu0 %vm229_vm1, %v4045_v34  ;;  %16962 = vmatprep.mubr.msk.f32.mxu1 %vm229_vm1, %v24641_v0  ;;  %v24643_v38 = vld [vmem:[#allocation92_spill] sm:$0xff] }
 0x208   :  { %v2995_v26 = vpop.f32.mrf.mxu0  ;;  %v3644_v42 = vpop.f32.mrf.mxu1 }
 0x209   :  { %v3278_v29 = vadd.f32 %v2995_v26, %v20004_v4  ;;  %v20550_v2 = vadd.f32 %v3644_v42, %v3274_v5  ;;  %v4048_v4 = vld [vmem:[%s24375_s0 + $0x188] sm:$0xff]  ;;  %v6318_v5 = vld [vmem:[%s24378_s3 + $0x38] sm:$0xff] }
 0x20a   :  { %v16640_v56 = vpop.f32.mrf.mxu0  ;;  %v16726_v48 = vpop.f32.mrf.mxu1  ;;  %16877 = vmatmul.mubr.msk.f32.gmra.mxu0 %vm229_vm1, %v4046_v21  ;;  %16963 = vmatmul.mubr.msk.f32.gmra.mxu1 %vm229_vm1, %v24642_v14  ;;  %v24645_v14 = vld [vmem:[#allocation93_spill] sm:$0xff] }
 0x20b   :  { %v3281_v34 = vadd.f32 %v16640_v56, %v20011_v51  ;;  %v20556_v59 = vadd.f32 %v16726_v48, %v3277_v18  ;;  %16879 = vmatprep.mubr.msk.f32.mxu0 %vm229_vm1, %v4047_v60  ;;  %16965 = vmatprep.mubr.msk.f32.mxu1 %vm229_vm1, %v24643_v38  ;;  %v4049_v51 = vld [vmem:[%s24375_s0 + $0x190] sm:$0xff] }
 0x20c   :  { %v3005_v10 = vpop.f32.mrf.mxu0  ;;  %v3654_v0 = vpop.f32.mrf.mxu1  ;;  %17087 = vmatprep.subr.mxu1 %v6318_v5  ;;  %v24644_v60 = vld [vmem:[#allocation27_spill] sm:$0xff] }
 0x20d   :  { %v3280_v18 = vadd.f32 %v3005_v10, %v20028_v8  ;;  %v20571_v21 = vadd.f32 %v3654_v0, %v3276_v58  ;;  %17088 = vmatpush3.msra.mxu1 %v6318_v5  ;;  %v4050_v8 = vld [vmem:[%s24375_s0 + $0x198] sm:$0xff]  ;;  %v24647_v0 = vld [vmem:[#allocation29_spill] sm:$0xff] }
 0x20e   :  { %v16643_v26 = vpop.f32.mrf.mxu0  ;;  %v16729_v42 = vpop.f32.mrf.mxu1  ;;  %16880 = vmatmul.mubr.msk.f32.gmra.mxu0 %vm229_vm1, %v4048_v4  ;;  %16966 = vmatmul.mubr.msk.f32.gmra.mxu1 %vm229_vm1, %v24644_v60  ;;  %v4051_v4 = vld [vmem:[%s24375_s0 + $0x1a0] sm:$0xff]  ;;  %v24649_v60 = vld [vmem:[#allocation31_spill] sm:$0xff] }
 0x20f   :  { %v3283_v56 = vadd.f32 %v16643_v26, %v20035_v37  ;;  %v20577_v48 = vadd.f32 %v16729_v42, %v3279_v25  ;;  %16882 = vmatprep.mubr.msk.f32.mxu0 %vm229_vm1, %v4049_v51  ;;  %16968 = vmatprep.mubr.msk.f32.mxu1 %vm229_vm1, %v24645_v14  ;;  %v24648_v51 = vld [vmem:[#allocation38_spill] sm:$0xff] }
 0x210   :  { %v3015_v58 = vpop.f32.mrf.mxu0  ;;  %v3664_v38 = vpop.f32.mrf.mxu1 }
 0x211   :  { %v20589_v5 = vadd.f32 %v3015_v58, %v20052_v46  ;;  %v20591_v37 = vadd.f32 %v3664_v38, %v3278_v29  ;;  %v4052_v46 = vld [vmem:[%s24375_s0 + $0x1a8] sm:$0xff]  ;;  %v24650_v58 = vld [vmem:[#allocation48_spill] sm:$0xff] }
 0x212   :  { %v16646_v25 = vpop.f32.mrf.mxu0  ;;  %v16732_v10 = vpop.f32.mrf.mxu1  ;;  %16883 = vmatmul.mubr.msk.f32.gmra.mxu0 %vm229_vm1, %v4050_v8  ;;  %16969 = vmatmul.mubr.msk.f32.gmra.mxu1 %vm229_vm1, %v24647_v0  ;;  %v4053_v8 = vld [vmem:[%s24375_s0 + $0x1b0] sm:$0xff]  ;;  %v24652_v0 = vld [vmem:[#allocation40_spill] sm:$0xff] }
 0x213   :  { %24646 = vst [vmem:[#allocation53_spill] sm:$0xff] %v20589_v5  ;;  %v3285_v26 = vadd.f32 %v16646_v25, %v24648_v51  ;;  %v20597_v42 = vadd.f32 %v16732_v10, %v3281_v34  ;;  %16885 = vmatprep.mubr.msk.f32.mxu0 %vm229_vm1, %v4051_v4  ;;  %16971 = vmatprep.mubr.msk.f32.mxu1 %vm229_vm1, %v24649_v60  ;;  %v24651_v10 = vld [vmem:[#allocation32_spill] sm:$0xff]  ;;  %v24653_v5 = vld [vmem:[#allocation33_spill] sm:$0xff] }
 0x214   :  { %v3025_v29 = vpop.f32.mrf.mxu0  ;;  %v3674_v14 = vpop.f32.mrf.mxu1 }
 0x215   :  { %v20609_v38 = vadd.f32 %v3025_v29, %v24650_v58  ;;  %v20611_v34 = vadd.f32 %v3674_v14, %v3280_v18  ;;  %v4054_v18 = vld [vmem:[%s24375_s0 + $0x1b8] sm:$0xff] }
 0x216   :  { %v16649_v25 = vpop.f32.mrf.mxu0  ;;  %v16735_v4 = vpop.f32.mrf.mxu1  ;;  %16886 = vmatmul.mubr.msk.f32.gmra.mxu0 %vm229_vm1, %v4052_v46  ;;  %16972 = vmatmul.mubr.msk.f32.gmra.mxu1 %vm229_vm1, %v24651_v10  ;;  %v4055_v46 = vld [vmem:[%s24375_s0 + $0x1c0] sm:$0xff] }
 0x217   :  { %v3287_v51 = vadd.f32 %v16649_v25, %v24652_v0  ;;  %v20617_v60 = vadd.f32 %v16735_v4, %v3283_v56  ;;  %16888 = vmatprep.mubr.msk.f32.mxu0 %vm229_vm1, %v4053_v8  ;;  %16974 = vmatprep.mubr.msk.f32.mxu1 %vm229_vm1, %v24653_v5  ;;  %v24655_v8 = vld [vmem:[#allocation34_spill] sm:$0xff]  ;;  %v24656_v5 = vld [vmem:[#allocation49_spill] sm:$0xff]  ;;  %v24657_v0 = vld [vmem:[#allocation35_spill] sm:$0xff] }
 0x218   :  { %v3035_v29 = vpop.f32.mrf.mxu0  ;;  %v20625_v14 = vpop.f32.mrf.mxu1 }
 0x219   :  { %v20631_v58 = vadd.f32 %v3035_v29, %v20100_v62  ;;  %v4056_v62 = vld [vmem:[%s24375_s0 + $0x1c8] sm:$0xff] }
 0x21a   :  { %v16652_v56 = vpop.f32.mrf.mxu0  ;;  %v16738_v25 = vpop.f32.mrf.mxu1  ;;  %16889 = vmatmul.mubr.msk.f32.gmra.mxu0 %vm229_vm1, %v4054_v18  ;;  %16975 = vmatmul.mubr.msk.f32.gmra.mxu1 %vm229_vm1, %v24655_v8  ;;  %v4057_v18 = vld [vmem:[%s24375_s0 + $0x1d0] sm:$0xff] }
 0x21b   :  { %24654 = vst [vmem:[#allocation52_spill] sm:$0xff] %v20631_v58  ;;  %v3289_v4 = vadd.f32 %v16652_v56, %v24656_v5  ;;  %v20637_v10 = vadd.f32 %v16738_v25, %v3285_v26  ;;  %16891 = vmatprep.mubr.msk.f32.mxu0 %vm229_vm1, %v4055_v46  ;;  %16977 = vmatprep.mubr.msk.f32.mxu1 %vm229_vm1, %v24657_v0  ;;  %v24659_v46 = vld [vmem:[#allocation36_spill] sm:$0xff]  ;;  %v24660_v0 = vld [vmem:[#allocation37_spill] sm:$0xff] }
 0x21c   :  { %v3045_v29 = vpop.f32.mrf.mxu0  ;;  %v20645_v58 = vpop.f32.mrf.mxu1 }
 0x21d   :  { %v20651_v56 = vadd.f32 %v3045_v29, %v20124_v61  ;;  %v4058_v61 = vld [vmem:[%s24375_s0 + $0x1d8] sm:$0xff] }
 0x21e   :  { %v16655_v26 = vpop.f32.mrf.mxu0  ;;  %v16741_v25 = vpop.f32.mrf.mxu1  ;;  %16892 = vmatmul.mubr.msk.f32.gmra.mxu0 %vm229_vm1, %v4056_v62  ;;  %16978 = vmatmul.mubr.msk.f32.gmra.mxu1 %vm229_vm1, %v24659_v46  ;;  %v4059_v62 = vld [vmem:[%s24375_s0 + $0x1e0] sm:$0xff] }
 0x21f   :  { %24658 = vst [vmem:[#allocation54_spill] sm:$0xff] %v20651_v56  ;;  %v3291_v8 = vadd.f32 %v16655_v26, %v20131_v9  ;;  %v20657_v5 = vadd.f32 %v16741_v25, %v3287_v51  ;;  %16894 = vmatprep.mubr.msk.f32.mxu0 %vm229_vm1, %v4057_v18  ;;  %16980 = vmatprep.mubr.msk.f32.mxu1 %vm229_vm1, %v24660_v0  ;;  %v24663_v18 = vld [vmem:[#allocation39_spill] sm:$0xff] }
 0x220   :  { %v3055_v29 = vpop.f32.mrf.mxu0  ;;  %v20665_v56 = vpop.f32.mrf.mxu1  ;;  %v24664_v25 = vld [vmem:[#allocation43_spill] sm:$0xff] }
 0x221   :  { %24661 = vst [vmem:[#allocation55_spill] sm:$0xff] %v20665_v56  ;;  %v20671_v9 = vadd.f32 %v3055_v29, %v20144_v41  ;;  %v24665_v56 = vld [vmem:[#allocation94_spill] sm:$0xff] }
 0x222   :  { %v16658_v51 = vpop.f32.mrf.mxu0  ;;  %v16744_v26 = vpop.f32.mrf.mxu1  ;;  %16895 = vmatmul.mubr.msk.f32.gmra.mxu0 %vm229_vm1, %v4058_v61  ;;  %16981 = vmatmul.mubr.msk.f32.gmra.mxu1 %vm229_vm1, %v24663_v18  ;;  %v4060_v41 = vld [vmem:[%s24375_s0 + $0x1e8] sm:$0xff]  ;;  %v4061_v61 = vld [vmem:[%s24375_s0 + $0x1f0] sm:$0xff] }
 0x223   :  { %24662 = vst [vmem:[#allocation22_spill] sm:$0xff] %v20671_v9  ;;  %v3293_v46 = vadd.f32 %v16658_v51, %v24664_v25  ;;  %v20677_v0 = vadd.f32 %v16744_v26, %v3289_v4  ;;  %16897 = vmatprep.mubr.msk.f32.mxu0 %vm229_vm1, %v4059_v62  ;;  %16983 = vmatprep.mubr.msk.f32.mxu1 %vm229_vm1, %v24665_v56  ;;  %v24667_v62 = vld [vmem:[#allocation41_spill] sm:$0xff]  ;;  %v24668_v25 = vld [vmem:[#allocation95_spill] sm:$0xff] }
 0x224   :  { %v3065_v29 = vpop.f32.mrf.mxu0  ;;  %v20685_v9 = vpop.f32.mrf.mxu1 }
 0x225   :  { %v20691_v51 = vadd.f32 %v3065_v29, %v20165_v57  ;;  %v4062_v57 = vld [vmem:[%s24375_s0 + $0x1f8] sm:$0x3f] }
 0x226   :  { %v16661_v4 = vpop.f32.mrf.mxu0  ;;  %v16747_v26 = vpop.f32.mrf.mxu1  ;;  %16898 = vmatmul.mubr.msk.f32.gmra.mxu0 %vm229_vm1, %v4060_v41  ;;  %16984 = vmatmul.mubr.msk.f32.gmra.mxu1 %vm229_vm1, %v24667_v62  ;;  %v5341_v41 = vld [vmem:[%s24375_s0 + $0x22] sm:$0xff] }
 0x227   :  { %24666 = vst [vmem:[#allocation56_spill] sm:$0xff] %v20691_v51  ;;  %v3295_v56 = vadd.f32 %v16661_v4, %v20173_v7  ;;  %v20697_v18 = vadd.f32 %v16747_v26, %v3291_v8  ;;  %16900 = vmatprep.mubr.msk.f32.mxu0 %vm229_vm1, %v4061_v61  ;;  %16986 = vmatprep.mubr.msk.f32.mxu1 %vm229_vm1, %v24668_v25  ;;  %v6317_v8 = vld [vmem:[%s24378_s3 + $0x30] sm:$0xff] }
 0x228   :  { %v3075_v29 = vpop.f32.mrf.mxu0  ;;  %v20705_v51 = vpop.f32.mrf.mxu1  ;;  %v24671_v26 = vld [vmem:[#allocation42_spill] sm:$0xff]  ;;  %17089 = vmatprep.subr.mxu1 %v6317_v8 }
 0x229   :  { %24669 = vst [vmem:[#allocation57_spill] sm:$0xff] %v20705_v51  ;;  %v20711_v7 = vadd.f32 %v3075_v29, %v20189_v55  ;;  %v24672_v51 = vld [vmem:[#allocation50_spill] sm:$0xff]  ;;  %17090 = vmatpush3.msra.mxu1 %v6317_v8  ;;  %v5344_v8 = vld [vmem:[%s24375_s0 + $0x3a] sm:$0xff] }
 0x22a   :  { %v16664_v61 = vpop.f32.mrf.mxu0  ;;  %v16750_v4 = vpop.f32.mrf.mxu1  ;;  %16901 = vmatmul.mubr.msk.f32.gmra.mxu0 %vm229_vm1, %v4062_v57  ;;  %16987 = vmatmul.mubr.msk.f32.gmra.mxu1 %vm229_vm1, %v24671_v26  ;;  %v4729_v55 = vld [vmem:[%s24375_s0 + $0x1e9] sm:$0xff] }
 0x22b   :  { %24670 = vst [vmem:[#allocation58_spill] sm:$0xff] %v20711_v7  ;;  %v3297_v62 = vadd.f32 %v16664_v61, %v20194_v53  ;;  %v20720_v25 = vadd.f32 %v16750_v4, %v3293_v46  ;;  %16989 = vmatprep.mubr.msk.f32.mxu1 %vm229_vm1, %v24672_v51  ;;  %16997 = vmatprep.mubr.msk.f32.mxu0 %vm229_vm1, %v5341_v41  ;;  %v5342_v57 = vld [vmem:[%s24375_s0 + $0x2a] sm:$0xff]  ;;  %v5343_v46 = vld [vmem:[%s24375_s0 + $0x32] sm:$0xff] }
 0x22c   :  { %v3085_v29 = vpop.f32.mrf.mxu0  ;;  %v20731_v7 = vpop.f32.mrf.mxu1  ;;  %v4730_v53 = vld [vmem:[%s24375_s0 + $0x1f1] sm:$0xff] }
 0x22d   :  { %24673 = vst [vmem:[#allocation59_spill] sm:$0xff] %v20731_v7  ;;  %v20740_v51 = vadd.f32 %v3085_v29, %v20206_v27  ;;  %v4731_v27 = vld [vmem:[%s24375_s0 + $0x1f9] sm:$0x3f] }
 0x22e   :  { %v16667_v41 = vpop.f32.mrf.mxu0  ;;  %v16753_v61 = vpop.f32.mrf.mxu1  ;;  %16990 = vmatmul.mubr.msk.f32.gmra.mxu1 %vm229_vm1, %v4729_v55  ;;  %16998 = vmatmul.mubr.msk.f32.vlgmr.msra.gmra.mxu0 %vm229_vm1, %v5342_v57 }
 0x22f   :  { %24674 = vst [vmem:[#allocation60_spill] sm:$0xff] %v20740_v51  ;;  %v3299_v4 = vadd.f32 %v16667_v41, %v20212_v45  ;;  %v20745_v26 = vadd.f32 %v16753_v61, %v3295_v56  ;;  %16992 = vmatprep.mubr.msk.f32.mxu1 %vm229_vm1, %v4730_v53  ;;  %17000 = vmatprep.mubr.msk.f32.mxu0 %vm229_vm1, %v5343_v46  ;;  %v5345_v45 = vld [vmem:[%s24375_s0 + $0x42] sm:$0xff]  ;;  %v5346_v61 = vld [vmem:[%s24375_s0 + $0x4a] sm:$0xff] }
 0x230   :  { %v3095_v29 = vpop.f32.mrf.mxu0  ;;  %v20755_v55 = vpop.f32.mrf.mxu1 }
 0x231   :  { %24675 = vst [vmem:[#allocation61_spill] sm:$0xff] %v20755_v55  ;;  %v20761_v56 = vadd.f32 %v3095_v29, %v20224_v43  ;;  %v5347_v43 = vld [vmem:[%s24375_s0 + $0x52] sm:$0xff] }
 0x232   :  { %v16670_v57 = vpop.f32.mrf.mxu0  ;;  %v16756_v53 = vpop.f32.mrf.mxu1  ;;  %16993 = vmatmul.mubr.msk.f32.gmra.mxu1 %vm229_vm1, %v4731_v27  ;;  %17001 = vmatmul.mubr.msk.f32.gmra.mxu0 %vm229_vm1, %v5344_v8 }
 0x233   :  { %24676 = vst [vmem:[#allocation62_spill] sm:$0xff] %v20761_v56  ;;  %v3301_v46 = vadd.f32 %v16670_v57, %v20230_v6  ;;  %v20766_v41 = vadd.f32 %v16756_v53, %v3297_v62  ;;  %17003 = vmatprep.mubr.msk.f32.mxu0 %vm229_vm1, %v5345_v45  ;;  %v5348_v45 = vld [vmem:[%s24375_s0 + $0x5a] sm:$0xff]  ;;  %v5399_v56 = vld [vmem:[%s24375_s0 + $0x1f2] sm:$0xff] }
 0x234   :  { %v3105_v51 = vpop.f32.mrf.mxu0  ;;  %v20772_v55 = vpop.f32.mrf.mxu1 }
 0x235   :  { %24677 = vst [vmem:[#allocation63_spill] sm:$0xff] %v20772_v55  ;;  %v20778_v27 = vadd.f32 %v3105_v51, %v20242_v63  ;;  %v5349_v63 = vld [vmem:[%s24375_s0 + $0x62] sm:$0xff] }
 0x236   :  { %v16673_v8 = vpop.f32.mrf.mxu0  ;;  %v16759_v6 = vpop.f32.mrf.mxu1  ;;  %17004 = vmatmul.mubr.msk.f32.gmra.mxu0 %vm229_vm1, %v5346_v61 }
 0x237   :  { %24678 = vst [vmem:[#allocation64_spill] sm:$0xff] %v20778_v27  ;;  %v3303_v62 = vadd.f32 %v16673_v8, %v20248_v11  ;;  %v20782_v29 = vadd.f32 %v16759_v6, %v3299_v4  ;;  %17006 = vmatprep.mubr.msk.f32.mxu0 %vm229_vm1, %v5347_v43  ;;  %v5350_v8 = vld [vmem:[%s24375_s0 + $0x6a] sm:$0xff] }
 0x238   :  { %v3115_v57 = vpop.f32.mrf.mxu0  ;;  %v20788_v53 = vpop.f32.mrf.mxu1 }
 0x239   :  { %24679 = vst [vmem:[#allocation65_spill] sm:$0xff] %v20788_v53  ;;  %v20794_v51 = vadd.f32 %v3115_v57, %v20260_v16  ;;  %v5351_v16 = vld [vmem:[%s24375_s0 + $0x72] sm:$0xff] }
 0x23a   :  { %v16676_v61 = vpop.f32.mrf.mxu0  ;;  %v16762_v11 = vpop.f32.mrf.mxu1  ;;  %17007 = vmatmul.mubr.msk.f32.gmra.mxu0 %vm229_vm1, %v5348_v45 }
 0x23b   :  { %24680 = vst [vmem:[#allocation66_spill] sm:$0xff] %v20794_v51  ;;  %v3305_v4 = vadd.f32 %v16676_v61, %v20266_v19  ;;  %v20798_v43 = vadd.f32 %v16762_v11, %v3301_v46  ;;  %17009 = vmatprep.mubr.msk.f32.mxu0 %vm229_vm1, %v5349_v63  ;;  %v5352_v61 = vld [vmem:[%s24375_s0 + $0x7a] sm:$0xff] }
 0x23c   :  { %v3125_v6 = vpop.f32.mrf.mxu0  ;;  %v20804_v27 = vpop.f32.mrf.mxu1 }
 0x23d   :  { %24681 = vst [vmem:[#allocation67_spill] sm:$0xff] %v20804_v27  ;;  %v20810_v57 = vadd.f32 %v3125_v6, %v20278_v20  ;;  %v5353_v20 = vld [vmem:[%s24375_s0 + $0x82] sm:$0xff] }
 0x23e   :  { %v16679_v45 = vpop.f32.mrf.mxu0  ;;  %v16765_v19 = vpop.f32.mrf.mxu1  ;;  %17010 = vmatmul.mubr.msk.f32.gmra.mxu0 %vm229_vm1, %v5350_v8  ;;  %v5397_v27 = vld [vmem:[%s24375_s0 + $0x1e2] sm:$0xff] }
 0x23f   :  { %24682 = vst [vmem:[#allocation68_spill] sm:$0xff] %v20810_v57  ;;  %v3307_v46 = vadd.f32 %v16679_v45, %v20284_v35  ;;  %v20814_v63 = vadd.f32 %v16765_v19, %v3303_v62  ;;  %17012 = vmatprep.mubr.msk.f32.mxu0 %vm229_vm1, %v5351_v16  ;;  %v5354_v45 = vld [vmem:[%s24375_s0 + $0x8a] sm:$0xff] }
 0x240   :  { %v3135_v11 = vpop.f32.mrf.mxu0  ;;  %v20820_v51 = vpop.f32.mrf.mxu1 }
 0x241   :  { %24683 = vst [vmem:[#allocation69_spill] sm:$0xff] %v20820_v51  ;;  %v20826_v6 = vadd.f32 %v3135_v11, %v20296_v24  ;;  %v5355_v24 = vld [vmem:[%s24375_s0 + $0x92] sm:$0xff] }
 0x242   :  { %v16682_v8 = vpop.f32.mrf.mxu0  ;;  %v16768_v35 = vpop.f32.mrf.mxu1  ;;  %17013 = vmatmul.mubr.msk.f32.gmra.mxu0 %vm229_vm1, %v5352_v61 }
 0x243   :  { %24684 = vst [vmem:[#allocation70_spill] sm:$0xff] %v20826_v6  ;;  %v3309_v62 = vadd.f32 %v16682_v8, %v20302_v15  ;;  %v20830_v16 = vadd.f32 %v16768_v35, %v3305_v4  ;;  %17015 = vmatprep.mubr.msk.f32.mxu0 %vm229_vm1, %v5353_v20  ;;  %v5356_v8 = vld [vmem:[%s24375_s0 + $0x9a] sm:$0xff]  ;;  %v6316_v35 = vld [vmem:[%s24378_s3 + $0x28] sm:$0xff] }
 0x244   :  { %v3145_v19 = vpop.f32.mrf.mxu0  ;;  %v20836_v57 = vpop.f32.mrf.mxu1  ;;  %17091 = vmatprep.subr.mxu1 %v6316_v35 }
 0x245   :  { %24685 = vst [vmem:[#allocation71_spill] sm:$0xff] %v20836_v57  ;;  %v20842_v11 = vadd.f32 %v3145_v19, %v20314_v28  ;;  %17092 = vmatpush3.msra.mxu1 %v6316_v35  ;;  %v5395_v57 = vld [vmem:[%s24375_s0 + $0x1d2] sm:$0xff] }
 0x246   :  { %v16685_v61 = vpop.f32.mrf.mxu0  ;;  %v16771_v15 = vpop.f32.mrf.mxu1  ;;  %17016 = vmatmul.mubr.msk.f32.gmra.mxu0 %vm229_vm1, %v5354_v45  ;;  %v5357_v45 = vld [vmem:[%s24375_s0 + $0xa2] sm:$0xff] }
 0x247   :  { %24686 = vst [vmem:[#allocation72_spill] sm:$0xff] %v20842_v11  ;;  %v3311_v4 = vadd.f32 %v16685_v61, %v20320_v17  ;;  %v20846_v20 = vadd.f32 %v16771_v15, %v3307_v46  ;;  %17018 = vmatprep.mubr.msk.f32.mxu0 %vm229_vm1, %v5355_v24  ;;  %v5358_v11 = vld [vmem:[%s24375_s0 + $0xaa] sm:$0xff] }
 0x248   :  { %v3155_v28 = vpop.f32.mrf.mxu0  ;;  %v20855_v19 = vpop.f32.mrf.mxu1 }
 0x249   :  { %24687 = vst [vmem:[#allocation73_spill] sm:$0xff] %v20855_v19  ;;  %v20861_v17 = vadd.f32 %v3155_v28, %v20332_v32  ;;  %v5359_v32 = vld [vmem:[%s24375_s0 + $0xb2] sm:$0xff] }
 0x24a   :  { %v16688_v46 = vpop.f32.mrf.mxu0  ;;  %v16774_v24 = vpop.f32.mrf.mxu1  ;;  %17019 = vmatmul.mubr.msk.f32.gmra.mxu0 %vm229_vm1, %v5356_v8 }
 0x24b   :  { %24688 = vst [vmem:[#allocation74_spill] sm:$0xff] %v20861_v17  ;;  %v3313_v61 = vadd.f32 %v16688_v46, %v20338_v1  ;;  %v20865_v15 = vadd.f32 %v16774_v24, %v3309_v62  ;;  %17021 = vmatprep.mubr.msk.f32.mxu0 %vm229_vm1, %v5357_v45  ;;  %v5360_v45 = vld [vmem:[%s24375_s0 + $0xba] sm:$0xff]  ;;  %v5393_v17 = vld [vmem:[%s24375_s0 + $0x1c2] sm:$0xff] }
 0x24c   :  { %v3165_v19 = vpop.f32.mrf.mxu0  ;;  %v20871_v6 = vpop.f32.mrf.mxu1 }
 0x24d   :  { %24689 = vst [vmem:[#allocation75_spill] sm:$0xff] %v20871_v6  ;;  %v20877_v35 = vadd.f32 %v3165_v19, %v20350_v36  ;;  %v5361_v36 = vld [vmem:[%s24375_s0 + $0xc2] sm:$0xff] }
 0x24e   :  { %v16691_v8 = vpop.f32.mrf.mxu0  ;;  %v16777_v1 = vpop.f32.mrf.mxu1  ;;  %17022 = vmatmul.mubr.msk.f32.gmra.mxu0 %vm229_vm1, %v5358_v11 }
 0x24f   :  { %24690 = vst [vmem:[#allocation76_spill] sm:$0xff] %v20877_v35  ;;  %v3315_v62 = vadd.f32 %v16691_v8, %v20356_v13  ;;  %v20881_v28 = vadd.f32 %v16777_v1, %v3311_v4  ;;  %17024 = vmatprep.mubr.msk.f32.mxu0 %vm229_vm1, %v5359_v32  ;;  %v5362_v8 = vld [vmem:[%s24375_s0 + $0xca] sm:$0xff] }
 0x250   :  { %v3175_v46 = vpop.f32.mrf.mxu0  ;;  %v20887_v24 = vpop.f32.mrf.mxu1 }
 0x251   :  { %24691 = vst [vmem:[#allocation77_spill] sm:$0xff] %v20887_v24  ;;  %v20893_v19 = vadd.f32 %v3175_v46, %v20368_v40  ;;  %v5363_v40 = vld [vmem:[%s24375_s0 + $0xd2] sm:$0xff] }
 0x252   :  { %v16694_v11 = vpop.f32.mrf.mxu0  ;;  %v16780_v13 = vpop.f32.mrf.mxu1  ;;  %17025 = vmatmul.mubr.msk.f32.gmra.mxu0 %vm229_vm1, %v5360_v45 }
 0x253   :  { %24692 = vst [vmem:[#allocation78_spill] sm:$0xff] %v20893_v19  ;;  %v3317_v4 = vadd.f32 %v16694_v11, %v20374_v33  ;;  %v20897_v32 = vadd.f32 %v16780_v13, %v3313_v61  ;;  %17027 = vmatprep.mubr.msk.f32.mxu0 %vm229_vm1, %v5361_v36  ;;  %v5364_v11 = vld [vmem:[%s24375_s0 + $0xda] sm:$0xff] }
 0x254   :  { %v3185_v1 = vpop.f32.mrf.mxu0  ;;  %v20903_v35 = vpop.f32.mrf.mxu1 }
 0x255   :  { %24693 = vst [vmem:[#allocation86_spill] sm:$0xff] %v20903_v35  ;;  %v20909_v46 = vadd.f32 %v3185_v1, %v20386_v44  ;;  %v5365_v44 = vld [vmem:[%s24375_s0 + $0xe2] sm:$0xff]  ;;  %v5391_v35 = vld [vmem:[%s24375_s0 + $0x1b2] sm:$0xff] }
 0x256   :  { %v16697_v45 = vpop.f32.mrf.mxu0  ;;  %v16783_v33 = vpop.f32.mrf.mxu1  ;;  %17028 = vmatmul.mubr.msk.f32.gmra.mxu0 %vm229_vm1, %v5362_v8 }
 0x257   :  { %24694 = vst [vmem:[#allocation79_spill] sm:$0xff] %v20909_v46  ;;  %v3319_v61 = vadd.f32 %v16697_v45, %v20392_v31  ;;  %v20913_v36 = vadd.f32 %v16783_v33, %v3315_v62  ;;  %17030 = vmatprep.mubr.msk.f32.mxu0 %vm229_vm1, %v5363_v40  ;;  %v5366_v45 = vld [vmem:[%s24375_s0 + $0xea] sm:$0xff] }
 0x258   :  { %v3195_v13 = vpop.f32.mrf.mxu0  ;;  %v20919_v19 = vpop.f32.mrf.mxu1 }
 0x259   :  { %24695 = vst [vmem:[#allocation80_spill] sm:$0xff] %v20919_v19  ;;  %v20925_v1 = vadd.f32 %v3195_v13, %v20404_v50  ;;  %v5367_v50 = vld [vmem:[%s24375_s0 + $0xf2] sm:$0xff] }
 0x25a   :  { %v16700_v8 = vpop.f32.mrf.mxu0  ;;  %v16786_v31 = vpop.f32.mrf.mxu1  ;;  %17031 = vmatmul.mubr.msk.f32.gmra.mxu0 %vm229_vm1, %v5364_v11 }
 0x25b   :  { %24696 = vst [vmem:[#allocation89_spill] sm:$0xff] %v20925_v1  ;;  %v3321_v62 = vadd.f32 %v16700_v8, %v20410_v39  ;;  %v20929_v40 = vadd.f32 %v16786_v31, %v3317_v4  ;;  %17033 = vmatprep.mubr.msk.f32.mxu0 %vm229_vm1, %v5365_v44  ;;  %v24699_v4 = vld [vmem:[#allocation51_spill] sm:$0xff] }
 0x25c   :  { %v3205_v33 = vpop.f32.mrf.mxu0  ;;  %v20935_v46 = vpop.f32.mrf.mxu1  ;;  %v5368_v31 = vld [vmem:[%s24375_s0 + $0xfa] sm:$0xff] }
 0x25d   :  { %24697 = vst [vmem:[#allocation81_spill] sm:$0xff] %v20935_v46  ;;  %v20941_v13 = vadd.f32 %v3205_v33, %v20422_v54  ;;  %v5369_v54 = vld [vmem:[%s24375_s0 + $0x102] sm:$0xff] }
 0x25e   :  { %v16703_v11 = vpop.f32.mrf.mxu0  ;;  %v16789_v39 = vpop.f32.mrf.mxu1  ;;  %17034 = vmatmul.mubr.msk.f32.gmra.mxu0 %vm229_vm1, %v5366_v45  ;;  %v24701_v33 = vld [vmem:[#allocation44_spill] sm:$0xff] }
 0x25f   :  { %24698 = vst [vmem:[#allocation28_spill] sm:$0xff] %v20941_v13  ;;  %v3323_v44 = vadd.f32 %v16703_v11, %v24699_v4  ;;  %v20945_v8 = vadd.f32 %v16789_v39, %v3319_v61  ;;  %17036 = vmatprep.mubr.msk.f32.mxu0 %vm229_vm1, %v5367_v50  ;;  %v24703_v61 = vld [vmem:[#allocation45_spill] sm:$0xff] }
 0x260   :  { %v3215_v1 = vpop.f32.mrf.mxu0  ;;  %v20951_v46 = vpop.f32.mrf.mxu1  ;;  %v5370_v4 = vld [vmem:[%s24375_s0 + $0x10a] sm:$0xff] }
 0x261   :  { %24700 = vst [vmem:[#allocation91_spill] sm:$0xff] %v20951_v46  ;;  %v20957_v13 = vadd.f32 %v3215_v1, %v24701_v33  ;;  %v5371_v1 = vld [vmem:[%s24375_s0 + $0x112] sm:$0xff] }
 0x262   :  { %v16706_v45 = vpop.f32.mrf.mxu0  ;;  %v16792_v11 = vpop.f32.mrf.mxu1  ;;  %17037 = vmatmul.mubr.msk.f32.gmra.mxu0 %vm229_vm1, %v5368_v31  ;;  %v24705_v33 = vld [vmem:[#allocation46_spill] sm:$0xff] }
 0x263   :  { %24702 = vst [vmem:[#allocation82_spill] sm:$0xff] %v20957_v13  ;;  %v3325_v50 = vadd.f32 %v16706_v45, %v24703_v61  ;;  %v20961_v39 = vadd.f32 %v16792_v11, %v3321_v62  ;;  %17039 = vmatprep.mubr.msk.f32.mxu0 %vm229_vm1, %v5369_v54  ;;  %v6315_v62 = vld [vmem:[%s24378_s3 + $0x20] sm:$0xff]  ;;  %v24707_v45 = vld [vmem:[#allocation47_spill] sm:$0xff] }
 0x264   :  { %v3225_v46 = vpop.f32.mrf.mxu0  ;;  %v20967_v19 = vpop.f32.mrf.mxu1  ;;  %17093 = vmatprep.subr.mxu1 %v6315_v62 }
 0x265   :  { %24704 = vst [vmem:[#allocation30_spill] sm:$0xff] %v20967_v19  ;;  %v20973_v13 = vadd.f32 %v3225_v46, %v24705_v33  ;;  %v5372_v46 = vld [vmem:[%s24375_s0 + $0x11a] sm:$0xff]  ;;  %17094 = vmatpush3.msra.mxu1 %v6315_v62  ;;  %v5373_v19 = vld [vmem:[%s24375_s0 + $0x122] sm:$0xff]  ;;  %v5374_v62 = vld [vmem:[%s24375_s0 + $0x12a] sm:$0xff] }
 0x266   :  { %v16709_v31 = vpop.f32.mrf.mxu0  ;;  %v16795_v54 = vpop.f32.mrf.mxu1  ;;  %17040 = vmatmul.mubr.msk.f32.gmra.mxu0 %vm229_vm1, %v5370_v4 }
 0x267   :  { %24706 = vst [vmem:[#allocation25_spill] sm:$0xff] %v20973_v13  ;;  %v3327_v11 = vadd.f32 %v16709_v31, %v24707_v45  ;;  %v20980_v61 = vadd.f32 %v16795_v54, %v3323_v44  ;;  %17042 = vmatprep.mubr.msk.f32.mxu0 %vm229_vm1, %v5371_v1 }
 0x268   :  { %v3235_v33 = vpop.f32.mrf.mxu0  ;;  %v20986_v13 = vpop.f32.mrf.mxu1 }
 0x269   :  { %24708 = vst [vmem:[#allocation83_spill] sm:$0xff] %v20986_v13  ;;  %v20992_v4 = vadd.f32 %v3235_v33, %v20478_v22  ;;  %v5375_v22 = vld [vmem:[%s24375_s0 + $0x132] sm:$0xff] }
 0x26a   :  { %v16712_v31 = vpop.f32.mrf.mxu0  ;;  %v16798_v44 = vpop.f32.mrf.mxu1  ;;  %17043 = vmatmul.mubr.msk.f32.gmra.mxu0 %vm229_vm1, %v5372_v46 }
 0x26b   :  { %24709 = vst [vmem:[#allocation84_spill] sm:$0xff] %v20992_v4  ;;  %v3329_v1 = vadd.f32 %v16712_v31, %v20485_v49  ;;  %v20996_v54 = vadd.f32 %v16798_v44, %v3325_v50  ;;  %17045 = vmatprep.mubr.msk.f32.mxu0 %vm229_vm1, %v5373_v19  ;;  %v5376_v31 = vld [vmem:[%s24375_s0 + $0x13a] sm:$0xff] }
 0x26c   :  { %v3245_v45 = vpop.f32.mrf.mxu0  ;;  %v21002_v13 = vpop.f32.mrf.mxu1 }
 0x26d   :  { %24710 = vst [vmem:[#allocation26_spill] sm:$0xff] %v21002_v13  ;;  %v21008_v33 = vadd.f32 %v3245_v45, %v20496_v23  ;;  %v5377_v23 = vld [vmem:[%s24375_s0 + $0x142] sm:$0xff] }
 0x26e   :  { %v16715_v46 = vpop.f32.mrf.mxu0  ;;  %v16801_v49 = vpop.f32.mrf.mxu1  ;;  %17046 = vmatmul.mubr.msk.f32.gmra.mxu0 %vm229_vm1, %v5374_v62 }
 0x26f   :  { %24711 = vst [vmem:[#allocation85_spill] sm:$0xff] %v21008_v33  ;;  %v3331_v19 = vadd.f32 %v16715_v46, %v20501_v12  ;;  %v21012_v50 = vadd.f32 %v16801_v49, %v3327_v11  ;;  %17048 = vmatprep.mubr.msk.f32.mxu0 %vm229_vm1, %v5375_v22  ;;  %v5378_v46 = vld [vmem:[%s24375_s0 + $0x14a] sm:$0xff] }
 0x270   :  { %v3255_v44 = vpop.f32.mrf.mxu0  ;;  %v21018_v4 = vpop.f32.mrf.mxu1 }
 0x271   :  { %24712 = vst [vmem:[#allocation87_spill] sm:$0xff] %v21018_v4  ;;  %v21024_v45 = vadd.f32 %v3255_v44, %v20513_v52  ;;  %v5379_v52 = vld [vmem:[%s24375_s0 + $0x152] sm:$0xff] }
 0x272   :  { %v16718_v62 = vpop.f32.mrf.mxu0  ;;  %v16804_v12 = vpop.f32.mrf.mxu1  ;;  %17049 = vmatmul.mubr.msk.f32.gmra.mxu0 %vm229_vm1, %v5376_v31 }
 0x273   :  { %24713 = vst [vmem:[#allocation88_spill] sm:$0xff] %v21024_v45  ;;  %v3333_v11 = vadd.f32 %v16718_v62, %v20519_v3  ;;  %v21028_v22 = vadd.f32 %v16804_v12, %v3329_v1  ;;  %17051 = vmatprep.mubr.msk.f32.mxu0 %vm229_vm1, %v5377_v23  ;;  %v5380_v62 = vld [vmem:[%s24375_s0 + $0x15a] sm:$0xff] }
 0x274   :  { %v3265_v49 = vpop.f32.mrf.mxu0  ;;  %v21034_v33 = vpop.f32.mrf.mxu1 }
 0x275   :  { %24714 = vst [vmem:[#allocation23_spill] sm:$0xff] %v21034_v33  ;;  %v21040_v44 = vadd.f32 %v3265_v49, %v20531_v30  ;;  %v5381_v30 = vld [vmem:[%s24375_s0 + $0x162] sm:$0xff] }
 0x276   :  { %v16807_v31 = vpop.f32.mrf.mxu1  ;;  %v16815_v3 = vpop.f32.mrf.mxu0  ;;  %17052 = vmatmul.mubr.msk.f32.gmra.mxu0 %vm229_vm1, %v5378_v46 }
 0x277   :  { %24715 = vst [vmem:[#allocation90_spill] sm:$0xff] %v21040_v44  ;;  %v21043_v1 = vadd.f32 %v16807_v31, %v3331_v19  ;;  %v21046_v23 = vadd.f32 %v16815_v3, %v20538_v47  ;;  %17054 = vmatprep.mubr.msk.f32.mxu0 %vm229_vm1, %v5379_v52  ;;  %v7404_v47 = vld [vmem:[%s24378_s3 + $0x58] sm:$0xff] }
 0x278   :  { %v21052_v12 = vpop.f32.mrf.mxu1  ;;  %v4313_v45 = vpop.f32.mrf.mxu0  ;;  %17271 = vmatprep.subr.mxu0 %v7404_v47 }
 0x279   :  { %24716 = vst [vmem:[#allocation24_spill] sm:$0xff] %v21052_v12  ;;  %v21058_v46 = vadd.f32 %v4313_v45, %v20550_v2  ;;  %v5382_v2 = vld [vmem:[%s24375_s0 + $0x16a] sm:$0xff]  ;;  %17272 = vmatpush3.msra.mxu0 %v7404_v47 }
 0x27a   :  { %v16810_v19 = vpop.f32.mrf.mxu1  ;;  %v16818_v49 = vpop.f32.mrf.mxu0  ;;  %17055 = vmatmul.mubr.msk.f32.gmra.mxu0 %vm229_vm1, %v5380_v62  ;;  %v5383_v62 = vld [vmem:[%s24375_s0 + $0x172] sm:$0xff]  ;;  %v5386_v12 = vld [vmem:[%s24375_s0 + $0x18a] sm:$0xff] }
 0x27b   :  { %v21064_v52 = vadd.f32 %v16810_v19, %v3333_v11  ;;  %v21067_v31 = vadd.f32 %v16818_v49, %v20556_v59  ;;  %17057 = vmatprep.mubr.msk.f32.mxu0 %vm229_vm1, %v5381_v30  ;;  %v7403_v59 = vld [vmem:[%s24378_s3 + $0x50] sm:$0xff]  ;;  %v7402_v49 = vld [vmem:[%s24378_s3 + $0x48] sm:$0xff] }
 0x27c   :  { %v21073_v45 = vpop.f32.mrf.mxu1  ;;  %v4323_v3 = vpop.f32.mrf.mxu0  ;;  %17273 = vmatprep.subr.mxu0 %v7403_v59 }
 0x27d   :  { %24717 = vst [vmem:[#allocation92_spill] sm:$0xff] %v21073_v45  ;;  %v21082_v11 = vadd.f32 %v4323_v3, %v20571_v21  ;;  %v5384_v21 = vld [vmem:[%s24375_s0 + $0x17a] sm:$0xff]  ;;  %17274 = vmatpush3.msra.mxu0 %v7403_v59 }
 0x27e   :  { %v16821_v30 = vpop.f32.mrf.mxu0  ;;  %v21084_v19 = vpop.f32.mrf.mxu1  ;;  %17058 = vmatmul.mubr.msk.f32.gmra.mxu0 %vm229_vm1, %v5382_v2  ;;  %v5385_v2 = vld [vmem:[%s24375_s0 + $0x182] sm:$0xff]  ;;  %17275 = vmatprep.subr.mxu0 %v7402_v49 }
 0x27f   :  { %v21091_v45 = vadd.f32 %v16821_v30, %v20577_v48  ;;  %17060 = vmatprep.mubr.msk.f32.mxu0 %vm229_vm1, %v5383_v62  ;;  %v7401_v48 = vld [vmem:[%s24378_s3 + $0x40] sm:$0xff]  ;;  %17276 = vmatpush3.msra.mxu0 %v7402_v49  ;;  %v5387_v49 = vld [vmem:[%s24375_s0 + $0x192] sm:$0xff] }
 0x280   :  { %v4333_v47 = vpop.f32.mrf.mxu0  ;;  %v21097_v3 = vpop.f32.mrf.mxu1  ;;  %17277 = vmatprep.subr.mxu0 %v7401_v48 }
 0x281   :  { %v21106_v30 = vadd.f32 %v4333_v47, %v20591_v37  ;;  %17278 = vmatpush3.msra.mxu0 %v7401_v48  ;;  %v5388_v48 = vld [vmem:[%s24375_s0 + $0x19a] sm:$0xff] }
 0x282   :  { %v16824_v62 = vpop.f32.mrf.mxu0  ;;  %v21108_v44 = vpop.f32.mrf.mxu1  ;;  %17061 = vmatmul.mubr.msk.f32.gmra.mxu0 %vm229_vm1, %v5384_v21 }
 0x283   :  { %v21112_v59 = vadd.f32 %v16824_v62, %v20597_v42  ;;  %17063 = vmatprep.mubr.msk.f32.mxu0 %vm229_vm1, %v5385_v2 }
 0x284   :  { %v4343_v33 = vpop.f32.mrf.mxu0  ;;  %v21118_v37 = vpop.f32.mrf.mxu1 }
 0x285   :  { %v21124_v21 = vadd.f32 %v4343_v33, %v20611_v34  ;;  %v5389_v34 = vld [vmem:[%s24375_s0 + $0x1a2] sm:$0xff]  ;;  %v21146_v33 = vld [vmem:[%s24378_s3 + $0x18] sm:$0xff] }
 0x286   :  { %v16827_v47 = vpop.f32.mrf.mxu0  ;;  %v21126_v42 = vpop.f32.mrf.mxu1  ;;  %17064 = vmatmul.mubr.msk.f32.gmra.mxu0 %vm229_vm1, %v5386_v12  ;;  %17179 = vmatprep.subr.mxu1 %v21146_v33 }
 0x287   :  { %v21130_v2 = vadd.f32 %v16827_v47, %v20617_v60  ;;  %17066 = vmatprep.mubr.msk.f32.mxu0 %vm229_vm1, %v5387_v49  ;;  %v5390_v49 = vld [vmem:[%s24375_s0 + $0x1aa] sm:$0xff] }
 0x288   :  { %v21136_v62 = vpop.f32.mrf.mxu0  ;;  %v21138_v4 = vpop.f32.mrf.mxu1 }
 0x28a   :  { %v16830_v60 = vpop.f32.mrf.mxu0  ;;  %17067 = vmatmul.mubr.msk.f32.gmra.mxu0 %vm229_vm1, %v5388_v48  ;;  %v21157_v47 = vpop.f32.mrf.mxu1 }
 0x28b   :  { %v21151_v12 = vadd.f32 %v16830_v60, %v20637_v10  ;;  %17069 = vmatprep.mubr.msk.f32.mxu0 %vm229_vm1, %v5389_v34  ;;  %v5392_v34 = vld [vmem:[%s24375_s0 + $0x1ba] sm:$0xff] }
 0x28c   :  { %v21159_v13 = vpop.f32.mrf.mxu0  ;;  %v21172_v60 = vpop.f32.mrf.mxu1 }
 0x28e   :  { %v16833_v48 = vpop.f32.mrf.mxu0  ;;  %17070 = vmatmul.mubr.msk.f32.gmra.mxu0 %vm229_vm1, %v5390_v49  ;;  %v21187_v49 = vpop.f32.mrf.mxu1 }
 0x28f   :  { %v21166_v10 = vadd.f32 %v16833_v48, %v20657_v5  ;;  %17072 = vmatprep.mubr.msk.f32.mxu0 %vm229_vm1, %v5391_v35  ;;  %v5394_v35 = vld [vmem:[%s24375_s0 + $0x1ca] sm:$0xff] }
 0x290   :  { %v21174_v24 = vpop.f32.mrf.mxu0 }
 0x292   :  { %v16836_v6 = vpop.f32.mrf.mxu0  ;;  %17073 = vmatmul.mubr.msk.f32.gmra.mxu0 %vm229_vm1, %v5392_v34 }
 0x293   :  { %v21181_v5 = vadd.f32 %v16836_v6, %v20677_v0  ;;  %17075 = vmatprep.mubr.msk.f32.mxu0 %vm229_vm1, %v5393_v17  ;;  %v5396_v6 = vld [vmem:[%s24375_s0 + $0x1da] sm:$0xff]  ;;  %v21202_v17 = vpop.f32.mrf.mxu1 }
 0x294   :  { %v21189_v48 = vpop.f32.mrf.mxu0 }
 0x296   :  { %v16839_v51 = vpop.f32.mrf.mxu0  ;;  %17076 = vmatmul.mubr.msk.f32.gmra.mxu0 %vm229_vm1, %v5394_v35 }
 0x297   :  { %v21196_v0 = vadd.f32 %v16839_v51, %v20697_v18  ;;  %17078 = vmatprep.mubr.msk.f32.mxu0 %vm229_vm1, %v5395_v57  ;;  %v5398_v51 = vld [vmem:[%s24375_s0 + $0x1ea] sm:$0xff]  ;;  %v21217_v57 = vpop.f32.mrf.mxu1 }
 0x298   :  { %v21204_v34 = vpop.f32.mrf.mxu0 }
 0x299   :  { %24718 = vst [vmem:[#allocation27_spill] sm:$0xff] %v21196_v0 }
 0x29a   :  { %v16842_v53 = vpop.f32.mrf.mxu0  ;;  %17079 = vmatmul.mubr.msk.f32.gmra.mxu0 %vm229_vm1, %v5396_v6 }
 0x29b   :  { %v21211_v18 = vadd.f32 %v16842_v53, %v20720_v25  ;;  %17081 = vmatprep.mubr.msk.f32.mxu0 %vm229_vm1, %v5397_v27  ;;  %v5400_v27 = vld [vmem:[%s24375_s0 + $0x1fa] sm:$0x3f]  ;;  %v21232_v53 = vpop.f32.mrf.mxu1 }
 0x29c   :  { %v21219_v35 = vpop.f32.mrf.mxu0 }
 0x29d   :  { %24719 = vst [vmem:[#allocation93_spill] sm:$0xff] %v21211_v18  ;;  %24720 = vst [vmem:[#allocation29_spill] sm:$0xff] %v21219_v35 }
 0x29e   :  { %v16845_v55 = vpop.f32.mrf.mxu0  ;;  %17082 = vmatmul.mubr.msk.f32.gmra.mxu0 %vm229_vm1, %v5398_v51  ;;  %v21240_v51 = vpop.f32.mrf.mxu1 }
 0x29f   :  { %v21226_v25 = vadd.f32 %v16845_v55, %v20745_v26  ;;  %17084 = vmatprep.mubr.msk.f32.mxu0 %vm229_vm1, %v5399_v56 }
 0x2a0   :  { %v21234_v6 = vpop.f32.mrf.mxu0 }
 0x2a1   :  { %24721 = vst [vmem:[#allocation38_spill] sm:$0xff] %v21226_v25  ;;  %24722 = vst [vmem:[#allocation31_spill] sm:$0xff] %v21234_v6  ;;  %v21247_v25 = vpop.f32.mrf.mxu1 }
 0x2a2   :  { %v16848_v18 = vpop.f32.mrf.mxu0  ;;  %17085 = vmatmul.mubr.msk.f32.gmra.mxu0 %vm229_vm1, %v5400_v27 }
 0x2a3   :  { %v21238_v35 = vadd.f32 %v16848_v18, %v20766_v41  ;;  %v21254_v27 = vpop.f32.mrf.mxu1 }
 0x2a4   :  { %v21242_v26 = vpop.f32.mrf.mxu0 }
 0x2a5   :  { %24723 = vst [vmem:[#allocation48_spill] sm:$0xff] %v21238_v35  ;;  %24724 = vst [vmem:[#allocation32_spill] sm:$0xff] %v21242_v26  ;;  %v21261_v26 = vpop.f32.mrf.mxu1 }
 0x2a6   :  { %v16851_v55 = vpop.f32.mrf.mxu0 }
 0x2a7   :  { %v21245_v56 = vadd.f32 %v16851_v55, %v20782_v29 }
 0x2a8   :  { %v21249_v7 = vpop.f32.mrf.mxu0 }
 0x2a9   :  { %24725 = vst [vmem:[#allocation40_spill] sm:$0xff] %v21245_v56  ;;  %24726 = vst [vmem:[#allocation33_spill] sm:$0xff] %v21249_v7  ;;  %v21268_v7 = vpop.f32.mrf.mxu1 }
 0x2aa   :  { %v16854_v0 = vpop.f32.mrf.mxu0 }
 0x2ab   :  { %v21252_v6 = vadd.f32 %v16854_v0, %v20798_v43 }
 0x2ac   :  { %v21256_v41 = vpop.f32.mrf.mxu0 }
 0x2ad   :  { %24727 = vst [vmem:[#allocation34_spill] sm:$0xff] %v21252_v6  ;;  %24728 = vst [vmem:[#allocation49_spill] sm:$0xff] %v21256_v41  ;;  %v21275_v41 = vpop.f32.mrf.mxu1 }
 0x2ae   :  { %v16857_v18 = vpop.f32.mrf.mxu0 }
 0x2af   :  { %v21259_v35 = vadd.f32 %v16857_v18, %v20814_v63 }
 0x2b0   :  { %v21263_v29 = vpop.f32.mrf.mxu0 }
 0x2b1   :  { %24729 = vst [vmem:[#allocation35_spill] sm:$0xff] %v21259_v35  ;;  %24730 = vst [vmem:[#allocation36_spill] sm:$0xff] %v21263_v29  ;;  %v21282_v29 = vpop.f32.mrf.mxu1 }
 0x2b2   :  { %v16860_v55 = vpop.f32.mrf.mxu0 }
 0x2b3   :  { %v21266_v56 = vadd.f32 %v16860_v55, %v20830_v16 }
 0x2b4   :  { %v21270_v43 = vpop.f32.mrf.mxu0 }
 0x2b5   :  { %24731 = vst [vmem:[#allocation37_spill] sm:$0xff] %v21266_v56  ;;  %24732 = vst [vmem:[#allocation39_spill] sm:$0xff] %v21270_v43  ;;  %v21289_v43 = vpop.f32.mrf.mxu1 }
 0x2b6   :  { %v16863_v0 = vpop.f32.mrf.mxu0 }
 0x2b7   :  { %v21273_v6 = vadd.f32 %v16863_v0, %v20846_v20 }
 0x2b8   :  { %v21277_v63 = vpop.f32.mrf.mxu0 }
 0x2b9   :  { %24733 = vst [vmem:[#allocation43_spill] sm:$0xff] %v21273_v6  ;;  %24734 = vst [vmem:[#allocation94_spill] sm:$0xff] %v21277_v63  ;;  %v21296_v63 = vpop.f32.mrf.mxu1 }
 0x2ba   :  { %v16866_v18 = vpop.f32.mrf.mxu0 }
 0x2bb   :  { %v21280_v35 = vadd.f32 %v16866_v18, %v20865_v15 }
 0x2bc   :  { %v21284_v16 = vpop.f32.mrf.mxu0 }
 0x2bd   :  { %24735 = vst [vmem:[#allocation41_spill] sm:$0xff] %v21280_v35  ;;  %24736 = vst [vmem:[#allocation95_spill] sm:$0xff] %v21284_v16  ;;  %v21303_v16 = vpop.f32.mrf.mxu1 }
 0x2be   :  { %v16869_v55 = vpop.f32.mrf.mxu0 }
 0x2bf   :  { %v21287_v56 = vadd.f32 %v16869_v55, %v20881_v28 }
 0x2c0   :  { %v21291_v20 = vpop.f32.mrf.mxu0 }
 0x2c1   :  { %24737 = vst [vmem:[#allocation42_spill] sm:$0xff] %v21287_v56  ;;  %24738 = vst [vmem:[#allocation50_spill] sm:$0xff] %v21291_v20  ;;  %v21310_v20 = vpop.f32.mrf.mxu1 }
 0x2c2   :  { %v16872_v0 = vpop.f32.mrf.mxu0 }
 0x2c3   :  { %v21294_v6 = vadd.f32 %v16872_v0, %v20897_v32 }
 0x2c4   :  { %v21298_v15 = vpop.f32.mrf.mxu0 }
 0x2c5   :  { %24739 = vst [vmem:[#allocation51_spill] sm:$0xff] %v21294_v6  ;;  %24740 = vst [vmem:[#allocation44_spill] sm:$0xff] %v21298_v15  ;;  %v21317_v15 = vpop.f32.mrf.mxu1 }
 0x2c6   :  { %v16875_v18 = vpop.f32.mrf.mxu0 }
 0x2c7   :  { %v21301_v35 = vadd.f32 %v16875_v18, %v20913_v36 }
 0x2c8   :  { %v21305_v28 = vpop.f32.mrf.mxu0 }
 0x2c9   :  { %24741 = vst [vmem:[#allocation45_spill] sm:$0xff] %v21301_v35  ;;  %24742 = vst [vmem:[#allocation46_spill] sm:$0xff] %v21305_v28  ;;  %v21324_v28 = vpop.f32.mrf.mxu1 }
 0x2ca   :  { %v16878_v55 = vpop.f32.mrf.mxu0 }
 0x2cb   :  { %v21308_v56 = vadd.f32 %v16878_v55, %v20929_v40 }
 0x2cc   :  { %v21312_v32 = vpop.f32.mrf.mxu0 }
 0x2cd   :  { %24743 = vst [vmem:[#allocation47_spill] sm:$0xff] %v21308_v56  ;;  %24744 = vst [vmem:[#allocation96_spill] sm:$0xff] %v21312_v32  ;;  %v21331_v32 = vpop.f32.mrf.mxu1 }
 0x2ce   :  { %v16881_v0 = vpop.f32.mrf.mxu0 }
 0x2cf   :  { %v21315_v6 = vadd.f32 %v16881_v0, %v20945_v8 }
 0x2d0   :  { %v21319_v36 = vpop.f32.mrf.mxu0 }
 0x2d1   :  { %24745 = vst [vmem:[#allocation97_spill] sm:$0xff] %v21315_v6  ;;  %24746 = vst [vmem:[#allocation98_spill] sm:$0xff] %v21319_v36  ;;  %v21338_v36 = vpop.f32.mrf.mxu1 }
 0x2d2   :  { %v16884_v18 = vpop.f32.mrf.mxu0 }
 0x2d3   :  { %v21322_v35 = vadd.f32 %v16884_v18, %v20961_v39 }
 0x2d4   :  { %v21326_v40 = vpop.f32.mrf.mxu0 }
 0x2d5   :  { %24747 = vst [vmem:[#allocation99_spill] sm:$0xff] %v21322_v35  ;;  %24748 = vst [vmem:[#allocation100_spill] sm:$0xff] %v21326_v40  ;;  %v21345_v40 = vpop.f32.mrf.mxu1 }
 0x2d6   :  { %v16887_v55 = vpop.f32.mrf.mxu0 }
 0x2d7   :  { %v21329_v56 = vadd.f32 %v16887_v55, %v20980_v61 }
 0x2d8   :  { %v21333_v8 = vpop.f32.mrf.mxu0 }
 0x2d9   :  { %24749 = vst [vmem:[#allocation101_spill] sm:$0xff] %v21329_v56  ;;  %24750 = vst [vmem:[#allocation102_spill] sm:$0xff] %v21333_v8  ;;  %v21352_v8 = vpop.f32.mrf.mxu1 }
 0x2da   :  { %v16890_v0 = vpop.f32.mrf.mxu0  ;;  %24756 = vst [vmem:[#allocation108_spill] sm:$0xff] %v21352_v8 }
 0x2db   :  { %v21336_v6 = vadd.f32 %v16890_v0, %v20996_v54 }
 0x2dc   :  { %v21340_v39 = vpop.f32.mrf.mxu0 }
 0x2dd   :  { %24751 = vst [vmem:[#allocation103_spill] sm:$0xff] %v21336_v6  ;;  %24752 = vst [vmem:[#allocation104_spill] sm:$0xff] %v21340_v39  ;;  %v21359_v39 = vpop.f32.mrf.mxu1 }
 0x2de   :  { %v16893_v18 = vpop.f32.mrf.mxu0  ;;  %24759 = vst [vmem:[#allocation111_spill] sm:$0xff] %v21359_v39 }
 0x2df   :  { %v21343_v35 = vadd.f32 %v16893_v18, %v21012_v50 }
 0x2e0   :  { %v21347_v61 = vpop.f32.mrf.mxu0 }
 0x2e1   :  { %24753 = vst [vmem:[#allocation105_spill] sm:$0xff] %v21343_v35  ;;  %24754 = vst [vmem:[#allocation106_spill] sm:$0xff] %v21347_v61 }
 0x2e2   :  { %v16896_v55 = vpop.f32.mrf.mxu0 }
 0x2e3   :  { %v21350_v56 = vadd.f32 %v16896_v55, %v21028_v22  ;;  %v21369_v22 = vld [vmem:[%s24378_s3 + $0x98] sm:$0xff]  ;;  %v21371_v55 = vpop.f32.mrf.mxu1 }
 0x2e4   :  { %v21354_v54 = vpop.f32.mrf.mxu0  ;;  %24762 = vst [vmem:[#allocation114_spill] sm:$0xff] %v21371_v55  ;;  %17455 = vmatprep.subr.mxu0 %v21369_v22 }
 0x2e5   :  { %24755 = vst [vmem:[#allocation107_spill] sm:$0xff] %v21350_v56  ;;  %24757 = vst [vmem:[#allocation109_spill] sm:$0xff] %v21354_v54  ;;  %v5284_v54 = vadd.f32 %v21108_v44, %v21067_v31 }
 0x2e6   :  { %v16899_v0 = vpop.f32.mrf.mxu0 }
 0x2e7   :  { %v21357_v6 = vadd.f32 %v16899_v0, %v21043_v1  ;;  %v5282_v1 = vadd.f32 %v21084_v19, %v21046_v23  ;;  %v5283_v23 = vadd.f32 %v21118_v37, %v21082_v11  ;;  %v5285_v11 = vadd.f32 %v21138_v4, %v21106_v30 }
 0x2e8   :  { %v21361_v50 = vpop.f32.mrf.mxu0 }
 0x2e9   :  { %24758 = vst [vmem:[#allocation110_spill] sm:$0xff] %v21357_v6  ;;  %24760 = vst [vmem:[#allocation112_spill] sm:$0xff] %v21361_v50  ;;  %v21378_v6 = vld [vmem:[#allocation8] ss:$0 sm:$0xff] }
 0x2ea   :  { %v16902_v18 = vpop.f32.mrf.mxu0 }
 0x2eb   :  { %v21364_v35 = vadd.f32 %v16902_v18, %v21064_v52  ;;  %v5281_v52 = vadd.f32 %v21097_v3, %v21058_v46 }
 0x2ec   :  { %v21373_v56 = vpop.f32.mrf.mxu0 }
 0x2ed   :  { %24761 = vst [vmem:[#allocation113_spill] sm:$0xff] %v21364_v35  ;;  %24763 = vst [vmem:[#allocation115_spill] sm:$0xff] %v21373_v56  ;;  %v21382_v35 = vpop.f32.mrf.mxu1 }
 0x2ee   :  { %v16999_v0 = vpop.f32.mrf.mxu0 }
 0x2ef   :  { %v5951_v18 = vadd.f32 %v16999_v0, %v5282_v1  ;;  %v21390_v46 = vpop.f32.mrf.mxu1  ;;  %v5286_v1 = vadd.f32 %v21126_v42, %v21091_v45  ;;  %v5288_v45 = vadd.f32 %v21157_v47, %v21112_v59 }
 0x2f0   :  { %v5651_v50 = vpop.f32.mrf.mxu0 }
 0x2f1   :  { %v6018_v56 = vadd.f32 %v21378_v6, %v5951_v18  ;;  %v5950_v61 = vadd.f32 %v5651_v50, %v5281_v52  ;;  %v24764_v52 = vld [vmem:[#allocation53_spill] sm:$0xff]  ;;  %v5287_v18 = vadd.f32 %v21172_v60, %v21124_v21  ;;  %v3953_v60 = vadd.f32 %v20645_v58, %v20609_v38 }
 0x2f2   :  { %v17002_v55 = vpop.f32.mrf.mxu0  ;;  %v3951_v4 = vadd.f32 %v20625_v14, %v24764_v52  ;;  %v5292_v58 = vadd.f32 %v21217_v57, %v21151_v12 }
 0x2f3   :  { %v6078_v19 = vmax.f32 %v6018_v56, 0.0  ;;  %v6017_v39 = vadd.f32 %v21378_v6, %v5950_v61  ;;  %v5953_v8 = vadd.f32 %v17002_v55, %v5284_v54  ;;  %v21400_v54 = vpop.f32.mrf.mxu1 }
 0x2f4   :  { %v5661_v3 = vpop.f32.mrf.mxu0  ;;  %v4620_v59 = vadd.f32 %v21136_v62, %v3951_v4 }
 0x2f5   :  { %6139 = vst.msk [vmem:[#allocation2 + $0x8] sm:$0xff] %vm6137_vm2, %v6078_v19  ;;  %v6077_v44 = vmax.f32 %v6017_v39, 0.0  ;;  %v6020_v31 = vadd.f32 %v21378_v6, %v5953_v8  ;;  %v5952_v50 = vadd.f32 %v5661_v3, %v5283_v23  ;;  %v21413_v47 = vpop.f32.mrf.mxu1 }
 0x2f6   :  { %v17005_v0 = vpop.f32.mrf.mxu0  ;;  %v5289_v62 = vadd.f32 %v21202_v17, %v4620_v59 }
 0x2f7   :  { %6138 = vst.msk [vmem:[#allocation2] sm:$0xff] %vm6137_vm2, %v6077_v44  ;;  %v6080_v37 = vmax.f32 %v6020_v31, 0.0  ;;  %v6019_v56 = vadd.f32 %v21378_v6, %v5952_v50  ;;  %v5955_v61 = vadd.f32 %v17005_v0, %v5286_v1  ;;  %v5290_v44 = vadd.f32 %v21187_v49, %v21130_v2 }
 0x2f8   :  { %v5671_v55 = vpop.f32.mrf.mxu0  ;;  %v4622_v49 = vadd.f32 %v21159_v13, %v3953_v60  ;;  %v24767_v60 = vld [vmem:[#allocation54_spill] sm:$0xff] }
 0x2f9   :  { %6141 = vst.msk [vmem:[#allocation2 + $0x18] sm:$0xff] %vm6137_vm2, %v6080_v37  ;;  %v6079_v42 = vmax.f32 %v6019_v56, 0.0  ;;  %v6022_v8 = vadd.f32 %v21378_v6, %v5955_v61  ;;  %v5954_v39 = vadd.f32 %v5671_v55, %v5285_v11  ;;  %v21427_v61 = vpop.f32.mrf.mxu1 }
 0x2fa   :  { %v17008_v30 = vpop.f32.mrf.mxu0 }
 0x2fb   :  { %6140 = vst.msk [vmem:[#allocation2 + $0x10] sm:$0xff] %vm6137_vm2, %v6079_v42  ;;  %v6082_v23 = vmax.f32 %v6022_v8, 0.0  ;;  %v6021_v19 = vadd.f32 %v21378_v6, %v5954_v39  ;;  %v5957_v3 = vadd.f32 %v17008_v30, %v5288_v45  ;;  %v6257_v42 = vld [vmem:[%s24378_s3 + $0x10] sm:$0xff]  ;;  %v24765_v8 = vld [vmem:[#allocation52_spill] sm:$0xff] }
 0x2fc   :  { %v5681_v1 = vpop.f32.mrf.mxu0  ;;  %v24766_v39 = vld [vmem:[#allocation55_spill] sm:$0xff] }
 0x2fd   :  { %6143 = vst.msk [vmem:[#allocation2 + $0x28] sm:$0xff] %vm6137_vm2, %v6082_v23  ;;  %v6081_v14 = vmax.f32 %v6021_v19, 0.0  ;;  %v6024_v31 = vadd.f32 %v21378_v6, %v5957_v3  ;;  %v5956_v21 = vadd.f32 %v5681_v1, %v5287_v18  ;;  %v3955_v52 = vadd.f32 %v24766_v39, %v24765_v8  ;;  %v21444_v1 = vpop.f32.mrf.mxu1  ;;  %v24769_v8 = vld [vmem:[#allocation57_spill] sm:$0xff] }
 0x2fe   :  { %v17011_v50 = vpop.f32.mrf.mxu0  ;;  %v6259_v0 = vld [vmem:[#allocation2 + $0x1] sm:$0xff]  ;;  %v5291_v23 = vadd.f32 %v21232_v53, %v4622_v49  ;;  %v5294_v53 = vadd.f32 %v21240_v51, %v21166_v10  ;;  %v3957_v10 = vadd.f32 %v20685_v9, %v24767_v60 }
 0x2ff   :  { %v7345_v11 = vld [vmem:[#allocation2 + $0x2] sm:$0xff]  ;;  %6142 = vst.msk [vmem:[#allocation2 + $0x20] sm:$0xff] %vm6137_vm2, %v6081_v14  ;;  %v6084_v37 = vmax.f32 %v6024_v31, 0.0  ;;  %v6023_v56 = vadd.f32 %v21378_v6, %v5956_v21  ;;  %v5959_v2 = vadd.f32 %v17011_v50, %v5290_v44  ;;  %17095 = vmatprep.mubr.msk.f32.mxu1 %vm6137_vm2, %v6259_v0  ;;  %v4624_v59 = vadd.f32 %v21174_v24, %v3955_v52 }
 0x300   :  { %17279 = vmatprep.mubr.msk.f32.mxu0 %vm6137_vm2, %v7345_v11  ;;  %v5691_v38 = vpop.f32.mrf.mxu0  ;;  %v6256_v24 = vld [vmem:[%s24378_s3 + $0x8] sm:$0xff]  ;;  %v4626_v49 = vadd.f32 %v21189_v48, %v3957_v10  ;;  %v6255_v48 = vld [vmem:[%s24378_s3] sm:$0xff] }
 0x301   :  { %6145 = vst.msk [vmem:[#allocation2 + $0x38] sm:$0xff] %vm6137_vm2, %v6084_v37  ;;  %v6083_v17 = vmax.f32 %v6023_v56, 0.0  ;;  %v6026_v55 = vadd.f32 %v21378_v6, %v5959_v2  ;;  %v5958_v45 = vadd.f32 %v5691_v38, %v5289_v62  ;;  %v5293_v62 = vadd.f32 %v21247_v25, %v4624_v59  ;;  %v21468_v38 = vpop.f32.mrf.mxu1 }
 0x302   :  { %v17014_v13 = vpop.f32.mrf.mxu0  ;;  %v6260_v4 = vld [vmem:[#allocation2 + $0x9] sm:$0xff]  ;;  %v6261_v18 = vld [vmem:[#allocation2 + $0x11] sm:$0xff]  ;;  %v5296_v25 = vadd.f32 %v21254_v27, %v21181_v5 }
 0x303   :  { %v7346_v30 = vld [vmem:[#allocation2 + $0xa] sm:$0xff]  ;;  %6144 = vst.msk [vmem:[#allocation2 + $0x30] sm:$0xff] %vm6137_vm2, %v6083_v17  ;;  %v6086_v12 = vmax.f32 %v6026_v55, 0.0  ;;  %v6025_v57 = vadd.f32 %v21378_v6, %v5958_v45  ;;  %v5961_v19 = vadd.f32 %v17014_v13, %v5292_v58  ;;  %17096 = vmatmul.mubr.msk.f32.vlgmr.msra.gmra.mxu1 %vm6137_vm2, %v6260_v4  ;;  %v7347_v3 = vld [vmem:[#allocation2 + $0x12] sm:$0xff]  ;;  %v5295_v4 = vadd.f32 %v21261_v26, %v4626_v49 }
 0x304   :  { %17280 = vmatmul.mubr.msk.f32.vlgmr.msra.gmra.mxu0 %vm6137_vm2, %v7346_v30  ;;  %v5701_v44 = vpop.f32.mrf.mxu0  ;;  %17098 = vmatprep.mubr.msk.f32.mxu1 %vm6137_vm2, %v6261_v18  ;;  %v8660_v45 = vld [vmem:[%s24378_s3 + $0x88] sm:$0xff]  ;;  %v24770_v26 = vld [vmem:[#allocation27_spill] sm:$0xff] }
 0x305   :  { %17180 = vmatpush3.msra.mxu1 %v21146_v33  ;;  %6147 = vst.msk [vmem:[#allocation2 + $0x48] sm:$0xff] %vm6137_vm2, %v6086_v12  ;;  %v6085_v14 = vmax.f32 %v6025_v57, 0.0  ;;  %v6028_v31 = vadd.f32 %v21378_v6, %v5961_v19  ;;  %v5960_v21 = vadd.f32 %v5701_v44, %v5291_v23  ;;  %17282 = vmatprep.mubr.msk.f32.mxu0 %vm6137_vm2, %v7347_v3  ;;  %v8661_v33 = vld [vmem:[%s24378_s3 + $0x90] sm:$0xff]  ;;  %v21490_v19 = vpop.f32.mrf.mxu1 }
 0x306   :  { %17181 = vmatprep.subr.mxu1 %v6257_v42  ;;  %v17017_v51 = vpop.f32.mrf.mxu0  ;;  %v6262_v50 = vld [vmem:[#allocation2 + $0x19] sm:$0xff]  ;;  %v6263_v11 = vld [vmem:[#allocation2 + $0x21] sm:$0xff]  ;;  %17456 = vmatpush3.msra.mxu0 %v21369_v22  ;;  %v5298_v59 = vadd.f32 %v21268_v7, %v24770_v26 }
 0x307   :  { %v7348_v0 = vld [vmem:[#allocation2 + $0x1a] sm:$0xff]  ;;  %17182 = vmatpush3.msra.mxu1 %v6257_v42  ;;  %6146 = vst.msk [vmem:[#allocation2 + $0x40] sm:$0xff] %vm6137_vm2, %v6085_v14  ;;  %v6088_v37 = vmax.f32 %v6028_v31, 0.0  ;;  %v6027_v56 = vadd.f32 %v21378_v6, %v5960_v21  ;;  %v5963_v2 = vadd.f32 %v17017_v51, %v5294_v53  ;;  %v7349_v9 = vld [vmem:[#allocation2 + $0x22] sm:$0xff]  ;;  %17457 = vmatprep.subr.mxu0 %v8661_v33  ;;  %v24768_v42 = vld [vmem:[#allocation22_spill] sm:$0xff] }
 0x308   :  { %17099 = vmatmul.mubr.msk.f32.gmra.mxu1 %vm6137_vm2, %v6262_v50  ;;  %17283 = vmatmul.mubr.msk.f32.gmra.mxu0 %vm6137_vm2, %v7348_v0  ;;  %v5711_v58 = vpop.f32.mrf.mxu0  ;;  %v3959_v39 = vadd.f32 %v24769_v8, %v24768_v42  ;;  %v8033_v31 = vld [vmem:[%s24378_s3 + $0x78] sm:$0xff] }
 0x309   :  { %17101 = vmatprep.mubr.msk.f32.mxu1 %vm6137_vm2, %v6263_v11  ;;  %17285 = vmatprep.mubr.msk.f32.mxu0 %vm6137_vm2, %v7349_v9  ;;  %6149 = vst.msk [vmem:[#allocation2 + $0x58] sm:$0xff] %vm6137_vm2, %v6088_v37  ;;  %v6087_v22 = vmax.f32 %v6027_v56, 0.0  ;;  %v6030_v17 = vadd.f32 %v21378_v6, %v5963_v2  ;;  %v5962_v55 = vadd.f32 %v5711_v58, %v5293_v62  ;;  %v24771_v21 = vld [vmem:[#allocation56_spill] sm:$0xff]  ;;  %v24773_v56 = vld [vmem:[#allocation29_spill] sm:$0xff]  ;;  %v21512_v9 = vpop.f32.mrf.mxu1 }
 0x30a   :  { %17183 = vmatprep.subr.mxu1 %v6256_v24  ;;  %v17020_v5 = vpop.f32.mrf.mxu0  ;;  %v6264_v27 = vld [vmem:[#allocation2 + $0x29] sm:$0xff]  ;;  %v6265_v13 = vld [vmem:[#allocation2 + $0x31] sm:$0xff]  ;;  %17458 = vmatpush3.msra.mxu0 %v8661_v33  ;;  %v4628_v57 = vadd.f32 %v21204_v34, %v3959_v39  ;;  %v8659_v34 = vld [vmem:[%s24378_s3 + $0x80] sm:$0xff] }
 0x30b   :  { %v7350_v52 = vld [vmem:[#allocation2 + $0x2a] sm:$0xff]  ;;  %17184 = vmatpush3.msra.mxu1 %v6256_v24  ;;  %6148 = vst.msk [vmem:[#allocation2 + $0x50] sm:$0xff] %vm6137_vm2, %v6087_v22  ;;  %v6090_v30 = vmax.f32 %v6030_v17, 0.0  ;;  %v6029_v18 = vadd.f32 %v21378_v6, %v5962_v55  ;;  %v5965_v23 = vadd.f32 %v17020_v5, %v5296_v25  ;;  %v7351_v12 = vld [vmem:[#allocation2 + $0x32] sm:$0xff]  ;;  %17459 = vmatprep.subr.mxu0 %v8660_v45 }
 0x30c   :  { %17102 = vmatmul.mubr.msk.f32.gmra.mxu1 %vm6137_vm2, %v6264_v27  ;;  %17286 = vmatmul.mubr.msk.f32.gmra.mxu0 %vm6137_vm2, %v7350_v52  ;;  %v5721_v3 = vpop.f32.mrf.mxu0  ;;  %v24772_v24 = vld [vmem:[#allocation59_spill] sm:$0xff]  ;;  %v5297_v50 = vadd.f32 %v21275_v41, %v4628_v57  ;;  %v24774_v41 = vld [vmem:[#allocation93_spill] sm:$0xff]  ;;  %v24775_v55 = vld [vmem:[#allocation58_spill] sm:$0xff] }
 0x30d   :  { %17104 = vmatprep.mubr.msk.f32.mxu1 %vm6137_vm2, %v6265_v13  ;;  %17288 = vmatprep.mubr.msk.f32.mxu0 %vm6137_vm2, %v7351_v12  ;;  %6151 = vst.msk [vmem:[#allocation2 + $0x68] sm:$0xff] %vm6137_vm2, %v6090_v30  ;;  %v6089_v44 = vmax.f32 %v6029_v18, 0.0  ;;  %v6032_v53 = vadd.f32 %v21378_v6, %v5965_v23  ;;  %v5964_v14 = vadd.f32 %v5721_v3, %v5295_v4  ;;  %v24777_v30 = vld [vmem:[#allocation31_spill] sm:$0xff]  ;;  %v21528_v23 = vpop.f32.mrf.mxu1 }
 0x30e   :  { %17185 = vmatprep.subr.mxu1 %v6255_v48  ;;  %v3961_v33 = vadd.f32 %v24772_v24, %v24771_v21  ;;  %v17023_v7 = vpop.f32.mrf.mxu0  ;;  %v6266_v60 = vld [vmem:[#allocation2 + $0x39] sm:$0xff]  ;;  %v6267_v51 = vld [vmem:[#allocation2 + $0x41] sm:$0xff]  ;;  %17460 = vmatpush3.msra.mxu0 %v8660_v45  ;;  %v5300_v58 = vadd.f32 %v21282_v29, %v24774_v41 }
 0x30f   :  { %v7352_v10 = vld [vmem:[#allocation2 + $0x3a] sm:$0xff]  ;;  %17186 = vmatpush3.msra.mxu1 %v6255_v48  ;;  %6150 = vst.msk [vmem:[#allocation2 + $0x60] sm:$0xff] %vm6137_vm2, %v6089_v44  ;;  %v6092_v0 = vmax.f32 %v6032_v53, 0.0  ;;  %v6031_v11 = vadd.f32 %v21378_v6, %v5964_v14  ;;  %v5967_v62 = vadd.f32 %v17023_v7, %v5298_v59  ;;  %v7353_v37 = vld [vmem:[#allocation2 + $0x42] sm:$0xff]  ;;  %17461 = vmatprep.subr.mxu0 %v8659_v34 }
 0x310   :  { %17105 = vmatmul.mubr.msk.f32.gmra.mxu1 %vm6137_vm2, %v6266_v60  ;;  %17289 = vmatmul.mubr.msk.f32.gmra.mxu0 %vm6137_vm2, %v7352_v10  ;;  %v4630_v2 = vadd.f32 %v24773_v56, %v3961_v33  ;;  %v5731_v49 = vpop.f32.mrf.mxu0  ;;  %v24776_v48 = vld [vmem:[#allocation61_spill] sm:$0xff]  ;;  %v24779_v44 = vld [vmem:[#allocation60_spill] sm:$0xff]  ;;  %v24780_v53 = vld [vmem:[#allocation63_spill] sm:$0xff] }
 0x311   :  { %17107 = vmatprep.mubr.msk.f32.mxu1 %vm6137_vm2, %v6267_v51  ;;  %17291 = vmatprep.mubr.msk.f32.mxu0 %vm6137_vm2, %v7353_v37  ;;  %6153 = vst.msk [vmem:[#allocation2 + $0x78] sm:$0xff] %vm6137_vm2, %v6092_v0  ;;  %v6091_v25 = vmax.f32 %v6031_v11, 0.0  ;;  %v6034_v22 = vadd.f32 %v21378_v6, %v5967_v62  ;;  %v5966_v17 = vadd.f32 %v5731_v49, %v5297_v50  ;;  %v24781_v51 = vld [vmem:[#allocation32_spill] sm:$0xff]  ;;  %v21544_v0 = vpop.f32.mrf.mxu1  ;;  %v24783_v49 = vld [vmem:[#allocation62_spill] sm:$0xff]  ;;  %v24784_v41 = vld [vmem:[#allocation65_spill] sm:$0xff] }
 0x312   :  { %17363 = vmatprep.subr.mxu1 %v8033_v31  ;;  %v3963_v45 = vadd.f32 %v24776_v48, %v24775_v55  ;;  %v17026_v42 = vpop.f32.mrf.mxu0  ;;  %v6268_v8 = vld [vmem:[#allocation2 + $0x49] sm:$0xff]  ;;  %v6269_v5 = vld [vmem:[#allocation2 + $0x51] sm:$0xff]  ;;  %17462 = vmatpush3.msra.mxu0 %v8659_v34  ;;  %v5299_v27 = vadd.f32 %v21289_v43, %v4630_v2  ;;  %v3965_v14 = vadd.f32 %v24780_v53, %v24779_v44 }
 0x313   :  { %v7354_v39 = vld [vmem:[#allocation2 + $0x4a] sm:$0xff]  ;;  %6152 = vst.msk [vmem:[#allocation2 + $0x70] sm:$0xff] %vm6137_vm2, %v6091_v25  ;;  %v6094_v29 = vmax.f32 %v6034_v22, 0.0  ;;  %v6033_v52 = vadd.f32 %v21378_v6, %v5966_v17  ;;  %v5969_v13 = vadd.f32 %v17026_v42, %v5300_v58  ;;  %v7355_v4 = vld [vmem:[#allocation2 + $0x52] sm:$0xff]  ;;  %v3967_v58 = vadd.f32 %v24784_v41, %v24783_v49 }
 0x314   :  { %17108 = vmatmul.mubr.msk.f32.gmra.mxu1 %vm6137_vm2, %v6268_v8  ;;  %17292 = vmatmul.mubr.msk.f32.gmra.mxu0 %vm6137_vm2, %v7354_v39  ;;  %v4632_v18 = vadd.f32 %v24777_v30, %v3963_v45  ;;  %v5741_v12 = vpop.f32.mrf.mxu0  ;;  %v24778_v43 = vld [vmem:[#allocation38_spill] sm:$0xff]  ;;  %v4634_v50 = vadd.f32 %v24781_v51, %v3965_v14  ;;  %v24785_v39 = vld [vmem:[#allocation33_spill] sm:$0xff] }
 0x315   :  { %17110 = vmatprep.mubr.msk.f32.mxu1 %vm6137_vm2, %v6269_v5  ;;  %17294 = vmatprep.mubr.msk.f32.mxu0 %vm6137_vm2, %v7355_v4  ;;  %v5302_v57 = vadd.f32 %v21296_v63, %v24778_v43  ;;  %6155 = vst.msk [vmem:[#allocation2 + $0x88] sm:$0xff] %vm6137_vm2, %v6094_v29  ;;  %v6093_v3 = vmax.f32 %v6033_v52, 0.0  ;;  %v6036_v26 = vadd.f32 %v21378_v6, %v5969_v13  ;;  %v24791_v51 = vld [vmem:[#allocation66_spill] sm:$0xff] }
 0x316   :  { %v5968_v59 = vadd.f32 %v5741_v12, %v5299_v27  ;;  %v17029_v34 = vpop.f32.mrf.mxu0  ;;  %v6270_v31 = vld [vmem:[#allocation2 + $0x59] sm:$0xff]  ;;  %v6271_v24 = vld [vmem:[#allocation2 + $0x61] sm:$0xff]  ;;  %v5301_v33 = vadd.f32 %v21303_v16, %v4632_v18  ;;  %v5303_v48 = vadd.f32 %v21317_v15, %v4634_v50  ;;  %v4636_v5 = vadd.f32 %v24785_v39, %v3967_v58  ;;  %v21560_v27 = vpop.f32.mrf.mxu1 }
 0x317   :  { %v7356_v21 = vld [vmem:[#allocation2 + $0x5a] sm:$0xff]  ;;  %6154 = vst.msk [vmem:[#allocation2 + $0x80] sm:$0xff] %vm6137_vm2, %v6093_v3  ;;  %v6096_v7 = vmax.f32 %v6036_v26, 0.0  ;;  %v5971_v60 = vadd.f32 %v17029_v34, %v5302_v57  ;;  %v7357_v10 = vld [vmem:[#allocation2 + $0x62] sm:$0xff] }
 0x318   :  { %v6035_v63 = vadd.f32 %v21378_v6, %v5968_v59  ;;  %17111 = vmatmul.mubr.msk.f32.gmra.mxu1 %vm6137_vm2, %v6270_v31  ;;  %17295 = vmatmul.mubr.msk.f32.gmra.mxu0 %vm6137_vm2, %v7356_v21  ;;  %v5751_v11 = vpop.f32.mrf.mxu0  ;;  %v24782_v16 = vld [vmem:[#allocation48_spill] sm:$0xff]  ;;  %v24788_v12 = vld [vmem:[#allocation67_spill] sm:$0xff]  ;;  %v5305_v44 = vadd.f32 %v21331_v32, %v4636_v5  ;;  %v24789_v31 = vld [vmem:[#allocation49_spill] sm:$0xff] }
 0x319   :  { %17113 = vmatprep.mubr.msk.f32.mxu1 %vm6137_vm2, %v6271_v24  ;;  %17297 = vmatprep.mubr.msk.f32.mxu0 %vm6137_vm2, %v7357_v10  ;;  %v5304_v62 = vadd.f32 %v21310_v20, %v24782_v16  ;;  %6157 = vst.msk [vmem:[#allocation2 + $0x98] sm:$0xff] %vm6137_vm2, %v6096_v7  ;;  %v6038_v56 = vadd.f32 %v21378_v6, %v5971_v60  ;;  %v24786_v15 = vld [vmem:[#allocation40_spill] sm:$0xff]  ;;  %v21581_v24 = vpop.f32.mrf.mxu1  ;;  %v24790_v32 = vld [vmem:[#allocation34_spill] sm:$0xff]  ;;  %v24792_v50 = vld [vmem:[#allocation69_spill] sm:$0xff] }
 0x31a   :  { %v6095_v37 = vmax.f32 %v6035_v63, 0.0  ;;  %v5970_v2 = vadd.f32 %v5751_v11, %v5301_v33  ;;  %v17032_v25 = vpop.f32.mrf.mxu0  ;;  %v6272_v22 = vld [vmem:[#allocation2 + $0x69] sm:$0xff]  ;;  %v6273_v55 = vld [vmem:[#allocation2 + $0x71] sm:$0xff]  ;;  %v5306_v52 = vadd.f32 %v21324_v28, %v24786_v15  ;;  %v24787_v18 = vld [vmem:[#allocation64_spill] sm:$0xff]  ;;  %v5308_v7 = vadd.f32 %v21338_v36, %v24790_v32 }
 0x31b   :  { %v7358_v17 = vld [vmem:[#allocation2 + $0x6a] sm:$0xff]  ;;  %v6098_v45 = vmax.f32 %v6038_v56, 0.0  ;;  %v5973_v42 = vadd.f32 %v17032_v25, %v5304_v62  ;;  %v7359_v8 = vld [vmem:[#allocation2 + $0x72] sm:$0xff]  ;;  %v3969_v43 = vadd.f32 %v24788_v12, %v24787_v18  ;;  %v3971_v11 = vadd.f32 %v24792_v50, %v24791_v51  ;;  %v24793_v25 = vld [vmem:[#allocation36_spill] sm:$0xff] }
 0x31c   :  { %6156 = vst.msk [vmem:[#allocation2 + $0x90] sm:$0xff] %vm6137_vm2, %v6095_v37  ;;  %v6037_v20 = vadd.f32 %v21378_v6, %v5970_v2  ;;  %17114 = vmatmul.mubr.msk.f32.gmra.mxu1 %vm6137_vm2, %v6272_v22  ;;  %17298 = vmatmul.mubr.msk.f32.gmra.mxu0 %vm6137_vm2, %v7358_v17  ;;  %v5761_v29 = vpop.f32.mrf.mxu0  ;;  %v21603_v17 = vpop.f32.mrf.mxu1  ;;  %v24796_v39 = vld [vmem:[#allocation68_spill] sm:$0xff]  ;;  %v24797_v5 = vld [vmem:[#allocation71_spill] sm:$0xff] }
 0x31d   :  { %17116 = vmatprep.mubr.msk.f32.mxu1 %vm6137_vm2, %v6273_v55  ;;  %17300 = vmatprep.mubr.msk.f32.mxu0 %vm6137_vm2, %v7359_v8  ;;  %6159 = vst.msk [vmem:[#allocation2 + $0xa8] sm:$0xff] %vm6137_vm2, %v6098_v45  ;;  %v6040_v4 = vadd.f32 %v21378_v6, %v5973_v42  ;;  %v5972_v30 = vadd.f32 %v5761_v29, %v5303_v48  ;;  %v24795_v48 = vld [vmem:[#allocation108_spill] sm:$0xff] }
 0x31e   :  { %v6097_v13 = vmax.f32 %v6037_v20, 0.0  ;;  %v17035_v57 = vpop.f32.mrf.mxu0  ;;  %v21570_v3 = vld [vmem:[#allocation2 + $0x79] sm:$0xff]  ;;  %v21572_v59 = vld [vmem:[#allocation2 + $0x81] sm:$0xff]  ;;  %v4638_v21 = vadd.f32 %v24789_v31, %v3969_v43  ;;  %v4640_v22 = vadd.f32 %v24793_v25, %v3971_v11  ;;  %v3973_v29 = vadd.f32 %v24797_v5, %v24796_v39  ;;  %v24801_v31 = vld [vmem:[#allocation114_spill] sm:$0xff] }
 0x31f   :  { %v7360_v26 = vld [vmem:[#allocation2 + $0x7a] sm:$0xff]  ;;  %v6100_v28 = vmax.f32 %v6040_v4, 0.0  ;;  %v6039_v53 = vadd.f32 %v21378_v6, %v5972_v30  ;;  %v5975_v14 = vadd.f32 %v17035_v57, %v5306_v52  ;;  %v7361_v34 = vld [vmem:[#allocation2 + $0x82] sm:$0xff] }
 0x320   :  { %6158 = vst.msk [vmem:[#allocation2 + $0xa0] sm:$0xff] %vm6137_vm2, %v6097_v13  ;;  %17117 = vmatmul.mubr.msk.f32.gmra.mxu1 %vm6137_vm2, %v21570_v3  ;;  %17301 = vmatmul.mubr.msk.f32.gmra.mxu0 %vm6137_vm2, %v7360_v26  ;;  %v5771_v33 = vpop.f32.mrf.mxu0  ;;  %v5307_v2 = vadd.f32 %v21345_v40, %v4638_v21  ;;  %v24794_v40 = vld [vmem:[#allocation35_spill] sm:$0xff] }
 0x321   :  { %17119 = vmatprep.mubr.msk.f32.mxu1 %vm6137_vm2, %v21572_v59  ;;  %17303 = vmatprep.mubr.msk.f32.mxu0 %vm6137_vm2, %v7361_v34  ;;  %6161 = vst.msk [vmem:[#allocation2 + $0xb8] sm:$0xff] %vm6137_vm2, %v6100_v28  ;;  %v6099_v63 = vmax.f32 %v6039_v53, 0.0  ;;  %v6042_v60 = vadd.f32 %v21378_v6, %v5975_v14  ;;  %v5974_v10 = vadd.f32 %v5771_v33, %v5305_v44  ;;  %v24798_v30 = vld [vmem:[#allocation111_spill] sm:$0xff]  ;;  %v21625_v53 = vpop.f32.mrf.mxu1  ;;  %v24800_v34 = vld [vmem:[#allocation37_spill] sm:$0xff] }
 0x322   :  { %v17038_v16 = vpop.f32.mrf.mxu0  ;;  %v5310_v45 = vadd.f32 %v24795_v48, %v24794_v40  ;;  %v5309_v18 = vadd.f32 %v24798_v30, %v4640_v22  ;;  %v24799_v44 = vld [vmem:[#allocation39_spill] sm:$0xff]  ;;  %v5312_v21 = vadd.f32 %v24801_v31, %v24800_v34 }
 0x323   :  { %v21592_v62 = vld [vmem:[#allocation2 + $0x89] sm:$0xff]  ;;  %v21594_v56 = vld [vmem:[#allocation2 + $0x91] sm:$0xff]  ;;  %6160 = vst.msk [vmem:[#allocation2 + $0xb0] sm:$0xff] %vm6137_vm2, %v6099_v63  ;;  %v6102_v36 = vmax.f32 %v6042_v60, 0.0  ;;  %v6041_v49 = vadd.f32 %v21378_v6, %v5974_v10  ;;  %v5977_v41 = vadd.f32 %v17038_v16, %v5308_v7  ;;  %v4642_v28 = vadd.f32 %v24799_v44, %v3973_v29  ;;  %v21647_v22 = vpop.f32.mrf.mxu1 }
 0x324   :  { %v7362_v37 = vld [vmem:[#allocation2 + $0x8a] sm:$0xff]  ;;  %17120 = vmatmul.mubr.msk.f32.gmra.mxu1 %vm6137_vm2, %v21592_v62  ;;  %v7363_v58 = vld [vmem:[#allocation2 + $0x92] sm:$0xff]  ;;  %v5781_v55 = vpop.f32.mrf.mxu0 }
 0x325   :  { %17304 = vmatmul.mubr.msk.f32.gmra.mxu0 %vm6137_vm2, %v7362_v37  ;;  %17122 = vmatprep.mubr.msk.f32.mxu1 %vm6137_vm2, %v21594_v56  ;;  %6163 = vst.msk [vmem:[#allocation2 + $0xc8] sm:$0xff] %vm6137_vm2, %v6102_v36  ;;  %v6101_v20 = vmax.f32 %v6041_v49, 0.0  ;;  %v6044_v42 = vadd.f32 %v21378_v6, %v5977_v41  ;;  %v5976_v8 = vadd.f32 %v5781_v55, %v5307_v2  ;;  %v24802_v63 = vld [vmem:[#allocation70_spill] sm:$0xff]  ;;  %v24803_v60 = vld [vmem:[#allocation73_spill] sm:$0xff]  ;;  %v21669_v44 = vpop.f32.mrf.mxu1 }
 0x326   :  { %17306 = vmatprep.mubr.msk.f32.mxu0 %vm6137_vm2, %v7363_v58  ;;  %v17041_v15 = vpop.f32.mrf.mxu0  ;;  %v3975_v10 = vadd.f32 %v24803_v60, %v24802_v63  ;;  %v5311_v37 = vadd.f32 %v21382_v35, %v4642_v28  ;;  %v24804_v58 = vld [vmem:[#allocation94_spill] sm:$0xff]  ;;  %v24805_v35 = vld [vmem:[#allocation43_spill] sm:$0xff] }
 0x327   :  { %v21614_v52 = vld [vmem:[#allocation2 + $0x99] sm:$0xff]  ;;  %v21616_v4 = vld [vmem:[#allocation2 + $0xa1] sm:$0xff]  ;;  %6162 = vst.msk [vmem:[#allocation2 + $0xc0] sm:$0xff] %vm6137_vm2, %v6101_v20  ;;  %v6104_v12 = vmax.f32 %v6044_v42, 0.0  ;;  %v6043_v43 = vadd.f32 %v21378_v6, %v5976_v8  ;;  %v5979_v57 = vadd.f32 %v17041_v15, %v5310_v45  ;;  %v5314_v40 = vadd.f32 %v21390_v46, %v24805_v35 }
 0x328   :  { %v7364_v13 = vld [vmem:[#allocation2 + $0x9a] sm:$0xff]  ;;  %17123 = vmatmul.mubr.msk.f32.gmra.mxu1 %vm6137_vm2, %v21614_v52  ;;  %v7365_v26 = vld [vmem:[#allocation2 + $0xa2] sm:$0xff]  ;;  %v5791_v14 = vpop.f32.mrf.mxu0  ;;  %v4644_v25 = vadd.f32 %v24804_v58, %v3975_v10  ;;  %v21691_v58 = vpop.f32.mrf.mxu1 }
 0x329   :  { %17307 = vmatmul.mubr.msk.f32.gmra.mxu0 %vm6137_vm2, %v7364_v13  ;;  %17125 = vmatprep.mubr.msk.f32.mxu1 %vm6137_vm2, %v21616_v4  ;;  %6165 = vst.msk [vmem:[#allocation2 + $0xd8] sm:$0xff] %vm6137_vm2, %v6104_v12  ;;  %v6103_v33 = vmax.f32 %v6043_v43, 0.0  ;;  %v6046_v32 = vadd.f32 %v21378_v6, %v5979_v57  ;;  %v5978_v7 = vadd.f32 %v5791_v14, %v5309_v18  ;;  %v24806_v42 = vld [vmem:[#allocation72_spill] sm:$0xff]  ;;  %v24807_v8 = vld [vmem:[#allocation75_spill] sm:$0xff] }
 0x32a   :  { %17309 = vmatprep.mubr.msk.f32.mxu0 %vm6137_vm2, %v7365_v26  ;;  %v17044_v51 = vpop.f32.mrf.mxu0  ;;  %v21636_v50 = vld [vmem:[#allocation2 + $0xa9] sm:$0xff]  ;;  %v21638_v16 = vld [vmem:[#allocation2 + $0xb1] sm:$0xff]  ;;  %v3977_v39 = vadd.f32 %v24807_v8, %v24806_v42  ;;  %v5313_v30 = vadd.f32 %v21400_v54, %v4644_v25 }
 0x32b   :  { %v7366_v11 = vld [vmem:[#allocation2 + $0xaa] sm:$0xff]  ;;  %6164 = vst.msk [vmem:[#allocation2 + $0xd0] sm:$0xff] %vm6137_vm2, %v6103_v33  ;;  %v6106_v2 = vmax.f32 %v6046_v32, 0.0  ;;  %v6045_v36 = vadd.f32 %v21378_v6, %v5978_v7  ;;  %v5981_v49 = vadd.f32 %v17044_v51, %v5312_v21  ;;  %v7367_v41 = vld [vmem:[#allocation2 + $0xb2] sm:$0xff] }
 0x32c   :  { %17126 = vmatmul.mubr.msk.f32.gmra.mxu1 %vm6137_vm2, %v21636_v50  ;;  %v5801_v55 = vpop.f32.mrf.mxu0  ;;  %v24808_v57 = vld [vmem:[#allocation95_spill] sm:$0xff]  ;;  %v24809_v54 = vld [vmem:[#allocation41_spill] sm:$0xff]  ;;  %v24810_v33 = vld [vmem:[#allocation74_spill] sm:$0xff] }
 0x32d   :  { %17310 = vmatmul.mubr.msk.f32.gmra.mxu0 %vm6137_vm2, %v7366_v11  ;;  %17128 = vmatprep.mubr.msk.f32.mxu1 %vm6137_vm2, %v21638_v16  ;;  %6167 = vst.msk [vmem:[#allocation2 + $0xe8] sm:$0xff] %vm6137_vm2, %v6106_v2  ;;  %v6105_v48 = vmax.f32 %v6045_v36, 0.0  ;;  %v6048_v45 = vadd.f32 %v21378_v6, %v5981_v49  ;;  %v5980_v20 = vadd.f32 %v5801_v55, %v5311_v37  ;;  %v24811_v32 = vld [vmem:[#allocation77_spill] sm:$0xff]  ;;  %v24812_v49 = vld [vmem:[#allocation50_spill] sm:$0xff] }
 0x32e   :  { %17312 = vmatprep.mubr.msk.f32.mxu0 %vm6137_vm2, %v7367_v41  ;;  %v17047_v5 = vpop.f32.mrf.mxu0  ;;  %v21658_v29 = vld [vmem:[#allocation2 + $0xb9] sm:$0xff]  ;;  %v21660_v13 = vld [vmem:[#allocation2 + $0xc1] sm:$0xff]  ;;  %v4646_v26 = vadd.f32 %v24808_v57, %v3977_v39  ;;  %v5316_v14 = vadd.f32 %v21413_v47, %v24809_v54  ;;  %v3979_v7 = vadd.f32 %v24811_v32, %v24810_v33 }
 0x32f   :  { %v7368_v15 = vld [vmem:[#allocation2 + $0xba] sm:$0xff]  ;;  %6166 = vst.msk [vmem:[#allocation2 + $0xe0] sm:$0xff] %vm6137_vm2, %v6105_v48  ;;  %v6108_v46 = vmax.f32 %v6048_v45, 0.0  ;;  %v6047_v18 = vadd.f32 %v21378_v6, %v5980_v20  ;;  %v5983_v12 = vadd.f32 %v17047_v5, %v5314_v40  ;;  %v7369_v43 = vld [vmem:[#allocation2 + $0xc2] sm:$0xff]  ;;  %v24815_v20 = vld [vmem:[#allocation86_spill] sm:$0xff] }
 0x330   :  { %17129 = vmatmul.mubr.msk.f32.gmra.mxu1 %vm6137_vm2, %v21658_v29  ;;  %v5811_v28 = vpop.f32.mrf.mxu0  ;;  %v5315_v11 = vadd.f32 %v21427_v61, %v4646_v26  ;;  %v4648_v41 = vadd.f32 %v24812_v49, %v3979_v7  ;;  %v24813_v61 = vld [vmem:[#allocation42_spill] sm:$0xff]  ;;  %v24814_v45 = vld [vmem:[#allocation76_spill] sm:$0xff]  ;;  %v21713_v26 = vpop.f32.mrf.mxu1 }
 0x331   :  { %17313 = vmatmul.mubr.msk.f32.gmra.mxu0 %vm6137_vm2, %v7368_v15  ;;  %17131 = vmatprep.mubr.msk.f32.mxu1 %vm6137_vm2, %v21660_v13  ;;  %6169 = vst.msk [vmem:[#allocation2 + $0xf8] sm:$0xff] %vm6137_vm2, %v6108_v46  ;;  %v6107_v34 = vmax.f32 %v6047_v18, 0.0  ;;  %v6050_v31 = vadd.f32 %v21378_v6, %v5983_v12  ;;  %v5982_v21 = vadd.f32 %v5811_v28, %v5313_v30  ;;  %v24819_v33 = vld [vmem:[#allocation80_spill] sm:$0xff]  ;;  %v24820_v49 = vld [vmem:[#allocation46_spill] sm:$0xff] }
 0x332   :  { %17315 = vmatprep.mubr.msk.f32.mxu0 %vm6137_vm2, %v7369_v43  ;;  %v17050_v63 = vpop.f32.mrf.mxu0  ;;  %v21680_v60 = vld [vmem:[#allocation2 + $0xc9] sm:$0xff]  ;;  %v21682_v51 = vld [vmem:[#allocation2 + $0xd1] sm:$0xff]  ;;  %v5318_v55 = vadd.f32 %v21444_v1, %v24813_v61  ;;  %v3981_v42 = vadd.f32 %v24815_v20, %v24814_v45  ;;  %v5317_v30 = vadd.f32 %v21468_v38, %v4648_v41  ;;  %v24816_v43 = vld [vmem:[#allocation44_spill] sm:$0xff] }
 0x333   :  { %v7370_v10 = vld [vmem:[#allocation2 + $0xca] sm:$0xff]  ;;  %6168 = vst.msk [vmem:[#allocation2 + $0xf0] sm:$0xff] %vm6137_vm2, %v6107_v34  ;;  %v6110_v47 = vmax.f32 %v6050_v31, 0.0  ;;  %v6049_v37 = vadd.f32 %v21378_v6, %v5982_v21  ;;  %v5985_v2 = vadd.f32 %v17050_v63, %v5316_v14  ;;  %v7371_v36 = vld [vmem:[#allocation2 + $0xd2] sm:$0xff] }
 0x334   :  { %17132 = vmatmul.mubr.msk.f32.gmra.mxu1 %vm6137_vm2, %v21680_v60  ;;  %v5821_v25 = vpop.f32.mrf.mxu0  ;;  %v4650_v57 = vadd.f32 %v24816_v43, %v3981_v42  ;;  %v24817_v38 = vld [vmem:[#allocation51_spill] sm:$0xff]  ;;  %v24818_v21 = vld [vmem:[#allocation78_spill] sm:$0xff]  ;;  %v24823_v20 = vld [vmem:[#allocation81_spill] sm:$0xff] }
 0x335   :  { %17316 = vmatmul.mubr.msk.f32.gmra.mxu0 %vm6137_vm2, %v7370_v10  ;;  %17134 = vmatprep.mubr.msk.f32.mxu1 %vm6137_vm2, %v21682_v51  ;;  %6171 = vst.msk [vmem:[#allocation2 + $0x108] sm:$0xff] %vm6137_vm2, %v6110_v47  ;;  %v6109_v35 = vmax.f32 %v6049_v37, 0.0  ;;  %v6052_v40 = vadd.f32 %v21378_v6, %v5985_v2  ;;  %v5984_v48 = vadd.f32 %v5821_v25, %v5315_v11  ;;  %v21735_v25 = vpop.f32.mrf.mxu1  ;;  %v24822_v45 = vld [vmem:[#allocation79_spill] sm:$0xff] }
 0x336   :  { %17318 = vmatprep.mubr.msk.f32.mxu0 %vm6137_vm2, %v7371_v36  ;;  %v17053_v8 = vpop.f32.mrf.mxu0  ;;  %v21702_v39 = vld [vmem:[#allocation2 + $0xd9] sm:$0xff]  ;;  %v21704_v15 = vld [vmem:[#allocation2 + $0xe1] sm:$0xff]  ;;  %v5320_v54 = vadd.f32 %v21490_v19, %v24817_v38  ;;  %v3983_v32 = vadd.f32 %v24819_v33, %v24818_v21  ;;  %v5319_v47 = vadd.f32 %v21512_v9, %v4650_v57  ;;  %v3985_v42 = vadd.f32 %v24823_v20, %v24822_v45 }
 0x337   :  { %v7372_v5 = vld [vmem:[#allocation2 + $0xda] sm:$0xff]  ;;  %6170 = vst.msk [vmem:[#allocation2 + $0x100] sm:$0xff] %vm6137_vm2, %v6109_v35  ;;  %v6112_v1 = vmax.f32 %v6052_v40, 0.0  ;;  %v6051_v46 = vadd.f32 %v21378_v6, %v5984_v48  ;;  %v5987_v18 = vadd.f32 %v17053_v8, %v5318_v55  ;;  %v7373_v12 = vld [vmem:[#allocation2 + $0xe2] sm:$0xff]  ;;  %v21757_v38 = vpop.f32.mrf.mxu1 }
 0x338   :  { %17135 = vmatmul.mubr.msk.f32.gmra.mxu1 %vm6137_vm2, %v21702_v39  ;;  %v5831_v28 = vpop.f32.mrf.mxu0  ;;  %v4652_v41 = vadd.f32 %v24820_v49, %v3983_v32  ;;  %v24821_v9 = vld [vmem:[#allocation45_spill] sm:$0xff]  ;;  %v24824_v57 = vld [vmem:[#allocation96_spill] sm:$0xff]  ;;  %v24827_v32 = vld [vmem:[#allocation91_spill] sm:$0xff] }
 0x339   :  { %17319 = vmatmul.mubr.msk.f32.gmra.mxu0 %vm6137_vm2, %v7372_v5  ;;  %17137 = vmatprep.mubr.msk.f32.mxu1 %vm6137_vm2, %v21704_v15  ;;  %6173 = vst.msk [vmem:[#allocation2 + $0x118] sm:$0xff] %vm6137_vm2, %v6112_v1  ;;  %v6111_v14 = vmax.f32 %v6051_v46, 0.0  ;;  %v6054_v34 = vadd.f32 %v21378_v6, %v5987_v18  ;;  %v5986_v31 = vadd.f32 %v5831_v28, %v5317_v30  ;;  %v24826_v33 = vld [vmem:[#allocation89_spill] sm:$0xff] }
 0x33a   :  { %17321 = vmatprep.mubr.msk.f32.mxu0 %vm6137_vm2, %v7373_v12  ;;  %v17056_v7 = vpop.f32.mrf.mxu0  ;;  %v21724_v63 = vld [vmem:[#allocation2 + $0xe9] sm:$0xff]  ;;  %v21726_v11 = vld [vmem:[#allocation2 + $0xf1] sm:$0xff]  ;;  %v5322_v55 = vadd.f32 %v21528_v23, %v24821_v9  ;;  %v5321_v46 = vadd.f32 %v21544_v0, %v4652_v41  ;;  %v4654_v28 = vadd.f32 %v24824_v57, %v3985_v42  ;;  %v24830_v42 = vld [vmem:[#allocation28_spill] sm:$0xff] }
 0x33b   :  { %v7374_v10 = vld [vmem:[#allocation2 + $0xea] sm:$0xff]  ;;  %6172 = vst.msk [vmem:[#allocation2 + $0x110] sm:$0xff] %vm6137_vm2, %v6111_v14  ;;  %v6114_v19 = vmax.f32 %v6054_v34, 0.0  ;;  %v6053_v37 = vadd.f32 %v21378_v6, %v5986_v31  ;;  %v5989_v2 = vadd.f32 %v17056_v7, %v5320_v54  ;;  %v7375_v36 = vld [vmem:[#allocation2 + $0xf2] sm:$0xff]  ;;  %v3987_v7 = vadd.f32 %v24827_v32, %v24826_v33 }
 0x33c   :  { %17138 = vmatmul.mubr.msk.f32.gmra.mxu1 %vm6137_vm2, %v21724_v63  ;;  %v5841_v61 = vpop.f32.mrf.mxu0  ;;  %v24825_v0 = vld [vmem:[#allocation47_spill] sm:$0xff] }
 0x33d   :  { %17322 = vmatmul.mubr.msk.f32.gmra.mxu0 %vm6137_vm2, %v7374_v10  ;;  %17140 = vmatprep.mubr.msk.f32.mxu1 %vm6137_vm2, %v21726_v11  ;;  %6175 = vst.msk [vmem:[#allocation2 + $0x128] sm:$0xff] %vm6137_vm2, %v6114_v19  ;;  %v6113_v35 = vmax.f32 %v6053_v37, 0.0  ;;  %v6056_v40 = vadd.f32 %v21378_v6, %v5989_v2  ;;  %v5988_v48 = vadd.f32 %v5841_v61, %v5319_v47  ;;  %v24828_v61 = vld [vmem:[#allocation98_spill] sm:$0xff] }
 0x33e   :  { %17324 = vmatprep.mubr.msk.f32.mxu0 %vm6137_vm2, %v7375_v36  ;;  %v17059_v8 = vpop.f32.mrf.mxu0  ;;  %v21746_v5 = vld [vmem:[#allocation2 + $0xf9] sm:$0xff]  ;;  %v21748_v1 = vld [vmem:[#allocation2 + $0x101] sm:$0xff]  ;;  %v5324_v14 = vadd.f32 %v21560_v27, %v24825_v0  ;;  %v5323_v2 = vadd.f32 %v21581_v24, %v4654_v28  ;;  %v4656_v9 = vadd.f32 %v24828_v61, %v3987_v7 }
 0x33f   :  { %v7376_v30 = vld [vmem:[#allocation2 + $0xfa] sm:$0xff]  ;;  %6174 = vst.msk [vmem:[#allocation2 + $0x120] sm:$0xff] %vm6137_vm2, %v6113_v35  ;;  %v6116_v23 = vmax.f32 %v6056_v40, 0.0  ;;  %v6055_v18 = vadd.f32 %v21378_v6, %v5988_v48  ;;  %v5991_v12 = vadd.f32 %v17059_v8, %v5322_v55  ;;  %v7377_v43 = vld [vmem:[#allocation2 + $0x102] sm:$0xff]  ;;  %v21779_v55 = vpop.f32.mrf.mxu1  ;;  %v24831_v8 = vld [vmem:[#allocation30_spill] sm:$0xff] }
 0x340   :  { %17141 = vmatmul.mubr.msk.f32.gmra.mxu1 %vm6137_vm2, %v21746_v5  ;;  %v5851_v54 = vpop.f32.mrf.mxu0  ;;  %v24829_v24 = vld [vmem:[#allocation97_spill] sm:$0xff]  ;;  %v24832_v0 = vld [vmem:[#allocation100_spill] sm:$0xff] }
 0x341   :  { %17325 = vmatmul.mubr.msk.f32.gmra.mxu0 %vm6137_vm2, %v7376_v30  ;;  %17143 = vmatprep.mubr.msk.f32.mxu1 %vm6137_vm2, %v21748_v1  ;;  %6177 = vst.msk [vmem:[#allocation2 + $0x138] sm:$0xff] %vm6137_vm2, %v6116_v23  ;;  %v6115_v34 = vmax.f32 %v6055_v18, 0.0  ;;  %v6058_v31 = vadd.f32 %v21378_v6, %v5991_v12  ;;  %v5990_v21 = vadd.f32 %v5851_v54, %v5321_v46 }
 0x342   :  { %17327 = vmatprep.mubr.msk.f32.mxu0 %vm6137_vm2, %v7377_v43  ;;  %v17062_v10 = vpop.f32.mrf.mxu0  ;;  %v21768_v47 = vld [vmem:[#allocation2 + $0x109] sm:$0xff]  ;;  %v21770_v37 = vld [vmem:[#allocation2 + $0x111] sm:$0xff]  ;;  %v5326_v40 = vadd.f32 %v21603_v17, %v24829_v24  ;;  %v3989_v30 = vadd.f32 %v24831_v8, %v24830_v42  ;;  %v5325_v43 = vadd.f32 %v21625_v53, %v4656_v9  ;;  %v21818_v9 = vld [vmem:[#allocation8] ss:$0 sm:$0xff] }
 0x343   :  { %v7378_v19 = vld [vmem:[#allocation2 + $0x10a] sm:$0xff]  ;;  %6176 = vst.msk [vmem:[#allocation2 + $0x130] sm:$0xff] %vm6137_vm2, %v6115_v34  ;;  %v6118_v27 = vmax.f32 %v6058_v31, 0.0  ;;  %v6057_v36 = vadd.f32 %v21378_v6, %v5990_v21  ;;  %v5993_v49 = vadd.f32 %v17062_v10, %v5324_v14  ;;  %v7379_v41 = vld [vmem:[#allocation2 + $0x112] sm:$0xff]  ;;  %v21801_v34 = vpop.f32.mrf.mxu1 }
 0x344   :  { %17144 = vmatmul.mubr.msk.f32.gmra.mxu1 %vm6137_vm2, %v21768_v47  ;;  %v5861_v35 = vpop.f32.mrf.mxu0  ;;  %v4658_v14 = vadd.f32 %v24832_v0, %v3989_v30  ;;  %v24833_v53 = vld [vmem:[#allocation99_spill] sm:$0xff]  ;;  %v24834_v10 = vld [vmem:[#allocation82_spill] sm:$0xff] }
 0x345   :  { %17328 = vmatmul.mubr.msk.f32.gmra.mxu0 %vm6137_vm2, %v7378_v19  ;;  %17146 = vmatprep.mubr.msk.f32.mxu1 %vm6137_vm2, %v21770_v37  ;;  %6179 = vst.msk [vmem:[#allocation2 + $0x148] sm:$0xff] %vm6137_vm2, %v6118_v27  ;;  %v6117_v48 = vmax.f32 %v6057_v36, 0.0  ;;  %v6060_v45 = vadd.f32 %v21378_v6, %v5993_v49  ;;  %v5992_v20 = vadd.f32 %v5861_v35, %v5323_v2  ;;  %v24835_v19 = vld [vmem:[#allocation83_spill] sm:$0xff] }
 0x346   :  { %17330 = vmatprep.mubr.msk.f32.mxu0 %vm6137_vm2, %v7379_v41  ;;  %v17065_v46 = vpop.f32.mrf.mxu0  ;;  %v21790_v23 = vld [vmem:[#allocation2 + $0x119] sm:$0xff]  ;;  %v21792_v12 = vld [vmem:[#allocation2 + $0x121] sm:$0xff]  ;;  %v5328_v21 = vadd.f32 %v21647_v22, %v24833_v53  ;;  %v3991_v2 = vadd.f32 %v24835_v19, %v24834_v10  ;;  %v5327_v61 = vadd.f32 %v21669_v44, %v4658_v14 }
 0x347   :  { %v7380_v18 = vld [vmem:[#allocation2 + $0x11a] sm:$0xff]  ;;  %6178 = vst.msk [vmem:[#allocation2 + $0x140] sm:$0xff] %vm6137_vm2, %v6117_v48  ;;  %v6120_v17 = vmax.f32 %v6060_v45, 0.0  ;;  %v6059_v57 = vadd.f32 %v21378_v6, %v5992_v20  ;;  %v5995_v28 = vadd.f32 %v17065_v46, %v5326_v40  ;;  %v7381_v54 = vld [vmem:[#allocation2 + $0x122] sm:$0xff]  ;;  %v24836_v40 = vld [vmem:[#allocation102_spill] sm:$0xff]  ;;  %v21825_v45 = vpop.f32.mrf.mxu1 }
 0x348   :  { %17147 = vmatmul.mubr.msk.f32.gmra.mxu1 %vm6137_vm2, %v21790_v23  ;;  %v5871_v31 = vpop.f32.mrf.mxu0  ;;  %v4660_v48 = vadd.f32 %v24836_v40, %v3991_v2  ;;  %v24837_v44 = vld [vmem:[#allocation101_spill] sm:$0xff] }
 0x349   :  { %17331 = vmatmul.mubr.msk.f32.gmra.mxu0 %vm6137_vm2, %v7380_v18  ;;  %17149 = vmatprep.mubr.msk.f32.mxu1 %vm6137_vm2, %v21792_v12  ;;  %6181 = vst.msk [vmem:[#allocation2 + $0x158] sm:$0xff] %vm6137_vm2, %v6120_v17  ;;  %v6119_v33 = vmax.f32 %v6059_v57, 0.0  ;;  %v6062_v32 = vadd.f32 %v21378_v6, %v5995_v28  ;;  %v5994_v7 = vadd.f32 %v5871_v31, %v5325_v43  ;;  %v24838_v18 = vld [vmem:[#allocation25_spill] sm:$0xff]  ;;  %v24839_v43 = vld [vmem:[#allocation26_spill] sm:$0xff] }
 0x34a   :  { %17333 = vmatprep.mubr.msk.f32.mxu0 %vm6137_vm2, %v7381_v54  ;;  %v17068_v27 = vpop.f32.mrf.mxu0  ;;  %v21812_v36 = vld [vmem:[#allocation2 + $0x129] sm:$0xff]  ;;  %v21814_v41 = vld [vmem:[#allocation2 + $0x131] sm:$0xff]  ;;  %v5330_v42 = vadd.f32 %v21691_v58, %v24837_v44  ;;  %v3993_v17 = vadd.f32 %v24839_v43, %v24838_v18  ;;  %v5329_v14 = vadd.f32 %v21713_v26, %v4660_v48 }
 0x34b   :  { %v7382_v49 = vld [vmem:[#allocation2 + $0x12a] sm:$0xff]  ;;  %6180 = vst.msk [vmem:[#allocation2 + $0x150] sm:$0xff] %vm6137_vm2, %v6119_v33  ;;  %v6122_v22 = vmax.f32 %v6062_v32, 0.0  ;;  %v6061_v35 = vadd.f32 %v21818_v9, %v5994_v7  ;;  %v5997_v6 = vadd.f32 %v17068_v27, %v5328_v21  ;;  %v7383_v24 = vld [vmem:[#allocation2 + $0x132] sm:$0xff]  ;;  %v24840_v33 = vld [vmem:[#allocation104_spill] sm:$0xff]  ;;  %v5252_v7 = vpop.f32.mrf.mxu1 }
 0x34c   :  { %17150 = vmatmul.mubr.msk.f32.gmra.mxu1 %vm6137_vm2, %v21812_v36  ;;  %v5881_v20 = vpop.f32.mrf.mxu0  ;;  %v4662_v32 = vadd.f32 %v24840_v33, %v3993_v17  ;;  %v24841_v26 = vld [vmem:[#allocation103_spill] sm:$0xff] }
 0x34d   :  { %17334 = vmatmul.mubr.msk.f32.gmra.mxu0 %vm6137_vm2, %v7382_v49  ;;  %17152 = vmatprep.mubr.msk.f32.mxu1 %vm6137_vm2, %v21814_v41  ;;  %6183 = vst.msk [vmem:[#allocation2 + $0x168] sm:$0xff] %vm6137_vm2, %v6122_v22  ;;  %v6121_v8 = vmax.f32 %v6061_v35, 0.0  ;;  %v6064_v30 = vadd.f32 %v21818_v9, %v5997_v6  ;;  %v5996_v46 = vadd.f32 %v5881_v20, %v5327_v61  ;;  %v24842_v61 = vld [vmem:[#allocation84_spill] sm:$0xff]  ;;  %v24843_v22 = vld [vmem:[#allocation87_spill] sm:$0xff]  ;;  %v16991_v18 = vpop.f32.mrf.mxu1 }
 0x34e   :  { %17336 = vmatprep.mubr.msk.f32.mxu0 %vm6137_vm2, %v7383_v24  ;;  %v17071_v57 = vpop.f32.mrf.mxu0  ;;  %v21836_v28 = vld [vmem:[#allocation2 + $0x139] sm:$0xff]  ;;  %v21838_v0 = vld [vmem:[#allocation2 + $0x141] sm:$0xff]  ;;  %v5332_v19 = vadd.f32 %v21735_v25, %v24841_v26  ;;  %v3995_v35 = vadd.f32 %v24843_v22, %v24842_v61  ;;  %v5331_v20 = vadd.f32 %v21757_v38, %v4662_v32 }
 0x34f   :  { %v7384_v54 = vld [vmem:[#allocation2 + $0x13a] sm:$0xff]  ;;  %6182 = vst.msk [vmem:[#allocation2 + $0x160] sm:$0xff] %vm6137_vm2, %v6121_v8  ;;  %v6124_v58 = vmax.f32 %v6064_v30, 0.0  ;;  %v6063_v31 = vadd.f32 %v21818_v9, %v5996_v46  ;;  %v5999_v53 = vadd.f32 %v17071_v57, %v5330_v42  ;;  %v7385_v21 = vld [vmem:[#allocation2 + $0x142] sm:$0xff]  ;;  %v24844_v30 = vld [vmem:[#allocation106_spill] sm:$0xff]  ;;  %v5262_v22 = vpop.f32.mrf.mxu1 }
 0x350   :  { %17153 = vmatmul.mubr.msk.f32.gmra.mxu1 %vm6137_vm2, %v21836_v28  ;;  %v5891_v10 = vpop.f32.mrf.mxu0  ;;  %v4664_v46 = vadd.f32 %v24844_v30, %v3995_v35  ;;  %v24845_v38 = vld [vmem:[#allocation105_spill] sm:$0xff] }
 0x351   :  { %17337 = vmatmul.mubr.msk.f32.gmra.mxu0 %vm6137_vm2, %v7384_v54  ;;  %17155 = vmatprep.mubr.msk.f32.mxu1 %vm6137_vm2, %v21838_v0  ;;  %6185 = vst.msk [vmem:[#allocation2 + $0x178] sm:$0xff] %vm6137_vm2, %v6124_v58  ;;  %v6123_v2 = vmax.f32 %v6063_v31, 0.0  ;;  %v6066_v27 = vadd.f32 %v21818_v9, %v5999_v53  ;;  %v5998_v49 = vadd.f32 %v5891_v10, %v5329_v14  ;;  %v24846_v58 = vld [vmem:[#allocation85_spill] sm:$0xff]  ;;  %v24847_v31 = vld [vmem:[#allocation23_spill] sm:$0xff] }
 0x352   :  { %17339 = vmatprep.mubr.msk.f32.mxu0 %vm6137_vm2, %v7385_v21  ;;  %v17074_v6 = vpop.f32.mrf.mxu0  ;;  %v21856_v24 = vld [vmem:[#allocation2 + $0x149] sm:$0xff]  ;;  %v21858_v48 = vld [vmem:[#allocation2 + $0x151] sm:$0xff]  ;;  %v5334_v17 = vadd.f32 %v21779_v55, %v24845_v38  ;;  %v3997_v53 = vadd.f32 %v24847_v31, %v24846_v58  ;;  %v5333_v26 = vadd.f32 %v21801_v34, %v4664_v46  ;;  %v24852_v31 = vld [vmem:[#allocation112_spill] sm:$0xff] }
 0x353   :  { %v7386_v40 = vld [vmem:[#allocation2 + $0x14a] sm:$0xff]  ;;  %6184 = vst.msk [vmem:[#allocation2 + $0x170] sm:$0xff] %vm6137_vm2, %v6123_v2  ;;  %v6126_v25 = vmax.f32 %v6066_v27, 0.0  ;;  %v6065_v44 = vadd.f32 %v21818_v9, %v5998_v49  ;;  %v6001_v42 = vadd.f32 %v17074_v6, %v5332_v19  ;;  %v7387_v8 = vld [vmem:[#allocation2 + $0x152] sm:$0xff] }
 0x354   :  { %17156 = vmatmul.mubr.msk.f32.gmra.mxu1 %vm6137_vm2, %v21856_v24  ;;  %v5901_v43 = vpop.f32.mrf.mxu0  ;;  %v24848_v49 = vld [vmem:[#allocation109_spill] sm:$0xff]  ;;  %v24849_v34 = vld [vmem:[#allocation107_spill] sm:$0xff] }
 0x355   :  { %17340 = vmatmul.mubr.msk.f32.gmra.mxu0 %vm6137_vm2, %v7386_v40  ;;  %17158 = vmatprep.mubr.msk.f32.mxu1 %vm6137_vm2, %v21858_v48  ;;  %6187 = vst.msk [vmem:[#allocation2 + $0x188] sm:$0xff] %vm6137_vm2, %v6126_v25  ;;  %v6125_v57 = vmax.f32 %v6065_v44, 0.0  ;;  %v6068_v54 = vadd.f32 %v21818_v9, %v6001_v42  ;;  %v6000_v14 = vadd.f32 %v5901_v43, %v5331_v20  ;;  %v24850_v44 = vld [vmem:[#allocation88_spill] sm:$0xff] }
 0x356   :  { %17342 = vmatprep.mubr.msk.f32.mxu0 %vm6137_vm2, %v7387_v8  ;;  %v17077_v21 = vpop.f32.mrf.mxu0  ;;  %v21876_v33 = vld [vmem:[#allocation2 + $0x159] sm:$0xff]  ;;  %v21878_v10 = vld [vmem:[#allocation2 + $0x161] sm:$0xff]  ;;  %v4666_v61 = vadd.f32 %v24848_v49, %v3997_v53  ;;  %v5336_v6 = vadd.f32 %v21825_v45, %v24849_v34 }
 0x357   :  { %v7388_v32 = vld [vmem:[#allocation2 + $0x15a] sm:$0xff]  ;;  %6186 = vst.msk [vmem:[#allocation2 + $0x180] sm:$0xff] %vm6137_vm2, %v6125_v57  ;;  %v6128_v55 = vmax.f32 %v6068_v54, 0.0  ;;  %v6067_v19 = vadd.f32 %v21818_v9, %v6000_v14  ;;  %v6003_v2 = vadd.f32 %v17077_v21, %v5334_v17  ;;  %v7389_v27 = vld [vmem:[#allocation2 + $0x162] sm:$0xff] }
 0x358   :  { %17159 = vmatmul.mubr.msk.f32.gmra.mxu1 %vm6137_vm2, %v21876_v33  ;;  %v5911_v35 = vpop.f32.mrf.mxu0  ;;  %v24851_v42 = vld [vmem:[#allocation24_spill] sm:$0xff]  ;;  %v5335_v17 = vadd.f32 %v5252_v7, %v4666_v61  ;;  %v16994_v7 = vpop.f32.mrf.mxu1 }
 0x359   :  { %17343 = vmatmul.mubr.msk.f32.gmra.mxu0 %vm6137_vm2, %v7388_v32  ;;  %17161 = vmatprep.mubr.msk.f32.mxu1 %vm6137_vm2, %v21878_v10  ;;  %6189 = vst.msk [vmem:[#allocation2 + $0x198] sm:$0xff] %vm6137_vm2, %v6128_v55  ;;  %v6127_v40 = vmax.f32 %v6067_v19, 0.0  ;;  %v6070_v20 = vadd.f32 %v21818_v9, %v6003_v2  ;;  %v6002_v25 = vadd.f32 %v5911_v35, %v5333_v26  ;;  %v21908_v58 = vld [vmem:[%s24378_s3 + $0xd8] sm:$0xff]  ;;  %v24853_v32 = vld [vmem:[#allocation110_spill] sm:$0xff] }
 0x35a   :  { %17345 = vmatprep.mubr.msk.f32.mxu0 %vm6137_vm2, %v7389_v27  ;;  %v3999_v8 = vadd.f32 %v24851_v42, %v24850_v44  ;;  %v17080_v30 = vpop.f32.mrf.mxu0  ;;  %v21896_v46 = vld [vmem:[#allocation2 + $0x169] sm:$0xff]  ;;  %v21898_v38 = vld [vmem:[#allocation2 + $0x171] sm:$0xff]  ;;  %v5338_v26 = vadd.f32 %v16991_v18, %v24853_v32  ;;  %17639 = vmatprep.subr.mxu0 %v21908_v58  ;;  %v24855_v49 = vld [vmem:[#allocation92_spill] sm:$0xff] }
 0x35b   :  { %v7390_v43 = vld [vmem:[#allocation2 + $0x16a] sm:$0xff]  ;;  %6188 = vst.msk [vmem:[#allocation2 + $0x190] sm:$0xff] %vm6137_vm2, %v6127_v40  ;;  %v6130_v57 = vmax.f32 %v6070_v20, 0.0  ;;  %v6069_v45 = vadd.f32 %v21818_v9, %v6002_v25  ;;  %v6005_v54 = vadd.f32 %v17080_v30, %v5336_v6  ;;  %v7391_v14 = vld [vmem:[#allocation2 + $0x172] sm:$0xff] }
 0x35c   :  { %17162 = vmatmul.mubr.msk.f32.gmra.mxu1 %vm6137_vm2, %v21896_v46  ;;  %v4668_v53 = vadd.f32 %v24852_v31, %v3999_v8  ;;  %v5921_v21 = vpop.f32.mrf.mxu0  ;;  %v24854_v27 = vld [vmem:[#allocation90_spill] sm:$0xff]  ;;  %v24856_v8 = vld [vmem:[#allocation115_spill] sm:$0xff] }
 0x35d   :  { %17346 = vmatmul.mubr.msk.f32.gmra.mxu0 %vm6137_vm2, %v7390_v43  ;;  %17164 = vmatprep.mubr.msk.f32.mxu1 %vm6137_vm2, %v21898_v38  ;;  %6191 = vst.msk [vmem:[#allocation2 + $0x1a8] sm:$0xff] %vm6137_vm2, %v6130_v57  ;;  %v6129_v55 = vmax.f32 %v6069_v45, 0.0  ;;  %v6072_v19 = vadd.f32 %v21818_v9, %v6005_v54  ;;  %v6004_v2 = vadd.f32 %v5921_v21, %v5335_v17  ;;  %v5272_v43 = vpop.f32.mrf.mxu1 }
 0x35e   :  { %17348 = vmatprep.mubr.msk.f32.mxu0 %vm6137_vm2, %v7391_v14  ;;  %v4001_v61 = vadd.f32 %v24855_v49, %v24854_v27  ;;  %v17083_v35 = vpop.f32.mrf.mxu0  ;;  %v21920_v34 = vld [vmem:[#allocation2 + $0x179] sm:$0xff]  ;;  %v21922_v40 = vld [vmem:[#allocation2 + $0x181] sm:$0xff]  ;;  %v5337_v20 = vadd.f32 %v5262_v22, %v4668_v53 }
 0x35f   :  { %v7392_v6 = vld [vmem:[#allocation2 + $0x17a] sm:$0xff]  ;;  %6190 = vst.msk [vmem:[#allocation2 + $0x1a0] sm:$0xff] %vm6137_vm2, %v6129_v55  ;;  %v6132_v18 = vmax.f32 %v6072_v19, 0.0  ;;  %v6071_v25 = vadd.f32 %v21818_v9, %v6004_v2  ;;  %v6007_v44 = vadd.f32 %v17083_v35, %v5338_v26  ;;  %v7393_v42 = vld [vmem:[#allocation2 + $0x182] sm:$0xff] }
 0x360   :  { %17165 = vmatmul.mubr.msk.f32.gmra.mxu1 %vm6137_vm2, %v21920_v34  ;;  %v4670_v30 = vadd.f32 %v24856_v8, %v4001_v61  ;;  %v5931_v17 = vpop.f32.mrf.mxu0  ;;  %v24857_v22 = vld [vmem:[#allocation113_spill] sm:$0xff] }
 0x361   :  { %17349 = vmatmul.mubr.msk.f32.gmra.mxu0 %vm6137_vm2, %v7392_v6  ;;  %17167 = vmatprep.mubr.msk.f32.mxu1 %vm6137_vm2, %v21922_v40  ;;  %v5340_v57 = vadd.f32 %v16994_v7, %v24857_v22  ;;  %6193 = vst.msk [vmem:[#allocation2 + $0x1b8] sm:$0xff] %vm6137_vm2, %v6132_v18  ;;  %v6131_v45 = vmax.f32 %v6071_v25, 0.0  ;;  %v6074_v54 = vadd.f32 %v21818_v9, %v6007_v44 }
 0x362   :  { %17351 = vmatprep.mubr.msk.f32.mxu0 %vm6137_vm2, %v7393_v42  ;;  %v6006_v14 = vadd.f32 %v5931_v17, %v5337_v20  ;;  %v17086_v31 = vpop.f32.mrf.mxu0  ;;  %v21936_v53 = vld [vmem:[#allocation2 + $0x189] sm:$0xff]  ;;  %v21938_v32 = vld [vmem:[#allocation2 + $0x191] sm:$0xff]  ;;  %v5339_v26 = vadd.f32 %v5272_v43, %v4670_v30 }
 0x363   :  { %v7394_v21 = vld [vmem:[#allocation2 + $0x18a] sm:$0xff]  ;;  %6192 = vst.msk [vmem:[#allocation2 + $0x1b0] sm:$0xff] %vm6137_vm2, %v6131_v45  ;;  %v6134_v55 = vmax.f32 %v6074_v54, 0.0  ;;  %v6009_v2 = vadd.f32 %v17086_v31, %v5340_v57  ;;  %v7395_v7 = vld [vmem:[#allocation2 + $0x192] sm:$0xff]  ;;  %v6199_v45 = vld [vmem:[#allocation2] sm:$0xff] }
 0x364   :  { %v6073_v19 = vadd.f32 %v21818_v9, %v6006_v14  ;;  %17168 = vmatmul.mubr.msk.f32.gmra.mxu1 %vm6137_vm2, %v21936_v53  ;;  %v5941_v27 = vpop.f32.mrf.mxu0  ;;  %v17973_v54 = vld [vmem:[#allocation2 + $0x11] sm:$0xff]  ;;  %v6200_v14 = vld [vmem:[#allocation2 + $0x8] sm:$0xff] }
 0x365   :  { %17352 = vmatmul.mubr.msk.f32.gmra.mxu0 %vm6137_vm2, %v7394_v21  ;;  %17170 = vmatprep.mubr.msk.f32.mxu1 %vm6137_vm2, %v21938_v32  ;;  %6195 = vst.msk [vmem:[#allocation2 + $0x1c8] sm:$0xff] %vm6137_vm2, %v6134_v55  ;;  %v6076_v61 = vadd.f32 %v21818_v9, %v6009_v2  ;;  %v6008_v35 = vadd.f32 %v5941_v27, %v5339_v26  ;;  %v8032_v31 = vld [vmem:[%s24378_s3 + $0x70] sm:$0xff]  ;;  %v17974_v21 = vld [vmem:[#allocation2 + $0x19] sm:$0xff] }
 0x366   :  { %17354 = vmatprep.mubr.msk.f32.mxu0 %vm6137_vm2, %v7395_v7  ;;  %v6133_v49 = vmax.f32 %v6073_v19, 0.0  ;;  %v21950_v6 = vld [vmem:[#allocation2 + $0x199] sm:$0xff]  ;;  %v21952_v18 = vld [vmem:[#allocation2 + $0x1a1] sm:$0xff]  ;;  %v21982_v26 = vld [vmem:[#allocation2 + $0x10] sm:$0xff] }
 0x367   :  { %v7396_v20 = vld [vmem:[#allocation2 + $0x19a] sm:$0xff]  ;;  %v6136_v25 = vmax.f32 %v6076_v61, 0.0  ;;  %v6075_v44 = vadd.f32 %v21818_v9, %v6008_v35  ;;  %v7397_v42 = vld [vmem:[#allocation2 + $0x1a2] sm:$0xff]  ;;  %v9919_v27 = vld [vmem:[%s24378_s3 + $0xd0] sm:$0xff] }
 0x368   :  { %6194 = vst.msk [vmem:[#allocation2 + $0x1c0] sm:$0xff] %vm6137_vm2, %v6133_v49  ;;  %17171 = vmatmul.mubr.msk.f32.gmra.mxu1 %vm6137_vm2, %v21950_v6  ;;  %v6314_v22 = vld [vmem:[#allocation2 + $0x1b9] sm:$0xf]  ;;  %v17976_v19 = vld [vmem:[#allocation2 + $0x21] sm:$0xff]  ;;  %v17977_v49 = vld [vmem:[#allocation2 + $0x29] sm:$0xff] }
 0x369   :  { %17355 = vmatmul.mubr.msk.f32.gmra.mxu0 %vm6137_vm2, %v7396_v20  ;;  %17173 = vmatprep.mubr.msk.f32.mxu1 %vm6137_vm2, %v21952_v18  ;;  %6198 = vst.msk [vmem:[#allocation2 + $0x1d8] sm:$0x3f] %vm6197_vm3, %v6136_v25  ;;  %v6135_v8 = vmax.f32 %v6075_v44, 0.0  ;;  %v7400_v57 = vld [vmem:[#allocation2 + $0x1ba] sm:$0xf]  ;;  %v8031_v7 = vld [vmem:[%s24378_s3 + $0x68] sm:$0xff] }
 0x36a   :  { %17357 = vmatprep.mubr.msk.f32.mxu0 %vm6137_vm2, %v7397_v42  ;;  %v21962_v30 = vld [vmem:[#allocation2 + $0x1a9] sm:$0xff]  ;;  %v21964_v17 = vld [vmem:[#allocation2 + $0x1b1] sm:$0xff]  ;;  %v22002_v61 = vld [vmem:[#allocation2 + $0x20] sm:$0xff] }
 0x36b   :  { %v7398_v43 = vld [vmem:[#allocation2 + $0x1aa] sm:$0xff]  ;;  %6196 = vst.msk [vmem:[#allocation2 + $0x1d0] sm:$0xff] %vm6137_vm2, %v6135_v8  ;;  %v7399_v9 = vld [vmem:[#allocation2 + $0x1b2] sm:$0xff]  ;;  %v8030_v20 = vld [vmem:[%s24378_s3 + $0x60] sm:$0xff] }
 0x36c   :  { %17174 = vmatmul.mubr.msk.f32.gmra.mxu1 %vm6137_vm2, %v21962_v30  ;;  %v17975_v55 = vld [vmem:[%s24378_s3 + $0x78] sm:$0xff]  ;;  %v9918_v25 = vld [vmem:[%s24378_s3 + $0xc8] sm:$0xff]  ;;  %v22018_v42 = vld [vmem:[#allocation2 + $0x30] sm:$0xff] }
 0x36d   :  { %17358 = vmatmul.mubr.msk.f32.gmra.mxu0 %vm6137_vm2, %v7398_v43  ;;  %17176 = vmatprep.mubr.msk.f32.mxu1 %vm6137_vm2, %v21964_v17  ;;  %v21990_v2 = vld [vmem:[#allocation2 + $0x18] sm:$0xff]  ;;  %v17980_v8 = vld [vmem:[#allocation2 + $0x41] sm:$0xff] }
 0x36e   :  { %17360 = vmatprep.mubr.msk.f32.mxu0 %vm6137_vm2, %v7399_v9  ;;  %v17978_v35 = vld [vmem:[#allocation2 + $0x31] sm:$0xff]  ;;  %v17979_v44 = vld [vmem:[#allocation2 + $0x39] sm:$0xff] }
 0x36f   :  { %v22023_v43 = vld [vmem:[#allocation2 + $0x38] sm:$0xff]  ;;  %v9917_v9 = vld [vmem:[%s24378_s3 + $0xc0] sm:$0xff] }
 0x370   :  { %17177 = vmatmul.mubr.msk.f32.gmra.mxu1 %vm6137_vm2, %v6314_v22  ;;  %v22031_v22 = vld [vmem:[%s24378_s3 + $0xb8] sm:$0xff] }
 0x371   :  { %17361 = vmatmul.mubr.msk.f32.gmra.mxu0 %vm6137_vm2, %v7400_v57  ;;  %17187 = vmatprep.mubr.msk.f32.mxu1 %vm6137_vm2, %v6199_v45  ;;  %v17981_v57 = vld [vmem:[#allocation2 + $0x49] sm:$0xff]  ;;  %v22036_v45 = vld [vmem:[#allocation2 + $0x40] sm:$0xff] }
 0x372   :  { %17463 = vmatprep.mubr.msk.f32.mxu0 %vm6137_vm2, %v17973_v54  ;;  %v17982_v54 = vld [vmem:[#allocation2 + $0x51] sm:$0xff] }
 0x374   :  { %17188 = vmatmul.mubr.msk.f32.vlgmr.msra.gmra.mxu1 %vm6137_vm2, %v6200_v14  ;;  %v22042_v14 = vld [vmem:[#allocation2 + $0x48] sm:$0xff] }
 0x375   :  { %17464 = vmatmul.mubr.msk.f32.vlgmr.msra.gmra.mxu0 %vm6137_vm2, %v17974_v21  ;;  %17190 = vmatprep.mubr.msk.f32.mxu1 %vm6137_vm2, %v21982_v26  ;;  %v22047_v21 = vld [vmem:[#allocation2 + $0x50] sm:$0xff] }
 0x376   :  { %17364 = vmatpush3.msra.mxu1 %v17975_v55  ;;  %17466 = vmatprep.mubr.msk.f32.mxu0 %vm6137_vm2, %v17976_v19  ;;  %v17984_v55 = vld [vmem:[#allocation2 + $0x61] sm:$0xff]  ;;  %v22052_v19 = vld [vmem:[#allocation2 + $0x58] sm:$0xff] }
 0x377   :  { %17365 = vmatprep.subr.mxu1 %v8032_v31  ;;  %17640 = vmatpush3.msra.mxu0 %v21908_v58  ;;  %v22007_v58 = vld [vmem:[#allocation2 + $0x28] sm:$0xff] }
 0x378   :  { %17366 = vmatpush3.msra.mxu1 %v8032_v31  ;;  %17641 = vmatprep.subr.mxu0 %v9919_v27  ;;  %v17983_v31 = vld [vmem:[#allocation2 + $0x59] sm:$0xff] }
 0x379   :  { %17191 = vmatmul.mubr.msk.f32.gmra.mxu1 %vm6137_vm2, %v21990_v2  ;;  %17467 = vmatmul.mubr.msk.f32.gmra.mxu0 %vm6137_vm2, %v17977_v49  ;;  %v17986_v49 = vld [vmem:[#allocation2 + $0x71] sm:$0xff] }
 0x37a   :  { %17193 = vmatprep.mubr.msk.f32.mxu1 %vm6137_vm2, %v22002_v61  ;;  %17469 = vmatprep.mubr.msk.f32.mxu0 %vm6137_vm2, %v17978_v35  ;;  %v22062_v35 = vld [vmem:[#allocation2 + $0x68] sm:$0xff] }
 0x37b   :  { %17367 = vmatprep.subr.mxu1 %v8031_v7  ;;  %17642 = vmatpush3.msra.mxu0 %v9919_v27  ;;  %v22057_v27 = vld [vmem:[#allocation2 + $0x60] sm:$0xff] }
 0x37c   :  { %17368 = vmatpush3.msra.mxu1 %v8031_v7  ;;  %17643 = vmatprep.subr.mxu0 %v9918_v25  ;;  %v17985_v7 = vld [vmem:[#allocation2 + $0x69] sm:$0xff] }
 0x37d   :  { %17194 = vmatmul.mubr.msk.f32.gmra.mxu1 %vm6137_vm2, %v22007_v58  ;;  %17470 = vmatmul.mubr.msk.f32.gmra.mxu0 %vm6137_vm2, %v17979_v44  ;;  %v22080_v44 = vld [vmem:[#allocation2 + $0x80] sm:$0xff] }
 0x37e   :  { %17196 = vmatprep.mubr.msk.f32.mxu1 %vm6137_vm2, %v22018_v42  ;;  %17472 = vmatprep.mubr.msk.f32.mxu0 %vm6137_vm2, %v17980_v8 }
 0x37f   :  { %17369 = vmatprep.subr.mxu1 %v8030_v20  ;;  %17644 = vmatpush3.msra.mxu0 %v9918_v25  ;;  %v22074_v25 = vld [vmem:[#allocation2 + $0x78] sm:$0xff] }
 0x380   :  { %17370 = vmatpush3.msra.mxu1 %v8030_v20  ;;  %17645 = vmatprep.subr.mxu0 %v9917_v9  ;;  %v22068_v20 = vld [vmem:[#allocation2 + $0x70] sm:$0xff] }
 0x381   :  { %17197 = vmatmul.mubr.msk.f32.gmra.mxu1 %vm6137_vm2, %v22023_v43  ;;  %17473 = vmatmul.mubr.msk.f32.gmra.mxu0 %vm6137_vm2, %v17981_v57  ;;  %v22250_v57 = vld [vmem:[#allocation2 + $0x158] sm:$0xff] }
 0x382   :  { %17199 = vmatprep.mubr.msk.f32.mxu1 %vm6137_vm2, %v22036_v45  ;;  %17475 = vmatprep.mubr.msk.f32.mxu0 %vm6137_vm2, %v17982_v54 }
 0x383   :  { %17547 = vmatprep.subr.mxu1 %v22031_v22  ;;  %17646 = vmatpush3.msra.mxu0 %v9917_v9 }
 0x385   :  { %17200 = vmatmul.mubr.msk.f32.gmra.mxu1 %vm6137_vm2, %v22042_v14  ;;  %17476 = vmatmul.mubr.msk.f32.gmra.mxu0 %vm6137_vm2, %v17983_v31  ;;  %v22260_v31 = vld [vmem:[#allocation2 + $0x160] sm:$0xff] }
 0x386   :  { %17202 = vmatprep.mubr.msk.f32.mxu1 %vm6137_vm2, %v22047_v21  ;;  %17478 = vmatprep.mubr.msk.f32.mxu0 %vm6137_vm2, %v17984_v55 }
 0x389   :  { %17203 = vmatmul.mubr.msk.f32.gmra.mxu1 %vm6137_vm2, %v22052_v19  ;;  %17479 = vmatmul.mubr.msk.f32.gmra.mxu0 %vm6137_vm2, %v17985_v7  ;;  %v22270_v7 = vld [vmem:[#allocation2 + $0x168] sm:$0xff] }
 0x38a   :  { %17205 = vmatprep.mubr.msk.f32.mxu1 %vm6137_vm2, %v22057_v27  ;;  %17481 = vmatprep.mubr.msk.f32.mxu0 %vm6137_vm2, %v17986_v49 }
 0x38d   :  { %17206 = vmatmul.mubr.msk.f32.gmra.mxu1 %vm6137_vm2, %v22062_v35  ;;  %17482 = vmatmul.mubr.msk.f32.gmra.mxu0 %vm6137_vm2, %v21570_v3  ;;  %v22086_v3 = vld [vmem:[#allocation2 + $0x88] sm:$0xff] }
 0x38e   :  { %17208 = vmatprep.mubr.msk.f32.mxu1 %vm6137_vm2, %v22068_v20  ;;  %17484 = vmatprep.mubr.msk.f32.mxu0 %vm6137_vm2, %v21572_v59  ;;  %v22092_v59 = vld [vmem:[#allocation2 + $0x90] sm:$0xff] }
 0x391   :  { %17209 = vmatmul.mubr.msk.f32.gmra.mxu1 %vm6137_vm2, %v22074_v25  ;;  %17485 = vmatmul.mubr.msk.f32.gmra.mxu0 %vm6137_vm2, %v21592_v62  ;;  %v22098_v62 = vld [vmem:[#allocation2 + $0x98] sm:$0xff] }
 0x392   :  { %17211 = vmatprep.mubr.msk.f32.mxu1 %vm6137_vm2, %v22080_v44  ;;  %17487 = vmatprep.mubr.msk.f32.mxu0 %vm6137_vm2, %v21594_v56  ;;  %v22104_v56 = vld [vmem:[#allocation2 + $0xa0] sm:$0xff] }
 0x395   :  { %17212 = vmatmul.mubr.msk.f32.gmra.mxu1 %vm6137_vm2, %v22086_v3  ;;  %17488 = vmatmul.mubr.msk.f32.gmra.mxu0 %vm6137_vm2, %v21614_v52  ;;  %v22110_v52 = vld [vmem:[#allocation2 + $0xa8] sm:$0xff] }
 0x396   :  { %17214 = vmatprep.mubr.msk.f32.mxu1 %vm6137_vm2, %v22092_v59  ;;  %17490 = vmatprep.mubr.msk.f32.mxu0 %vm6137_vm2, %v21616_v4  ;;  %v22116_v4 = vld [vmem:[#allocation2 + $0xb0] sm:$0xff] }
 0x399   :  { %17215 = vmatmul.mubr.msk.f32.gmra.mxu1 %vm6137_vm2, %v22098_v62  ;;  %17491 = vmatmul.mubr.msk.f32.gmra.mxu0 %vm6137_vm2, %v21636_v50  ;;  %v22122_v50 = vld [vmem:[#allocation2 + $0xb8] sm:$0xff] }
 0x39a   :  { %17217 = vmatprep.mubr.msk.f32.mxu1 %vm6137_vm2, %v22104_v56  ;;  %17493 = vmatprep.mubr.msk.f32.mxu0 %vm6137_vm2, %v21638_v16  ;;  %v22128_v16 = vld [vmem:[#allocation2 + $0xc0] sm:$0xff] }
 0x39d   :  { %17218 = vmatmul.mubr.msk.f32.gmra.mxu1 %vm6137_vm2, %v22110_v52  ;;  %17494 = vmatmul.mubr.msk.f32.gmra.mxu0 %vm6137_vm2, %v21658_v29  ;;  %v22134_v29 = vld [vmem:[#allocation2 + $0xc8] sm:$0xff] }
 0x39e   :  { %17220 = vmatprep.mubr.msk.f32.mxu1 %vm6137_vm2, %v22116_v4  ;;  %17496 = vmatprep.mubr.msk.f32.mxu0 %vm6137_vm2, %v21660_v13  ;;  %v22140_v13 = vld [vmem:[#allocation2 + $0xd0] sm:$0xff] }
 0x3a1   :  { %17221 = vmatmul.mubr.msk.f32.gmra.mxu1 %vm6137_vm2, %v22122_v50  ;;  %17497 = vmatmul.mubr.msk.f32.gmra.mxu0 %vm6137_vm2, %v21680_v60  ;;  %v22146_v60 = vld [vmem:[#allocation2 + $0xd8] sm:$0xff] }
 0x3a2   :  { %17223 = vmatprep.mubr.msk.f32.mxu1 %vm6137_vm2, %v22128_v16  ;;  %17499 = vmatprep.mubr.msk.f32.mxu0 %vm6137_vm2, %v21682_v51  ;;  %v22152_v51 = vld [vmem:[#allocation2 + $0xe0] sm:$0xff] }
 0x3a5   :  { %17224 = vmatmul.mubr.msk.f32.gmra.mxu1 %vm6137_vm2, %v22134_v29  ;;  %17500 = vmatmul.mubr.msk.f32.gmra.mxu0 %vm6137_vm2, %v21702_v39  ;;  %v22158_v39 = vld [vmem:[#allocation2 + $0xe8] sm:$0xff] }
 0x3a6   :  { %17226 = vmatprep.mubr.msk.f32.mxu1 %vm6137_vm2, %v22140_v13  ;;  %17502 = vmatprep.mubr.msk.f32.mxu0 %vm6137_vm2, %v21704_v15  ;;  %v22164_v15 = vld [vmem:[#allocation2 + $0xf0] sm:$0xff] }
 0x3a9   :  { %17227 = vmatmul.mubr.msk.f32.gmra.mxu1 %vm6137_vm2, %v22146_v60  ;;  %17503 = vmatmul.mubr.msk.f32.gmra.mxu0 %vm6137_vm2, %v21724_v63  ;;  %v22170_v63 = vld [vmem:[#allocation2 + $0xf8] sm:$0xff] }
 0x3aa   :  { %17229 = vmatprep.mubr.msk.f32.mxu1 %vm6137_vm2, %v22152_v51  ;;  %17505 = vmatprep.mubr.msk.f32.mxu0 %vm6137_vm2, %v21726_v11  ;;  %v22176_v11 = vld [vmem:[#allocation2 + $0x100] sm:$0xff] }
 0x3ad   :  { %17230 = vmatmul.mubr.msk.f32.gmra.mxu1 %vm6137_vm2, %v22158_v39  ;;  %17506 = vmatmul.mubr.msk.f32.gmra.mxu0 %vm6137_vm2, %v21746_v5  ;;  %v22182_v5 = vld [vmem:[#allocation2 + $0x108] sm:$0xff] }
 0x3ae   :  { %17232 = vmatprep.mubr.msk.f32.mxu1 %vm6137_vm2, %v22164_v15  ;;  %17508 = vmatprep.mubr.msk.f32.mxu0 %vm6137_vm2, %v21748_v1  ;;  %v22188_v1 = vld [vmem:[#allocation2 + $0x110] sm:$0xff] }
 0x3b1   :  { %17233 = vmatmul.mubr.msk.f32.gmra.mxu1 %vm6137_vm2, %v22170_v63  ;;  %17509 = vmatmul.mubr.msk.f32.gmra.mxu0 %vm6137_vm2, %v21768_v47  ;;  %v22194_v47 = vld [vmem:[#allocation2 + $0x118] sm:$0xff] }
 0x3b2   :  { %17235 = vmatprep.mubr.msk.f32.mxu1 %vm6137_vm2, %v22176_v11  ;;  %17511 = vmatprep.mubr.msk.f32.mxu0 %vm6137_vm2, %v21770_v37  ;;  %v22200_v37 = vld [vmem:[#allocation2 + $0x120] sm:$0xff] }
 0x3b5   :  { %17236 = vmatmul.mubr.msk.f32.gmra.mxu1 %vm6137_vm2, %v22182_v5  ;;  %17512 = vmatmul.mubr.msk.f32.gmra.mxu0 %vm6137_vm2, %v21790_v23  ;;  %v22206_v23 = vld [vmem:[#allocation2 + $0x128] sm:$0xff] }
 0x3b6   :  { %17238 = vmatprep.mubr.msk.f32.mxu1 %vm6137_vm2, %v22188_v1  ;;  %17514 = vmatprep.mubr.msk.f32.mxu0 %vm6137_vm2, %v21792_v12  ;;  %v22212_v12 = vld [vmem:[#allocation2 + $0x130] sm:$0xff] }
 0x3b9   :  { %17239 = vmatmul.mubr.msk.f32.gmra.mxu1 %vm6137_vm2, %v22194_v47  ;;  %17515 = vmatmul.mubr.msk.f32.gmra.mxu0 %vm6137_vm2, %v21812_v36  ;;  %v22218_v36 = vld [vmem:[#allocation2 + $0x138] sm:$0xff] }
 0x3ba   :  { %17241 = vmatprep.mubr.msk.f32.mxu1 %vm6137_vm2, %v22200_v37  ;;  %17517 = vmatprep.mubr.msk.f32.mxu0 %vm6137_vm2, %v21814_v41  ;;  %v22224_v41 = vld [vmem:[#allocation2 + $0x140] sm:$0xff] }
 0x3bd   :  { %17242 = vmatmul.mubr.msk.f32.gmra.mxu1 %vm6137_vm2, %v22206_v23  ;;  %17518 = vmatmul.mubr.msk.f32.gmra.mxu0 %vm6137_vm2, %v21836_v28  ;;  %v22230_v28 = vld [vmem:[#allocation2 + $0x148] sm:$0xff] }
 0x3be   :  { %17244 = vmatprep.mubr.msk.f32.mxu1 %vm6137_vm2, %v22212_v12  ;;  %17520 = vmatprep.mubr.msk.f32.mxu0 %vm6137_vm2, %v21838_v0 }
 0x3c1   :  { %17245 = vmatmul.mubr.msk.f32.gmra.mxu1 %vm6137_vm2, %v22218_v36  ;;  %17521 = vmatmul.mubr.msk.f32.gmra.mxu0 %vm6137_vm2, %v21856_v24  ;;  %v22240_v24 = vld [vmem:[#allocation2 + $0x150] sm:$0xff] }
 0x3c2   :  { %17247 = vmatprep.mubr.msk.f32.mxu1 %vm6137_vm2, %v22224_v41  ;;  %17523 = vmatprep.mubr.msk.f32.mxu0 %vm6137_vm2, %v21858_v48 }
 0x3c3   :  { %v22232_v8 = vpop.f32.mrf.mxu1 }
 0x3c4   :  { %v22236_v0 = vpop.f32.mrf.mxu0 }
 0x3c5   :  { %17248 = vmatmul.mubr.msk.f32.gmra.mxu1 %vm6137_vm2, %v22230_v28  ;;  %24858 = vst [vmem:[#allocation53_spill] sm:$0xff] %v22236_v0  ;;  %17524 = vmatmul.mubr.msk.f32.gmra.mxu0 %vm6137_vm2, %v21876_v33  ;;  %v22246_v48 = vpop.f32.mrf.mxu1 }
 0x3c6   :  { %17250 = vmatprep.mubr.msk.f32.mxu1 %vm6137_vm2, %v22240_v24  ;;  %17526 = vmatprep.mubr.msk.f32.mxu0 %vm6137_vm2, %v21878_v10  ;;  %24859 = vst [vmem:[#allocation52_spill] sm:$0xff] %v22246_v48  ;;  %v22248_v9 = vpop.f32.mrf.mxu0 }
 0x3c7   :  { %24860 = vst [vmem:[#allocation55_spill] sm:$0xff] %v22248_v9 }
 0x3c8   :  { %v22252_v54 = vpop.f32.mrf.mxu1  ;;  %v22256_v33 = vpop.f32.mrf.mxu0 }
 0x3c9   :  { %24861 = vst [vmem:[#allocation54_spill] sm:$0xff] %v22252_v54  ;;  %17251 = vmatmul.mubr.msk.f32.gmra.mxu1 %vm6137_vm2, %v22250_v57  ;;  %24862 = vst [vmem:[#allocation22_spill] sm:$0xff] %v22256_v33  ;;  %17527 = vmatmul.mubr.msk.f32.gmra.mxu0 %vm6137_vm2, %v21896_v46  ;;  %v22280_v33 = vld [vmem:[#allocation2 + $0x170] sm:$0xff]  ;;  %v8657_v54 = vld [vmem:[#allocation2 + $0x1c1] sm:$0xff] }
 0x3ca   :  { %17253 = vmatprep.mubr.msk.f32.mxu1 %vm6137_vm2, %v22260_v31  ;;  %17529 = vmatprep.mubr.msk.f32.mxu0 %vm6137_vm2, %v21898_v38  ;;  %v22266_v10 = vpop.f32.mrf.mxu1  ;;  %v22268_v55 = vpop.f32.mrf.mxu0  ;;  %v22285_v38 = vld [vmem:[%s24378_s3 + $0x118] sm:$0xff] }
 0x3cb   :  { %24863 = vst [vmem:[#allocation57_spill] sm:$0xff] %v22266_v10  ;;  %24864 = vst [vmem:[#allocation27_spill] sm:$0xff] %v22268_v55  ;;  %17823 = vmatprep.subr.mxu0 %v22285_v38  ;;  %v22306_v10 = vld [vmem:[#allocation2 + $0x180] sm:$0xff] }
 0x3cc   :  { %v22272_v49 = vpop.f32.mrf.mxu1  ;;  %v22276_v46 = vpop.f32.mrf.mxu0 }
 0x3cd   :  { %24865 = vst [vmem:[#allocation56_spill] sm:$0xff] %v22272_v49  ;;  %17254 = vmatmul.mubr.msk.f32.gmra.mxu1 %vm6137_vm2, %v22270_v7  ;;  %24866 = vst [vmem:[#allocation59_spill] sm:$0xff] %v22276_v46  ;;  %17530 = vmatmul.mubr.msk.f32.gmra.mxu0 %vm6137_vm2, %v21920_v34  ;;  %v22296_v34 = vld [vmem:[#allocation2 + $0x178] sm:$0xff] }
 0x3ce   :  { %17256 = vmatprep.mubr.msk.f32.mxu1 %vm6137_vm2, %v22280_v33  ;;  %17532 = vmatprep.mubr.msk.f32.mxu0 %vm6137_vm2, %v21922_v40  ;;  %v22291_v55 = vpop.f32.mrf.mxu1  ;;  %v22293_v49 = vpop.f32.mrf.mxu0 }
 0x3cf   :  { %24867 = vst [vmem:[#allocation29_spill] sm:$0xff] %v22291_v55  ;;  %24868 = vst [vmem:[#allocation93_spill] sm:$0xff] %v22293_v49 }
 0x3d0   :  { %v22298_v46 = vpop.f32.mrf.mxu1  ;;  %v22302_v9 = vpop.f32.mrf.mxu0 }
 0x3d1   :  { %24869 = vst [vmem:[#allocation58_spill] sm:$0xff] %v22298_v46  ;;  %17257 = vmatmul.mubr.msk.f32.gmra.mxu1 %vm6137_vm2, %v22296_v34  ;;  %24870 = vst [vmem:[#allocation61_spill] sm:$0xff] %v22302_v9  ;;  %17533 = vmatmul.mubr.msk.f32.gmra.mxu0 %vm6137_vm2, %v21936_v53  ;;  %v22316_v46 = vld [vmem:[#allocation2 + $0x188] sm:$0xff]  ;;  %v22326_v9 = vld [vmem:[#allocation2 + $0x190] sm:$0xff] }
 0x3d2   :  { %17259 = vmatprep.mubr.msk.f32.mxu1 %vm6137_vm2, %v22306_v10  ;;  %17535 = vmatprep.mubr.msk.f32.mxu0 %vm6137_vm2, %v21938_v32  ;;  %v22312_v40 = vpop.f32.mrf.mxu1  ;;  %v22314_v49 = vpop.f32.mrf.mxu0 }
 0x3d3   :  { %24871 = vst [vmem:[#allocation31_spill] sm:$0xff] %v22312_v40  ;;  %24872 = vst [vmem:[#allocation38_spill] sm:$0xff] %v22314_v49 }
 0x3d4   :  { %v22318_v55 = vpop.f32.mrf.mxu1  ;;  %v22322_v53 = vpop.f32.mrf.mxu0 }
 0x3d5   :  { %24873 = vst [vmem:[#allocation60_spill] sm:$0xff] %v22318_v55  ;;  %17260 = vmatmul.mubr.msk.f32.gmra.mxu1 %vm6137_vm2, %v22316_v46  ;;  %24874 = vst [vmem:[#allocation63_spill] sm:$0xff] %v22322_v53  ;;  %17536 = vmatmul.mubr.msk.f32.gmra.mxu0 %vm6137_vm2, %v21950_v6  ;;  %v22336_v55 = vld [vmem:[#allocation2 + $0x198] sm:$0xff]  ;;  %v22346_v53 = vld [vmem:[#allocation2 + $0x1a0] sm:$0xff] }
 0x3d6   :  { %17262 = vmatprep.mubr.msk.f32.mxu1 %vm6137_vm2, %v22326_v9  ;;  %17538 = vmatprep.mubr.msk.f32.mxu0 %vm6137_vm2, %v21952_v18  ;;  %v22332_v32 = vpop.f32.mrf.mxu1  ;;  %v22334_v49 = vpop.f32.mrf.mxu0 }
 0x3d7   :  { %24875 = vst [vmem:[#allocation32_spill] sm:$0xff] %v22332_v32  ;;  %24876 = vst [vmem:[#allocation48_spill] sm:$0xff] %v22334_v49  ;;  %v8656_v32 = vld [vmem:[#allocation2 + $0x1b9] sm:$0xff] }
 0x3d8   :  { %v22338_v40 = vpop.f32.mrf.mxu1  ;;  %v22342_v6 = vpop.f32.mrf.mxu0 }
 0x3d9   :  { %24877 = vst [vmem:[#allocation62_spill] sm:$0xff] %v22338_v40  ;;  %17263 = vmatmul.mubr.msk.f32.gmra.mxu1 %vm6137_vm2, %v22336_v55  ;;  %24878 = vst [vmem:[#allocation65_spill] sm:$0xff] %v22342_v6  ;;  %17539 = vmatmul.mubr.msk.f32.gmra.mxu0 %vm6137_vm2, %v21962_v30  ;;  %v22356_v40 = vld [vmem:[#allocation2 + $0x1a8] sm:$0xff]  ;;  %v22365_v6 = vld [vmem:[#allocation2 + $0x1b0] sm:$0xff] }
 0x3da   :  { %17265 = vmatprep.mubr.msk.f32.mxu1 %vm6137_vm2, %v22346_v53  ;;  %17541 = vmatprep.mubr.msk.f32.mxu0 %vm6137_vm2, %v21964_v17  ;;  %v22352_v18 = vpop.f32.mrf.mxu1  ;;  %v22354_v49 = vpop.f32.mrf.mxu0 }
 0x3db   :  { %24879 = vst [vmem:[#allocation33_spill] sm:$0xff] %v22352_v18  ;;  %24880 = vst [vmem:[#allocation40_spill] sm:$0xff] %v22354_v49  ;;  %v8658_v18 = vld [vmem:[#allocation2 + $0x1c9] sm:$0xf] }
 0x3dc   :  { %v22358_v0 = vpop.f32.mrf.mxu1  ;;  %v22362_v30 = vpop.f32.mrf.mxu0 }
 0x3dd   :  { %24881 = vst [vmem:[#allocation64_spill] sm:$0xff] %v22358_v0  ;;  %17266 = vmatmul.mubr.msk.f32.gmra.mxu1 %vm6137_vm2, %v22356_v40  ;;  %24882 = vst [vmem:[#allocation67_spill] sm:$0xff] %v22362_v30  ;;  %17542 = vmatmul.mubr.msk.f32.gmra.mxu0 %vm6137_vm2, %v8656_v32  ;;  %v6254_v0 = vld [vmem:[#allocation2 + $0x1b8] sm:$0xf] }
 0x3de   :  { %17268 = vmatprep.mubr.msk.f32.mxu1 %vm6137_vm2, %v22365_v6  ;;  %17544 = vmatprep.mubr.msk.f32.mxu0 %vm6137_vm2, %v8657_v54  ;;  %v22370_v17 = vpop.f32.mrf.mxu1  ;;  %v22372_v49 = vpop.f32.mrf.mxu0 }
 0x3df   :  { %24883 = vst [vmem:[#allocation49_spill] sm:$0xff] %v22372_v49  ;;  %v9290_v49 = vld [vmem:[%s24378_s3 + $0xb0] sm:$0xff] }
 0x3e0   :  { %v22374_v48 = vpop.f32.mrf.mxu1  ;;  %v22377_v30 = vpop.f32.mrf.mxu0 }
 0x3e1   :  { %24884 = vst [vmem:[#allocation34_spill] sm:$0xff] %v22374_v48  ;;  %17269 = vmatmul.mubr.msk.f32.gmra.mxu1 %vm6137_vm2, %v6254_v0  ;;  %17545 = vmatmul.mubr.msk.f32.gmra.mxu0 %vm6137_vm2, %v8658_v18 }
 0x3e2   :  { %17371 = vmatprep.mubr.msk.f32.mxu1 %vm6137_vm2, %v21982_v26  ;;  %17647 = vmatprep.mubr.msk.f32.mxu0 %vm6137_vm2, %v22002_v61  ;;  %v22384_v54 = vpop.f32.mrf.mxu1  ;;  %v22386_v32 = vpop.f32.mrf.mxu0 }
 0x3e4   :  { %v22391_v48 = vpop.f32.mrf.mxu1 }
 0x3e5   :  { %v22393_v0 = vpop.f32.mrf.mxu0  ;;  %17372 = vmatmul.mubr.msk.f32.vlgmr.msra.gmra.mxu1 %vm6137_vm2, %v21990_v2  ;;  %17648 = vmatmul.mubr.msk.f32.vlgmr.msra.gmra.mxu0 %vm6137_vm2, %v22007_v58  ;;  %v9289_v2 = vld [vmem:[%s24378_s3 + $0xa8] sm:$0xff] }
 0x3e6   :  { %24885 = vst [vmem:[#allocation66_spill] sm:$0xff] %v22393_v0  ;;  %17374 = vmatprep.mubr.msk.f32.mxu1 %vm6137_vm2, %v22002_v61  ;;  %17548 = vmatpush3.msra.mxu1 %v22031_v22  ;;  %v22404_v26 = vpop.f32.mrf.mxu1  ;;  %v11177_v61 = vld [vmem:[%s24378_s3 + $0x110] sm:$0xff] }
 0x3e7   :  { %17650 = vmatprep.mubr.msk.f32.mxu0 %vm6137_vm2, %v22018_v42  ;;  %v22406_v18 = vpop.f32.mrf.mxu0  ;;  %17549 = vmatprep.subr.mxu1 %v9290_v49 }
 0x3e8   :  { %24886 = vst [vmem:[#allocation69_spill] sm:$0xff] %v22406_v18  ;;  %17550 = vmatpush3.msra.mxu1 %v9290_v49  ;;  %17824 = vmatpush3.msra.mxu0 %v22285_v38  ;;  %v22415_v22 = vpop.f32.mrf.mxu1 }
 0x3e9   :  { %v22417_v0 = vpop.f32.mrf.mxu0  ;;  %17375 = vmatmul.mubr.msk.f32.gmra.mxu1 %vm6137_vm2, %v22007_v58  ;;  %17651 = vmatmul.mubr.msk.f32.gmra.mxu0 %vm6137_vm2, %v22023_v43  ;;  %v9288_v58 = vld [vmem:[%s24378_s3 + $0xa0] sm:$0xff] }
 0x3ea   :  { %24887 = vst [vmem:[#allocation36_spill] sm:$0xff] %v22417_v0  ;;  %17377 = vmatprep.mubr.msk.f32.mxu1 %vm6137_vm2, %v22018_v42  ;;  %17653 = vmatprep.mubr.msk.f32.mxu0 %vm6137_vm2, %v22036_v45  ;;  %v22427_v49 = vpop.f32.mrf.mxu1  ;;  %v11176_v0 = vld [vmem:[%s24378_s3 + $0x108] sm:$0xff] }
 0x3eb   :  { %v22429_v38 = vpop.f32.mrf.mxu0  ;;  %17551 = vmatprep.subr.mxu1 %v9289_v2  ;;  %17825 = vmatprep.subr.mxu0 %v11177_v61 }
 0x3ec   :  { %24888 = vst [vmem:[#allocation35_spill] sm:$0xff] %v22429_v38  ;;  %17552 = vmatpush3.msra.mxu1 %v9289_v2  ;;  %17826 = vmatpush3.msra.mxu0 %v11177_v61  ;;  %v22437_v42 = vpop.f32.mrf.mxu1 }
 0x3ed   :  { %v22439_v18 = vpop.f32.mrf.mxu0  ;;  %17378 = vmatmul.mubr.msk.f32.gmra.mxu1 %vm6137_vm2, %v22023_v43  ;;  %17654 = vmatmul.mubr.msk.f32.gmra.mxu0 %vm6137_vm2, %v22042_v14  ;;  %v11175_v43 = vld [vmem:[%s24378_s3 + $0x100] sm:$0xff] }
 0x3ee   :  { %24889 = vst [vmem:[#allocation108_spill] sm:$0xff] %v22439_v18  ;;  %17380 = vmatprep.mubr.msk.f32.mxu1 %vm6137_vm2, %v22036_v45  ;;  %17656 = vmatprep.mubr.msk.f32.mxu0 %vm6137_vm2, %v22047_v21  ;;  %v22449_v2 = vpop.f32.mrf.mxu1  ;;  %v22459_v18 = vld [vmem:[%s24378_s3 + $0xf8] sm:$0xff] }
 0x3ef   :  { %v22451_v61 = vpop.f32.mrf.mxu0  ;;  %17553 = vmatprep.subr.mxu1 %v9288_v58  ;;  %17827 = vmatprep.subr.mxu0 %v11176_v0 }
 0x3f0   :  { %24890 = vst [vmem:[#allocation68_spill] sm:$0xff] %v22451_v61  ;;  %17554 = vmatpush3.msra.mxu1 %v9288_v58  ;;  %17828 = vmatpush3.msra.mxu0 %v11176_v0  ;;  %v22461_v45 = vpop.f32.mrf.mxu1 }
 0x3f1   :  { %v22463_v38 = vpop.f32.mrf.mxu0  ;;  %17381 = vmatmul.mubr.msk.f32.gmra.mxu1 %vm6137_vm2, %v22042_v14  ;;  %17657 = vmatmul.mubr.msk.f32.gmra.mxu0 %vm6137_vm2, %v22052_v19 }
 0x3f2   :  { %24891 = vst [vmem:[#allocation71_spill] sm:$0xff] %v22463_v38  ;;  %17383 = vmatprep.mubr.msk.f32.mxu1 %vm6137_vm2, %v22047_v21  ;;  %17659 = vmatprep.mubr.msk.f32.mxu0 %vm6137_vm2, %v22057_v27  ;;  %v22473_v0 = vpop.f32.mrf.mxu1 }
 0x3f3   :  { %24892 = vst [vmem:[#allocation111_spill] sm:$0xff] %v22473_v0  ;;  %v22475_v58 = vpop.f32.mrf.mxu0  ;;  %17829 = vmatprep.subr.mxu0 %v11175_v43  ;;  %17731 = vmatprep.subr.mxu1 %v22459_v18 }
 0x3f4   :  { %24893 = vst [vmem:[#allocation39_spill] sm:$0xff] %v22475_v58  ;;  %17830 = vmatpush3.msra.mxu0 %v11175_v43  ;;  %v17133_v38 = vpop.f32.mrf.mxu1 }
 0x3f5   :  { %v17317_v61 = vpop.f32.mrf.mxu0  ;;  %17384 = vmatmul.mubr.msk.f32.gmra.mxu1 %vm6137_vm2, %v22052_v19  ;;  %17660 = vmatmul.mubr.msk.f32.gmra.mxu0 %vm6137_vm2, %v22062_v35 }
 0x3f6   :  { %17386 = vmatprep.mubr.msk.f32.mxu1 %vm6137_vm2, %v22057_v27  ;;  %17662 = vmatprep.mubr.msk.f32.mxu0 %vm6137_vm2, %v22068_v20  ;;  %v6673_v14 = vpop.f32.mrf.mxu1 }
 0x3f7   :  { %v7759_v21 = vpop.f32.mrf.mxu0 }
 0x3f8   :  { %v17136_v58 = vpop.f32.mrf.mxu1 }
 0x3f9   :  { %v17320_v0 = vpop.f32.mrf.mxu0  ;;  %17387 = vmatmul.mubr.msk.f32.gmra.mxu1 %vm6137_vm2, %v22062_v35  ;;  %17663 = vmatmul.mubr.msk.f32.gmra.mxu0 %vm6137_vm2, %v22074_v25 }
 0x3fa   :  { %17389 = vmatprep.mubr.msk.f32.mxu1 %vm6137_vm2, %v22068_v20  ;;  %17665 = vmatprep.mubr.msk.f32.mxu0 %vm6137_vm2, %v22080_v44  ;;  %v6683_v19 = vpop.f32.mrf.mxu1 }
 0x3fb   :  { %v7769_v27 = vpop.f32.mrf.mxu0 }
 0x3fc   :  { %v17139_v38 = vpop.f32.mrf.mxu1 }
 0x3fd   :  { %v17323_v61 = vpop.f32.mrf.mxu0  ;;  %17390 = vmatmul.mubr.msk.f32.gmra.mxu1 %vm6137_vm2, %v22074_v25  ;;  %17666 = vmatmul.mubr.msk.f32.gmra.mxu0 %vm6137_vm2, %v22086_v3 }
 0x3fe   :  { %17392 = vmatprep.mubr.msk.f32.mxu1 %vm6137_vm2, %v22080_v44  ;;  %17668 = vmatprep.mubr.msk.f32.mxu0 %vm6137_vm2, %v22092_v59  ;;  %v6693_v35 = vpop.f32.mrf.mxu1 }
 0x3ff   :  { %v7779_v20 = vpop.f32.mrf.mxu0 }
 0x400   :  { %v17142_v43 = vpop.f32.mrf.mxu1 }
 0x401   :  { %v17326_v0 = vpop.f32.mrf.mxu0  ;;  %17393 = vmatmul.mubr.msk.f32.gmra.mxu1 %vm6137_vm2, %v22086_v3  ;;  %17669 = vmatmul.mubr.msk.f32.gmra.mxu0 %vm6137_vm2, %v22098_v62 }
 0x402   :  { %17395 = vmatprep.mubr.msk.f32.mxu1 %vm6137_vm2, %v22092_v59  ;;  %17671 = vmatprep.mubr.msk.f32.mxu0 %vm6137_vm2, %v22104_v56  ;;  %v6703_v25 = vpop.f32.mrf.mxu1 }
 0x403   :  { %v7789_v44 = vpop.f32.mrf.mxu0 }
 0x404   :  { %v22510_v58 = vpop.f32.mrf.mxu1 }
 0x405   :  { %v22512_v14 = vpop.f32.mrf.mxu0  ;;  %17396 = vmatmul.mubr.msk.f32.gmra.mxu1 %vm6137_vm2, %v22098_v62  ;;  %17672 = vmatmul.mubr.msk.f32.gmra.mxu0 %vm6137_vm2, %v22110_v52 }
 0x406   :  { %17398 = vmatprep.mubr.msk.f32.mxu1 %vm6137_vm2, %v22104_v56  ;;  %17674 = vmatprep.mubr.msk.f32.mxu0 %vm6137_vm2, %v22116_v4  ;;  %v22522_v3 = vpop.f32.mrf.mxu1 }
 0x407   :  { %v22524_v59 = vpop.f32.mrf.mxu0 }
 0x408   :  { %v22526_v21 = vpop.f32.mrf.mxu1 }
 0x409   :  { %v22528_v19 = vpop.f32.mrf.mxu0  ;;  %17399 = vmatmul.mubr.msk.f32.gmra.mxu1 %vm6137_vm2, %v22110_v52  ;;  %17675 = vmatmul.mubr.msk.f32.gmra.mxu0 %vm6137_vm2, %v22122_v50 }
 0x40a   :  { %24894 = vst [vmem:[#allocation37_spill] sm:$0xff] %v22528_v19  ;;  %17401 = vmatprep.mubr.msk.f32.mxu1 %vm6137_vm2, %v22116_v4  ;;  %17677 = vmatprep.mubr.msk.f32.mxu0 %vm6137_vm2, %v22128_v16  ;;  %v22538_v62 = vpop.f32.mrf.mxu1  ;;  %v11162_v19 = vld [vmem:[#allocation2 + $0x17a] sm:$0xff] }
 0x40b   :  { %v22540_v56 = vpop.f32.mrf.mxu0 }
 0x40c   :  { %24895 = vst [vmem:[#allocation114_spill] sm:$0xff] %v22540_v56  ;;  %v22542_v27 = vpop.f32.mrf.mxu1 }
 0x40d   :  { %v22544_v38 = vpop.f32.mrf.mxu0  ;;  %17402 = vmatmul.mubr.msk.f32.gmra.mxu1 %vm6137_vm2, %v22122_v50  ;;  %17678 = vmatmul.mubr.msk.f32.gmra.mxu0 %vm6137_vm2, %v22134_v29 }
 0x40e   :  { %24896 = vst [vmem:[#allocation70_spill] sm:$0xff] %v22544_v38  ;;  %17404 = vmatprep.mubr.msk.f32.mxu1 %vm6137_vm2, %v22128_v16  ;;  %17680 = vmatprep.mubr.msk.f32.mxu0 %vm6137_vm2, %v22140_v13  ;;  %v22554_v52 = vpop.f32.mrf.mxu1 }
 0x40f   :  { %24897 = vst [vmem:[#allocation73_spill] sm:$0xff] %v22554_v52  ;;  %v22556_v4 = vpop.f32.mrf.mxu0 }
 0x410   :  { %24898 = vst [vmem:[#allocation94_spill] sm:$0xff] %v22556_v4  ;;  %v22558_v61 = vpop.f32.mrf.mxu1 }
 0x411   :  { %24899 = vst [vmem:[#allocation43_spill] sm:$0xff] %v22558_v61  ;;  %v22560_v35 = vpop.f32.mrf.mxu0  ;;  %17405 = vmatmul.mubr.msk.f32.gmra.mxu1 %vm6137_vm2, %v22134_v29  ;;  %17681 = vmatmul.mubr.msk.f32.gmra.mxu0 %vm6137_vm2, %v22146_v60 }
 0x412   :  { %24900 = vst [vmem:[#allocation72_spill] sm:$0xff] %v22560_v35  ;;  %17407 = vmatprep.mubr.msk.f32.mxu1 %vm6137_vm2, %v22140_v13  ;;  %17683 = vmatprep.mubr.msk.f32.mxu0 %vm6137_vm2, %v22152_v51  ;;  %v22570_v50 = vpop.f32.mrf.mxu1 }
 0x413   :  { %24901 = vst [vmem:[#allocation75_spill] sm:$0xff] %v22570_v50  ;;  %v22572_v16 = vpop.f32.mrf.mxu0  ;;  %v11144_v50 = vld [vmem:[#allocation2 + $0xea] sm:$0xff] }
 0x414   :  { %24902 = vst [vmem:[#allocation95_spill] sm:$0xff] %v22572_v16  ;;  %v22574_v20 = vpop.f32.mrf.mxu1 }
 0x415   :  { %24903 = vst [vmem:[#allocation41_spill] sm:$0xff] %v22574_v20  ;;  %v22576_v43 = vpop.f32.mrf.mxu0  ;;  %17408 = vmatmul.mubr.msk.f32.gmra.mxu1 %vm6137_vm2, %v22146_v60  ;;  %17684 = vmatmul.mubr.msk.f32.gmra.mxu0 %vm6137_vm2, %v22158_v39  ;;  %v11142_v20 = vld [vmem:[#allocation2 + $0xda] sm:$0xff] }
 0x416   :  { %24904 = vst [vmem:[#allocation74_spill] sm:$0xff] %v22576_v43  ;;  %17410 = vmatprep.mubr.msk.f32.mxu1 %vm6137_vm2, %v22152_v51  ;;  %17686 = vmatprep.mubr.msk.f32.mxu0 %vm6137_vm2, %v22164_v15  ;;  %v22586_v29 = vpop.f32.mrf.mxu1 }
 0x417   :  { %24905 = vst [vmem:[#allocation77_spill] sm:$0xff] %v22586_v29  ;;  %v22588_v13 = vpop.f32.mrf.mxu0 }
 0x418   :  { %24906 = vst [vmem:[#allocation50_spill] sm:$0xff] %v22588_v13  ;;  %v22590_v0 = vpop.f32.mrf.mxu1 }
 0x419   :  { %24907 = vst [vmem:[#allocation42_spill] sm:$0xff] %v22590_v0  ;;  %v22592_v25 = vpop.f32.mrf.mxu0  ;;  %17411 = vmatmul.mubr.msk.f32.gmra.mxu1 %vm6137_vm2, %v22158_v39  ;;  %17687 = vmatmul.mubr.msk.f32.gmra.mxu0 %vm6137_vm2, %v22170_v63  ;;  %v11130_v0 = vld [vmem:[#allocation2 + $0x7a] sm:$0xff] }
 0x41a   :  { %24908 = vst [vmem:[#allocation76_spill] sm:$0xff] %v22592_v25  ;;  %17413 = vmatprep.mubr.msk.f32.mxu1 %vm6137_vm2, %v22164_v15  ;;  %17689 = vmatprep.mubr.msk.f32.mxu0 %vm6137_vm2, %v22176_v11  ;;  %v22602_v60 = vpop.f32.mrf.mxu1 }
 0x41b   :  { %24909 = vst [vmem:[#allocation86_spill] sm:$0xff] %v22602_v60  ;;  %v22604_v51 = vpop.f32.mrf.mxu0 }
 0x41c   :  { %24910 = vst [vmem:[#allocation44_spill] sm:$0xff] %v22604_v51  ;;  %v22606_v44 = vpop.f32.mrf.mxu1 }
 0x41d   :  { %24911 = vst [vmem:[#allocation51_spill] sm:$0xff] %v22606_v44  ;;  %v22608_v13 = vpop.f32.mrf.mxu0  ;;  %17414 = vmatmul.mubr.msk.f32.gmra.mxu1 %vm6137_vm2, %v22170_v63  ;;  %17690 = vmatmul.mubr.msk.f32.gmra.mxu0 %vm6137_vm2, %v22182_v5 }
 0x41e   :  { %24912 = vst [vmem:[#allocation78_spill] sm:$0xff] %v22608_v13  ;;  %17416 = vmatprep.mubr.msk.f32.mxu1 %vm6137_vm2, %v22176_v11  ;;  %17692 = vmatprep.mubr.msk.f32.mxu0 %vm6137_vm2, %v22188_v1  ;;  %v22618_v39 = vpop.f32.mrf.mxu1 }
 0x41f   :  { %24913 = vst [vmem:[#allocation80_spill] sm:$0xff] %v22618_v39  ;;  %v22620_v15 = vpop.f32.mrf.mxu0  ;;  %v11126_v39 = vld [vmem:[#allocation2 + $0x5a] sm:$0xff] }
 0x420   :  { %24914 = vst [vmem:[#allocation46_spill] sm:$0xff] %v22620_v15  ;;  %v22622_v51 = vpop.f32.mrf.mxu1 }
 0x421   :  { %24915 = vst [vmem:[#allocation45_spill] sm:$0xff] %v22622_v51  ;;  %v22624_v25 = vpop.f32.mrf.mxu0  ;;  %17417 = vmatmul.mubr.msk.f32.gmra.mxu1 %vm6137_vm2, %v22182_v5  ;;  %17693 = vmatmul.mubr.msk.f32.gmra.mxu0 %vm6137_vm2, %v22194_v47 }
 0x422   :  { %24916 = vst [vmem:[#allocation79_spill] sm:$0xff] %v22624_v25  ;;  %17419 = vmatprep.mubr.msk.f32.mxu1 %vm6137_vm2, %v22188_v1  ;;  %17695 = vmatprep.mubr.msk.f32.mxu0 %vm6137_vm2, %v22200_v37  ;;  %v22634_v63 = vpop.f32.mrf.mxu1 }
 0x423   :  { %24917 = vst [vmem:[#allocation81_spill] sm:$0xff] %v22634_v63  ;;  %v22636_v11 = vpop.f32.mrf.mxu0 }
 0x424   :  { %24918 = vst [vmem:[#allocation96_spill] sm:$0xff] %v22636_v11  ;;  %v22638_v15 = vpop.f32.mrf.mxu1 }
 0x425   :  { %24919 = vst [vmem:[#allocation47_spill] sm:$0xff] %v22638_v15  ;;  %v22640_v13 = vpop.f32.mrf.mxu0  ;;  %17420 = vmatmul.mubr.msk.f32.gmra.mxu1 %vm6137_vm2, %v22194_v47  ;;  %17696 = vmatmul.mubr.msk.f32.gmra.mxu0 %vm6137_vm2, %v22206_v23  ;;  %v11122_v15 = vld [vmem:[#allocation2 + $0x3a] sm:$0xff] }
 0x426   :  { %24920 = vst [vmem:[#allocation89_spill] sm:$0xff] %v22640_v13  ;;  %17422 = vmatprep.mubr.msk.f32.mxu1 %vm6137_vm2, %v22200_v37  ;;  %17698 = vmatprep.mubr.msk.f32.mxu0 %vm6137_vm2, %v22212_v12  ;;  %v22650_v5 = vpop.f32.mrf.mxu1 }
 0x427   :  { %24921 = vst [vmem:[#allocation91_spill] sm:$0xff] %v22650_v5  ;;  %v22652_v1 = vpop.f32.mrf.mxu0 }
 0x428   :  { %24922 = vst [vmem:[#allocation98_spill] sm:$0xff] %v22652_v1  ;;  %v22654_v11 = vpop.f32.mrf.mxu1 }
 0x429   :  { %24923 = vst [vmem:[#allocation97_spill] sm:$0xff] %v22654_v11  ;;  %v22656_v25 = vpop.f32.mrf.mxu0  ;;  %17423 = vmatmul.mubr.msk.f32.gmra.mxu1 %vm6137_vm2, %v22206_v23  ;;  %17699 = vmatmul.mubr.msk.f32.gmra.mxu0 %vm6137_vm2, %v22218_v36  ;;  %v11120_v11 = vld [vmem:[#allocation2 + $0x2a] sm:$0xff] }
 0x42a   :  { %24924 = vst [vmem:[#allocation28_spill] sm:$0xff] %v22656_v25  ;;  %17425 = vmatprep.mubr.msk.f32.mxu1 %vm6137_vm2, %v22212_v12  ;;  %17701 = vmatprep.mubr.msk.f32.mxu0 %vm6137_vm2, %v22224_v41  ;;  %v22666_v47 = vpop.f32.mrf.mxu1 }
 0x42b   :  { %24925 = vst [vmem:[#allocation30_spill] sm:$0xff] %v22666_v47  ;;  %v22668_v37 = vpop.f32.mrf.mxu0 }
 0x42c   :  { %24926 = vst [vmem:[#allocation100_spill] sm:$0xff] %v22668_v37  ;;  %v22670_v1 = vpop.f32.mrf.mxu1 }
 0x42d   :  { %24927 = vst [vmem:[#allocation99_spill] sm:$0xff] %v22670_v1  ;;  %v22672_v13 = vpop.f32.mrf.mxu0  ;;  %17426 = vmatmul.mubr.msk.f32.gmra.mxu1 %vm6137_vm2, %v22218_v36  ;;  %17702 = vmatmul.mubr.msk.f32.gmra.mxu0 %vm6137_vm2, %v22230_v28  ;;  %v8029_v1 = vld [vmem:[#allocation2 + $0x1c8] sm:$0xf] }
 0x42e   :  { %24928 = vst [vmem:[#allocation82_spill] sm:$0xff] %v22672_v13  ;;  %17428 = vmatprep.mubr.msk.f32.mxu1 %vm6137_vm2, %v22224_v41  ;;  %17704 = vmatprep.mubr.msk.f32.mxu0 %vm6137_vm2, %v22240_v24  ;;  %v22682_v23 = vpop.f32.mrf.mxu1 }
 0x42f   :  { %24929 = vst [vmem:[#allocation83_spill] sm:$0xff] %v22682_v23  ;;  %v22684_v12 = vpop.f32.mrf.mxu0 }
 0x430   :  { %24930 = vst [vmem:[#allocation102_spill] sm:$0xff] %v22684_v12  ;;  %v22686_v37 = vpop.f32.mrf.mxu1 }
 0x431   :  { %24931 = vst [vmem:[#allocation101_spill] sm:$0xff] %v22686_v37  ;;  %v22688_v25 = vpop.f32.mrf.mxu0  ;;  %17429 = vmatmul.mubr.msk.f32.gmra.mxu1 %vm6137_vm2, %v22230_v28  ;;  %17705 = vmatmul.mubr.msk.f32.gmra.mxu0 %vm6137_vm2, %v22250_v57 }
 0x432   :  { %24932 = vst [vmem:[#allocation25_spill] sm:$0xff] %v22688_v25  ;;  %17431 = vmatprep.mubr.msk.f32.mxu1 %vm6137_vm2, %v22240_v24  ;;  %17707 = vmatprep.mubr.msk.f32.mxu0 %vm6137_vm2, %v22260_v31  ;;  %v22698_v36 = vpop.f32.mrf.mxu1 }
 0x433   :  { %24933 = vst [vmem:[#allocation26_spill] sm:$0xff] %v22698_v36  ;;  %v22700_v41 = vpop.f32.mrf.mxu0 }
 0x434   :  { %24934 = vst [vmem:[#allocation104_spill] sm:$0xff] %v22700_v41  ;;  %v22702_v12 = vpop.f32.mrf.mxu1 }
 0x435   :  { %17432 = vmatmul.mubr.msk.f32.gmra.mxu1 %vm6137_vm2, %v22250_v57  ;;  %v22706_v25 = vpop.f32.mrf.mxu0  ;;  %17708 = vmatmul.mubr.msk.f32.gmra.mxu0 %vm6137_vm2, %v22270_v7 }
 0x436   :  { %24935 = vst [vmem:[#allocation103_spill] sm:$0xff] %v22706_v25  ;;  %17434 = vmatprep.mubr.msk.f32.mxu1 %vm6137_vm2, %v22260_v31  ;;  %17710 = vmatprep.mubr.msk.f32.mxu0 %vm6137_vm2, %v22280_v33  ;;  %v22714_v28 = vpop.f32.mrf.mxu1 }
 0x437   :  { %v22716_v24 = vpop.f32.mrf.mxu0 }
 0x438   :  { %24936 = vst [vmem:[#allocation84_spill] sm:$0xff] %v22716_v24 }
 0x439   :  { %v22718_v41 = vpop.f32.mrf.mxu1  ;;  %17435 = vmatmul.mubr.msk.f32.gmra.mxu1 %vm6137_vm2, %v22270_v7  ;;  %v22722_v57 = vpop.f32.mrf.mxu0  ;;  %17711 = vmatmul.mubr.msk.f32.gmra.mxu0 %vm6137_vm2, %v22296_v34 }
 0x43a   :  { %24937 = vst [vmem:[#allocation87_spill] sm:$0xff] %v22722_v57  ;;  %17437 = vmatprep.mubr.msk.f32.mxu1 %vm6137_vm2, %v22280_v33  ;;  %17713 = vmatprep.mubr.msk.f32.mxu0 %vm6137_vm2, %v22306_v10 }
 0x43b   :  { %v22730_v31 = vpop.f32.mrf.mxu1  ;;  %v22732_v25 = vpop.f32.mrf.mxu0 }
 0x43c   :  { %24938 = vst [vmem:[#allocation106_spill] sm:$0xff] %v22732_v25 }
 0x43d   :  { %v22734_v24 = vpop.f32.mrf.mxu1  ;;  %17438 = vmatmul.mubr.msk.f32.gmra.mxu1 %vm6137_vm2, %v22296_v34  ;;  %v22738_v7 = vpop.f32.mrf.mxu0  ;;  %17714 = vmatmul.mubr.msk.f32.gmra.mxu0 %vm6137_vm2, %v22316_v46 }
 0x43e   :  { %24939 = vst [vmem:[#allocation105_spill] sm:$0xff] %v22738_v7  ;;  %17440 = vmatprep.mubr.msk.f32.mxu1 %vm6137_vm2, %v22306_v10  ;;  %17716 = vmatprep.mubr.msk.f32.mxu0 %vm6137_vm2, %v22326_v9 }
 0x43f   :  { %v22746_v33 = vpop.f32.mrf.mxu1  ;;  %v22748_v57 = vpop.f32.mrf.mxu0 }
 0x440   :  { %24940 = vst [vmem:[#allocation85_spill] sm:$0xff] %v22748_v57 }
 0x441   :  { %v22750_v25 = vpop.f32.mrf.mxu1  ;;  %17441 = vmatmul.mubr.msk.f32.gmra.mxu1 %vm6137_vm2, %v22316_v46  ;;  %v22754_v34 = vpop.f32.mrf.mxu0  ;;  %17717 = vmatmul.mubr.msk.f32.gmra.mxu0 %vm6137_vm2, %v22336_v55 }
 0x442   :  { %24941 = vst [vmem:[#allocation23_spill] sm:$0xff] %v22754_v34  ;;  %17443 = vmatprep.mubr.msk.f32.mxu1 %vm6137_vm2, %v22326_v9  ;;  %17719 = vmatprep.mubr.msk.f32.mxu0 %vm6137_vm2, %v22346_v53 }
 0x443   :  { %v22762_v10 = vpop.f32.mrf.mxu1  ;;  %v22764_v7 = vpop.f32.mrf.mxu0 }
 0x444   :  { %24942 = vst [vmem:[#allocation109_spill] sm:$0xff] %v22764_v7  ;;  %v9912_v7 = vld [vmem:[#allocation2 + $0x1b8] sm:$0xff] }
 0x445   :  { %v22766_v57 = vpop.f32.mrf.mxu1  ;;  %17444 = vmatmul.mubr.msk.f32.gmra.mxu1 %vm6137_vm2, %v22336_v55  ;;  %v22770_v46 = vpop.f32.mrf.mxu0  ;;  %17720 = vmatmul.mubr.msk.f32.gmra.mxu0 %vm6137_vm2, %v22356_v40 }
 0x446   :  { %24943 = vst [vmem:[#allocation107_spill] sm:$0xff] %v22770_v46  ;;  %17446 = vmatprep.mubr.msk.f32.mxu1 %vm6137_vm2, %v22346_v53  ;;  %17722 = vmatprep.mubr.msk.f32.mxu0 %vm6137_vm2, %v22365_v6  ;;  %v9913_v46 = vld [vmem:[#allocation2 + $0x1c0] sm:$0xff] }
 0x447   :  { %v22778_v9 = vpop.f32.mrf.mxu1  ;;  %v22780_v34 = vpop.f32.mrf.mxu0 }
 0x448   :  { %24944 = vst [vmem:[#allocation88_spill] sm:$0xff] %v22780_v34  ;;  %v9914_v34 = vld [vmem:[#allocation2 + $0x1c8] sm:$0xff] }
 0x449   :  { %v22782_v36 = vpop.f32.mrf.mxu1  ;;  %17447 = vmatmul.mubr.msk.f32.gmra.mxu1 %vm6137_vm2, %v22356_v40  ;;  %v22786_v55 = vpop.f32.mrf.mxu0  ;;  %17723 = vmatmul.mubr.msk.f32.gmra.mxu0 %vm6137_vm2, %v9912_v7 }
 0x44a   :  { %24945 = vst [vmem:[#allocation24_spill] sm:$0xff] %v22786_v55  ;;  %17449 = vmatprep.mubr.msk.f32.mxu1 %vm6137_vm2, %v22365_v6  ;;  %17725 = vmatprep.mubr.msk.f32.mxu0 %vm6137_vm2, %v9913_v46  ;;  %v9915_v55 = vld [vmem:[#allocation2 + $0x1d0] sm:$0xff] }
 0x44b   :  { %v22792_v53 = vpop.f32.mrf.mxu1  ;;  %v22794_v13 = vpop.f32.mrf.mxu0 }
 0x44c   :  { %24946 = vst [vmem:[#allocation112_spill] sm:$0xff] %v22794_v13  ;;  %v9916_v13 = vld [vmem:[#allocation2 + $0x1d8] sm:$0xf] }
 0x44d   :  { %v22796_v37 = vpop.f32.mrf.mxu1  ;;  %17450 = vmatmul.mubr.msk.f32.gmra.mxu1 %vm6137_vm2, %v9912_v7  ;;  %v22799_v40 = vpop.f32.mrf.mxu0  ;;  %17726 = vmatmul.mubr.msk.f32.gmra.mxu0 %vm6137_vm2, %v9914_v34  ;;  %v9232_v34 = vld [vmem:[#allocation2 + $0x12] sm:$0xff] }
 0x44e   :  { %24947 = vst [vmem:[#allocation110_spill] sm:$0xff] %v22799_v40  ;;  %17452 = vmatprep.mubr.msk.f32.mxu1 %vm6137_vm2, %v9913_v46  ;;  %17728 = vmatprep.mubr.msk.f32.mxu0 %vm6137_vm2, %v9915_v55  ;;  %v11119_v40 = vld [vmem:[#allocation2 + $0x22] sm:$0xff] }
 0x44f   :  { %v22804_v6 = vpop.f32.mrf.mxu1  ;;  %v22806_v23 = vpop.f32.mrf.mxu0 }
 0x450   :  { %24948 = vst [vmem:[#allocation90_spill] sm:$0xff] %v22806_v23  ;;  %v9233_v23 = vld [vmem:[#allocation2 + $0x1a] sm:$0xff] }
 0x451   :  { %v22808_v47 = vpop.f32.mrf.mxu1  ;;  %17453 = vmatmul.mubr.msk.f32.gmra.mxu1 %vm6137_vm2, %v8029_v1  ;;  %v22811_v7 = vpop.f32.mrf.mxu0  ;;  %17729 = vmatmul.mubr.msk.f32.gmra.mxu0 %vm6137_vm2, %v9916_v13  ;;  %v10548_v1 = vld [vmem:[%s24378_s3 + $0xf0] sm:$0xff] }
 0x452   :  { %24949 = vst [vmem:[#allocation92_spill] sm:$0xff] %v22811_v7  ;;  %17555 = vmatprep.mubr.msk.f32.mxu1 %vm6137_vm2, %v9232_v34  ;;  %17831 = vmatprep.mubr.msk.f32.mxu0 %vm6137_vm2, %v11119_v40  ;;  %v11121_v13 = vld [vmem:[#allocation2 + $0x32] sm:$0xff] }
 0x453   :  { %v22816_v46 = vpop.f32.mrf.mxu1  ;;  %v22818_v55 = vpop.f32.mrf.mxu0 }
 0x454   :  { %24950 = vst [vmem:[#allocation115_spill] sm:$0xff] %v22818_v55 }
 0x455   :  { %v22823_v5 = vpop.f32.mrf.mxu1  ;;  %v22825_v7 = vpop.f32.mrf.mxu0  ;;  %17556 = vmatmul.mubr.msk.f32.vlgmr.msra.gmra.mxu1 %vm6137_vm2, %v9233_v23  ;;  %17832 = vmatmul.mubr.msk.f32.vlgmr.msra.gmra.mxu0 %vm6137_vm2, %v11120_v11  ;;  %v10547_v23 = vld [vmem:[%s24378_s3 + $0xe8] sm:$0xff] }
 0x456   :  { %24951 = vst [vmem:[#allocation113_spill] sm:$0xff] %v22825_v7  ;;  %17558 = vmatprep.mubr.msk.f32.mxu1 %vm6137_vm2, %v11119_v40  ;;  %17732 = vmatpush3.msra.mxu1 %v22459_v18  ;;  %v11123_v18 = vld [vmem:[#allocation2 + $0x42] sm:$0xff] }
 0x457   :  { %17834 = vmatprep.mubr.msk.f32.mxu0 %vm6137_vm2, %v11121_v13  ;;  %v22832_v34 = vpop.f32.mrf.mxu1  ;;  %v22834_v55 = vpop.f32.mrf.mxu0  ;;  %17733 = vmatprep.subr.mxu1 %v10548_v1 }
 0x458   :  { %24952 = vst [vmem:[#allocation116_spill] sm:$0xff] %v22834_v55  ;;  %17734 = vmatpush3.msra.mxu1 %v10548_v1  ;;  %v11124_v55 = vld [vmem:[#allocation2 + $0x4a] sm:$0xff] }
 0x459   :  { %v22839_v7 = vpop.f32.mrf.mxu1  ;;  %v22841_v63 = vpop.f32.mrf.mxu0  ;;  %17559 = vmatmul.mubr.msk.f32.gmra.mxu1 %vm6137_vm2, %v11120_v11  ;;  %17835 = vmatmul.mubr.msk.f32.gmra.mxu0 %vm6137_vm2, %v11122_v15 }
 0x45a   :  { %24953 = vst [vmem:[#allocation117_spill] sm:$0xff] %v22841_v63  ;;  %17561 = vmatprep.mubr.msk.f32.mxu1 %vm6137_vm2, %v11121_v13  ;;  %17837 = vmatprep.mubr.msk.f32.mxu0 %vm6137_vm2, %v11123_v18  ;;  %v10546_v63 = vld [vmem:[%s24378_s3 + $0xe0] sm:$0xff]  ;;  %v11125_v13 = vld [vmem:[#allocation2 + $0x52] sm:$0xff]  ;;  %s18147_s3 = smov 64  }
 0x45b   :  { %v22847_v40 = vpop.f32.mrf.mxu1  ;;  %v22849_v1 = vpop.f32.mrf.mxu0  ;;  %17735 = vmatprep.subr.mxu1 %v10547_v23 }
 0x45c   :  { %24954 = vst [vmem:[#allocation118_spill] sm:$0xff] %v22849_v1  ;;  %17736 = vmatpush3.msra.mxu1 %v10547_v23 }
 0x45d   :  { %v22854_v51 = vpop.f32.mrf.mxu1  ;;  %v22856_v11 = vpop.f32.mrf.mxu0  ;;  %17562 = vmatmul.mubr.msk.f32.gmra.mxu1 %vm6137_vm2, %v11122_v15  ;;  %17838 = vmatmul.mubr.msk.f32.gmra.mxu0 %vm6137_vm2, %v11124_v55  ;;  %v11127_v15 = vld [vmem:[#allocation2 + $0x62] sm:$0xff] }
 0x45e   :  { %24955 = vst [vmem:[#allocation119_spill] sm:$0xff] %v22856_v11  ;;  %17564 = vmatprep.mubr.msk.f32.mxu1 %vm6137_vm2, %v11123_v18  ;;  %17840 = vmatprep.mubr.msk.f32.mxu0 %vm6137_vm2, %v11125_v13 }
 0x45f   :  { %v22862_v1 = vpop.f32.mrf.mxu1  ;;  %v22864_v23 = vpop.f32.mrf.mxu0  ;;  %17737 = vmatprep.subr.mxu1 %v10546_v63 }
 0x460   :  { %24956 = vst [vmem:[#allocation120_spill] sm:$0xff] %v22864_v23  ;;  %17738 = vmatpush3.msra.mxu1 %v10546_v63  ;;  %v11128_v23 = vld [vmem:[#allocation2 + $0x6a] sm:$0xff] }
 0x461   :  { %v22866_v44 = vpop.f32.mrf.mxu1  ;;  %v22868_v60 = vpop.f32.mrf.mxu0  ;;  %17565 = vmatmul.mubr.msk.f32.gmra.mxu1 %vm6137_vm2, %v11124_v55  ;;  %17841 = vmatmul.mubr.msk.f32.gmra.mxu0 %vm6137_vm2, %v11126_v39 }
 0x462   :  { %24957 = vst [vmem:[#allocation121_spill] sm:$0xff] %v22868_v60  ;;  %17567 = vmatprep.mubr.msk.f32.mxu1 %vm6137_vm2, %v11125_v13  ;;  %17843 = vmatprep.mubr.msk.f32.mxu0 %vm6137_vm2, %v11127_v15  ;;  %v11129_v60 = vld [vmem:[#allocation2 + $0x72] sm:$0xff] }
 0x463   :  { %v22874_v18 = vpop.f32.mrf.mxu1  ;;  %v22876_v11 = vpop.f32.mrf.mxu0 }
 0x464   :  { %24958 = vst [vmem:[#allocation122_spill] sm:$0xff] %v22876_v11  ;;  %v11132_v11 = vld [vmem:[#allocation2 + $0x8a] sm:$0xff] }
 0x465   :  { %v17225_v43 = vpop.f32.mrf.mxu1  ;;  %v17501_v63 = vpop.f32.mrf.mxu0  ;;  %17568 = vmatmul.mubr.msk.f32.gmra.mxu1 %vm6137_vm2, %v11126_v39  ;;  %17844 = vmatmul.mubr.msk.f32.gmra.mxu0 %vm6137_vm2, %v11128_v23 }
 0x466   :  { %17570 = vmatprep.mubr.msk.f32.mxu1 %vm6137_vm2, %v11127_v15  ;;  %17846 = vmatprep.mubr.msk.f32.mxu0 %vm6137_vm2, %v11129_v60  ;;  %v11131_v43 = vld [vmem:[#allocation2 + $0x82] sm:$0xff] }
 0x467   :  { %v7186_v55 = vpop.f32.mrf.mxu1  ;;  %v9017_v13 = vpop.f32.mrf.mxu0 }
 0x468   :  { %v11134_v55 = vld [vmem:[#allocation2 + $0x9a] sm:$0xff] }
 0x469   :  { %v17228_v16 = vpop.f32.mrf.mxu1  ;;  %v17504_v29 = vpop.f32.mrf.mxu0  ;;  %17571 = vmatmul.mubr.msk.f32.gmra.mxu1 %vm6137_vm2, %v11128_v23  ;;  %17847 = vmatmul.mubr.msk.f32.gmra.mxu0 %vm6137_vm2, %v11130_v0 }
 0x46a   :  { %17573 = vmatprep.mubr.msk.f32.mxu1 %vm6137_vm2, %v11129_v60  ;;  %17849 = vmatprep.mubr.msk.f32.mxu0 %vm6137_vm2, %v11131_v43  ;;  %v11133_v16 = vld [vmem:[#allocation2 + $0x92] sm:$0xff] }
 0x46b   :  { %v7196_v39 = vpop.f32.mrf.mxu1  ;;  %v9027_v63 = vpop.f32.mrf.mxu0 }
 0x46c   :  { %v11135_v39 = vld [vmem:[#allocation2 + $0xa2] sm:$0xff]  ;;  %v11136_v63 = vld [vmem:[#allocation2 + $0xaa] sm:$0xff] }
 0x46d   :  { %v17231_v15 = vpop.f32.mrf.mxu1  ;;  %v17507_v35 = vpop.f32.mrf.mxu0  ;;  %17574 = vmatmul.mubr.msk.f32.gmra.mxu1 %vm6137_vm2, %v11130_v0  ;;  %17850 = vmatmul.mubr.msk.f32.gmra.mxu0 %vm6137_vm2, %v11132_v11 }
 0x46e   :  { %17576 = vmatprep.mubr.msk.f32.mxu1 %vm6137_vm2, %v11131_v43  ;;  %17852 = vmatprep.mubr.msk.f32.mxu0 %vm6137_vm2, %v11133_v16 }
 0x46f   :  { %v7206_v29 = vpop.f32.mrf.mxu1  ;;  %v9037_v23 = vpop.f32.mrf.mxu0 }
 0x470   :  { %v11137_v29 = vld [vmem:[#allocation2 + $0xb2] sm:$0xff]  ;;  %v11138_v23 = vld [vmem:[#allocation2 + $0xba] sm:$0xff] }
 0x471   :  { %v17234_v60 = vpop.f32.mrf.mxu1  ;;  %v17510_v13 = vpop.f32.mrf.mxu0  ;;  %17577 = vmatmul.mubr.msk.f32.gmra.mxu1 %vm6137_vm2, %v11132_v11  ;;  %17853 = vmatmul.mubr.msk.f32.gmra.mxu0 %vm6137_vm2, %v11134_v55 }
 0x472   :  { %17579 = vmatprep.mubr.msk.f32.mxu1 %vm6137_vm2, %v11133_v16  ;;  %17855 = vmatprep.mubr.msk.f32.mxu0 %vm6137_vm2, %v11135_v39 }
 0x473   :  { %v7216_v35 = vpop.f32.mrf.mxu1  ;;  %v9047_v0 = vpop.f32.mrf.mxu0 }
 0x474   :  { %v11140_v0 = vld [vmem:[#allocation2 + $0xca] sm:$0xff] }
 0x475   :  { %v22894_v43 = vpop.f32.mrf.mxu1  ;;  %v22896_v15 = vpop.f32.mrf.mxu0  ;;  %17580 = vmatmul.mubr.msk.f32.gmra.mxu1 %vm6137_vm2, %v11134_v55  ;;  %17856 = vmatmul.mubr.msk.f32.gmra.mxu0 %vm6137_vm2, %v11136_v63  ;;  %v11139_v55 = vld [vmem:[#allocation2 + $0xc2] sm:$0xff] }
 0x476   :  { %24959 = vst [vmem:[#allocation123_spill] sm:$0xff] %v22896_v15  ;;  %17582 = vmatprep.mubr.msk.f32.mxu1 %vm6137_vm2, %v11135_v39  ;;  %17858 = vmatprep.mubr.msk.f32.mxu0 %vm6137_vm2, %v11137_v29 }
 0x477   :  { %v22902_v11 = vpop.f32.mrf.mxu1  ;;  %v22904_v16 = vpop.f32.mrf.mxu0 }
 0x478   :  { %24960 = vst [vmem:[#allocation124_spill] sm:$0xff] %v22904_v16 }
 0x479   :  { %v22906_v60 = vpop.f32.mrf.mxu1  ;;  %v22908_v13 = vpop.f32.mrf.mxu0  ;;  %17583 = vmatmul.mubr.msk.f32.gmra.mxu1 %vm6137_vm2, %v11136_v63  ;;  %17859 = vmatmul.mubr.msk.f32.gmra.mxu0 %vm6137_vm2, %v11138_v23  ;;  %v11141_v63 = vld [vmem:[#allocation2 + $0xd2] sm:$0xff] }
 0x47a   :  { %24961 = vst [vmem:[#allocation125_spill] sm:$0xff] %v22908_v13  ;;  %17585 = vmatprep.mubr.msk.f32.mxu1 %vm6137_vm2, %v11137_v29  ;;  %17861 = vmatprep.mubr.msk.f32.mxu0 %vm6137_vm2, %v11139_v55 }
 0x47b   :  { %v22914_v39 = vpop.f32.mrf.mxu1  ;;  %v22916_v35 = vpop.f32.mrf.mxu0 }
 0x47c   :  { %24962 = vst [vmem:[#allocation126_spill] sm:$0xff] %v22916_v35 }
 0x47d   :  { %v22918_v16 = vpop.f32.mrf.mxu1  ;;  %v22920_v15 = vpop.f32.mrf.mxu0  ;;  %17586 = vmatmul.mubr.msk.f32.gmra.mxu1 %vm6137_vm2, %v11138_v23  ;;  %17862 = vmatmul.mubr.msk.f32.gmra.mxu0 %vm6137_vm2, %v11140_v0  ;;  %v11143_v23 = vld [vmem:[#allocation2 + $0xe2] sm:$0xff] }
 0x47e   :  { %24963 = vst [vmem:[#allocation127_spill] sm:$0xff] %v22920_v15  ;;  %17588 = vmatprep.mubr.msk.f32.mxu1 %vm6137_vm2, %v11139_v55  ;;  %17864 = vmatprep.mubr.msk.f32.mxu0 %vm6137_vm2, %v11141_v63 }
 0x47f   :  { %v22926_v29 = vpop.f32.mrf.mxu1  ;;  %v22928_v13 = vpop.f32.mrf.mxu0 }
 0x480   :  { %24964 = vst [vmem:[#allocation128_spill] sm:$0xff] %v22926_v29  ;;  %24965 = vst [vmem:[#allocation129_spill] sm:$0xff] %v22928_v13  ;;  %v25010_v29 = vld [vmem:[#allocation22_spill] sm:$0xff] }
 0x481   :  { %v22930_v35 = vpop.f32.mrf.mxu1  ;;  %v22932_v4 = vpop.f32.mrf.mxu0  ;;  %17589 = vmatmul.mubr.msk.f32.gmra.mxu1 %vm6137_vm2, %v11140_v0  ;;  %17865 = vmatmul.mubr.msk.f32.gmra.mxu0 %vm6137_vm2, %v11142_v20  ;;  %v11145_v0 = vld [vmem:[#allocation2 + $0xf2] sm:$0xff] }
 0x482   :  { %24966 = vst [vmem:[#allocation130_spill] sm:$0xff] %v22930_v35  ;;  %24967 = vst [vmem:[#allocation131_spill] sm:$0xff] %v22932_v4  ;;  %17591 = vmatprep.mubr.msk.f32.mxu1 %vm6137_vm2, %v11141_v63  ;;  %17867 = vmatprep.mubr.msk.f32.mxu0 %vm6137_vm2, %v11143_v23 }
 0x483   :  { %v22938_v55 = vpop.f32.mrf.mxu1  ;;  %v22940_v15 = vpop.f32.mrf.mxu0 }
 0x484   :  { %24968 = vst [vmem:[#allocation132_spill] sm:$0xff] %v22938_v55  ;;  %24969 = vst [vmem:[#allocation133_spill] sm:$0xff] %v22940_v15  ;;  %v11146_v55 = vld [vmem:[#allocation2 + $0xfa] sm:$0xff] }
 0x485   :  { %v22942_v13 = vpop.f32.mrf.mxu1  ;;  %v22944_v38 = vpop.f32.mrf.mxu0  ;;  %17592 = vmatmul.mubr.msk.f32.gmra.mxu1 %vm6137_vm2, %v11142_v20  ;;  %17868 = vmatmul.mubr.msk.f32.gmra.mxu0 %vm6137_vm2, %v11144_v50  ;;  %v11147_v20 = vld [vmem:[#allocation2 + $0x102] sm:$0xff] }
 0x486   :  { %24970 = vst [vmem:[#allocation134_spill] sm:$0xff] %v22942_v13  ;;  %24971 = vst [vmem:[#allocation135_spill] sm:$0xff] %v22944_v38  ;;  %17594 = vmatprep.mubr.msk.f32.mxu1 %vm6137_vm2, %v11143_v23  ;;  %17870 = vmatprep.mubr.msk.f32.mxu0 %vm6137_vm2, %v11145_v0 }
 0x487   :  { %v22950_v63 = vpop.f32.mrf.mxu1  ;;  %v22952_v4 = vpop.f32.mrf.mxu0 }
 0x488   :  { %24972 = vst [vmem:[#allocation136_spill] sm:$0xff] %v22950_v63  ;;  %24973 = vst [vmem:[#allocation137_spill] sm:$0xff] %v22952_v4  ;;  %v11148_v63 = vld [vmem:[#allocation2 + $0x10a] sm:$0xff] }
 0x489   :  { %v22954_v15 = vpop.f32.mrf.mxu1  ;;  %v22956_v35 = vpop.f32.mrf.mxu0  ;;  %17595 = vmatmul.mubr.msk.f32.gmra.mxu1 %vm6137_vm2, %v11144_v50  ;;  %17871 = vmatmul.mubr.msk.f32.gmra.mxu0 %vm6137_vm2, %v11146_v55  ;;  %v11149_v50 = vld [vmem:[#allocation2 + $0x112] sm:$0xff] }
 0x48a   :  { %24974 = vst [vmem:[#allocation138_spill] sm:$0xff] %v22954_v15  ;;  %24975 = vst [vmem:[#allocation139_spill] sm:$0xff] %v22956_v35  ;;  %17597 = vmatprep.mubr.msk.f32.mxu1 %vm6137_vm2, %v11145_v0  ;;  %17873 = vmatprep.mubr.msk.f32.mxu0 %vm6137_vm2, %v11147_v20 }
 0x48b   :  { %v22962_v23 = vpop.f32.mrf.mxu1  ;;  %v22964_v38 = vpop.f32.mrf.mxu0 }
 0x48c   :  { %24976 = vst [vmem:[#allocation140_spill] sm:$0xff] %v22962_v23  ;;  %24977 = vst [vmem:[#allocation141_spill] sm:$0xff] %v22964_v38  ;;  %v11150_v23 = vld [vmem:[#allocation2 + $0x11a] sm:$0xff] }
 0x48d   :  { %v22966_v4 = vpop.f32.mrf.mxu1  ;;  %v22968_v13 = vpop.f32.mrf.mxu0  ;;  %17598 = vmatmul.mubr.msk.f32.gmra.mxu1 %vm6137_vm2, %v11146_v55  ;;  %17874 = vmatmul.mubr.msk.f32.gmra.mxu0 %vm6137_vm2, %v11148_v63  ;;  %v11151_v55 = vld [vmem:[#allocation2 + $0x122] sm:$0xff] }
 0x48e   :  { %24978 = vst [vmem:[#allocation142_spill] sm:$0xff] %v22966_v4  ;;  %24979 = vst [vmem:[#allocation143_spill] sm:$0xff] %v22968_v13  ;;  %17600 = vmatprep.mubr.msk.f32.mxu1 %vm6137_vm2, %v11147_v20  ;;  %17876 = vmatprep.mubr.msk.f32.mxu0 %vm6137_vm2, %v11149_v50 }
 0x48f   :  { %v22974_v0 = vpop.f32.mrf.mxu1  ;;  %v22976_v35 = vpop.f32.mrf.mxu0 }
 0x490   :  { %24980 = vst [vmem:[#allocation144_spill] sm:$0xff] %v22974_v0  ;;  %24981 = vst [vmem:[#allocation145_spill] sm:$0xff] %v22976_v35  ;;  %v11152_v0 = vld [vmem:[#allocation2 + $0x12a] sm:$0xff] }
 0x491   :  { %v22978_v38 = vpop.f32.mrf.mxu1  ;;  %v22980_v15 = vpop.f32.mrf.mxu0  ;;  %17601 = vmatmul.mubr.msk.f32.gmra.mxu1 %vm6137_vm2, %v11148_v63  ;;  %17877 = vmatmul.mubr.msk.f32.gmra.mxu0 %vm6137_vm2, %v11150_v23  ;;  %v11153_v63 = vld [vmem:[#allocation2 + $0x132] sm:$0xff] }
 0x492   :  { %24982 = vst [vmem:[#allocation146_spill] sm:$0xff] %v22978_v38  ;;  %24983 = vst [vmem:[#allocation147_spill] sm:$0xff] %v22980_v15  ;;  %17603 = vmatprep.mubr.msk.f32.mxu1 %vm6137_vm2, %v11149_v50  ;;  %17879 = vmatprep.mubr.msk.f32.mxu0 %vm6137_vm2, %v11151_v55 }
 0x493   :  { %v22986_v20 = vpop.f32.mrf.mxu1  ;;  %v22988_v13 = vpop.f32.mrf.mxu0 }
 0x494   :  { %24984 = vst [vmem:[#allocation148_spill] sm:$0xff] %v22986_v20  ;;  %24985 = vst [vmem:[#allocation149_spill] sm:$0xff] %v22988_v13  ;;  %v11154_v20 = vld [vmem:[#allocation2 + $0x13a] sm:$0xff] }
 0x495   :  { %v22990_v35 = vpop.f32.mrf.mxu1  ;;  %v22992_v4 = vpop.f32.mrf.mxu0  ;;  %17604 = vmatmul.mubr.msk.f32.gmra.mxu1 %vm6137_vm2, %v11150_v23  ;;  %17880 = vmatmul.mubr.msk.f32.gmra.mxu0 %vm6137_vm2, %v11152_v0  ;;  %v11155_v23 = vld [vmem:[#allocation2 + $0x142] sm:$0xff] }
 0x496   :  { %24986 = vst [vmem:[#allocation150_spill] sm:$0xff] %v22990_v35  ;;  %24987 = vst [vmem:[#allocation151_spill] sm:$0xff] %v22992_v4  ;;  %17606 = vmatprep.mubr.msk.f32.mxu1 %vm6137_vm2, %v11151_v55  ;;  %17882 = vmatprep.mubr.msk.f32.mxu0 %vm6137_vm2, %v11153_v63 }
 0x497   :  { %v22998_v50 = vpop.f32.mrf.mxu1  ;;  %v23000_v15 = vpop.f32.mrf.mxu0 }
 0x498   :  { %24988 = vst [vmem:[#allocation152_spill] sm:$0xff] %v22998_v50  ;;  %24989 = vst [vmem:[#allocation153_spill] sm:$0xff] %v23000_v15  ;;  %v11156_v50 = vld [vmem:[#allocation2 + $0x14a] sm:$0xff] }
 0x499   :  { %v23002_v13 = vpop.f32.mrf.mxu1  ;;  %v23004_v38 = vpop.f32.mrf.mxu0  ;;  %17607 = vmatmul.mubr.msk.f32.gmra.mxu1 %vm6137_vm2, %v11152_v0  ;;  %17883 = vmatmul.mubr.msk.f32.gmra.mxu0 %vm6137_vm2, %v11154_v20  ;;  %v11157_v0 = vld [vmem:[#allocation2 + $0x152] sm:$0xff] }
 0x49a   :  { %24990 = vst [vmem:[#allocation154_spill] sm:$0xff] %v23002_v13  ;;  %24991 = vst [vmem:[#allocation155_spill] sm:$0xff] %v23004_v38  ;;  %17609 = vmatprep.mubr.msk.f32.mxu1 %vm6137_vm2, %v11153_v63  ;;  %17885 = vmatprep.mubr.msk.f32.mxu0 %vm6137_vm2, %v11155_v23 }
 0x49b   :  { %v23010_v55 = vpop.f32.mrf.mxu1  ;;  %v23012_v4 = vpop.f32.mrf.mxu0 }
 0x49c   :  { %24992 = vst [vmem:[#allocation156_spill] sm:$0xff] %v23010_v55  ;;  %24993 = vst [vmem:[#allocation157_spill] sm:$0xff] %v23012_v4  ;;  %v7072_v4 = vadd.f32 %v22702_v12, %v22232_v8  ;;  %v11158_v55 = vld [vmem:[#allocation2 + $0x15a] sm:$0xff]  ;;  %v25003_v12 = vld [vmem:[#allocation54_spill] sm:$0xff] }
 0x49d   :  { %v23014_v15 = vpop.f32.mrf.mxu1  ;;  %v23016_v35 = vpop.f32.mrf.mxu0  ;;  %17610 = vmatmul.mubr.msk.f32.gmra.mxu1 %vm6137_vm2, %v11154_v20  ;;  %17886 = vmatmul.mubr.msk.f32.gmra.mxu0 %vm6137_vm2, %v11156_v50  ;;  %v11159_v20 = vld [vmem:[#allocation2 + $0x162] sm:$0xff] }
 0x49e   :  { %24994 = vst [vmem:[#allocation158_spill] sm:$0xff] %v23014_v15  ;;  %24995 = vst [vmem:[#allocation159_spill] sm:$0xff] %v23016_v35  ;;  %17612 = vmatprep.mubr.msk.f32.mxu1 %vm6137_vm2, %v11155_v23  ;;  %17888 = vmatprep.mubr.msk.f32.mxu0 %vm6137_vm2, %v11157_v0  ;;  %v25000_v23 = vld [vmem:[#allocation52_spill] sm:$0xff] }
 0x49f   :  { %v23022_v63 = vpop.f32.mrf.mxu1  ;;  %v23024_v38 = vpop.f32.mrf.mxu0  ;;  %v7067_v13 = vadd.f32 %v22714_v28, %v25000_v23  ;;  %v11161_v28 = vld [vmem:[#allocation2 + $0x172] sm:$0xff] }
 0x4a0   :  { %24996 = vst [vmem:[#allocation160_spill] sm:$0xff] %v23022_v63  ;;  %24997 = vst [vmem:[#allocation161_spill] sm:$0xff] %v23024_v38 }
 0x4a1   :  { %v23028_v15 = vpop.f32.mrf.mxu1  ;;  %v23030_v35 = vpop.f32.mrf.mxu0  ;;  %17613 = vmatmul.mubr.msk.f32.gmra.mxu1 %vm6137_vm2, %v11156_v50  ;;  %17889 = vmatmul.mubr.msk.f32.gmra.mxu0 %vm6137_vm2, %v11158_v55  ;;  %v11160_v50 = vld [vmem:[#allocation2 + $0x16a] sm:$0xff] }
 0x4a2   :  { %24998 = vst [vmem:[#allocation162_spill] sm:$0xff] %v23028_v15  ;;  %24999 = vst [vmem:[#allocation163_spill] sm:$0xff] %v23030_v35  ;;  %17615 = vmatprep.mubr.msk.f32.mxu1 %vm6137_vm2, %v11157_v0  ;;  %17891 = vmatprep.mubr.msk.f32.mxu0 %vm6137_vm2, %v11159_v20  ;;  %v7082_v15 = vadd.f32 %v22718_v41, %v25003_v12  ;;  %v25004_v35 = vld [vmem:[#allocation53_spill] sm:$0xff]  ;;  %v25007_v41 = vld [vmem:[#allocation55_spill] sm:$0xff] }
 0x4a3   :  { %v23038_v38 = vpop.f32.mrf.mxu1  ;;  %v23040_v8 = vpop.f32.mrf.mxu0  ;;  %v7919_v63 = vadd.f32 %v25004_v35, %v7072_v4  ;;  %v25006_v0 = vld [vmem:[#allocation57_spill] sm:$0xff]  ;;  %v7918_v4 = vadd.f32 %v25007_v41, %v7067_v13 }
 0x4a4   :  { %25001 = vst [vmem:[#allocation52_spill] sm:$0xff] %v23038_v38  ;;  %25002 = vst [vmem:[#allocation164_spill] sm:$0xff] %v23040_v8  ;;  %v7077_v23 = vadd.f32 %v22730_v31, %v25006_v0  ;;  %v7921_v52 = vadd.f32 %v25010_v29, %v7082_v15  ;;  %v25012_v13 = vld [vmem:[#allocation29_spill] sm:$0xff] }
 0x4a5   :  { %v17373_v61 = vpop.f32.mrf.mxu1  ;;  %17616 = vmatmul.mubr.msk.f32.gmra.mxu1 %vm6137_vm2, %v11158_v55  ;;  %v23046_v56 = vpop.f32.mrf.mxu0  ;;  %17892 = vmatmul.mubr.msk.f32.gmra.mxu0 %vm6137_vm2, %v11160_v50  ;;  %v25009_v55 = vld [vmem:[#allocation56_spill] sm:$0xff] }
 0x4a6   :  { %25005 = vst [vmem:[#allocation54_spill] sm:$0xff] %v23046_v56  ;;  %v23051_v38 = vadd.f32 %v17373_v61, %v7919_v63  ;;  %17618 = vmatprep.mubr.msk.f32.mxu1 %vm6137_vm2, %v11159_v20  ;;  %17894 = vmatprep.mubr.msk.f32.mxu0 %vm6137_vm2, %v11161_v28  ;;  %v7092_v56 = vadd.f32 %v22734_v24, %v25009_v55  ;;  %v11163_v63 = vld [vmem:[#allocation2 + $0x182] sm:$0xff]  ;;  %v25013_v24 = vld [vmem:[#allocation27_spill] sm:$0xff] }
 0x4a7   :  { %v8268_v35 = vpop.f32.mrf.mxu1  ;;  %v23056_v12 = vpop.f32.mrf.mxu0  ;;  %v7087_v20 = vadd.f32 %v22746_v33, %v25012_v13  ;;  %v7920_v15 = vadd.f32 %v25013_v24, %v7077_v23  ;;  %v25016_v55 = vld [vmem:[#allocation59_spill] sm:$0xff] }
 0x4a8   :  { %25008 = vst [vmem:[#allocation53_spill] sm:$0xff] %v23056_v12  ;;  %v23060_v8 = vadd.f32 %v8268_v35, %v7918_v4  ;;  %v11164_v12 = vld [vmem:[#allocation2 + $0x18a] sm:$0xff]  ;;  %v25018_v23 = vld [vmem:[#allocation31_spill] sm:$0xff] }
 0x4a9   :  { %v17376_v31 = vpop.f32.mrf.mxu1  ;;  %17619 = vmatmul.mubr.msk.f32.gmra.mxu1 %vm6137_vm2, %v11160_v50  ;;  %v23064_v61 = vpop.f32.mrf.mxu0  ;;  %17895 = vmatmul.mubr.msk.f32.gmra.mxu0 %vm6137_vm2, %v11162_v19  ;;  %v25015_v50 = vld [vmem:[#allocation58_spill] sm:$0xff] }
 0x4aa   :  { %25011 = vst [vmem:[#allocation57_spill] sm:$0xff] %v23064_v61  ;;  %v23069_v0 = vadd.f32 %v17376_v31, %v7921_v52  ;;  %17621 = vmatprep.mubr.msk.f32.mxu1 %vm6137_vm2, %v11161_v28  ;;  %17897 = vmatprep.mubr.msk.f32.mxu0 %vm6137_vm2, %v11163_v63  ;;  %v7102_v4 = vadd.f32 %v22750_v25, %v25015_v50  ;;  %v11165_v28 = vld [vmem:[#allocation2 + $0x192] sm:$0xff]  ;;  %v25019_v25 = vld [vmem:[#allocation93_spill] sm:$0xff] }
 0x4ab   :  { %v8278_v29 = vpop.f32.mrf.mxu1  ;;  %v23074_v41 = vpop.f32.mrf.mxu0  ;;  %v7923_v61 = vadd.f32 %v25016_v55, %v7092_v56  ;;  %v7097_v31 = vadd.f32 %v22762_v10, %v25018_v23  ;;  %v7922_v56 = vadd.f32 %v25019_v25, %v7087_v20  ;;  %v25022_v55 = vld [vmem:[#allocation61_spill] sm:$0xff]  ;;  %v25024_v20 = vld [vmem:[#allocation32_spill] sm:$0xff] }
 0x4ac   :  { %25014 = vst [vmem:[#allocation55_spill] sm:$0xff] %v23074_v41  ;;  %v23078_v35 = vadd.f32 %v8278_v29, %v7920_v15  ;;  %v11166_v41 = vld [vmem:[#allocation2 + $0x19a] sm:$0xff] }
 0x4ad   :  { %v17379_v33 = vpop.f32.mrf.mxu1  ;;  %17622 = vmatmul.mubr.msk.f32.gmra.mxu1 %vm6137_vm2, %v11162_v19  ;;  %v23082_v52 = vpop.f32.mrf.mxu0  ;;  %17898 = vmatmul.mubr.msk.f32.gmra.mxu0 %vm6137_vm2, %v11164_v12  ;;  %v25021_v19 = vld [vmem:[#allocation60_spill] sm:$0xff] }
 0x4ae   :  { %25017 = vst [vmem:[#allocation56_spill] sm:$0xff] %v23082_v52  ;;  %v23087_v13 = vadd.f32 %v17379_v33, %v7923_v61  ;;  %17624 = vmatprep.mubr.msk.f32.mxu1 %vm6137_vm2, %v11163_v63  ;;  %17900 = vmatprep.mubr.msk.f32.mxu0 %vm6137_vm2, %v11165_v28  ;;  %v7112_v29 = vadd.f32 %v22766_v57, %v25021_v19  ;;  %v11167_v63 = vld [vmem:[#allocation2 + $0x1a2] sm:$0xff]  ;;  %v25025_v57 = vld [vmem:[#allocation38_spill] sm:$0xff] }
 0x4af   :  { %v8288_v24 = vpop.f32.mrf.mxu1  ;;  %v23092_v15 = vpop.f32.mrf.mxu0  ;;  %v7925_v52 = vadd.f32 %v25022_v55, %v7102_v4  ;;  %v7107_v33 = vadd.f32 %v22778_v9, %v25024_v20  ;;  %v7924_v4 = vadd.f32 %v25025_v57, %v7097_v31  ;;  %v25028_v55 = vld [vmem:[#allocation63_spill] sm:$0xff]  ;;  %v25030_v31 = vld [vmem:[#allocation33_spill] sm:$0xff] }
 0x4b0   :  { %25020 = vst [vmem:[#allocation22_spill] sm:$0xff] %v23092_v15  ;;  %v23096_v50 = vadd.f32 %v8288_v24, %v7922_v56  ;;  %v11168_v15 = vld [vmem:[#allocation2 + $0x1aa] sm:$0xff] }
 0x4b1   :  { %v17382_v10 = vpop.f32.mrf.mxu1  ;;  %17625 = vmatmul.mubr.msk.f32.gmra.mxu1 %vm6137_vm2, %v11164_v12  ;;  %v23100_v61 = vpop.f32.mrf.mxu0  ;;  %17901 = vmatmul.mubr.msk.f32.gmra.mxu0 %vm6137_vm2, %v11166_v41  ;;  %v25027_v12 = vld [vmem:[#allocation62_spill] sm:$0xff] }
 0x4b2   :  { %25023 = vst [vmem:[#allocation29_spill] sm:$0xff] %v23100_v61  ;;  %v23105_v23 = vadd.f32 %v17382_v10, %v7925_v52  ;;  %17627 = vmatprep.mubr.msk.f32.mxu1 %vm6137_vm2, %v11165_v28  ;;  %17903 = vmatprep.mubr.msk.f32.mxu0 %vm6137_vm2, %v11167_v63  ;;  %v7122_v24 = vadd.f32 %v22782_v36, %v25027_v12  ;;  %v11169_v28 = vld [vmem:[#allocation2 + $0x1b2] sm:$0xff]  ;;  %v25031_v36 = vld [vmem:[#allocation48_spill] sm:$0xff] }
 0x4b3   :  { %v8298_v25 = vpop.f32.mrf.mxu1  ;;  %v23110_v56 = vpop.f32.mrf.mxu0  ;;  %v7927_v61 = vadd.f32 %v25028_v55, %v7112_v29  ;;  %v7117_v10 = vadd.f32 %v22792_v53, %v25030_v31  ;;  %v7926_v29 = vadd.f32 %v25031_v36, %v7107_v33  ;;  %v25035_v55 = vld [vmem:[#allocation65_spill] sm:$0xff]  ;;  %v7127_v33 = vadd.f32 %v22804_v6, %v22370_v17 }
 0x4b4   :  { %25026 = vst [vmem:[#allocation27_spill] sm:$0xff] %v23110_v56  ;;  %v23114_v19 = vadd.f32 %v8298_v25, %v7924_v4  ;;  %v11170_v56 = vld [vmem:[#allocation2 + $0x1ba] sm:$0xff] }
 0x4b5   :  { %v17385_v9 = vpop.f32.mrf.mxu1  ;;  %17628 = vmatmul.mubr.msk.f32.gmra.mxu1 %vm6137_vm2, %v11166_v41  ;;  %v23118_v52 = vpop.f32.mrf.mxu0  ;;  %17904 = vmatmul.mubr.msk.f32.gmra.mxu0 %vm6137_vm2, %v11168_v15  ;;  %v25033_v41 = vld [vmem:[#allocation64_spill] sm:$0xff] }
 0x4b6   :  { %25029 = vst [vmem:[#allocation58_spill] sm:$0xff] %v23118_v52  ;;  %v23123_v20 = vadd.f32 %v17385_v9, %v7927_v61  ;;  %17630 = vmatprep.mubr.msk.f32.mxu1 %vm6137_vm2, %v11167_v63  ;;  %17906 = vmatprep.mubr.msk.f32.mxu0 %vm6137_vm2, %v11169_v28  ;;  %v7132_v25 = vadd.f32 %v22796_v37, %v25033_v41  ;;  %v11171_v63 = vld [vmem:[#allocation2 + $0x1c2] sm:$0xff]  ;;  %v25040_v41 = vld [vmem:[#allocation67_spill] sm:$0xff] }
 0x4b7   :  { %v8308_v57 = vpop.f32.mrf.mxu1  ;;  %v23128_v4 = vpop.f32.mrf.mxu0  ;;  %v7929_v52 = vadd.f32 %v25035_v55, %v7122_v24  ;;  %v25037_v37 = vld [vmem:[#allocation40_spill] sm:$0xff] }
 0x4b8   :  { %25032 = vst [vmem:[#allocation59_spill] sm:$0xff] %v23128_v4  ;;  %v23132_v12 = vadd.f32 %v8308_v57, %v7926_v29  ;;  %v7928_v24 = vadd.f32 %v25037_v37, %v7117_v10  ;;  %v7931_v55 = vadd.f32 %v25040_v41, %v7132_v25 }
 0x4b9   :  { %v17388_v53 = vpop.f32.mrf.mxu1  ;;  %17631 = vmatmul.mubr.msk.f32.gmra.mxu1 %vm6137_vm2, %v11168_v15  ;;  %v23136_v61 = vpop.f32.mrf.mxu0  ;;  %17907 = vmatmul.mubr.msk.f32.gmra.mxu0 %vm6137_vm2, %v11170_v56  ;;  %v25039_v15 = vld [vmem:[#allocation34_spill] sm:$0xff] }
 0x4ba   :  { %25034 = vst [vmem:[#allocation31_spill] sm:$0xff] %v23132_v12  ;;  %25036 = vst [vmem:[#allocation93_spill] sm:$0xff] %v23136_v61  ;;  %v23141_v9 = vadd.f32 %v17388_v53, %v7929_v52  ;;  %17633 = vmatprep.mubr.msk.f32.mxu1 %vm6137_vm2, %v11169_v28  ;;  %17909 = vmatprep.mubr.msk.f32.mxu0 %vm6137_vm2, %v11171_v63  ;;  %v7142_v29 = vadd.f32 %v22808_v47, %v25039_v15  ;;  %v11172_v61 = vld [vmem:[#allocation2 + $0x1ca] sm:$0xff]  ;;  %v11173_v52 = vld [vmem:[#allocation2 + $0x1d2] sm:$0xff] }
 0x4bb   :  { %v8318_v31 = vpop.f32.mrf.mxu1  ;;  %v23146_v36 = vpop.f32.mrf.mxu0  ;;  %v7137_v28 = vadd.f32 %v22816_v46, %v22384_v54  ;;  %v25042_v47 = vld [vmem:[#allocation49_spill] sm:$0xff]  ;;  %v11174_v54 = vld [vmem:[#allocation2 + $0x1da] sm:$0xf]  ;;  %v7147_v15 = vadd.f32 %v22832_v34, %v22404_v26  ;;  %v10492_v26 = vld [vmem:[#allocation2 + $0x31] sm:$0xff] }
 0x4bc   :  { %25038 = vst [vmem:[#allocation60_spill] sm:$0xff] %v23146_v36  ;;  %v23150_v57 = vadd.f32 %v8318_v31, %v7928_v24  ;;  %v7930_v25 = vadd.f32 %v25042_v47, %v7127_v33  ;;  %v9287_v31 = vld [vmem:[#allocation2 + $0x1ca] sm:$0xf]  ;;  %v10490_v33 = vld [vmem:[#allocation2 + $0x21] sm:$0xff] }
 0x4bd   :  { %v17391_v17 = vpop.f32.mrf.mxu1  ;;  %17634 = vmatmul.mubr.msk.f32.gmra.mxu1 %vm6137_vm2, %v11170_v56  ;;  %v23154_v6 = vpop.f32.mrf.mxu0  ;;  %17910 = vmatmul.mubr.msk.f32.gmra.mxu0 %vm6137_vm2, %v11172_v61  ;;  %v7152_v56 = vadd.f32 %v22823_v5, %v22391_v48  ;;  %v7933_v61 = vadd.f32 %v22377_v30, %v7142_v29  ;;  %v7932_v48 = vadd.f32 %v22386_v32, %v7137_v28  ;;  %v10491_v47 = vld [vmem:[#allocation2 + $0x29] sm:$0xff] }
 0x4be   :  { %25041 = vst [vmem:[#allocation61_spill] sm:$0xff] %v23154_v6  ;;  %v23159_v10 = vadd.f32 %v17391_v17, %v7931_v55  ;;  %17636 = vmatprep.mubr.msk.f32.mxu1 %vm6137_vm2, %v11171_v63  ;;  %17912 = vmatprep.mubr.msk.f32.mxu0 %vm6137_vm2, %v11173_v52  ;;  %v7162_v29 = vadd.f32 %v22839_v7, %v22415_v22  ;;  %v25046_v17 = vld [vmem:[#allocation66_spill] sm:$0xff]  ;;  %v25048_v28 = vld [vmem:[#allocation69_spill] sm:$0xff] }
 0x4bf   :  { %v8328_v53 = vpop.f32.mrf.mxu1  ;;  %v23164_v37 = vpop.f32.mrf.mxu0  ;;  %v7935_v52 = vadd.f32 %v25046_v17, %v7152_v56  ;;  %v7157_v32 = vadd.f32 %v22847_v40, %v22427_v49  ;;  %v7934_v22 = vadd.f32 %v25048_v28, %v7147_v15  ;;  %v7172_v56 = vadd.f32 %v22854_v51, %v22437_v42  ;;  %v10494_v49 = vld [vmem:[#allocation2 + $0x41] sm:$0xff]  ;;  %v25052_v17 = vld [vmem:[#allocation35_spill] sm:$0xff]  ;;  %v10495_v28 = vld [vmem:[#allocation2 + $0x49] sm:$0xff] }
 0x4c0   :  { %25043 = vst [vmem:[#allocation32_spill] sm:$0xff] %v23164_v37  ;;  %v23168_v24 = vadd.f32 %v8328_v53, %v7930_v25  ;;  %v7167_v40 = vadd.f32 %v22862_v1, %v22449_v2  ;;  %v10496_v2 = vld [vmem:[#allocation2 + $0x51] sm:$0xff] }
 0x4c1   :  { %v17394_v46 = vpop.f32.mrf.mxu1  ;;  %17637 = vmatmul.mubr.msk.f32.gmra.mxu1 %vm6137_vm2, %v9287_v31  ;;  %v23172_v63 = vpop.f32.mrf.mxu0  ;;  %17913 = vmatmul.mubr.msk.f32.gmra.mxu0 %vm6137_vm2, %v11174_v54  ;;  %v25050_v54 = vld [vmem:[#allocation36_spill] sm:$0xff]  ;;  %v7936_v42 = vadd.f32 %v25052_v17, %v7157_v32  ;;  %v25056_v1 = vld [vmem:[#allocation111_spill] sm:$0xff] }
 0x4c2   :  { %25044 = vst [vmem:[#allocation38_spill] sm:$0xff] %v23172_v63  ;;  %v23177_v41 = vadd.f32 %v17394_v46, %v7933_v61  ;;  %17739 = vmatprep.mubr.msk.f32.mxu1 %vm6137_vm2, %v10490_v33  ;;  %v7937_v46 = vadd.f32 %v25050_v54, %v7162_v29  ;;  %v10493_v33 = vld [vmem:[#allocation2 + $0x39] sm:$0xff]  ;;  %v7182_v29 = vadd.f32 %v22866_v44, %v22461_v45 }
 0x4c3   :  { %v8338_v30 = vpop.f32.mrf.mxu1  ;;  %v23181_v5 = vpop.f32.mrf.mxu0  ;;  %v7177_v32 = vadd.f32 %v22874_v18, %v25056_v1  ;;  %v10497_v17 = vld [vmem:[#allocation2 + $0x59] sm:$0xff]  ;;  %v10498_v18 = vld [vmem:[#allocation2 + $0x61] sm:$0xff]  ;;  %v10499_v1 = vld [vmem:[#allocation2 + $0x69] sm:$0xff] }
 0x4c4   :  { %25045 = vst [vmem:[#allocation62_spill] sm:$0xff] %v23181_v5  ;;  %v23185_v55 = vadd.f32 %v8338_v30, %v7932_v48 }
 0x4c5   :  { %v17397_v25 = vpop.f32.mrf.mxu1  ;;  %v23188_v53 = vpop.f32.mrf.mxu0  ;;  %17740 = vmatmul.mubr.msk.f32.vlgmr.msra.gmra.mxu1 %vm6137_vm2, %v10491_v47 }
 0x4c6   :  { %25047 = vst [vmem:[#allocation63_spill] sm:$0xff] %v23188_v53  ;;  %v23193_v34 = vadd.f32 %v17397_v25, %v7935_v52  ;;  %17742 = vmatprep.mubr.msk.f32.mxu1 %vm6137_vm2, %v10492_v26  ;;  %v25054_v25 = vld [vmem:[#allocation108_spill] sm:$0xff] }
 0x4c7   :  { %v8348_v7 = vpop.f32.mrf.mxu1  ;;  %v23197_v61 = vpop.f32.mrf.mxu0  ;;  %v7939_v26 = vadd.f32 %v25054_v25, %v7172_v56 }
 0x4c8   :  { %25049 = vst [vmem:[#allocation33_spill] sm:$0xff] %v23197_v61  ;;  %v23201_v31 = vadd.f32 %v8348_v7, %v7934_v22 }
 0x4c9   :  { %v17400_v48 = vpop.f32.mrf.mxu1  ;;  %v23204_v30 = vpop.f32.mrf.mxu0  ;;  %17743 = vmatmul.mubr.msk.f32.gmra.mxu1 %vm6137_vm2, %v10493_v33 }
 0x4ca   :  { %25051 = vst [vmem:[#allocation48_spill] sm:$0xff] %v23204_v30  ;;  %v23209_v15 = vadd.f32 %v17400_v48, %v7937_v46  ;;  %17745 = vmatprep.mubr.msk.f32.mxu1 %vm6137_vm2, %v10494_v49  ;;  %v25057_v46 = vld [vmem:[#allocation68_spill] sm:$0xff]  ;;  %v25059_v48 = vld [vmem:[#allocation71_spill] sm:$0xff] }
 0x4cb   :  { %v8358_v51 = vpop.f32.mrf.mxu1  ;;  %v23213_v52 = vpop.f32.mrf.mxu0  ;;  %v7938_v45 = vadd.f32 %v25057_v46, %v7167_v40  ;;  %v7941_v49 = vadd.f32 %v25059_v48, %v7182_v29 }
 0x4cc   :  { %25053 = vst [vmem:[#allocation64_spill] sm:$0xff] %v23213_v52  ;;  %v23217_v47 = vadd.f32 %v8358_v51, %v7936_v42 }
 0x4cd   :  { %v17403_v22 = vpop.f32.mrf.mxu1  ;;  %v23220_v7 = vpop.f32.mrf.mxu0  ;;  %17746 = vmatmul.mubr.msk.f32.gmra.mxu1 %vm6137_vm2, %v10495_v28 }
 0x4ce   :  { %25055 = vst [vmem:[#allocation65_spill] sm:$0xff] %v23220_v7  ;;  %v23225_v54 = vadd.f32 %v17403_v22, %v7939_v26  ;;  %17748 = vmatprep.mubr.msk.f32.mxu1 %vm6137_vm2, %v10496_v2  ;;  %v25061_v26 = vld [vmem:[#allocation39_spill] sm:$0xff] }
 0x4cf   :  { %v8368_v44 = vpop.f32.mrf.mxu1  ;;  %v23229_v33 = vpop.f32.mrf.mxu0  ;;  %v7940_v40 = vadd.f32 %v25061_v26, %v7177_v32  ;;  %v10502_v32 = vld [vmem:[#allocation2 + $0x81] sm:$0xff] }
 0x4d0   :  { %25058 = vst [vmem:[#allocation40_spill] sm:$0xff] %v23229_v33  ;;  %v23231_v56 = vadd.f32 %v8368_v44, %v7938_v45  ;;  %v10500_v45 = vld [vmem:[#allocation2 + $0x71] sm:$0xff] }
 0x4d1   :  { %v17406_v42 = vpop.f32.mrf.mxu1  ;;  %v23234_v51 = vpop.f32.mrf.mxu0  ;;  %17749 = vmatmul.mubr.msk.f32.gmra.mxu1 %vm6137_vm2, %v10497_v17 }
 0x4d2   :  { %25060 = vst [vmem:[#allocation34_spill] sm:$0xff] %v23234_v51  ;;  %v23237_v25 = vadd.f32 %v17406_v42, %v7941_v49  ;;  %17751 = vmatprep.mubr.msk.f32.mxu1 %vm6137_vm2, %v10498_v18  ;;  %v10501_v49 = vld [vmem:[#allocation2 + $0x79] sm:$0xff] }
 0x4d3   :  { %v8378_v28 = vpop.f32.mrf.mxu1  ;;  %v23241_v22 = vpop.f32.mrf.mxu0 }
 0x4d4   :  { %25062 = vst [vmem:[#allocation67_spill] sm:$0xff] %v23241_v22  ;;  %v23243_v2 = vadd.f32 %v8378_v28, %v7940_v40  ;;  %v10503_v40 = vld [vmem:[#allocation2 + $0x89] sm:$0xff] }
 0x4d5   :  { %v17409_v29 = vpop.f32.mrf.mxu1  ;;  %v17685_v46 = vpop.f32.mrf.mxu0  ;;  %17752 = vmatmul.mubr.msk.f32.gmra.mxu1 %vm6137_vm2, %v10499_v1  ;;  %v10504_v1 = vld [vmem:[#allocation2 + $0x91] sm:$0xff] }
 0x4d6   :  { %17754 = vmatprep.mubr.msk.f32.mxu1 %vm6137_vm2, %v10500_v45 }
 0x4d7   :  { %v8388_v44 = vpop.f32.mrf.mxu1  ;;  %v10275_v48 = vpop.f32.mrf.mxu0 }
 0x4d8   :  { %v7232_v44 = vadd.f32 %v22894_v43, %v22510_v58  ;;  %v10505_v48 = vld [vmem:[#allocation2 + $0x99] sm:$0xff] }
 0x4d9   :  { %v17412_v17 = vpop.f32.mrf.mxu1  ;;  %v17688_v42 = vpop.f32.mrf.mxu0  ;;  %17755 = vmatmul.mubr.msk.f32.gmra.mxu1 %vm6137_vm2, %v10501_v49 }
 0x4da   :  { %17757 = vmatprep.mubr.msk.f32.mxu1 %vm6137_vm2, %v10502_v32  ;;  %v10506_v42 = vld [vmem:[#allocation2 + $0xa1] sm:$0xff]  ;;  %v7227_v32 = vadd.f32 %v22902_v11, %v22522_v3 }
 0x4db   :  { %v8398_v18 = vpop.f32.mrf.mxu1  ;;  %v10285_v26 = vpop.f32.mrf.mxu0 }
 0x4dc   :  { %v7950_v11 = vadd.f32 %v22524_v59, %v7227_v32 }
 0x4dd   :  { %v17415_v28 = vpop.f32.mrf.mxu1  ;;  %v17691_v29 = vpop.f32.mrf.mxu0  ;;  %17758 = vmatmul.mubr.msk.f32.gmra.mxu1 %vm6137_vm2, %v10503_v40  ;;  %v7242_v40 = vadd.f32 %v22906_v60, %v22526_v21 }
 0x4de   :  { %17760 = vmatprep.mubr.msk.f32.mxu1 %vm6137_vm2, %v10504_v1  ;;  %v7951_v28 = vadd.f32 %v22512_v14, %v7232_v44  ;;  %v10507_v29 = vld [vmem:[#allocation2 + $0xa9] sm:$0xff]  ;;  %v10508_v1 = vld [vmem:[#allocation2 + $0xb1] sm:$0xff]  ;;  %v7252_v14 = vadd.f32 %v22918_v16, %v22542_v27 }
 0x4df   :  { %v8408_v46 = vpop.f32.mrf.mxu1  ;;  %v10295_v45 = vpop.f32.mrf.mxu0  ;;  %v25065_v44 = vld [vmem:[#allocation37_spill] sm:$0xff] }
 0x4e0   :  { %v7237_v46 = vadd.f32 %v22914_v39, %v22538_v62  ;;  %v10510_v62 = vld [vmem:[#allocation2 + $0xc1] sm:$0xff] }
 0x4e1   :  { %v17418_v49 = vpop.f32.mrf.mxu1  ;;  %v17694_v17 = vpop.f32.mrf.mxu0  ;;  %17761 = vmatmul.mubr.msk.f32.gmra.mxu1 %vm6137_vm2, %v10505_v48  ;;  %v7953_v48 = vadd.f32 %v25065_v44, %v7242_v40  ;;  %v25067_v39 = vld [vmem:[#allocation73_spill] sm:$0xff]  ;;  %v25071_v40 = vld [vmem:[#allocation43_spill] sm:$0xff] }
 0x4e2   :  { %17763 = vmatprep.mubr.msk.f32.mxu1 %vm6137_vm2, %v10506_v42  ;;  %v10509_v49 = vld [vmem:[#allocation2 + $0xb9] sm:$0xff]  ;;  %v10511_v44 = vld [vmem:[#allocation2 + $0xc9] sm:$0xff] }
 0x4e3   :  { %v8418_v18 = vpop.f32.mrf.mxu1  ;;  %v10305_v26 = vpop.f32.mrf.mxu0 }
 0x4e4   :  { %v25068_v18 = vld [vmem:[#allocation128_spill] sm:$0xff]  ;;  %v25069_v26 = vld [vmem:[#allocation114_spill] sm:$0xff] }
 0x4e5   :  { %v17421_v58 = vpop.f32.mrf.mxu1  ;;  %v23260_v43 = vpop.f32.mrf.mxu0  ;;  %17764 = vmatmul.mubr.msk.f32.gmra.mxu1 %vm6137_vm2, %v10507_v29  ;;  %v7247_v59 = vadd.f32 %v25068_v18, %v25067_v39  ;;  %v7952_v27 = vadd.f32 %v25069_v26, %v7237_v46  ;;  %v25072_v29 = vld [vmem:[#allocation130_spill] sm:$0xff] }
 0x4e6   :  { %25063 = vst [vmem:[#allocation49_spill] sm:$0xff] %v23260_v43  ;;  %v23265_v3 = vadd.f32 %v17421_v58, %v7951_v28  ;;  %17766 = vmatprep.mubr.msk.f32.mxu1 %vm6137_vm2, %v10508_v1  ;;  %v7262_v58 = vadd.f32 %v25072_v29, %v25071_v40  ;;  %v25077_v18 = vld [vmem:[#allocation94_spill] sm:$0xff] }
 0x4e7   :  { %v8428_v45 = vpop.f32.mrf.mxu1  ;;  %v23269_v21 = vpop.f32.mrf.mxu0  ;;  %v7954_v26 = vadd.f32 %v25077_v18, %v7247_v59  ;;  %v25080_v40 = vld [vmem:[#allocation134_spill] sm:$0xff] }
 0x4e8   :  { %25064 = vst [vmem:[#allocation66_spill] sm:$0xff] %v23269_v21  ;;  %v23273_v60 = vadd.f32 %v8428_v45, %v7950_v11  ;;  %v25073_v11 = vld [vmem:[#allocation70_spill] sm:$0xff] }
 0x4e9   :  { %v17424_v17 = vpop.f32.mrf.mxu1  ;;  %v23276_v42 = vpop.f32.mrf.mxu0  ;;  %17767 = vmatmul.mubr.msk.f32.gmra.mxu1 %vm6137_vm2, %v10509_v49  ;;  %v7955_v45 = vadd.f32 %v25073_v11, %v7252_v14  ;;  %v25079_v14 = vld [vmem:[#allocation41_spill] sm:$0xff] }
 0x4ea   :  { %25066 = vst [vmem:[#allocation69_spill] sm:$0xff] %v23276_v42  ;;  %v23281_v32 = vadd.f32 %v17424_v17, %v7953_v48  ;;  %17769 = vmatprep.mubr.msk.f32.mxu1 %vm6137_vm2, %v10510_v62  ;;  %v10512_v48 = vld [vmem:[#allocation2 + $0xd1] sm:$0xff]  ;;  %v25076_v62 = vld [vmem:[#allocation132_spill] sm:$0xff]  ;;  %v7272_v29 = vadd.f32 %v25080_v40, %v25079_v14 }
 0x4eb   :  { %v8438_v16 = vpop.f32.mrf.mxu1  ;;  %v23285_v28 = vpop.f32.mrf.mxu0  ;;  %v25075_v17 = vld [vmem:[#allocation75_spill] sm:$0xff] }
 0x4ec   :  { %25070 = vst [vmem:[#allocation36_spill] sm:$0xff] %v23285_v28  ;;  %v23289_v1 = vadd.f32 %v8438_v16, %v7952_v27  ;;  %v7257_v46 = vadd.f32 %v25076_v62, %v25075_v17  ;;  %v10513_v28 = vld [vmem:[#allocation2 + $0xd9] sm:$0xff] }
 0x4ed   :  { %v17427_v49 = vpop.f32.mrf.mxu1  ;;  %v23292_v42 = vpop.f32.mrf.mxu0  ;;  %17770 = vmatmul.mubr.msk.f32.gmra.mxu1 %vm6137_vm2, %v10511_v44  ;;  %v25085_v62 = vld [vmem:[#allocation95_spill] sm:$0xff] }
 0x4ee   :  { %25074 = vst [vmem:[#allocation35_spill] sm:$0xff] %v23292_v42  ;;  %v23297_v39 = vadd.f32 %v17427_v49, %v7955_v45  ;;  %17772 = vmatprep.mubr.msk.f32.mxu1 %vm6137_vm2, %v10512_v48  ;;  %v25081_v42 = vld [vmem:[#allocation72_spill] sm:$0xff]  ;;  %v25083_v49 = vld [vmem:[#allocation77_spill] sm:$0xff]  ;;  %v7956_v18 = vadd.f32 %v25085_v62, %v7257_v46 }
 0x4ef   :  { %v8448_v27 = vpop.f32.mrf.mxu1  ;;  %v23301_v16 = vpop.f32.mrf.mxu0  ;;  %v7957_v44 = vadd.f32 %v25081_v42, %v7262_v58  ;;  %v10514_v45 = vld [vmem:[#allocation2 + $0xe1] sm:$0xff]  ;;  %v25087_v42 = vld [vmem:[#allocation42_spill] sm:$0xff] }
 0x4f0   :  { %25078 = vst [vmem:[#allocation108_spill] sm:$0xff] %v23301_v16  ;;  %v23305_v11 = vadd.f32 %v8448_v27, %v7954_v26  ;;  %v25084_v48 = vld [vmem:[#allocation136_spill] sm:$0xff]  ;;  %v25088_v58 = vld [vmem:[#allocation138_spill] sm:$0xff] }
 0x4f1   :  { %v17430_v21 = vpop.f32.mrf.mxu1  ;;  %v23308_v43 = vpop.f32.mrf.mxu0  ;;  %17773 = vmatmul.mubr.msk.f32.gmra.mxu1 %vm6137_vm2, %v10513_v28  ;;  %v7267_v59 = vadd.f32 %v25084_v48, %v25083_v49  ;;  %v7282_v14 = vadd.f32 %v25088_v58, %v25087_v42  ;;  %v10515_v16 = vld [vmem:[#allocation2 + $0xe9] sm:$0xff] }
 0x4f2   :  { %25082 = vst [vmem:[#allocation111_spill] sm:$0xff] %v23308_v43  ;;  %v23313_v17 = vadd.f32 %v17430_v21, %v7957_v44  ;;  %17775 = vmatprep.mubr.msk.f32.mxu1 %vm6137_vm2, %v10514_v45  ;;  %v25089_v43 = vld [vmem:[#allocation74_spill] sm:$0xff]  ;;  %v25092_v45 = vld [vmem:[#allocation140_spill] sm:$0xff] }
 0x4f3   :  { %v8458_v26 = vpop.f32.mrf.mxu1  ;;  %v23317_v27 = vpop.f32.mrf.mxu0  ;;  %v7959_v28 = vadd.f32 %v25089_v43, %v7272_v29  ;;  %v10516_v21 = vld [vmem:[#allocation2 + $0xf1] sm:$0xff] }
 0x4f4   :  { %25086 = vst [vmem:[#allocation68_spill] sm:$0xff] %v23317_v27  ;;  %v23321_v40 = vadd.f32 %v8458_v26, %v7956_v18  ;;  %v25091_v44 = vld [vmem:[#allocation86_spill] sm:$0xff]  ;;  %v25095_v43 = vld [vmem:[#allocation51_spill] sm:$0xff] }
 0x4f5   :  { %v17433_v22 = vpop.f32.mrf.mxu1  ;;  %v23324_v51 = vpop.f32.mrf.mxu0  ;;  %17776 = vmatmul.mubr.msk.f32.gmra.mxu1 %vm6137_vm2, %v10515_v16  ;;  %v7277_v46 = vadd.f32 %v25092_v45, %v25091_v44  ;;  %v25093_v48 = vld [vmem:[#allocation50_spill] sm:$0xff]  ;;  %v10517_v27 = vld [vmem:[#allocation2 + $0xf9] sm:$0xff] }
 0x4f6   :  { %25090 = vst [vmem:[#allocation71_spill] sm:$0xff] %v23324_v51  ;;  %v23329_v49 = vadd.f32 %v17433_v22, %v7959_v28  ;;  %17778 = vmatprep.mubr.msk.f32.mxu1 %vm6137_vm2, %v10516_v21  ;;  %v7958_v62 = vadd.f32 %v25093_v48, %v7267_v59  ;;  %v25096_v29 = vld [vmem:[#allocation142_spill] sm:$0xff]  ;;  %v25097_v51 = vld [vmem:[#allocation76_spill] sm:$0xff] }
 0x4f7   :  { %v8468_v18 = vpop.f32.mrf.mxu1  ;;  %v23333_v26 = vpop.f32.mrf.mxu0  ;;  %v7292_v42 = vadd.f32 %v25096_v29, %v25095_v43  ;;  %v7961_v16 = vadd.f32 %v25097_v51, %v7282_v14  ;;  %v10518_v22 = vld [vmem:[#allocation2 + $0x101] sm:$0xff]  ;;  %v25104_v14 = vld [vmem:[#allocation146_spill] sm:$0xff] }
 0x4f8   :  { %25094 = vst [vmem:[#allocation39_spill] sm:$0xff] %v23333_v26  ;;  %v23337_v58 = vadd.f32 %v8468_v18, %v7958_v62  ;;  %v25099_v28 = vld [vmem:[#allocation80_spill] sm:$0xff]  ;;  %v25103_v51 = vld [vmem:[#allocation45_spill] sm:$0xff] }
 0x4f9   :  { %v17436_v33 = vpop.f32.mrf.mxu1  ;;  %v23340_v7 = vpop.f32.mrf.mxu0  ;;  %17779 = vmatmul.mubr.msk.f32.gmra.mxu1 %vm6137_vm2, %v10517_v27  ;;  %v25100_v21 = vld [vmem:[#allocation144_spill] sm:$0xff]  ;;  %v7302_v43 = vadd.f32 %v25104_v14, %v25103_v51  ;;  %v10519_v26 = vld [vmem:[#allocation2 + $0x109] sm:$0xff] }
 0x4fa   :  { %25098 = vst [vmem:[#allocation37_spill] sm:$0xff] %v23340_v7  ;;  %v7287_v59 = vadd.f32 %v25100_v21, %v25099_v28  ;;  %v23345_v44 = vadd.f32 %v17436_v33, %v7961_v16  ;;  %17781 = vmatprep.mubr.msk.f32.mxu1 %vm6137_vm2, %v10518_v22  ;;  %v25101_v45 = vld [vmem:[#allocation44_spill] sm:$0xff]  ;;  %v25105_v7 = vld [vmem:[#allocation78_spill] sm:$0xff]  ;;  %v25107_v16 = vld [vmem:[#allocation81_spill] sm:$0xff] }
 0x4fb   :  { %v7960_v48 = vadd.f32 %v25101_v45, %v7277_v46  ;;  %v8478_v62 = vpop.f32.mrf.mxu1  ;;  %v23349_v18 = vpop.f32.mrf.mxu0  ;;  %v7963_v27 = vadd.f32 %v25105_v7, %v7292_v42  ;;  %v10520_v33 = vld [vmem:[#allocation2 + $0x111] sm:$0xff]  ;;  %v25108_v22 = vld [vmem:[#allocation148_spill] sm:$0xff] }
 0x4fc   :  { %25102 = vst [vmem:[#allocation73_spill] sm:$0xff] %v23349_v18  ;;  %v7297_v46 = vadd.f32 %v25108_v22, %v25107_v16  ;;  %v25109_v21 = vld [vmem:[#allocation46_spill] sm:$0xff]  ;;  %v25111_v7 = vld [vmem:[#allocation47_spill] sm:$0xff]  ;;  %v25117_v22 = vld [vmem:[#allocation96_spill] sm:$0xff] }
 0x4fd   :  { %v23353_v29 = vadd.f32 %v8478_v62, %v7960_v48  ;;  %v17439_v52 = vpop.f32.mrf.mxu1  ;;  %v23356_v30 = vpop.f32.mrf.mxu0  ;;  %17782 = vmatmul.mubr.msk.f32.gmra.mxu1 %vm6137_vm2, %v10519_v26  ;;  %v7962_v45 = vadd.f32 %v25109_v21, %v7287_v59  ;;  %v25112_v42 = vld [vmem:[#allocation150_spill] sm:$0xff]  ;;  %v10521_v18 = vld [vmem:[#allocation2 + $0x119] sm:$0xff] }
 0x4fe   :  { %25106 = vst [vmem:[#allocation128_spill] sm:$0xff] %v23356_v30  ;;  %v23361_v28 = vadd.f32 %v17439_v52, %v7963_v27  ;;  %17784 = vmatprep.mubr.msk.f32.mxu1 %vm6137_vm2, %v10520_v33  ;;  %v7312_v51 = vadd.f32 %v25112_v42, %v25111_v7  ;;  %v25113_v30 = vld [vmem:[#allocation79_spill] sm:$0xff]  ;;  %v10522_v52 = vld [vmem:[#allocation2 + $0x121] sm:$0xff]  ;;  %v7964_v21 = vadd.f32 %v25117_v22, %v7297_v46 }
 0x4ff   :  { %v8488_v48 = vpop.f32.mrf.mxu1  ;;  %v23365_v62 = vpop.f32.mrf.mxu0  ;;  %v7965_v26 = vadd.f32 %v25113_v30, %v7302_v43  ;;  %v25115_v27 = vld [vmem:[#allocation91_spill] sm:$0xff]  ;;  %v25116_v33 = vld [vmem:[#allocation152_spill] sm:$0xff]  ;;  %v25119_v30 = vld [vmem:[#allocation97_spill] sm:$0xff] }
 0x500   :  { %25110 = vst [vmem:[#allocation114_spill] sm:$0xff] %v23365_v62  ;;  %v23369_v14 = vadd.f32 %v8488_v48, %v7962_v45  ;;  %v7307_v59 = vadd.f32 %v25116_v33, %v25115_v27  ;;  %v25120_v43 = vld [vmem:[#allocation154_spill] sm:$0xff] }
 0x501   :  { %v17442_v61 = vpop.f32.mrf.mxu1  ;;  %v23372_v53 = vpop.f32.mrf.mxu0  ;;  %17785 = vmatmul.mubr.msk.f32.gmra.mxu1 %vm6137_vm2, %v10521_v18  ;;  %v7322_v7 = vadd.f32 %v25120_v43, %v25119_v30  ;;  %v10523_v62 = vld [vmem:[#allocation2 + $0x129] sm:$0xff] }
 0x502   :  { %25114 = vst [vmem:[#allocation43_spill] sm:$0xff] %v23372_v53  ;;  %v23377_v16 = vadd.f32 %v17442_v61, %v7965_v26  ;;  %17787 = vmatprep.mubr.msk.f32.mxu1 %vm6137_vm2, %v10522_v52  ;;  %v25121_v53 = vld [vmem:[#allocation89_spill] sm:$0xff]  ;;  %v10524_v61 = vld [vmem:[#allocation2 + $0x131] sm:$0xff]  ;;  %v25124_v52 = vld [vmem:[#allocation156_spill] sm:$0xff] }
 0x503   :  { %v8498_v45 = vpop.f32.mrf.mxu1  ;;  %v23381_v48 = vpop.f32.mrf.mxu0  ;;  %v7967_v18 = vadd.f32 %v25121_v53, %v7312_v51  ;;  %v25123_v26 = vld [vmem:[#allocation30_spill] sm:$0xff]  ;;  %v25127_v53 = vld [vmem:[#allocation99_spill] sm:$0xff] }
 0x504   :  { %25118 = vst [vmem:[#allocation130_spill] sm:$0xff] %v23381_v48  ;;  %v23385_v42 = vadd.f32 %v8498_v45, %v7964_v21  ;;  %v7317_v46 = vadd.f32 %v25124_v52, %v25123_v26  ;;  %v25125_v33 = vld [vmem:[#allocation98_spill] sm:$0xff]  ;;  %v10525_v48 = vld [vmem:[#allocation2 + $0x139] sm:$0xff] }
 0x505   :  { %v17445_v5 = vpop.f32.mrf.mxu1  ;;  %v23388_v63 = vpop.f32.mrf.mxu0  ;;  %17788 = vmatmul.mubr.msk.f32.gmra.mxu1 %vm6137_vm2, %v10523_v62  ;;  %v7966_v22 = vadd.f32 %v25125_v33, %v7307_v59  ;;  %v25128_v51 = vld [vmem:[#allocation158_spill] sm:$0xff]  ;;  %v25133_v52 = vld [vmem:[#allocation100_spill] sm:$0xff] }
 0x506   :  { %25122 = vst [vmem:[#allocation70_spill] sm:$0xff] %v23388_v63  ;;  %v23393_v27 = vadd.f32 %v17445_v5, %v7967_v18  ;;  %17790 = vmatprep.mubr.msk.f32.mxu1 %vm6137_vm2, %v10524_v61  ;;  %v7332_v30 = vadd.f32 %v25128_v51, %v25127_v53  ;;  %v25129_v63 = vld [vmem:[#allocation28_spill] sm:$0xff]  ;;  %v25131_v18 = vld [vmem:[#allocation83_spill] sm:$0xff]  ;;  %v7968_v33 = vadd.f32 %v25133_v52, %v7317_v46 }
 0x507   :  { %v8508_v21 = vpop.f32.mrf.mxu1  ;;  %v23397_v45 = vpop.f32.mrf.mxu0  ;;  %v7969_v62 = vadd.f32 %v25129_v63, %v7322_v7  ;;  %v10526_v5 = vld [vmem:[#allocation2 + $0x141] sm:$0xff]  ;;  %v25136_v7 = vld [vmem:[#allocation162_spill] sm:$0xff] }
 0x508   :  { %25126 = vst [vmem:[#allocation75_spill] sm:$0xff] %v23397_v45  ;;  %v23401_v43 = vadd.f32 %v8508_v21, %v7966_v22  ;;  %v25132_v61 = vld [vmem:[#allocation160_spill] sm:$0xff]  ;;  %v25135_v63 = vld [vmem:[#allocation101_spill] sm:$0xff] }
 0x509   :  { %v17448_v37 = vpop.f32.mrf.mxu1  ;;  %v23404_v6 = vpop.f32.mrf.mxu0  ;;  %17791 = vmatmul.mubr.msk.f32.gmra.mxu1 %vm6137_vm2, %v10525_v48  ;;  %v7327_v59 = vadd.f32 %v25132_v61, %v25131_v18  ;;  %v7342_v53 = vadd.f32 %v25136_v7, %v25135_v63  ;;  %v10527_v45 = vld [vmem:[#allocation2 + $0x149] sm:$0xff]  ;;  %v10529_v7 = vld [vmem:[#allocation2 + $0x159] sm:$0xff] }
 0x50a   :  { %25130 = vst [vmem:[#allocation132_spill] sm:$0xff] %v23404_v6  ;;  %v23409_v26 = vadd.f32 %v17448_v37, %v7969_v62  ;;  %17793 = vmatprep.mubr.msk.f32.mxu1 %vm6137_vm2, %v10526_v5  ;;  %v25137_v6 = vld [vmem:[#allocation82_spill] sm:$0xff]  ;;  %v25140_v5 = vld [vmem:[#allocation52_spill] sm:$0xff] }
 0x50b   :  { %v8518_v22 = vpop.f32.mrf.mxu1  ;;  %v23413_v21 = vpop.f32.mrf.mxu0  ;;  %v7971_v48 = vadd.f32 %v25137_v6, %v7332_v30  ;;  %v10528_v37 = vld [vmem:[#allocation2 + $0x151] sm:$0xff]  ;;  %v25143_v30 = vld [vmem:[#allocation25_spill] sm:$0xff] }
 0x50c   :  { %25134 = vst [vmem:[#allocation94_spill] sm:$0xff] %v23413_v21  ;;  %v23417_v51 = vadd.f32 %v8518_v22, %v7968_v33  ;;  %v25139_v62 = vld [vmem:[#allocation26_spill] sm:$0xff]  ;;  %v7973_v63 = vadd.f32 %v25143_v30, %v7342_v53 }
 0x50d   :  { %v17451_v36 = vpop.f32.mrf.mxu1  ;;  %v23420_v4 = vpop.f32.mrf.mxu0  ;;  %17794 = vmatmul.mubr.msk.f32.gmra.mxu1 %vm6137_vm2, %v10527_v45  ;;  %v7337_v46 = vadd.f32 %v25140_v5, %v25139_v62  ;;  %v25141_v61 = vld [vmem:[#allocation102_spill] sm:$0xff]  ;;  %v10530_v62 = vld [vmem:[#allocation2 + $0x161] sm:$0xff] }
 0x50e   :  { %25138 = vst [vmem:[#allocation41_spill] sm:$0xff] %v23420_v4  ;;  %v23425_v18 = vadd.f32 %v17451_v36, %v7971_v48  ;;  %17796 = vmatprep.mubr.msk.f32.mxu1 %vm6137_vm2, %v10528_v37  ;;  %v7970_v52 = vadd.f32 %v25141_v61, %v7327_v59  ;;  %v25145_v48 = vld [vmem:[#allocation104_spill] sm:$0xff]  ;;  %v25146_v61 = vld [vmem:[#allocation103_spill] sm:$0xff]  ;;  %v10531_v53 = vld [vmem:[#allocation2 + $0x169] sm:$0xff] }
 0x50f   :  { %v8528_v33 = vpop.f32.mrf.mxu1  ;;  %v23429_v22 = vpop.f32.mrf.mxu0  ;;  %v7972_v59 = vadd.f32 %v25145_v48, %v7337_v46  ;;  %v25148_v46 = vld [vmem:[#allocation87_spill] sm:$0xff] }
 0x510   :  { %25142 = vst [vmem:[#allocation134_spill] sm:$0xff] %v23429_v22  ;;  %v23431_v6 = vadd.f32 %v8528_v33, %v7970_v52  ;;  %v9177_v52 = vadd.f32 %v25146_v61, %v23051_v38 }
 0x511   :  { %v17454_v4 = vpop.f32.mrf.mxu1  ;;  %v23434_v45 = vpop.f32.mrf.mxu0  ;;  %17797 = vmatmul.mubr.msk.f32.gmra.mxu1 %vm6137_vm2, %v10529_v7  ;;  %v10532_v7 = vld [vmem:[#allocation2 + $0x171] sm:$0xff] }
 0x512   :  { %25144 = vst [vmem:[#allocation72_spill] sm:$0xff] %v23434_v45  ;;  %v23437_v36 = vadd.f32 %v17454_v4, %v7973_v63  ;;  %17799 = vmatprep.mubr.msk.f32.mxu1 %vm6137_vm2, %v10530_v62  ;;  %v9179_v63 = vadd.f32 %v25148_v46, %v23069_v0  ;;  %v10533_v62 = vld [vmem:[#allocation2 + $0x179] sm:$0xff]  ;;  %v10536_v46 = vld [vmem:[#allocation2 + $0x191] sm:$0xff] }
 0x513   :  { %v8538_v37 = vpop.f32.mrf.mxu1  ;;  %v23445_v33 = vpop.f32.mrf.mxu0 }
 0x514   :  { %v23441_v5 = vadd.f32 %v8538_v37, %v7972_v59  ;;  %25147 = vst [vmem:[#allocation77_spill] sm:$0xff] %v23445_v33  ;;  %v10534_v59 = vld [vmem:[#allocation2 + $0x181] sm:$0xff] }
 0x515   :  { %v17557_v30 = vpop.f32.mrf.mxu1  ;;  %17800 = vmatmul.mubr.msk.f32.gmra.mxu1 %vm6137_vm2, %v10531_v53  ;;  %v23455_v48 = vpop.f32.mrf.mxu0 }
 0x516   :  { %v23448_v45 = vadd.f32 %v17557_v30, %v9177_v52  ;;  %17802 = vmatprep.mubr.msk.f32.mxu1 %vm6137_vm2, %v10532_v7  ;;  %v25149_v52 = vld [vmem:[#allocation105_spill] sm:$0xff] }
 0x517   :  { %v23451_v4 = vpop.f32.mrf.mxu1  ;;  %v9181_v53 = vadd.f32 %v25149_v52, %v23087_v13  ;;  %v10535_v30 = vld [vmem:[#allocation2 + $0x189] sm:$0xff]  ;;  %v23465_v7 = vpop.f32.mrf.mxu0  ;;  %v10538_v52 = vld [vmem:[#allocation2 + $0x1a1] sm:$0xff] }
 0x519   :  { %v17560_v38 = vpop.f32.mrf.mxu1  ;;  %17803 = vmatmul.mubr.msk.f32.gmra.mxu1 %vm6137_vm2, %v10533_v62  ;;  %v25150_v62 = vld [vmem:[#allocation23_spill] sm:$0xff]  ;;  %v23475_v22 = vpop.f32.mrf.mxu0 }
 0x51a   :  { %v23458_v37 = vadd.f32 %v17560_v38, %v9179_v63  ;;  %17805 = vmatprep.mubr.msk.f32.mxu1 %vm6137_vm2, %v10534_v59  ;;  %v9183_v38 = vadd.f32 %v25150_v62, %v23105_v23  ;;  %v10537_v59 = vld [vmem:[#allocation2 + $0x199] sm:$0xff]  ;;  %25151 = vst [vmem:[#allocation136_spill] sm:$0xff] %v23475_v22  ;;  %v10540_v62 = vld [vmem:[#allocation2 + $0x1b1] sm:$0xff] }
 0x51b   :  { %v23461_v61 = vpop.f32.mrf.mxu1  ;;  %v23485_v12 = vpop.f32.mrf.mxu0 }
 0x51c   :  { %25154 = vst [vmem:[#allocation42_spill] sm:$0xff] %v23485_v12 }
 0x51d   :  { %v17563_v0 = vpop.f32.mrf.mxu1  ;;  %17806 = vmatmul.mubr.msk.f32.gmra.mxu1 %vm6137_vm2, %v10535_v30  ;;  %v25153_v30 = vld [vmem:[#allocation107_spill] sm:$0xff] }
 0x51e   :  { %v23468_v33 = vadd.f32 %v17563_v0, %v9181_v53  ;;  %17808 = vmatprep.mubr.msk.f32.mxu1 %vm6137_vm2, %v10536_v46  ;;  %v9185_v0 = vadd.f32 %v25153_v30, %v23123_v20  ;;  %v10539_v46 = vld [vmem:[#allocation2 + $0x1a9] sm:$0xff]  ;;  %v10542_v30 = vld [vmem:[#allocation2 + $0x1c1] sm:$0xff] }
 0x51f   :  { %v23471_v63 = vpop.f32.mrf.mxu1 }
 0x521   :  { %v17566_v13 = vpop.f32.mrf.mxu1  ;;  %17809 = vmatmul.mubr.msk.f32.gmra.mxu1 %vm6137_vm2, %v10537_v59  ;;  %v25157_v59 = vld [vmem:[#allocation24_spill] sm:$0xff] }
 0x522   :  { %v23478_v21 = vadd.f32 %v17566_v13, %v9183_v38  ;;  %17811 = vmatprep.mubr.msk.f32.mxu1 %vm6137_vm2, %v10538_v52  ;;  %v9187_v13 = vadd.f32 %v25157_v59, %v23141_v9  ;;  %v10541_v52 = vld [vmem:[#allocation2 + $0x1b9] sm:$0xff]  ;;  %v10543_v59 = vld [vmem:[#allocation2 + $0x1c9] sm:$0xff] }
 0x523   :  { %v23481_v53 = vpop.f32.mrf.mxu1 }
 0x524   :  { %25152 = vst [vmem:[#allocation95_spill] sm:$0xff] %v23478_v21  ;;  %v23495_v21 = vpop.f32.mrf.mxu0 }
 0x525   :  { %v17569_v23 = vpop.f32.mrf.mxu1  ;;  %17812 = vmatmul.mubr.msk.f32.gmra.mxu1 %vm6137_vm2, %v10539_v46  ;;  %25158 = vst [vmem:[#allocation86_spill] sm:$0xff] %v23495_v21 }
 0x526   :  { %v23488_v22 = vadd.f32 %v17569_v23, %v9185_v0  ;;  %17814 = vmatprep.mubr.msk.f32.mxu1 %vm6137_vm2, %v10540_v62  ;;  %v25159_v0 = vld [vmem:[#allocation112_spill] sm:$0xff] }
 0x527   :  { %v23491_v38 = vpop.f32.mrf.mxu1  ;;  %v9186_v46 = vadd.f32 %v25159_v0, %v23150_v57 }
 0x528   :  { %25155 = vst [vmem:[#allocation138_spill] sm:$0xff] %v23488_v22  ;;  %25156 = vst [vmem:[#allocation74_spill] sm:$0xff] %v23491_v38  ;;  %v25161_v22 = vld [vmem:[#allocation110_spill] sm:$0xff]  ;;  %v23507_v38 = vpop.f32.mrf.mxu0 }
 0x529   :  { %v17572_v20 = vpop.f32.mrf.mxu1  ;;  %17815 = vmatmul.mubr.msk.f32.gmra.mxu1 %vm6137_vm2, %v10541_v52  ;;  %v9189_v9 = vadd.f32 %v25161_v22, %v23159_v10  ;;  %v10544_v52 = vld [vmem:[#allocation2 + $0x1d1] sm:$0xff]  ;;  %v10545_v22 = vld [vmem:[#allocation2 + $0x1d9] sm:$0xf] }
 0x52a   :  { %v23498_v12 = vadd.f32 %v17572_v20, %v9187_v13  ;;  %17817 = vmatprep.mubr.msk.f32.mxu1 %vm6137_vm2, %v10542_v30  ;;  %v25163_v20 = vld [vmem:[#allocation90_spill] sm:$0xff] }
 0x52b   :  { %v9576_v23 = vpop.f32.mrf.mxu1  ;;  %v9188_v57 = vadd.f32 %v25163_v20, %v23168_v24  ;;  %v25168_v24 = vld [vmem:[#allocation113_spill] sm:$0xff] }
 0x52c   :  { %v23503_v62 = vadd.f32 %v9576_v23, %v9186_v46  ;;  %v25165_v46 = vld [vmem:[#allocation92_spill] sm:$0xff]  ;;  %v23519_v23 = vpop.f32.mrf.mxu0  ;;  %v9193_v20 = vadd.f32 %v25168_v24, %v23193_v34  ;;  %v25172_v34 = vld [vmem:[#allocation118_spill] sm:$0xff] }
 0x52d   :  { %v17575_v21 = vpop.f32.mrf.mxu1  ;;  %17818 = vmatmul.mubr.msk.f32.gmra.mxu1 %vm6137_vm2, %v10543_v59  ;;  %v9191_v10 = vadd.f32 %v25165_v46, %v23177_v41  ;;  %v25169_v46 = vld [vmem:[#allocation116_spill] sm:$0xff]  ;;  %v9194_v24 = vadd.f32 %v25172_v34, %v23217_v47 }
 0x52e   :  { %25160 = vst [vmem:[#allocation140_spill] sm:$0xff] %v23503_v62  ;;  %v23510_v13 = vadd.f32 %v17575_v21, %v9189_v9  ;;  %17820 = vmatprep.mubr.msk.f32.mxu1 %vm6137_vm2, %v10544_v52  ;;  %v25166_v21 = vld [vmem:[#allocation115_spill] sm:$0xff] }
 0x52f   :  { %v9586_v30 = vpop.f32.mrf.mxu1  ;;  %v9190_v9 = vadd.f32 %v25166_v21, %v23185_v55 }
 0x530   :  { %25162 = vst [vmem:[#allocation50_spill] sm:$0xff] %v23510_v13  ;;  %v23515_v0 = vadd.f32 %v9586_v30, %v9188_v57  ;;  %v23530_v57 = vpop.f32.mrf.mxu0 }
 0x531   :  { %v17578_v62 = vpop.f32.mrf.mxu1  ;;  %17821 = vmatmul.mubr.msk.f32.gmra.mxu1 %vm6137_vm2, %v10545_v22 }
 0x532   :  { %25164 = vst [vmem:[#allocation51_spill] sm:$0xff] %v23515_v0  ;;  %v23522_v59 = vadd.f32 %v17578_v62, %v9191_v10  ;;  %v9192_v0 = vadd.f32 %v25169_v46, %v23201_v31  ;;  %v25171_v10 = vld [vmem:[#allocation117_spill] sm:$0xff]  ;;  %v23540_v21 = vpop.f32.mrf.mxu0 }
 0x533   :  { %v9596_v52 = vpop.f32.mrf.mxu1  ;;  %v9195_v55 = vadd.f32 %v25171_v10, %v23209_v15  ;;  %v25176_v15 = vld [vmem:[#allocation120_spill] sm:$0xff] }
 0x534   :  { %v23526_v13 = vadd.f32 %v9596_v52, %v9190_v9  ;;  %v23550_v46 = vpop.f32.mrf.mxu0  ;;  %v9196_v10 = vadd.f32 %v25176_v15, %v23231_v56 }
 0x535   :  { %v17581_v41 = vpop.f32.mrf.mxu1 }
 0x536   :  { %25167 = vst [vmem:[#allocation142_spill] sm:$0xff] %v23526_v13  ;;  %v23532_v30 = vadd.f32 %v17581_v41, %v9193_v20  ;;  %v25174_v41 = vld [vmem:[#allocation119_spill] sm:$0xff]  ;;  %v23560_v34 = vpop.f32.mrf.mxu0 }
 0x537   :  { %v9606_v22 = vpop.f32.mrf.mxu1  ;;  %v9197_v31 = vadd.f32 %v25174_v41, %v23225_v54  ;;  %v25180_v54 = vld [vmem:[#allocation122_spill] sm:$0xff] }
 0x538   :  { %v23536_v62 = vadd.f32 %v9606_v22, %v9192_v0  ;;  %v9198_v41 = vadd.f32 %v25180_v54, %v23243_v2  ;;  %v25183_v2 = vld [vmem:[#allocation123_spill] sm:$0xff] }
 0x539   :  { %v17584_v9 = vpop.f32.mrf.mxu1 }
 0x53a   :  { %25170 = vst [vmem:[#allocation76_spill] sm:$0xff] %v23536_v62  ;;  %v23542_v52 = vadd.f32 %v17584_v9, %v9195_v55  ;;  %v25178_v9 = vld [vmem:[#allocation121_spill] sm:$0xff] }
 0x53b   :  { %v9616_v13 = vpop.f32.mrf.mxu1  ;;  %v9199_v47 = vadd.f32 %v25178_v9, %v23237_v25 }
 0x53c   :  { %v23546_v20 = vadd.f32 %v9616_v13, %v9194_v24 }
 0x53d   :  { %v17587_v0 = vpop.f32.mrf.mxu1 }
 0x53e   :  { %25173 = vst [vmem:[#allocation80_spill] sm:$0xff] %v23546_v20  ;;  %v23552_v22 = vadd.f32 %v17587_v0, %v9197_v31  ;;  %v23568_v0 = vpop.f32.mrf.mxu0 }
 0x53f   :  { %v9626_v62 = vpop.f32.mrf.mxu1 }
 0x540   :  { %25175 = vst [vmem:[#allocation144_spill] sm:$0xff] %v23552_v22  ;;  %v23556_v55 = vadd.f32 %v9626_v62, %v9196_v10  ;;  %v23570_v62 = vpop.f32.mrf.mxu0 }
 0x541   :  { %v17590_v13 = vpop.f32.mrf.mxu1 }
 0x542   :  { %25177 = vst [vmem:[#allocation44_spill] sm:$0xff] %v23556_v55  ;;  %v23562_v24 = vadd.f32 %v17590_v13, %v9199_v47  ;;  %v23572_v25 = vpop.f32.mrf.mxu0 }
 0x543   :  { %v9636_v20 = vpop.f32.mrf.mxu1 }
 0x544   :  { %25179 = vst [vmem:[#allocation45_spill] sm:$0xff] %v23562_v24  ;;  %v23566_v31 = vadd.f32 %v9636_v20, %v9198_v41  ;;  %v23574_v47 = vpop.f32.mrf.mxu0  ;;  %v9209_v20 = vadd.f32 %v25183_v2, %v23265_v3  ;;  %v25188_v3 = vld [vmem:[#allocation126_spill] sm:$0xff] }
 0x545   :  { %v17593_v56 = vpop.f32.mrf.mxu1  ;;  %25182 = vst [vmem:[#allocation78_spill] sm:$0xff] %v23574_v47  ;;  %v9210_v2 = vadd.f32 %v25188_v3, %v23289_v1 }
 0x546   :  { %25181 = vst [vmem:[#allocation146_spill] sm:$0xff] %v23566_v31  ;;  %v23578_v54 = vpop.f32.mrf.mxu0 }
 0x547   :  { %v9646_v15 = vpop.f32.mrf.mxu1  ;;  %25184 = vst [vmem:[#allocation81_spill] sm:$0xff] %v23578_v54 }
 0x548   :  { %v25185_v15 = vld [vmem:[#allocation124_spill] sm:$0xff]  ;;  %v23588_v47 = vpop.f32.mrf.mxu0 }
 0x549   :  { %v17596_v10 = vpop.f32.mrf.mxu1 }
 0x54a   :  { %v9208_v10 = vadd.f32 %v25185_v15, %v23273_v60  ;;  %v23598_v15 = vpop.f32.mrf.mxu0 }
 0x54b   :  { %v9656_v55 = vpop.f32.mrf.mxu1 }
 0x54c   :  { %v23608_v3 = vpop.f32.mrf.mxu0 }
 0x54d   :  { %v17599_v9 = vpop.f32.mrf.mxu1 }
 0x54f   :  { %v9666_v22 = vpop.f32.mrf.mxu1 }
 0x550   :  { %v25187_v22 = vld [vmem:[#allocation125_spill] sm:$0xff] }
 0x551   :  { %v17602_v13 = vpop.f32.mrf.mxu1  ;;  %v9211_v9 = vadd.f32 %v25187_v22, %v23281_v32  ;;  %v25191_v32 = vld [vmem:[#allocation129_spill] sm:$0xff] }
 0x552   :  { %v9212_v22 = vadd.f32 %v25191_v32, %v23305_v11  ;;  %v23618_v32 = vpop.f32.mrf.mxu0 }
 0x553   :  { %v9676_v24 = vpop.f32.mrf.mxu1 }
 0x555   :  { %v17605_v41 = vpop.f32.mrf.mxu1 }
 0x556   :  { %v23580_v56 = vadd.f32 %v17605_v41, %v9209_v20  ;;  %v25190_v41 = vld [vmem:[#allocation127_spill] sm:$0xff] }
 0x557   :  { %v9686_v55 = vpop.f32.mrf.mxu1  ;;  %v9213_v60 = vadd.f32 %v25190_v41, %v23297_v39  ;;  %v25194_v39 = vld [vmem:[#allocation133_spill] sm:$0xff] }
 0x558   :  { %v23584_v31 = vadd.f32 %v9686_v55, %v9208_v10  ;;  %v9214_v41 = vadd.f32 %v25194_v39, %v23321_v40  ;;  %v23628_v39 = vpop.f32.mrf.mxu0 }
 0x559   :  { %v17608_v24 = vpop.f32.mrf.mxu1 }
 0x55a   :  { %25186 = vst [vmem:[#allocation148_spill] sm:$0xff] %v23584_v31  ;;  %v23590_v13 = vadd.f32 %v17608_v24, %v9211_v9  ;;  %v25193_v24 = vld [vmem:[#allocation131_spill] sm:$0xff] }
 0x55b   :  { %v9696_v54 = vpop.f32.mrf.mxu1  ;;  %v9215_v1 = vadd.f32 %v25193_v24, %v23313_v17  ;;  %v25197_v17 = vld [vmem:[#allocation137_spill] sm:$0xff] }
 0x55c   :  { %v23594_v20 = vadd.f32 %v9696_v54, %v9210_v2  ;;  %v9216_v24 = vadd.f32 %v25197_v17, %v23337_v58  ;;  %v23638_v17 = vpop.f32.mrf.mxu0 }
 0x55d   :  { %v17611_v10 = vpop.f32.mrf.mxu1 }
 0x55e   :  { %25189 = vst [vmem:[#allocation46_spill] sm:$0xff] %v23594_v20  ;;  %v23600_v55 = vadd.f32 %v17611_v10, %v9213_v60  ;;  %v25196_v10 = vld [vmem:[#allocation135_spill] sm:$0xff] }
 0x55f   :  { %v9706_v31 = vpop.f32.mrf.mxu1  ;;  %v9217_v11 = vadd.f32 %v25196_v10, %v23329_v49  ;;  %v25200_v49 = vld [vmem:[#allocation141_spill] sm:$0xff] }
 0x560   :  { %v23604_v9 = vadd.f32 %v9706_v31, %v9212_v22  ;;  %v9218_v10 = vadd.f32 %v25200_v49, %v23353_v29  ;;  %v23648_v49 = vpop.f32.mrf.mxu0 }
 0x561   :  { %v17614_v54 = vpop.f32.mrf.mxu1 }
 0x562   :  { %25192 = vst [vmem:[#allocation47_spill] sm:$0xff] %v23604_v9  ;;  %v23610_v2 = vadd.f32 %v17614_v54, %v9215_v1  ;;  %v25199_v54 = vld [vmem:[#allocation139_spill] sm:$0xff] }
 0x563   :  { %v9716_v20 = vpop.f32.mrf.mxu1  ;;  %v9219_v40 = vadd.f32 %v25199_v54, %v23345_v44  ;;  %v25203_v44 = vld [vmem:[#allocation145_spill] sm:$0xff] }
 0x564   :  { %v23614_v60 = vadd.f32 %v9716_v20, %v9214_v41  ;;  %v9220_v54 = vadd.f32 %v25203_v44, %v23369_v14  ;;  %v23658_v44 = vpop.f32.mrf.mxu0 }
 0x565   :  { %v17617_v31 = vpop.f32.mrf.mxu1 }
 0x566   :  { %25195 = vst [vmem:[#allocation150_spill] sm:$0xff] %v23614_v60  ;;  %v23620_v22 = vadd.f32 %v17617_v31, %v9217_v11  ;;  %v25202_v31 = vld [vmem:[#allocation143_spill] sm:$0xff] }
 0x567   :  { %v9726_v9 = vpop.f32.mrf.mxu1  ;;  %v9221_v58 = vadd.f32 %v25202_v31, %v23361_v28  ;;  %v25207_v28 = vld [vmem:[#allocation149_spill] sm:$0xff] }
 0x568   :  { %v23624_v1 = vadd.f32 %v9726_v9, %v9216_v24  ;;  %v9222_v31 = vadd.f32 %v25207_v28, %v23385_v42  ;;  %v17869_v28 = vpop.f32.mrf.mxu0 }
 0x569   :  { %v17620_v20 = vpop.f32.mrf.mxu1  ;;  %v25215_v28 = vld [vmem:[#allocation84_spill] sm:$0xff] }
 0x56a   :  { %25198 = vst [vmem:[#allocation79_spill] sm:$0xff] %v23624_v1  ;;  %v23630_v41 = vadd.f32 %v17620_v20, %v9219_v40  ;;  %v25205_v20 = vld [vmem:[#allocation147_spill] sm:$0xff] }
 0x56b   :  { %v9736_v60 = vpop.f32.mrf.mxu1  ;;  %v9223_v29 = vadd.f32 %v25205_v20, %v23377_v16  ;;  %v25210_v16 = vld [vmem:[#allocation153_spill] sm:$0xff] }
 0x56c   :  { %v23634_v11 = vadd.f32 %v9736_v60, %v9218_v10  ;;  %v9224_v20 = vadd.f32 %v25210_v16, %v23401_v43  ;;  %v11533_v43 = vpop.f32.mrf.mxu0 }
 0x56d   :  { %v17623_v9 = vpop.f32.mrf.mxu1 }
 0x56e   :  { %25201 = vst [vmem:[#allocation91_spill] sm:$0xff] %v23634_v11  ;;  %v23640_v24 = vadd.f32 %v17623_v9, %v9221_v58  ;;  %v25209_v9 = vld [vmem:[#allocation151_spill] sm:$0xff] }
 0x56f   :  { %v9746_v1 = vpop.f32.mrf.mxu1  ;;  %v9225_v14 = vadd.f32 %v25209_v9, %v23393_v27  ;;  %v25212_v27 = vld [vmem:[#allocation157_spill] sm:$0xff] }
 0x570   :  { %v23644_v40 = vadd.f32 %v9746_v1, %v9220_v54  ;;  %v9226_v9 = vadd.f32 %v25212_v27, %v23417_v51 }
 0x571   :  { %v17626_v60 = vpop.f32.mrf.mxu1 }
 0x572   :  { %25204 = vst [vmem:[#allocation152_spill] sm:$0xff] %v23644_v40  ;;  %v23650_v10 = vadd.f32 %v17626_v60, %v9223_v29  ;;  %v25211_v60 = vld [vmem:[#allocation155_spill] sm:$0xff] }
 0x573   :  { %v9756_v11 = vpop.f32.mrf.mxu1  ;;  %v9227_v42 = vadd.f32 %v25211_v60, %v23409_v26  ;;  %v25214_v26 = vld [vmem:[#allocation161_spill] sm:$0xff] }
 0x574   :  { %25206 = vst [vmem:[#allocation96_spill] sm:$0xff] %v23650_v10  ;;  %v23654_v58 = vadd.f32 %v9756_v11, %v9222_v31  ;;  %v9228_v60 = vadd.f32 %v25214_v26, %v23431_v6  ;;  %v25219_v26 = vld [vmem:[#allocation106_spill] sm:$0xff] }
 0x575   :  { %v17629_v1 = vpop.f32.mrf.mxu1 }
 0x576   :  { %25208 = vst [vmem:[#allocation97_spill] sm:$0xff] %v23654_v58  ;;  %v23660_v54 = vadd.f32 %v17629_v1, %v9225_v14  ;;  %v25213_v14 = vld [vmem:[#allocation159_spill] sm:$0xff] }
 0x577   :  { %v9766_v40 = vpop.f32.mrf.mxu1  ;;  %v9229_v1 = vadd.f32 %v25213_v14, %v23425_v18  ;;  %v12644_v14 = vld [vmem:[#allocation11 + $0x78] sm:$0xff] }
 0x578   :  { %v23664_v29 = vadd.f32 %v9766_v40, %v9224_v20  ;;  %v12660_v40 = vld [vmem:[#allocation11 + $0xf8] sm:$0xff] }
 0x579   :  { %v17632_v11 = vpop.f32.mrf.mxu1  ;;  %15927 = vmatprep.subr.mxu1 %v12660_v40 }
 0x57a   :  { %v23668_v31 = vadd.f32 %v17632_v11, %v9227_v42  ;;  %v9176_v11 = vadd.f32 %v25215_v28, %v23060_v8  ;;  %15928 = vmatpush3.msra.mxu1 %v12644_v14  ;;  %v9178_v8 = vadd.f32 %v25219_v26, %v23078_v35 }
 0x57b   :  { %v9776_v58 = vpop.f32.mrf.mxu1 }
 0x57c   :  { %v23672_v10 = vadd.f32 %v9776_v58, %v9226_v9  ;;  %v25217_v58 = vld [vmem:[#allocation163_spill] sm:$0xff]  ;;  %v17872_v9 = vpop.f32.mrf.mxu0  ;;  %v9805_v43 = vadd.f32 %v23451_v4, %v9176_v11  ;;  %v9807_v4 = vadd.f32 %v23461_v61, %v9178_v8 }
 0x57d   :  { %v17635_v16 = vpop.f32.mrf.mxu1  ;;  %v9231_v27 = vadd.f32 %v25217_v58, %v23437_v36  ;;  %v12659_v9 = vld [vmem:[#allocation11 + $0xf0] sm:$0xff] }
 0x57e   :  { %v23676_v20 = vadd.f32 %v17635_v16, %v9229_v1  ;;  %v25218_v16 = vld [vmem:[#allocation164_spill] sm:$0xff]  ;;  %v11543_v28 = vpop.f32.mrf.mxu0  ;;  %15929 = vmatprep.subr.mxu1 %v12659_v9  ;;  %v25225_v9 = vld [vmem:[#allocation109_spill] sm:$0xff] }
 0x57f   :  { %v9786_v42 = vpop.f32.mrf.mxu1  ;;  %v9230_v6 = vadd.f32 %v25218_v16, %v23441_v5  ;;  %v25222_v5 = vld [vmem:[#allocation85_spill] sm:$0xff] }
 0x580   :  { %v23682_v51 = vadd.f32 %v9786_v42, %v9228_v60  ;;  %v25220_v42 = vld [vmem:[#allocation54_spill] sm:$0xff]  ;;  %v9180_v14 = vadd.f32 %v25222_v5, %v23096_v50  ;;  %v23701_v16 = vld [vmem:[#allocation10] ss:$0 sm:$0xff]  ;;  %v17875_v61 = vpop.f32.mrf.mxu0  ;;  %v25224_v50 = vld [vmem:[#allocation55_spill] sm:$0xff] }
 0x581   :  { %v17638_v18 = vpop.f32.mrf.mxu1  ;;  %v10435_v36 = vadd.f32 %v25220_v42, %v23448_v45 }
 0x582   :  { %25216 = vst [vmem:[#allocation154_spill] sm:$0xff] %v23682_v51  ;;  %v23687_v1 = vadd.f32 %v17638_v18, %v9231_v27  ;;  %v12643_v51 = vld [vmem:[#allocation11 + $0x70] sm:$0xff]  ;;  %v25221_v27 = vld [vmem:[#allocation53_spill] sm:$0xff]  ;;  %v9809_v42 = vadd.f32 %v23471_v63, %v9180_v14 }
 0x583   :  { %v9796_v40 = vpop.f32.mrf.mxu1  ;;  %v10434_v18 = vadd.f32 %v25221_v27, %v9805_v43  ;;  %15930 = vmatpush3.msra.mxu1 %v12643_v51  ;;  %v9182_v51 = vadd.f32 %v25225_v9, %v23114_v19  ;;  %v25233_v9 = vld [vmem:[#allocation29_spill] sm:$0xff] }
 0x584   :  { %v23693_v60 = vadd.f32 %v9796_v40, %v9230_v6  ;;  %v25223_v40 = vld [vmem:[#allocation57_spill] sm:$0xff] }
 0x585   :  { %v17741_v58 = vpop.f32.mrf.mxu1  ;;  %v10437_v26 = vadd.f32 %v25223_v40, %v23458_v37  ;;  %v12658_v40 = vld [vmem:[#allocation11 + $0xe8] sm:$0xff] }
 0x586   :  { %v11064_v11 = vadd.f32 %v17741_v58, %v10435_v36  ;;  %v10436_v58 = vadd.f32 %v25224_v50, %v9807_v4  ;;  %15931 = vmatprep.subr.mxu1 %v12658_v40 }
 0x587   :  { %v10784_v35 = vpop.f32.mrf.mxu1 }
 0x588   :  { %v11693_v6 = vadd.f32 %v23455_v48, %v11064_v11  ;;  %v11063_v45 = vadd.f32 %v10784_v35, %v10434_v18  ;;  %v25226_v11 = vld [vmem:[#allocation56_spill] sm:$0xff]  ;;  %v9811_v35 = vadd.f32 %v23481_v53, %v9182_v51  ;;  %v25232_v53 = vld [vmem:[#allocation95_spill] sm:$0xff] }
 0x589   :  { %v17744_v8 = vpop.f32.mrf.mxu1  ;;  %v10439_v27 = vadd.f32 %v25226_v11, %v23468_v33  ;;  %v25227_v18 = vld [vmem:[#allocation136_spill] sm:$0xff]  ;;  %v25229_v33 = vld [vmem:[#allocation42_spill] sm:$0xff]  ;;  %v10441_v51 = vadd.f32 %v25233_v9, %v25232_v53 }
 0x58a   :  { %v11756_v43 = vadd.f32 %v23701_v16, %v11693_v6  ;;  %v11692_v36 = vadd.f32 %v23465_v7, %v11063_v45  ;;  %v11066_v28 = vadd.f32 %v17744_v8, %v10437_v26  ;;  %v11553_v7 = vpop.f32.mrf.mxu0  ;;  %v25228_v45 = vld [vmem:[#allocation22_spill] sm:$0xff] }
 0x58b   :  { %v10794_v48 = vpop.f32.mrf.mxu1  ;;  %v10438_v4 = vadd.f32 %v25228_v45, %v9809_v42  ;;  %v12642_v26 = vld [vmem:[#allocation11 + $0x68] sm:$0xff]  ;;  %v18146_v45 = vmov 1983009808  }
 0x58c   :  { %v11812_v37 = vmax.f32 %v11756_v43, 0.0  ;;  %v11755_v63 = vadd.f32 %v23701_v16, %v11692_v36  ;;  %v11695_v5 = vadd.f32 %v25227_v18, %v11066_v28  ;;  %v11065_v14 = vadd.f32 %v10794_v48, %v10436_v58  ;;  %v25230_v36 = vld [vmem:[#allocation31_spill] sm:$0xff]  ;;  %v25231_v28 = vld [vmem:[#allocation88_spill] sm:$0xff]  ;;  %15932 = vmatpush3.msra.mxu1 %v12642_v26  ;;  %v25234_v11 = vld [vmem:[#allocation86_spill] sm:$0xff] }
 0x58d   :  { %v17747_v6 = vpop.f32.mrf.mxu1  ;;  %v9184_v50 = vadd.f32 %v25231_v28, %v25230_v36  ;;  %v25235_v18 = vld [vmem:[#allocation74_spill] sm:$0xff]  ;;  %v25236_v7 = vld [vmem:[#allocation27_spill] sm:$0xff]  ;;  %v11945_v40 = vunpack.c.l.s4 %v18146_v45 }
 0x58e   :  { %11869 = vst.msk [vmem:[#allocation3 + $0x8] sm:$0xff] %vm11867_vm4, %v11812_v37  ;;  %v11811_v19 = vmax.f32 %v11755_v63, 0.0  ;;  %v11758_v61 = vadd.f32 %v23701_v16, %v11695_v5  ;;  %v11694_v8 = vadd.f32 %v25229_v33, %v11065_v14  ;;  %v11068_v43 = vadd.f32 %v17747_v6, %v10439_v27  ;;  %v17878_v27 = vpop.f32.mrf.mxu0 }
 0x58f   :  { %v10804_v58 = vpop.f32.mrf.mxu1  ;;  %v9813_v5 = vadd.f32 %v25235_v18, %v9184_v50  ;;  %v10440_v6 = vadd.f32 %v25236_v7, %v9811_v35  ;;  %v11947_v33 = vlaneseq }
 0x590   :  { %11868 = vst.msk [vmem:[#allocation3] sm:$0xff] %vm11867_vm4, %v11811_v19  ;;  %v11814_v42 = vmax.f32 %v11758_v61, 0.0  ;;  %v11757_v48 = vadd.f32 %v23701_v16, %v11694_v8  ;;  %v11697_v37 = vadd.f32 %v25234_v11, %v11068_v43  ;;  %v11067_v63 = vadd.f32 %v10804_v58, %v10438_v4  ;;  %v25237_v43 = vld [vmem:[#allocation138_spill] sm:$0xff]  ;;  %v11563_v9 = vpop.f32.mrf.mxu0 }
 0x591   :  { %v17750_v14 = vpop.f32.mrf.mxu1  ;;  %v25238_v4 = vld [vmem:[#allocation58_spill] sm:$0xff]  ;;  %v11948_v18 = vshrl.u32 %v11947_v33, 7  ;;  %v25244_v9 = vld [vmem:[#allocation61_spill] sm:$0xff] }
 0x592   :  { %11871 = vst.msk [vmem:[#allocation3 + $0x18] sm:$0xff] %vm11867_vm4, %v11814_v42  ;;  %v11813_v26 = vmax.f32 %v11757_v48, 0.0  ;;  %v11760_v19 = vadd.f32 %v23701_v16, %v11697_v37  ;;  %v11696_v61 = vadd.f32 %v23507_v38, %v11067_v63  ;;  %v11070_v8 = vadd.f32 %v17750_v14, %v10441_v51  ;;  %v25239_v48 = vld [vmem:[#allocation59_spill] sm:$0xff]  ;;  %v12657_v38 = vld [vmem:[#allocation11 + $0xe0] sm:$0xff] }
 0x593   :  { %v10814_v36 = vpop.f32.mrf.mxu1  ;;  %v10443_v28 = vadd.f32 %v25238_v4, %v25237_v43  ;;  %v10442_v11 = vadd.f32 %v25239_v48, %v9813_v5  ;;  %v11946_v37 = vunpack.c.0.s8 %v11945_v40  ;;  %v12641_v51 = vld [vmem:[#allocation11 + $0x60] sm:$0xff]  ;;  %15933 = vmatprep.subr.mxu1 %v12657_v38 }
 0x594   :  { %11870 = vst.msk [vmem:[#allocation3 + $0x10] sm:$0xff] %vm11867_vm4, %v11813_v26  ;;  %v11816_v50 = vmax.f32 %v11760_v19, 0.0  ;;  %v11759_v35 = vadd.f32 %v23701_v16, %v11696_v61  ;;  %v11699_v58 = vadd.f32 %v23519_v23, %v11070_v8  ;;  %v11069_v53 = vadd.f32 %v10814_v36, %v10440_v6  ;;  %v25240_v23 = vld [vmem:[#allocation93_spill] sm:$0xff]  ;;  %15934 = vmatpush3.msra.mxu1 %v12641_v51  ;;  %v23747_v19 = vpop.f32.mrf.mxu0  ;;  %v25241_v8 = vld [vmem:[#allocation140_spill] sm:$0xff] }
 0x595   :  { %v17753_v42 = vpop.f32.mrf.mxu1  ;;  %v10445_v6 = vadd.f32 %v25240_v23, %v23498_v12  ;;  %v23751_v4 = vsub.s32 %v11946_v37, %v11948_v18 }
 0x596   :  { %11873 = vst.msk [vmem:[#allocation3 + $0x28] sm:$0xff] %vm11867_vm4, %v11816_v50  ;;  %v11815_v63 = vmax.f32 %v11759_v35, 0.0  ;;  %v11762_v27 = vadd.f32 %v23701_v16, %v11699_v58  ;;  %v11698_v14 = vadd.f32 %v23530_v57, %v11069_v53  ;;  %v11072_v7 = vadd.f32 %v17753_v42, %v10443_v28  ;;  %v25242_v57 = vld [vmem:[#allocation60_spill] sm:$0xff]  ;;  %v11926_v58 = vld [vmem:[#allocation3 + $0x8] sm:$0xf]  ;;  %v25243_v53 = vld [vmem:[#allocation50_spill] sm:$0xff] }
 0x597   :  { %v10824_v45 = vpop.f32.mrf.mxu1  ;;  %v10444_v36 = vadd.f32 %v25242_v57, %v25241_v8  ;;  %v10447_v42 = vadd.f32 %v25244_v9, %v25243_v53 }
 0x598   :  { %11872 = vst.msk [vmem:[#allocation3 + $0x20] sm:$0xff] %vm11867_vm4, %v11815_v63  ;;  %v11818_v5 = vmax.f32 %v11762_v27, 0.0  ;;  %v11761_v40 = vadd.f32 %v23701_v16, %v11698_v14  ;;  %v11701_v33 = vadd.f32 %v23540_v21, %v11072_v7  ;;  %v11071_v26 = vadd.f32 %v10824_v45, %v10442_v11  ;;  %v11925_v63 = vld [vmem:[#allocation3] sm:$0xff]  ;;  %v23761_v27 = vpop.f32.mrf.mxu0  ;;  %v25245_v7 = vld [vmem:[#allocation51_spill] sm:$0xff] }
 0x599   :  { %v17756_v61 = vpop.f32.mrf.mxu1  ;;  %v11928_v43 = vld [vmem:[#allocation3 + $0x18] sm:$0xf]  ;;  %v25246_v45 = vld [vmem:[#allocation32_spill] sm:$0xff] }
 0x59a   :  { %11875 = vst.msk [vmem:[#allocation3 + $0x38] sm:$0xff] %vm11867_vm4, %v11818_v5  ;;  %v11817_v12 = vmax.f32 %v11761_v40, 0.0  ;;  %v11764_v28 = vadd.f32 %v23701_v16, %v11701_v33  ;;  %v11700_v50 = vadd.f32 %v23550_v46, %v11071_v26  ;;  %v11074_v35 = vadd.f32 %v17756_v61, %v10445_v6  ;;  %v12656_v46 = vld [vmem:[#allocation11 + $0xd8] sm:$0xff]  ;;  %v25247_v6 = vld [vmem:[#allocation38_spill] sm:$0xff] }
 0x59b   :  { %v10834_v21 = vpop.f32.mrf.mxu1  ;;  %v11930_v48 = vmax.f32 %v11926_v58, %v11928_v43  ;;  %v11927_v11 = vld [vmem:[#allocation3 + $0x10] sm:$0xff]  ;;  %v10446_v23 = vadd.f32 %v25246_v45, %v25245_v7  ;;  %v10449_v5 = vadd.f32 %v25247_v6, %v23522_v59  ;;  %15935 = vmatprep.subr.mxu1 %v12656_v46  ;;  %v12640_v26 = vld [vmem:[#allocation11 + $0x58] sm:$0xff] }
 0x59c   :  { %11874 = vst.msk [vmem:[#allocation3 + $0x30] sm:$0xff] %vm11867_vm4, %v11817_v12  ;;  %v11820_v37 = vmax.f32 %v11764_v28, 0.0  ;;  %v11763_v18 = vadd.f32 %v23701_v16, %v11700_v50  ;;  %v11703_v38 = vadd.f32 %v23560_v34, %v11074_v35  ;;  %v11073_v51 = vadd.f32 %v10834_v21, %v10444_v36  ;;  %v12692_v61 = vld [vmem:[#allocation11 + $0x1f8] sm:$0xff]  ;;  %15936 = vmatpush3.msra.mxu1 %v12640_v26  ;;  %v25248_v12 = vld [vmem:[#allocation142_spill] sm:$0xff]  ;;  %v25250_v35 = vld [vmem:[#allocation63_spill] sm:$0xff] }
 0x59d   :  { %v17759_v14 = vpop.f32.mrf.mxu1  ;;  %v11935_v40 = vrot.slane %v11930_v48, 1  ;;  %v11929_v33 = vmax.f32 %v11925_v63, %v11927_v11  ;;  %15962 = vmatprep.subr.mxu0 %v12692_v61  ;;  %v25249_v28 = vld [vmem:[#allocation62_spill] sm:$0xff]  ;;  %v10451_v58 = vadd.f32 %v25250_v35, %v23532_v30  ;;  %v25253_v46 = vld [vmem:[#allocation48_spill] sm:$0xff]  ;;  %v11987_v26 = vld [vmem:[#allocation3 + $0x28] sm:$0xf] }
 0x59e   :  { %11877 = vst.msk [vmem:[#allocation3 + $0x48] sm:$0xff] %vm11867_vm4, %v11820_v37  ;;  %v11819_v34 = vmax.f32 %v11763_v18, 0.0  ;;  %v11766_v8 = vadd.f32 %v23701_v16, %v11703_v38  ;;  %v11702_v57 = vadd.f32 %v23568_v0, %v11073_v51  ;;  %v11076_v36 = vadd.f32 %v17759_v14, %v10447_v42  ;;  %v12676_v42 = vld [vmem:[#allocation11 + $0x178] sm:$0xff]  ;;  %v23777_v37 = vpop.f32.mrf.mxu0 }
 0x59f   :  { %v10844_v43 = vpop.f32.mrf.mxu1  ;;  %v10448_v50 = vadd.f32 %v25249_v28, %v25248_v12  ;;  %v11940_v59 = vmax.f32 %v11930_v48, %v11935_v40  ;;  %v11934_v21 = vrot.slane %v11929_v33, 1  ;;  %v25251_v51 = vld [vmem:[#allocation76_spill] sm:$0xff]  ;;  %v25252_v48 = vld [vmem:[#allocation33_spill] sm:$0xff]  ;;  %v23785_v14 = vadd.f32 %v25253_v46, %v23542_v52  ;;  %15963 = vmatpush3.msra.mxu0 %v12676_v42 }
 0x5a0   :  { %11876 = vst.msk [vmem:[#allocation3 + $0x40] sm:$0xff] %vm11867_vm4, %v11819_v34  ;;  %v11822_v53 = vmax.f32 %v11766_v8, 0.0  ;;  %v11765_v9 = vadd.f32 %v23701_v16, %v11702_v57  ;;  %v11705_v11 = vadd.f32 %v23570_v62, %v11076_v36  ;;  %v11075_v0 = vadd.f32 %v10844_v43, %v10446_v23  ;;  %v25254_v8 = vld [vmem:[#allocation80_spill] sm:$0xff] }
 0x5a1   :  { %v17762_v18 = vpop.f32.mrf.mxu1  ;;  %v11980_v38 = vrot.slane %v11940_v59, %v23751_v4  ;;  %v10450_v63 = vadd.f32 %v25252_v48, %v25251_v51  ;;  %v11936_v30 = vsel %vm11933_vm5, %v11934_v21, %v11935_v40  ;;  %v11989_v7 = vld [vmem:[#allocation3 + $0x38] sm:$0xf]  ;;  %11972 = vst.msk [vmem:[#allocation4 + $0x4] sm:$0x1] %vm11941_vm6, %v11940_v59  ;;  %v25255_v57 = vld [vmem:[#allocation64_spill] sm:$0xff]  ;;  %v25256_v59 = vld [vmem:[#allocation78_spill] sm:$0xff] }
 0x5a2   :  { %11879 = vst.msk [vmem:[#allocation3 + $0x58] sm:$0xff] %vm11867_vm4, %v11822_v53  ;;  %v11821_v62 = vmax.f32 %v11765_v9, 0.0  ;;  %v11768_v45 = vadd.f32 %v23701_v16, %v11705_v11  ;;  %v11704_v23 = vadd.f32 %v23572_v25, %v11075_v0  ;;  %v11078_v6 = vadd.f32 %v17762_v18, %v10449_v5  ;;  %v11986_v25 = vld [vmem:[#allocation3 + $0x20] sm:$0xff]  ;;  %v12655_v5 = vld [vmem:[#allocation11 + $0xd0] sm:$0xff]  ;;  %v23798_v9 = vpop.f32.mrf.mxu0 }
 0x5a3   :  { %v10854_v61 = vpop.f32.mrf.mxu1  ;;  %v11981_v34 = vcombine.high %v11980_v38, %v11980_v38  ;;  %v11939_v40 = vmax.f32 %v11929_v33, %v11936_v30  ;;  %v23793_v52 = vadd.f32 %v25255_v57, %v25254_v8  ;;  %v11988_v36 = vld [vmem:[#allocation3 + $0x30] sm:$0xff]  ;;  %v11991_v43 = vmax.f32 %v11987_v26, %v11989_v7  ;;  %v12639_v53 = vld [vmem:[#allocation11 + $0x50] sm:$0xff]  ;;  %15937 = vmatprep.subr.mxu1 %v12655_v5  ;;  %v25257_v30 = vld [vmem:[#allocation81_spill] sm:$0xff] }
 0x5a4   :  { %11878 = vst.msk [vmem:[#allocation3 + $0x50] sm:$0xff] %vm11867_vm4, %v11821_v62  ;;  %v11824_v12 = vmax.f32 %v11768_v45, 0.0  ;;  %v11767_v28 = vadd.f32 %v23701_v16, %v11704_v23  ;;  %v11707_v35 = vadd.f32 %v25256_v59, %v11078_v6  ;;  %v11077_v21 = vadd.f32 %v10854_v61, %v10448_v50  ;;  %v12691_v38 = vld [vmem:[#allocation11 + $0x1f0] sm:$0xff]  ;;  %15938 = vmatpush3.msra.mxu1 %v12639_v53  ;;  %v25262_v5 = vld [vmem:[#allocation45_spill] sm:$0xff]  ;;  %v25263_v53 = vld [vmem:[#allocation34_spill] sm:$0xff] }
 0x5a5   :  { %11982 = vrot.lane.b32.xlu1 %v11981_v34, %s18147_s3  ;;  %v17765_v33 = vpop.f32.mrf.mxu1  ;;  %v11950_v11 = vrot.slane %v11939_v40, %v23751_v4  ;;  %v11957_v0 = vcombine.high %v11939_v40, %v11939_v40  ;;  %v11990_v42 = vmax.f32 %v11986_v25, %v11988_v36  ;;  %v11995_v18 = vrot.slane %v11991_v43, 1  ;;  %11942 = vst.msk [vmem:[#allocation4] sm:$0x1] %vm11941_vm6, %v11939_v40  ;;  %v12675_v51 = vld [vmem:[#allocation11 + $0x170] sm:$0xff]  ;;  %v12045_v57 = vld [vmem:[#allocation3 + $0x48] sm:$0xf] }
 0x5a6   :  { %11881 = vst.msk [vmem:[#allocation3 + $0x68] sm:$0xff] %vm11867_vm4, %v11824_v12  ;;  %v11823_v50 = vmax.f32 %v11767_v28, 0.0  ;;  %v11770_v48 = vadd.f32 %v23701_v16, %v11707_v35  ;;  %v11706_v46 = vadd.f32 %v25257_v30, %v11077_v21  ;;  %v11080_v7 = vadd.f32 %v17765_v33, %v10451_v58  ;;  %15964 = vmatprep.subr.mxu0 %v12691_v38  ;;  %v23812_v58 = vpop.f32.mrf.mxu0  ;;  %v25258_v12 = vld [vmem:[#allocation144_spill] sm:$0xff]  ;;  %v25259_v28 = vld [vmem:[#allocation65_spill] sm:$0xff]  ;;  %v12674_v30 = vld [vmem:[#allocation11 + $0x168] sm:$0xff] }
 0x5a7   :  { %v10864_v62 = vpop.f32.mrf.mxu1  ;;  %v11951_v45 = vcombine.high %v11950_v11, %v11950_v11  ;;  %v11964_v23 = vrot.slane %v11957_v0, %v23751_v4  ;;  %v11994_v6 = vrot.slane %v11990_v42, 1  ;;  %v23807_v26 = vmax.f32 %v11991_v43, %v11995_v18  ;;  %15965 = vmatpush3.msra.mxu0 %v12675_v51  ;;  %v25260_v43 = vld [vmem:[#allocation44_spill] sm:$0xff]  ;;  %v12638_v11 = vld [vmem:[#allocation11 + $0x48] sm:$0xff] }
 0x5a8   :  { %11880 = vst.msk [vmem:[#allocation3 + $0x60] sm:$0xff] %vm11867_vm4, %v11823_v50  ;;  %v11826_v61 = vmax.f32 %v11770_v48, 0.0  ;;  %v11769_v34 = vadd.f32 %v23701_v16, %v11706_v46  ;;  %v11709_v40 = vadd.f32 %v23588_v47, %v11080_v7  ;;  %v11079_v8 = vadd.f32 %v10864_v62, %v10450_v63  ;;  %v25261_v35 = vld [vmem:[#allocation40_spill] sm:$0xff]  ;;  %v12654_v63 = vld [vmem:[#allocation11 + $0xc8] sm:$0xff]  ;;  %v12653_v46 = vld [vmem:[#allocation11 + $0xc0] sm:$0xff] }
 0x5a9   :  { %11952 = vrot.lane.b32.xlu0 %v11951_v45, %s18147_s3  ;;  %v17768_v36 = vpop.f32.mrf.mxu1  ;;  %v10455_v59 = vadd.f32 %v25259_v28, %v25258_v12  ;;  %v23819_v21 = vadd.f32 %v25261_v35, %v25260_v43  ;;  %v11996_v25 = vsel %vm11933_vm5, %v11994_v6, %v11995_v18  ;;  %v23824_v33 = vadd.f32 %v25263_v53, %v25262_v5  ;;  %v12047_v47 = vld [vmem:[#allocation3 + $0x58] sm:$0xf]  ;;  %v12044_v50 = vld [vmem:[#allocation3 + $0x40] sm:$0xff]  ;;  %v12690_v48 = vld [vmem:[#allocation11 + $0x1e8] sm:$0xff]  ;;  %v23837_v28 = vpop.f32.mrf.mxu0 }
 0x5aa   :  { %11966 = vst.msk [vmem:[#allocation4 + $0x2] sm:$0x1] %vm11941_vm6, %v11964_v23  ;;  %12030 = vst.msk [vmem:[#allocation4 + $0xa] sm:$0x1] %vm11941_vm6, %v23807_v26  ;;  %v11825_v0 = vmax.f32 %v11769_v34, 0.0  ;;  %v11772_v38 = vadd.f32 %v23701_v16, %v11709_v40  ;;  %v11708_v51 = vadd.f32 %v23598_v15, %v11079_v8  ;;  %v11082_v18 = vadd.f32 %v17768_v36, %v23785_v14  ;;  %v12689_v34 = vld [vmem:[#allocation11 + $0x1e0] sm:$0xff] }
 0x5ab   :  { %11883 = vst.msk [vmem:[#allocation3 + $0x78] sm:$0xff] %vm11867_vm4, %v11826_v61  ;;  %15939 = vmatprep.subr.mxu1 %v12654_v63  ;;  %v10874_v7 = vpop.f32.mrf.mxu1  ;;  %v11967_v62 = vcombine.high %v11964_v23, %v11964_v23  ;;  %v11999_v45 = vmax.f32 %v11990_v42, %v11996_v25  ;;  %v12046_v6 = vld [vmem:[#allocation3 + $0x50] sm:$0xff]  ;;  %v12049_v12 = vmax.f32 %v12045_v57, %v12047_v47  ;;  %v12637_v61 = vld [vmem:[#allocation11 + $0x40] sm:$0xff]  ;;  %v12652_v23 = vld [vmem:[#allocation11 + $0xb8] sm:$0xff] }
 0x5ac   :  { %15940 = vmatpush3.msra.mxu1 %v12638_v11  ;;  %15966 = vmatprep.subr.mxu0 %v12690_v48  ;;  %11882 = vst.msk [vmem:[#allocation3 + $0x70] sm:$0xff] %vm11867_vm4, %v11825_v0  ;;  %v11828_v40 = vmax.f32 %v11772_v38, 0.0  ;;  %v11771_v15 = vadd.f32 %v23701_v16, %v11708_v51  ;;  %v11711_v14 = vadd.f32 %v23608_v3, %v11082_v18  ;;  %v12673_v36 = vld [vmem:[#allocation11 + $0x160] sm:$0xff]  ;;  %v12636_v42 = vld [vmem:[#allocation11 + $0x38] sm:$0xff]  ;;  %v12651_v0 = vld [vmem:[#allocation11 + $0xb0] sm:$0xff] }
 0x5ad   :  { %v11081_v8 = vadd.f32 %v10874_v7, %v23793_v52  ;;  %15967 = vmatpush3.msra.mxu0 %v12674_v30  ;;  %15941 = vmatprep.subr.mxu1 %v12653_v46  ;;  %v17771_v57 = vpop.f32.mrf.mxu1  ;;  %v12009_v43 = vrot.slane %v11999_v45, %v23751_v4  ;;  %v12015_v35 = vcombine.high %v11999_v45, %v11999_v45  ;;  %v12053_v5 = vrot.slane %v12049_v12, 1  ;;  %v12688_v3 = vld [vmem:[#allocation11 + $0x1d8] sm:$0xff]  ;;  %v12635_v30 = vld [vmem:[#allocation11 + $0x30] sm:$0xff] }
 0x5ae   :  { %11968 = vrot.lane.b32.xlu0 %v11967_v62, %s18147_s3  ;;  %v12048_v25 = vmax.f32 %v12044_v50, %v12046_v6  ;;  %12001 = vst.msk [vmem:[#allocation4 + $0x6] sm:$0x1] %vm11941_vm6, %v11999_v45  ;;  %15942 = vmatpush3.msra.mxu1 %v12637_v61  ;;  %v11827_v52 = vmax.f32 %v11771_v15, 0.0  ;;  %v11774_v53 = vadd.f32 %v23701_v16, %v11711_v14  ;;  %v12672_v11 = vld [vmem:[#allocation11 + $0x158] sm:$0xff]  ;;  %v12687_v46 = vld [vmem:[#allocation11 + $0x1d0] sm:$0xff]  ;;  %v12650_v6 = vld [vmem:[#allocation11 + $0xa8] sm:$0xff]  ;;  %v23854_v61 = vpop.f32.mrf.mxu0 }
 0x5af   :  { %11885 = vst.msk [vmem:[#allocation3 + $0x88] sm:$0xff] %vm11867_vm4, %v11828_v40  ;;  %v11710_v47 = vadd.f32 %v23618_v32, %v11081_v8  ;;  %v11084_v63 = vadd.f32 %v17771_v57, %v10455_v59  ;;  %15968 = vmatprep.subr.mxu0 %v12689_v34  ;;  %15943 = vmatprep.subr.mxu1 %v12652_v23  ;;  %v10884_v38 = vpop.f32.mrf.mxu1  ;;  %v12671_v45 = vld [vmem:[#allocation11 + $0x150] sm:$0xff]  ;;  %v25264_v34 = vld [vmem:[#allocation146_spill] sm:$0xff] }
 0x5b0   :  { %v12010_v51 = vcombine.high %v12009_v43, %v12009_v43  ;;  %v23846_v18 = vrot.slane %v12015_v35, %v23751_v4  ;;  %v12052_v50 = vrot.slane %v12048_v25, 1  ;;  %v23848_v48 = vmax.f32 %v12049_v12, %v12053_v5  ;;  %15969 = vmatpush3.msra.mxu0 %v12673_v36  ;;  %15944 = vmatpush3.msra.mxu1 %v12636_v42  ;;  %v25265_v40 = vld [vmem:[#allocation67_spill] sm:$0xff]  ;;  %v12103_v43 = vld [vmem:[#allocation3 + $0x68] sm:$0xf] }
 0x5b1   :  { %11884 = vst.msk [vmem:[#allocation3 + $0x80] sm:$0xff] %vm11867_vm4, %v11827_v52  ;;  %v11830_v32 = vmax.f32 %v11774_v53, 0.0  ;;  %v11773_v59 = vadd.f32 %v23701_v16, %v11710_v47  ;;  %v11713_v7 = vadd.f32 %v23628_v39, %v11084_v63  ;;  %v11083_v62 = vadd.f32 %v10884_v38, %v23819_v21  ;;  %15970 = vmatprep.subr.mxu0 %v12688_v3  ;;  %v17774_v12 = vpop.f32.mrf.mxu1  ;;  %v12634_v39 = vld [vmem:[#allocation11 + $0x28] sm:$0xff]  ;;  %v12633_v63 = vld [vmem:[#allocation11 + $0x20] sm:$0xff] }
 0x5b2   :  { %15945 = vmatprep.subr.mxu1 %v12651_v0  ;;  %12011 = vrot.lane.b32.xlu1 %v12010_v51, %s18147_s3  ;;  %v10456_v15 = vadd.f32 %v25265_v40, %v25264_v34  ;;  %v12054_v14 = vsel %vm11933_vm5, %v12052_v50, %v12053_v5  ;;  %v12105_v8 = vld [vmem:[#allocation3 + $0x78] sm:$0xf]  ;;  %12024 = vst.msk [vmem:[#allocation4 + $0x8] sm:$0x1] %vm11941_vm6, %v23846_v18  ;;  %12088 = vst.msk [vmem:[#allocation4 + $0x10] sm:$0x1] %vm11941_vm6, %v23848_v48 }
 0x5b3   :  { %15971 = vmatpush3.msra.mxu0 %v12672_v11  ;;  %v12686_v21 = vld [vmem:[#allocation11 + $0x1c8] sm:$0xff]  ;;  %11887 = vst.msk [vmem:[#allocation3 + $0x98] sm:$0xff] %vm11867_vm4, %v11830_v32  ;;  %v11829_v36 = vmax.f32 %v11773_v59, 0.0  ;;  %v11776_v23 = vadd.f32 %v23701_v16, %v11713_v7  ;;  %v11712_v42 = vadd.f32 %v23638_v17, %v11083_v62  ;;  %v11086_v57 = vadd.f32 %v17774_v12, %v23824_v33  ;;  %v12649_v5 = vld [vmem:[#allocation11 + $0xa0] sm:$0xff]  ;;  %v10894_v3 = vpop.f32.mrf.mxu1  ;;  %v12102_v51 = vld [vmem:[#allocation3 + $0x60] sm:$0xff] }
 0x5b4   :  { %15946 = vmatpush3.msra.mxu1 %v12635_v30  ;;  %15972 = vmatprep.subr.mxu0 %v12687_v46  ;;  %v12670_v35 = vld [vmem:[#allocation11 + $0x148] sm:$0xff]  ;;  %v23868_v52 = vmax.f32 %v12048_v25, %v12054_v14  ;;  %v12107_v47 = vmax.f32 %v12103_v43, %v12105_v8  ;;  %v12685_v11 = vld [vmem:[#allocation11 + $0x1c0] sm:$0xff]  ;;  %v11085_v38 = vadd.f32 %v10894_v3, %v10456_v15  ;;  %v12648_v25 = vld [vmem:[#allocation11 + $0x98] sm:$0xff]  ;;  %v23873_v30 = vpop.f32.mrf.mxu0 }
 0x5b5   :  { %v12104_v53 = vld [vmem:[#allocation3 + $0x70] sm:$0xff]  ;;  %15973 = vmatpush3.msra.mxu0 %v12671_v45  ;;  %15947 = vmatprep.subr.mxu1 %v12650_v6  ;;  %11886 = vst.msk [vmem:[#allocation3 + $0x90] sm:$0xff] %vm11867_vm4, %v11829_v36  ;;  %v11832_v0 = vmax.f32 %v11776_v23, 0.0  ;;  %v11775_v17 = vadd.f32 %v23701_v16, %v11712_v42  ;;  %v11715_v33 = vadd.f32 %v23648_v49, %v11086_v57  ;;  %v12669_v50 = vld [vmem:[#allocation11 + $0x140] sm:$0xff]  ;;  %v17777_v46 = vpop.f32.mrf.mxu1  ;;  %v12632_v49 = vld [vmem:[#allocation11 + $0x18] sm:$0xff] }
 0x5b6   :  { %15948 = vmatpush3.msra.mxu1 %v12634_v39  ;;  %15974 = vmatprep.subr.mxu0 %v12686_v21  ;;  %v12073_v32 = vcombine.high %v23868_v52, %v23868_v52  ;;  %v12106_v59 = vmax.f32 %v12102_v51, %v12104_v53  ;;  %v12111_v7 = vrot.slane %v12107_v47, 1  ;;  %12059 = vst.msk [vmem:[#allocation4 + $0xc] sm:$0x1] %vm11941_vm6, %v23868_v52  ;;  %v12684_v62 = vld [vmem:[#allocation11 + $0x1b8] sm:$0xff]  ;;  %v12161_v43 = vld [vmem:[#allocation3 + $0x88] sm:$0xf] }
 0x5b7   :  { %15975 = vmatpush3.msra.mxu0 %v12670_v35  ;;  %15949 = vmatprep.subr.mxu1 %v12649_v5  ;;  %11889 = vst.msk [vmem:[#allocation3 + $0xa8] sm:$0xff] %vm11867_vm4, %v11832_v0  ;;  %v11831_v45 = vmax.f32 %v11775_v17, 0.0  ;;  %v11778_v6 = vadd.f32 %v23701_v16, %v11715_v33  ;;  %v11714_v12 = vadd.f32 %v23658_v44, %v11085_v38  ;;  %v12668_v34 = vld [vmem:[#allocation11 + $0x138] sm:$0xff]  ;;  %v10904_v40 = vpop.f32.mrf.mxu1  ;;  %v23889_v44 = vpop.f32.mrf.mxu0 }
 0x5b8   :  { %15950 = vmatpush3.msra.mxu1 %v12633_v63  ;;  %15976 = vmatprep.subr.mxu0 %v12685_v11  ;;  %v23883_v15 = vrot.slane %v12073_v32, %v23751_v4  ;;  %v12110_v14 = vrot.slane %v12106_v59, 1  ;;  %v23885_v8 = vmax.f32 %v12107_v47, %v12111_v7  ;;  %v12160_v47 = vld [vmem:[#allocation3 + $0x80] sm:$0xff] }
 0x5b9   :  { %15977 = vmatpush3.msra.mxu0 %v12669_v50  ;;  %15951 = vmatprep.subr.mxu1 %v12648_v25  ;;  %11888 = vst.msk [vmem:[#allocation3 + $0xa0] sm:$0xff] %vm11867_vm4, %v11831_v45  ;;  %v11834_v39 = vmax.f32 %v11778_v6, 0.0  ;;  %v11777_v21 = vadd.f32 %v23701_v16, %v11714_v12  ;;  %v17780_v36 = vpop.f32.mrf.mxu1  ;;  %v23900_v63 = vpop.f32.mrf.mxu0  ;;  %v25266_v45 = vld [vmem:[#allocation49_spill] sm:$0xff] }
 0x5ba   :  { %15952 = vmatpush3.msra.mxu1 %v12632_v49  ;;  %15978 = vmatprep.subr.mxu0 %v12684_v62  ;;  %v12112_v23 = vsel %vm11933_vm5, %v12110_v14, %v12111_v7  ;;  %v12163_v42 = vld [vmem:[#allocation3 + $0x98] sm:$0xf]  ;;  %12082 = vst.msk [vmem:[#allocation4 + $0xe] sm:$0x1] %vm11941_vm6, %v23883_v15  ;;  %12146 = vst.msk [vmem:[#allocation4 + $0x16] sm:$0x1] %vm11941_vm6, %v23885_v8  ;;  %v10467_v6 = vadd.f32 %v25266_v45, %v23580_v56 }
 0x5bb   :  { %15979 = vmatpush3.msra.mxu0 %v12668_v34  ;;  %11891 = vst.msk [vmem:[#allocation3 + $0xb8] sm:$0xff] %vm11867_vm4, %v11834_v39  ;;  %v11833_v57 = vmax.f32 %v11777_v21, 0.0  ;;  %v10914_v35 = vpop.f32.mrf.mxu1  ;;  %v23897_v5 = vmax.f32 %v12106_v59, %v12112_v23  ;;  %v12165_v53 = vmax.f32 %v12161_v43, %v12163_v42  ;;  %v23911_v46 = vpop.f32.mrf.mxu0  ;;  %v25267_v36 = vld [vmem:[#allocation148_spill] sm:$0xff]  ;;  %v25268_v23 = vld [vmem:[#allocation66_spill] sm:$0xff] }
 0x5bc   :  { %v12162_v3 = vld [vmem:[#allocation3 + $0x90] sm:$0xff]  ;;  %v10466_v42 = vadd.f32 %v25268_v23, %v25267_v36 }
 0x5bd   :  { %11890 = vst.msk [vmem:[#allocation3 + $0xb0] sm:$0xff] %vm11867_vm4, %v11833_v57  ;;  %v17783_v11 = vpop.f32.mrf.mxu1  ;;  %v12131_v0 = vcombine.high %v23897_v5, %v23897_v5  ;;  %v12164_v17 = vmax.f32 %v12160_v47, %v12162_v3  ;;  %v12169_v33 = vrot.slane %v12165_v53, 1  ;;  %v23922_v39 = vpop.f32.mrf.mxu0 }
 0x5be   :  { %12117 = vst.msk [vmem:[#allocation4 + $0x12] sm:$0x1] %vm11941_vm6, %v23897_v5  ;;  %v12219_v49 = vld [vmem:[#allocation3 + $0xa8] sm:$0xf] }
 0x5bf   :  { %v10924_v38 = vpop.f32.mrf.mxu1  ;;  %v23907_v51 = vrot.slane %v12131_v0, %v23751_v4  ;;  %v12168_v50 = vrot.slane %v12164_v17, 1  ;;  %v23909_v25 = vmax.f32 %v12165_v53, %v12169_v33  ;;  %v25269_v53 = vld [vmem:[#allocation69_spill] sm:$0xff] }
 0x5c0   :  { %v12218_v14 = vld [vmem:[#allocation3 + $0xa0] sm:$0xff]  ;;  %v10469_v47 = vadd.f32 %v25269_v53, %v23590_v13 }
 0x5c1   :  { %v17786_v32 = vpop.f32.mrf.mxu1  ;;  %v12170_v59 = vsel %vm11933_vm5, %v12168_v50, %v12169_v33  ;;  %12140 = vst.msk [vmem:[#allocation4 + $0x14] sm:$0x1] %vm11941_vm6, %v23907_v51  ;;  %12204 = vst.msk [vmem:[#allocation4 + $0x1c] sm:$0x1] %vm11941_vm6, %v23909_v25  ;;  %v23938_v50 = vpop.f32.mrf.mxu0 }
 0x5c2   :  { %v12221_v7 = vld [vmem:[#allocation3 + $0xb8] sm:$0xf]  ;;  %v23920_v12 = vmax.f32 %v12164_v17, %v12170_v59  ;;  %v25270_v59 = vld [vmem:[#allocation46_spill] sm:$0xff] }
 0x5c3   :  { %v10934_v62 = vpop.f32.mrf.mxu1  ;;  %v12223_v40 = vmax.f32 %v12219_v49, %v12221_v7  ;;  %v25271_v7 = vld [vmem:[#allocation36_spill] sm:$0xff] }
 0x5c4   :  { %v12220_v34 = vld [vmem:[#allocation3 + $0xb0] sm:$0xff]  ;;  %v12189_v57 = vcombine.high %v23920_v12, %v23920_v12  ;;  %12175 = vst.msk [vmem:[#allocation4 + $0x18] sm:$0x1] %vm11941_vm6, %v23920_v12  ;;  %v10468_v49 = vadd.f32 %v25271_v7, %v25270_v59 }
 0x5c5   :  { %v17789_v21 = vpop.f32.mrf.mxu1  ;;  %v12222_v43 = vmax.f32 %v12218_v14, %v12220_v34  ;;  %v12227_v35 = vrot.slane %v12223_v40, 1  ;;  %v25272_v34 = vld [vmem:[#allocation35_spill] sm:$0xff] }
 0x5c6   :  { %v11096_v56 = vadd.f32 %v17789_v21, %v10467_v6  ;;  %v23933_v11 = vrot.slane %v12189_v57, %v23751_v4  ;;  %v23955_v57 = vpop.f32.mrf.mxu0 }
 0x5c7   :  { %v10944_v3 = vpop.f32.mrf.mxu1  ;;  %v12226_v0 = vrot.slane %v12222_v43, 1  ;;  %v23935_v17 = vmax.f32 %v12223_v40, %v12227_v35  ;;  %v10471_v40 = vadd.f32 %v25272_v34, %v23600_v55 }
 0x5c8   :  { %v11725_v33 = vadd.f32 %v23747_v19, %v11096_v56  ;;  %v11095_v38 = vadd.f32 %v10944_v3, %v10466_v42  ;;  %12198 = vst.msk [vmem:[#allocation4 + $0x1a] sm:$0x1] %vm11941_vm6, %v23933_v11  ;;  %v25273_v56 = vld [vmem:[#allocation47_spill] sm:$0xff]  ;;  %v25274_v3 = vld [vmem:[#allocation108_spill] sm:$0xff] }
 0x5c9   :  { %v17792_v32 = vpop.f32.mrf.mxu1  ;;  %v12228_v13 = vsel %vm11933_vm5, %v12226_v0, %v12227_v35  ;;  %12262 = vst.msk [vmem:[#allocation4 + $0x22] sm:$0x1] %vm11941_vm6, %v23935_v17  ;;  %v10470_v53 = vadd.f32 %v25274_v3, %v25273_v56 }
 0x5ca   :  { %v11788_v62 = vadd.f32 %v23701_v16, %v11725_v33  ;;  %v11724_v45 = vadd.f32 %v23761_v27, %v11095_v38  ;;  %v11098_v19 = vadd.f32 %v17792_v32, %v10469_v47  ;;  %v23951_v14 = vmax.f32 %v12222_v43, %v12228_v13  ;;  %v25275_v33 = vld [vmem:[#allocation111_spill] sm:$0xff] }
 0x5cb   :  { %v10954_v6 = vpop.f32.mrf.mxu1  ;;  %v10473_v38 = vadd.f32 %v25275_v33, %v23610_v2 }
 0x5cc   :  { %v11844_v21 = vmax.f32 %v11788_v62, 0.0  ;;  %v11787_v36 = vadd.f32 %v23701_v16, %v11724_v45  ;;  %v11727_v23 = vadd.f32 %v23777_v37, %v11098_v19  ;;  %v11097_v42 = vadd.f32 %v10954_v6, %v10468_v49  ;;  %12233 = vst.msk [vmem:[#allocation4 + $0x1e] sm:$0x1] %vm11941_vm6, %v23951_v14  ;;  %v23974_v62 = vpop.f32.mrf.mxu0  ;;  %v25277_v19 = vld [vmem:[#allocation68_spill] sm:$0xff] }
 0x5cd   :  { %v17795_v35 = vpop.f32.mrf.mxu1  ;;  %v12247_v55 = vcombine.high %v23951_v14, %v23951_v14 }
 0x5ce   :  { %11901 = vst.msk [vmem:[#allocation3 + $0x108] sm:$0xff] %vm11867_vm4, %v11844_v21  ;;  %v11843_v27 = vmax.f32 %v11787_v36, 0.0  ;;  %v11790_v43 = vadd.f32 %v23701_v16, %v11727_v23  ;;  %v11726_v37 = vadd.f32 %v23798_v9, %v11097_v42  ;;  %v11100_v47 = vadd.f32 %v17795_v35, %v10471_v40  ;;  %v25276_v9 = vld [vmem:[#allocation150_spill] sm:$0xff] }
 0x5cf   :  { %v10964_v0 = vpop.f32.mrf.mxu1  ;;  %v23969_v32 = vrot.slane %v12247_v55, %v23751_v4  ;;  %v10472_v6 = vadd.f32 %v25277_v19, %v25276_v9  ;;  %v25282_v19 = vld [vmem:[#allocation91_spill] sm:$0xff] }
 0x5d0   :  { %11900 = vst.msk [vmem:[#allocation3 + $0x100] sm:$0xff] %vm11867_vm4, %v11843_v27  ;;  %v11846_v59 = vmax.f32 %v11790_v43, 0.0  ;;  %v11789_v7 = vadd.f32 %v23701_v16, %v11726_v37  ;;  %v11729_v49 = vadd.f32 %v23812_v58, %v11100_v47  ;;  %v11099_v13 = vadd.f32 %v10964_v0, %v10470_v53  ;;  %v25278_v58 = vld [vmem:[#allocation71_spill] sm:$0xff]  ;;  %v23988_v53 = vpop.f32.mrf.mxu0 }
 0x5d1   :  { %v17798_v45 = vpop.f32.mrf.mxu1  ;;  %12256 = vst.msk [vmem:[#allocation4 + $0x20] sm:$0x1] %vm11941_vm6, %v23969_v32  ;;  %v10475_v23 = vadd.f32 %v25278_v58, %v23620_v22  ;;  %v25279_v27 = vld [vmem:[#allocation79_spill] sm:$0xff] }
 0x5d2   :  { %11903 = vst.msk [vmem:[#allocation3 + $0x118] sm:$0xff] %vm11867_vm4, %v11846_v59  ;;  %v11845_v2 = vmax.f32 %v11789_v7, 0.0  ;;  %v11792_v34 = vadd.f32 %v23701_v16, %v11729_v49  ;;  %v11728_v40 = vadd.f32 %v23837_v28, %v11099_v13  ;;  %v11102_v21 = vadd.f32 %v17798_v45, %v10473_v38  ;;  %v25280_v43 = vld [vmem:[#allocation39_spill] sm:$0xff]  ;;  %v25281_v38 = vld [vmem:[#allocation37_spill] sm:$0xff]  ;;  %v24000_v45 = vpop.f32.mrf.mxu0 }
 0x5d3   :  { %v10974_v36 = vpop.f32.mrf.mxu1  ;;  %v10474_v37 = vadd.f32 %v25280_v43, %v25279_v27  ;;  %v10477_v59 = vadd.f32 %v25281_v38, %v23630_v41  ;;  %v25290_v43 = vld [vmem:[#allocation130_spill] sm:$0xff] }
 0x5d4   :  { %11902 = vst.msk [vmem:[#allocation3 + $0x110] sm:$0xff] %vm11867_vm4, %v11845_v2  ;;  %v11848_v42 = vmax.f32 %v11792_v34, 0.0  ;;  %v11791_v35 = vadd.f32 %v23701_v16, %v11728_v40  ;;  %v11731_v56 = vadd.f32 %v23854_v61, %v11102_v21  ;;  %v11101_v3 = vadd.f32 %v10974_v36, %v10472_v6  ;;  %v25283_v6 = vld [vmem:[#allocation73_spill] sm:$0xff]  ;;  %v25285_v40 = vld [vmem:[#allocation152_spill] sm:$0xff]  ;;  %v25286_v21 = vld [vmem:[#allocation114_spill] sm:$0xff] }
 0x5d5   :  { %v17801_v55 = vpop.f32.mrf.mxu1  ;;  %v10476_v2 = vadd.f32 %v25283_v6, %v25282_v19  ;;  %v10478_v41 = vadd.f32 %v25286_v21, %v25285_v40  ;;  %v25292_v19 = vld [vmem:[#allocation75_spill] sm:$0xff]  ;;  %v25293_v40 = vld [vmem:[#allocation132_spill] sm:$0xff] }
 0x5d6   :  { %11905 = vst.msk [vmem:[#allocation3 + $0x128] sm:$0xff] %vm11867_vm4, %v11848_v42  ;;  %v11847_v28 = vmax.f32 %v11791_v35, 0.0  ;;  %v11794_v47 = vadd.f32 %v23701_v16, %v11731_v56  ;;  %v11730_v22 = vadd.f32 %v23873_v30, %v11101_v3  ;;  %v11104_v0 = vadd.f32 %v17801_v55, %v10475_v23  ;;  %v25284_v30 = vld [vmem:[#allocation128_spill] sm:$0xff]  ;;  %v12277_v35 = vld [vmem:[#allocation3 + $0x108] sm:$0xf]  ;;  %v25288_v55 = vld [vmem:[#allocation43_spill] sm:$0xff] }
 0x5d7   :  { %v10984_v33 = vpop.f32.mrf.mxu1  ;;  %v10479_v34 = vadd.f32 %v25284_v30, %v23640_v24  ;;  %v25287_v3 = vld [vmem:[#allocation96_spill] sm:$0xff]  ;;  %v25289_v24 = vld [vmem:[#allocation97_spill] sm:$0xff]  ;;  %v24034_v21 = vadd.f32 %v25293_v40, %v23668_v31 }
 0x5d8   :  { %11904 = vst.msk [vmem:[#allocation3 + $0x120] sm:$0xff] %vm11867_vm4, %v11847_v28  ;;  %v11850_v61 = vmax.f32 %v11794_v47, 0.0  ;;  %v11793_v7 = vadd.f32 %v23701_v16, %v11730_v22  ;;  %v11733_v49 = vadd.f32 %v23889_v44, %v11104_v0  ;;  %v11103_v13 = vadd.f32 %v10984_v33, %v10474_v37  ;;  %v24009_v16 = vld [vmem:[#allocation10] ss:$0 sm:$0xff]  ;;  %v25291_v28 = vld [vmem:[#allocation70_spill] sm:$0xff] }
 0x5d9   :  { %v17804_v9 = vpop.f32.mrf.mxu1  ;;  %v12279_v36 = vld [vmem:[#allocation3 + $0x118] sm:$0xf]  ;;  %v10481_v27 = vadd.f32 %v25288_v55, %v25287_v3  ;;  %v24017_v37 = vadd.f32 %v25290_v43, %v25289_v24  ;;  %v24021_v47 = vadd.f32 %v25291_v28, %v23660_v54  ;;  %v24030_v54 = vadd.f32 %v25292_v19, %v23664_v29  ;;  %v25295_v3 = vld [vmem:[#allocation41_spill] sm:$0xff]  ;;  %v12646_v28 = vld [vmem:[#allocation11 + $0x88] sm:$0xff] }
 0x5da   :  { %11907 = vst.msk [vmem:[#allocation3 + $0x138] sm:$0xff] %vm11867_vm4, %v11850_v61  ;;  %v11849_v58 = vmax.f32 %v11793_v7, 0.0  ;;  %v11796_v44 = vadd.f32 %v24009_v16, %v11733_v49  ;;  %v11732_v23 = vadd.f32 %v23900_v63, %v11103_v13  ;;  %v11106_v42 = vadd.f32 %v17804_v9, %v10477_v59  ;;  %v12276_v61 = vld [vmem:[#allocation3 + $0x100] sm:$0xff]  ;;  %v12647_v7 = vld [vmem:[#allocation11 + $0x90] sm:$0xff]  ;;  %v24026_v13 = vpop.f32.mrf.mxu0 }
 0x5db   :  { %v10994_v56 = vpop.f32.mrf.mxu1  ;;  %v12278_v22 = vld [vmem:[#allocation3 + $0x110] sm:$0xff]  ;;  %v12281_v0 = vmax.f32 %v12277_v35, %v12279_v36  ;;  %v12631_v49 = vld [vmem:[#allocation11 + $0x10] sm:$0xff]  ;;  %15953 = vmatprep.subr.mxu1 %v12647_v7  ;;  %v24045_v55 = vadd.f32 %v25295_v3, %v23676_v20 }
 0x5dc   :  { %11906 = vst.msk [vmem:[#allocation3 + $0x130] sm:$0xff] %vm11867_vm4, %v11849_v58  ;;  %v11852_v33 = vmax.f32 %v11796_v44, 0.0  ;;  %v11795_v63 = vadd.f32 %v24009_v16, %v11732_v23  ;;  %v11735_v38 = vadd.f32 %v23911_v46, %v11106_v42  ;;  %v11105_v59 = vadd.f32 %v10994_v56, %v10476_v2  ;;  %15954 = vmatpush3.msra.mxu1 %v12631_v49  ;;  %v12683_v44 = vld [vmem:[#allocation11 + $0x1b0] sm:$0xff]  ;;  %v25294_v35 = vld [vmem:[#allocation94_spill] sm:$0xff] }
 0x5dd   :  { %v17807_v9 = vpop.f32.mrf.mxu1  ;;  %v12280_v6 = vmax.f32 %v12276_v61, %v12278_v22  ;;  %v12285_v30 = vrot.slane %v12281_v0, 1  ;;  %v12667_v23 = vld [vmem:[#allocation11 + $0x130] sm:$0xff]  ;;  %v24041_v56 = vadd.f32 %v25294_v35, %v23672_v10  ;;  %15980 = vmatprep.subr.mxu0 %v12683_v44  ;;  %v24050_v22 = vpop.f32.mrf.mxu0  ;;  %15955 = vmatprep.subr.mxu1 %v12646_v28  ;;  %v12335_v19 = vld [vmem:[#allocation3 + $0x128] sm:$0xf] }
 0x5de   :  { %11909 = vst.msk [vmem:[#allocation3 + $0x148] sm:$0xff] %vm11867_vm4, %v11852_v33  ;;  %v11851_v46 = vmax.f32 %v11795_v63, 0.0  ;;  %v11798_v2 = vadd.f32 %v24009_v16, %v11735_v38  ;;  %v11734_v36 = vadd.f32 %v23922_v39, %v11105_v59  ;;  %v11108_v58 = vadd.f32 %v17807_v9, %v10479_v34  ;;  %15981 = vmatpush3.msra.mxu0 %v12667_v23  ;;  %v25296_v33 = vld [vmem:[#allocation154_spill] sm:$0xff]  ;;  %v25298_v59 = vld [vmem:[#allocation72_spill] sm:$0xff] }
 0x5df   :  { %v11004_v29 = vpop.f32.mrf.mxu1  ;;  %v12284_v42 = vrot.slane %v12280_v6, 1  ;;  %v12290_v31 = vmax.f32 %v12281_v0, %v12285_v30  ;;  %v25297_v63 = vld [vmem:[#allocation134_spill] sm:$0xff]  ;;  %v24059_v61 = vadd.f32 %v25298_v59, %v23687_v1 }
 0x5e0   :  { %11908 = vst.msk [vmem:[#allocation3 + $0x140] sm:$0xff] %vm11867_vm4, %v11851_v46  ;;  %v11854_v24 = vmax.f32 %v11798_v2, 0.0  ;;  %v11797_v39 = vadd.f32 %v24009_v16, %v11734_v36  ;;  %v11737_v34 = vadd.f32 %v23938_v50, %v11108_v58  ;;  %v11107_v43 = vadd.f32 %v11004_v29, %v10478_v41  ;;  %v12334_v46 = vld [vmem:[#allocation3 + $0x120] sm:$0xff]  ;;  %v12630_v23 = vld [vmem:[#allocation11 + $0x8] sm:$0xff] }
 0x5e1   :  { %v17810_v10 = vpop.f32.mrf.mxu1  ;;  %v12286_v0 = vsel %vm11933_vm5, %v12284_v42, %v12285_v30  ;;  %v24055_v20 = vadd.f32 %v25297_v63, %v25296_v33  ;;  %v12337_v38 = vld [vmem:[#allocation3 + $0x138] sm:$0xf]  ;;  %v24063_v50 = vrot.slane %v23807_v26, %v23751_v4  ;;  %12320 = vst.msk [vmem:[#allocation4 + $0x5] sm:$0x1] %vm11941_vm6, %v12290_v31  ;;  %v24070_v1 = vrot.slane %v12290_v31, %v23751_v4  ;;  %v12666_v29 = vld [vmem:[#allocation11 + $0x128] sm:$0xff]  ;;  %v24078_v42 = vpop.f32.mrf.mxu0 }
 0x5e2   :  { %11911 = vst.msk [vmem:[#allocation3 + $0x158] sm:$0xff] %vm11867_vm4, %v11854_v24  ;;  %v11853_v41 = vmax.f32 %v11797_v39, 0.0  ;;  %v11800_v7 = vadd.f32 %v24009_v16, %v11737_v34  ;;  %v11736_v49 = vadd.f32 %v23955_v57, %v11107_v43  ;;  %v11110_v9 = vadd.f32 %v17810_v10, %v10481_v27  ;;  %15956 = vmatpush3.msra.mxu1 %v12630_v23 }
 0x5e3   :  { %v11014_v30 = vpop.f32.mrf.mxu1  ;;  %v12289_v40 = vmax.f32 %v12280_v6, %v12286_v0  ;;  %v12336_v26 = vld [vmem:[#allocation3 + $0x130] sm:$0xff]  ;;  %v12339_v2 = vmax.f32 %v12335_v19, %v12337_v38  ;;  %v12025_v36 = vcombine.high %v23846_v18, %v23846_v18 }
 0x5e4   :  { %11910 = vst.msk [vmem:[#allocation3 + $0x150] sm:$0xff] %vm11867_vm4, %v11853_v41  ;;  %v11856_v58 = vmax.f32 %v11800_v7, 0.0  ;;  %v11799_v44 = vadd.f32 %v24009_v16, %v11736_v49  ;;  %v11739_v57 = vadd.f32 %v23974_v62, %v11110_v9  ;;  %v11109_v27 = vadd.f32 %v11014_v30, %v24017_v37  ;;  %v12682_v6 = vld [vmem:[#allocation11 + $0x1a8] sm:$0xff]  ;;  %v12665_v49 = vld [vmem:[#allocation11 + $0x120] sm:$0xff]  ;;  %v24093_v9 = vpop.f32.mrf.mxu0 }
 0x5e5   :  { %v17813_v35 = vpop.f32.mrf.mxu1  ;;  %v12299_v31 = vrot.slane %v12289_v40, %v23751_v4  ;;  %v12305_v3 = vcombine.high %v12289_v40, %v12289_v40  ;;  %v12338_v24 = vmax.f32 %v12334_v46, %v12336_v26  ;;  %v12343_v39 = vrot.slane %v12339_v2, 1  ;;  %12291 = vst.msk [vmem:[#allocation4 + $0x1] sm:$0x1] %vm11941_vm6, %v12289_v40  ;;  %15982 = vmatprep.subr.mxu0 %v12682_v6 }
 0x5e6   :  { %11913 = vst.msk [vmem:[#allocation3 + $0x168] sm:$0xff] %vm11867_vm4, %v11856_v58  ;;  %v11855_v62 = vmax.f32 %v11799_v44, 0.0  ;;  %v11802_v37 = vadd.f32 %v24009_v16, %v11739_v57  ;;  %v11738_v34 = vadd.f32 %v23988_v53, %v11109_v27  ;;  %v11112_v43 = vadd.f32 %v17813_v35, %v24021_v47  ;;  %15983 = vmatpush3.msra.mxu0 %v12666_v29  ;;  %v12681_v53 = vld [vmem:[#allocation11 + $0x1a0] sm:$0xff]  ;;  %v12664_v27 = vld [vmem:[#allocation11 + $0x118] sm:$0xff] }
 0x5e7   :  { %v11024_v28 = vpop.f32.mrf.mxu1  ;;  %v12300_v10 = vcombine.high %v12299_v31, %v12299_v31  ;;  %v12312_v0 = vrot.slane %v12305_v3, %v23751_v4  ;;  %v12342_v33 = vrot.slane %v12338_v24, 1  ;;  %v24087_v63 = vmax.f32 %v12339_v2, %v12343_v39  ;;  %v12645_v47 = vld [vmem:[#allocation11 + $0x80] sm:$0xff]  ;;  %15984 = vmatprep.subr.mxu0 %v12681_v53  ;;  %v12392_v35 = vld [vmem:[#allocation3 + $0x140] sm:$0xff] }
 0x5e8   :  { %11912 = vst.msk [vmem:[#allocation3 + $0x160] sm:$0xff] %vm11867_vm4, %v11855_v62  ;;  %v11858_v38 = vmax.f32 %v11802_v37, 0.0  ;;  %v11801_v59 = vadd.f32 %v24009_v16, %v11738_v34  ;;  %v11741_v41 = vadd.f32 %v24000_v45, %v11112_v43  ;;  %v11111_v7 = vadd.f32 %v11024_v28, %v24030_v54  ;;  %v12680_v45 = vld [vmem:[#allocation11 + $0x198] sm:$0xff]  ;;  %v12629_v54 = vld [vmem:[#allocation11] sm:$0xff]  ;;  %15985 = vmatpush3.msra.mxu0 %v12665_v49  ;;  %v12679_v37 = vld [vmem:[#allocation11 + $0x190] sm:$0xff] }
 0x5e9   :  { %12301 = vrot.lane.b32.xlu0 %v12300_v10, %s18147_s3  ;;  %v17816_v19 = vpop.f32.mrf.mxu1  ;;  %v12315_v30 = vcombine.high %v12312_v0, %v12312_v0  ;;  %v12344_v40 = vsel %vm11933_vm5, %v12342_v33, %v12343_v39  ;;  %v24099_v46 = vrot.slane %v23868_v52, %v23751_v4  ;;  %v12395_v26 = vld [vmem:[#allocation3 + $0x158] sm:$0xf]  ;;  %12314 = vst.msk [vmem:[#allocation4 + $0x3] sm:$0x1] %vm11941_vm6, %v12312_v0  ;;  %12378 = vst.msk [vmem:[#allocation4 + $0xb] sm:$0x1] %vm11941_vm6, %v24087_v63 }
 0x5ea   :  { %11915 = vst.msk [vmem:[#allocation3 + $0x178] sm:$0xff] %vm11867_vm4, %v11858_v38  ;;  %v11857_v2 = vmax.f32 %v11801_v59, 0.0  ;;  %v11804_v58 = vadd.f32 %v24009_v16, %v11741_v41  ;;  %v11740_v44 = vadd.f32 %v24026_v13, %v11111_v7  ;;  %v11114_v57 = vadd.f32 %v17816_v19, %v24034_v21  ;;  %v12393_v52 = vld [vmem:[#allocation3 + $0x148] sm:$0xf]  ;;  %15957 = vmatprep.subr.mxu1 %v12645_v47  ;;  %v12663_v34 = vld [vmem:[#allocation11 + $0x110] sm:$0xff]  ;;  %v12678_v43 = vld [vmem:[#allocation11 + $0x188] sm:$0xff] }
 0x5eb   :  { %12316 = vrot.lane.b32.xlu1 %v12315_v30, %s18147_s3  ;;  %v11034_v23 = vpop.f32.mrf.mxu1  ;;  %v12329_v6 = vcombine.high %v24070_v1, %v24070_v1  ;;  %v12347_v29 = vmax.f32 %v12338_v24, %v12344_v40  ;;  %v12394_v31 = vld [vmem:[#allocation3 + $0x150] sm:$0xff]  ;;  %v12397_v3 = vmax.f32 %v12393_v52, %v12395_v26  ;;  %15986 = vmatprep.subr.mxu0 %v12680_v45  ;;  %v11673_v1 = vpop.f32.mrf.mxu0  ;;  %v12724_v45 = vld [vmem:[#allocation11 + $0x2f8] sm:$0xff]  ;;  %v12661_v52 = vld [vmem:[#allocation11 + $0x100] sm:$0xff] }
 0x5ec   :  { %11914 = vst.msk [vmem:[#allocation3 + $0x170] sm:$0xff] %vm11867_vm4, %v11857_v2  ;;  %v11860_v13 = vmax.f32 %v11804_v58, 0.0  ;;  %v11803_v21 = vadd.f32 %v24009_v16, %v11740_v44  ;;  %v11743_v39 = vadd.f32 %v24050_v22, %v11114_v57  ;;  %v11113_v62 = vadd.f32 %v11034_v23, %v24041_v56  ;;  %15958 = vmatpush3.msra.mxu1 %v12629_v54  ;;  %v12662_v22 = vld [vmem:[#allocation11 + $0x108] sm:$0xff]  ;;  %v25299_v58 = vld [vmem:[#allocation77_spill] sm:$0xff] }
 0x5ed   :  { %15987 = vmatpush3.msra.mxu0 %v12664_v27  ;;  %12330 = vrot.lane.b32.xlu0 %v12329_v6, %s18147_s3  ;;  %v17819_v24 = vpop.f32.mrf.mxu1  ;;  %v12357_v28 = vrot.slane %v12347_v29, %v23751_v4  ;;  %v12363_v10 = vcombine.high %v12347_v29, %v12347_v29  ;;  %v12396_v0 = vmax.f32 %v12392_v35, %v12394_v31  ;;  %v12401_v33 = vrot.slane %v12397_v3, 1  ;;  %v17914_v54 = vpop.f32.mrf.mxu0  ;;  %v12451_v23 = vld [vmem:[#allocation3 + $0x168] sm:$0xf] }
 0x5ee   :  { %12349 = vst.msk [vmem:[#allocation4 + $0x7] sm:$0x1] %vm11941_vm6, %v12347_v29  ;;  %15988 = vmatprep.subr.mxu0 %v12679_v37  ;;  %v11859_v56 = vmax.f32 %v11803_v21, 0.0  ;;  %v11806_v38 = vadd.f32 %v24009_v16, %v11743_v39  ;;  %v11742_v59 = vadd.f32 %v24078_v42, %v11113_v62  ;;  %v11116_v41 = vadd.f32 %v17819_v24, %v24045_v55  ;;  %v12677_v55 = vld [vmem:[#allocation11 + $0x180] sm:$0xff] }
 0x5ef   :  { %11917 = vst.msk [vmem:[#allocation3 + $0x188] sm:$0xff] %vm11867_vm4, %v11860_v13  ;;  %15989 = vmatpush3.msra.mxu0 %v12663_v34  ;;  %v11044_v7 = vpop.f32.mrf.mxu1  ;;  %v12358_v53 = vcombine.high %v12357_v28, %v12357_v28  ;;  %v24123_v49 = vrot.slane %v12363_v10, %v23751_v4  ;;  %v12400_v47 = vrot.slane %v12396_v0, 1  ;;  %v24125_v19 = vmax.f32 %v12397_v3, %v12401_v33  ;;  %v12756_v13 = vld [vmem:[#allocation11 + $0x3f8] sm:$0xff]  ;;  %v11683_v34 = vpop.f32.mrf.mxu0 }
 0x5f0   :  { %15990 = vmatprep.subr.mxu0 %v12678_v43  ;;  %11916 = vst.msk [vmem:[#allocation3 + $0x180] sm:$0xff] %vm11867_vm4, %v11859_v56  ;;  %v11862_v30 = vmax.f32 %v11806_v38, 0.0  ;;  %v11805_v40 = vadd.f32 %v24009_v16, %v11742_v59  ;;  %v11745_v26 = vadd.f32 %v24093_v9, %v11116_v41  ;;  %v11115_v42 = vadd.f32 %v11044_v7, %v24055_v20  ;;  %v12450_v37 = vld [vmem:[#allocation3 + $0x160] sm:$0xff] }
 0x5f1   :  { %15991 = vmatpush3.msra.mxu0 %v12662_v22  ;;  %12359 = vrot.lane.b32.xlu1 %v12358_v53, %s18147_s3  ;;  %v17822_v2 = vpop.f32.mrf.mxu1  ;;  %v10488_v44 = vadd.f32 %v25299_v58, %v23693_v60  ;;  %v12039_v9 = vcombine.high %v24063_v50, %v24063_v50  ;;  %v12402_v20 = vsel %vm11933_vm5, %v12400_v47, %v12401_v33  ;;  %v12453_v57 = vld [vmem:[#allocation3 + $0x178] sm:$0xf] }
 0x5f2   :  { %12026 = vrot.lane.b32.xlu0 %v12025_v36, %s18147_s3  ;;  %12372 = vst.msk [vmem:[#allocation4 + $0x9] sm:$0x1] %vm11941_vm6, %v24123_v49  ;;  %12436 = vst.msk [vmem:[#allocation4 + $0x11] sm:$0x1] %vm11941_vm6, %v24125_v19  ;;  %v11861_v18 = vmax.f32 %v11805_v40, 0.0  ;;  %v11808_v36 = vadd.f32 %v24009_v16, %v11745_v26  ;;  %v11744_v27 = vadd.f32 %v11673_v1, %v11115_v42  ;;  %15992 = vmatprep.subr.mxu0 %v12677_v55 }
 0x5f3   :  { %11919 = vst.msk [vmem:[#allocation3 + $0x198] sm:$0xff] %vm11867_vm4, %v11862_v30  ;;  %v11118_v60 = vadd.f32 %v17822_v2, %v24059_v61  ;;  %15997 = vmatprep.subr.mxu1 %v12724_v45  ;;  %v11054_v50 = vpop.f32.mrf.mxu1  ;;  %v12068_v6 = vcombine.high %v24099_v46, %v24099_v46  ;;  %v12083_v29 = vcombine.high %v23883_v15, %v23883_v15  ;;  %v12452_v31 = vld [vmem:[#allocation3 + $0x170] sm:$0xff] }
 0x5f4   :  { %v12405_v35 = vmax.f32 %v12396_v0, %v12402_v20  ;;  %v12455_v3 = vmax.f32 %v12451_v23, %v12453_v57  ;;  %15993 = vmatpush3.msra.mxu0 %v12661_v52  ;;  %11918 = vst.msk [vmem:[#allocation3 + $0x190] sm:$0xff] %vm11867_vm4, %v11861_v18  ;;  %v11864_v21 = vmax.f32 %v11808_v36, 0.0  ;;  %v11807_v61 = vadd.f32 %v24009_v16, %v11744_v27 }
 0x5f5   :  { %v11747_v39 = vadd.f32 %v17914_v54, %v11118_v60  ;;  %v11117_v62 = vadd.f32 %v11054_v50, %v10488_v44  ;;  %16032 = vmatprep.subr.mxu0 %v12756_v13  ;;  %12040 = vrot.lane.b32.xlu1 %v12039_v9, %s18147_s3  ;;  %v12386_v15 = vrot.slane %v24087_v63, %v23751_v4 }
 0x5f6   :  { %12069 = vrot.lane.b32.xlu0 %v12068_v6, %s18147_s3  ;;  %v12421_v46 = vcombine.high %v12405_v35, %v12405_v35  ;;  %v12454_v43 = vmax.f32 %v12450_v37, %v12452_v31  ;;  %v12459_v1 = vrot.slane %v12455_v3, 1  ;;  %12407 = vst.msk [vmem:[#allocation4 + $0xd] sm:$0x1] %vm11941_vm6, %v12405_v35  ;;  %v11863_v24 = vmax.f32 %v11807_v61, 0.0  ;;  %v12509_v7 = vld [vmem:[#allocation3 + $0x188] sm:$0xf] }
 0x5f7   :  { %11921 = vst.msk [vmem:[#allocation3 + $0x1a8] sm:$0xff] %vm11867_vm4, %v11864_v21  ;;  %v11810_v28 = vadd.f32 %v24009_v16, %v11747_v39  ;;  %v11746_v10 = vadd.f32 %v11683_v34, %v11117_v62  ;;  %v12373_v0 = vcombine.high %v24123_v49, %v24123_v49  ;;  %v12415_v33 = vrot.slane %v12405_v35, %v23751_v4  ;;  %v12508_v42 = vld [vmem:[#allocation3 + $0x180] sm:$0xff] }
 0x5f8   :  { %v12428_v22 = vrot.slane %v12421_v46, %v23751_v4  ;;  %v12458_v56 = vrot.slane %v12454_v43, 1  ;;  %v24165_v63 = vmax.f32 %v12455_v3, %v12459_v1  ;;  %11920 = vst.msk [vmem:[#allocation3 + $0x1a0] sm:$0xff] %vm11867_vm4, %v11863_v24  ;;  %v12387_v40 = vcombine.high %v12386_v15, %v12386_v15 }
 0x5f9   :  { %v11866_v38 = vmax.f32 %v11810_v28, 0.0  ;;  %v11809_v59 = vadd.f32 %v24009_v16, %v11746_v10  ;;  %12084 = vrot.lane.b32.xlu1 %v12083_v29, %s18147_s3  ;;  %v12416_v16 = vcombine.high %v12415_v33, %v12415_v33  ;;  %v12096_v26 = vrot.slane %v23848_v48, %v23751_v4 }
 0x5fa   :  { %12374 = vrot.lane.b32.xlu0 %v12373_v0, %s18147_s3  ;;  %v12460_v41 = vsel %vm11933_vm5, %v12458_v56, %v12459_v1  ;;  %12430 = vst.msk [vmem:[#allocation4 + $0xf] sm:$0x1] %vm11941_vm6, %v12428_v22  ;;  %12494 = vst.msk [vmem:[#allocation4 + $0x17] sm:$0x1] %vm11941_vm6, %v24165_v63  ;;  %v12511_v53 = vld [vmem:[#allocation3 + $0x198] sm:$0xf]  ;;  %v12431_v20 = vcombine.high %v12428_v22, %v12428_v22  ;;  %v12125_v48 = vrot.slane %v23897_v5, %v23751_v4 }
 0x5fb   :  { %11924 = vst.msk [vmem:[#allocation3 + $0x1b8] sm:$0xf] %vm11923_vm7, %v11866_v38  ;;  %v11865_v49 = vmax.f32 %v11809_v59, 0.0  ;;  %v12463_v47 = vmax.f32 %v12454_v43, %v12460_v41  ;;  %v12513_v30 = vmax.f32 %v12509_v7, %v12511_v53  ;;  %v12510_v55 = vld [vmem:[#allocation3 + $0x190] sm:$0xff]  ;;  %v12097_v57 = vcombine.high %v12096_v26, %v12096_v26 }
 0x5fc   :  { %v12512_v54 = vmax.f32 %v12508_v42, %v12510_v55  ;;  %v12154_v60 = vrot.slane %v23885_v8, %v23751_v4  ;;  %v12126_v50 = vcombine.high %v12125_v48, %v12125_v48  ;;  %v12141_v5 = vcombine.high %v23907_v51, %v23907_v51 }
 0x5fd   :  { %11922 = vst.msk [vmem:[#allocation3 + $0x1b0] sm:$0xff] %vm11867_vm4, %v11865_v49  ;;  %v12479_v45 = vcombine.high %v12463_v47, %v12463_v47  ;;  %v12517_v2 = vrot.slane %v12513_v30, 1  ;;  %12388 = vrot.lane.b32.xlu1 %v12387_v40, %s18147_s3  ;;  %v12444_v6 = vrot.slane %v24125_v19, %v23751_v4  ;;  %v12473_v62 = vrot.slane %v12463_v47, %v23751_v4 }
 0x5fe   :  { %12465 = vst.msk [vmem:[#allocation4 + $0x13] sm:$0x1] %vm11941_vm6, %v12463_v47  ;;  %12417 = vrot.lane.b32.xlu0 %v12416_v16, %s18147_s3  ;;  %v12516_v44 = vrot.slane %v12512_v54, 1  ;;  %v12567_v36 = vld [vmem:[#allocation3 + $0x1a8] sm:$0xf]  ;;  %v12155_v39 = vcombine.high %v12154_v60, %v12154_v60  ;;  %v12183_v34 = vrot.slane %v23920_v12, %v23751_v4  ;;  %v12502_v43 = vrot.slane %v24165_v63, %v23751_v4 }
 0x5ff   :  { %v12486_v58 = vrot.slane %v12479_v45, %v23751_v4  ;;  %v12522_v9 = vmax.f32 %v12513_v30, %v12517_v2  ;;  %v12566_v35 = vld [vmem:[#allocation3 + $0x1a0] sm:$0xff]  ;;  %v12445_v51 = vcombine.high %v12444_v6, %v12444_v6  ;;  %v12474_v15 = vcombine.high %v12473_v62, %v12473_v62  ;;  %v12707_v6 = vld [vmem:[#allocation11 + $0x270] sm:$0xff]  ;;  %v12738_v62 = vld [vmem:[#allocation11 + $0x368] sm:$0xff] }
 0x600   :  { %v12518_v52 = vsel %vm11933_vm5, %v12516_v44, %v12517_v2  ;;  %v12503_v28 = vcombine.high %v12502_v43, %v12502_v43  ;;  %v12184_v10 = vcombine.high %v12183_v34, %v12183_v34  ;;  %v12212_v0 = vrot.slane %v23909_v25, %v23751_v4  ;;  %v12737_v43 = vld [vmem:[#allocation11 + $0x360] sm:$0xff] }
 0x601   :  { %12488 = vst.msk [vmem:[#allocation4 + $0x15] sm:$0x1] %vm11941_vm6, %v12486_v58  ;;  %12552 = vst.msk [vmem:[#allocation4 + $0x1d] sm:$0x1] %vm11941_vm6, %v12522_v9  ;;  %12432 = vrot.lane.b32.xlu1 %v12431_v20, %s18147_s3  ;;  %v12521_v18 = vmax.f32 %v12512_v54, %v12518_v52  ;;  %v12489_v46 = vcombine.high %v12486_v58, %v12486_v58  ;;  %v12199_v12 = vcombine.high %v23933_v11, %v23933_v11 }
 0x602   :  { %12098 = vrot.lane.b32.xlu0 %v12097_v57, %s18147_s3  ;;  %v12569_v27 = vld [vmem:[#allocation3 + $0x1b8] sm:$0xf]  ;;  %v12213_v33 = vcombine.high %v12212_v0, %v12212_v0  ;;  %v12241_v22 = vrot.slane %v23951_v14, %v23751_v4  ;;  %v12560_v59 = vrot.slane %v12522_v9, %v23751_v4  ;;  %v12257_v47 = vcombine.high %v23969_v32, %v23969_v32  ;;  %v12718_v0 = vld [vmem:[#allocation11 + $0x2c8] sm:$0xff] }
 0x603   :  { %v12571_v23 = vmax.f32 %v12567_v36, %v12569_v27  ;;  %12523 = vst.msk [vmem:[#allocation4 + $0x19] sm:$0x1] %vm11941_vm6, %v12521_v18  ;;  %v12537_v29 = vcombine.high %v12521_v18, %v12521_v18  ;;  %v12531_v56 = vrot.slane %v12521_v18, %v23751_v4  ;;  %v12270_v30 = vrot.slane %v23935_v17, %v23751_v4 }
 0x604   :  { %v12568_v31 = vld [vmem:[#allocation3 + $0x1b0] sm:$0xff]  ;;  %v12242_v63 = vcombine.high %v12241_v22, %v12241_v22  ;;  %v12561_v41 = vcombine.high %v12560_v59, %v12560_v59 }
 0x605   :  { %v12570_v3 = vmax.f32 %v12566_v35, %v12568_v31  ;;  %v12575_v13 = vrot.slane %v12571_v23, 1  ;;  %12127 = vrot.lane.b32.xlu1 %v12126_v50, %s18147_s3  ;;  %v12544_v8 = vrot.slane %v12537_v29, %v23751_v4  ;;  %v12532_v38 = vcombine.high %v12531_v56, %v12531_v56  ;;  %v12740_v29 = vld [vmem:[#allocation11 + $0x378] sm:$0xff]  ;;  %v12722_v35 = vld [vmem:[#allocation11 + $0x2e8] sm:$0xff]  ;;  %v12755_v31 = vld [vmem:[#allocation11 + $0x3f0] sm:$0xff] }
 0x606   :  { %12142 = vrot.lane.b32.xlu0 %v12141_v5, %s18147_s3  ;;  %v12271_v16 = vcombine.high %v12270_v30, %v12270_v30  ;;  %v12723_v5 = vld [vmem:[#allocation11 + $0x2f0] sm:$0xff]  ;;  %v12702_v56 = vld [vmem:[#allocation11 + $0x248] sm:$0xff] }
 0x607   :  { %v12574_v21 = vrot.slane %v12570_v3, 1  ;;  %v12580_v61 = vmax.f32 %v12571_v23, %v12575_v13  ;;  %12546 = vst.msk [vmem:[#allocation4 + $0x1b] sm:$0x1] %vm11941_vm6, %v12544_v8  ;;  %v12547_v14 = vcombine.high %v12544_v8, %v12544_v8  ;;  %v12708_v23 = vld [vmem:[#allocation11 + $0x278] sm:$0xff]  ;;  %v12706_v8 = vld [vmem:[#allocation11 + $0x268] sm:$0xff] }
 0x608   :  { %v12750_v59 = vld [vmem:[#allocation11 + $0x3c8] sm:$0xff] }
 0x609   :  { %v12576_v19 = vsel %vm11933_vm5, %v12574_v21, %v12575_v13  ;;  %12610 = vst.msk [vmem:[#allocation4 + $0x23] sm:$0x1] %vm11941_vm6, %v12580_v61  ;;  %12156 = vrot.lane.b32.xlu1 %v12155_v39, %s18147_s3  ;;  %v12618_v42 = vrot.slane %v12580_v61, %v23751_v4  ;;  %v12739_v21 = vld [vmem:[#allocation11 + $0x370] sm:$0xff]  ;;  %v12721_v61 = vld [vmem:[#allocation11 + $0x2e0] sm:$0xff]  ;;  %v12754_v39 = vld [vmem:[#allocation11 + $0x3e8] sm:$0xff] }
 0x60a   :  { %12446 = vrot.lane.b32.xlu0 %v12445_v51, %s18147_s3  ;;  %v12579_v37 = vmax.f32 %v12570_v3, %v12576_v19  ;;  %v12705_v51 = vld [vmem:[#allocation11 + $0x260] sm:$0xff]  ;;  %v12720_v19 = vld [vmem:[#allocation11 + $0x2d8] sm:$0xff] }
 0x60b   :  { %v12619_v32 = vcombine.high %v12618_v42, %v12618_v42  ;;  %v12733_v42 = vld [vmem:[#allocation11 + $0x340] sm:$0xff] }
 0x60c   :  { %12581 = vst.msk [vmem:[#allocation4 + $0x1f] sm:$0x1] %vm11941_vm6, %v12579_v37  ;;  %v12595_v1 = vcombine.high %v12579_v37, %v12579_v37  ;;  %v12589_v7 = vrot.slane %v12579_v37, %v23751_v4  ;;  %v12753_v37 = vld [vmem:[#allocation11 + $0x3e0] sm:$0xff] }
 0x60d   :  { %12475 = vrot.lane.b32.xlu1 %v12474_v15, %s18147_s3 }
 0x60e   :  { %12490 = vrot.lane.b32.xlu0 %v12489_v46, %s18147_s3  ;;  %v12602_v24 = vrot.slane %v12595_v1, %v23751_v4  ;;  %v12590_v49 = vcombine.high %v12589_v7, %v12589_v7  ;;  %v12704_v46 = vld [vmem:[#allocation11 + $0x258] sm:$0xff]  ;;  %v12719_v1 = vld [vmem:[#allocation11 + $0x2d0] sm:$0xff]  ;;  %v12734_v7 = vld [vmem:[#allocation11 + $0x348] sm:$0xff] }
 0x610   :  { %12604 = vst.msk [vmem:[#allocation4 + $0x21] sm:$0x1] %vm11941_vm6, %v12602_v24  ;;  %v12605_v26 = vcombine.high %v12602_v24, %v12602_v24  ;;  %v12752_v24 = vld [vmem:[#allocation11 + $0x3d8] sm:$0xff] }
 0x611   :  { %12504 = vrot.lane.b32.xlu1 %v12503_v28, %s18147_s3  ;;  %v12703_v28 = vld [vmem:[#allocation11 + $0x250] sm:$0xff] }
 0x612   :  { %12185 = vrot.lane.b32.xlu0 %v12184_v10, %s18147_s3  ;;  %v12736_v10 = vld [vmem:[#allocation11 + $0x358] sm:$0xff] }
 0x615   :  { %12200 = vrot.lane.b32.xlu1 %v12199_v12, %s18147_s3  ;;  %v12751_v12 = vld [vmem:[#allocation11 + $0x3d0] sm:$0xff] }
 0x616   :  { %12214 = vrot.lane.b32.xlu0 %v12213_v33, %s18147_s3 }
 0x617   :  { %v11983_v25 = vpop.permute.xlu1 %11982 }
 0x618   :  { %11985 = vst.msk [vmem:[#allocation4 + $0x4] sm:$0x1] %vm11955_vm8, %v11983_v25  ;;  %v12735_v25 = vld [vmem:[#allocation11 + $0x350] sm:$0xff] }
 0x619   :  { %12243 = vrot.lane.b32.xlu1 %v12242_v63, %s18147_s3 }
 0x61a   :  { %12533 = vrot.lane.b32.xlu0 %v12532_v38, %s18147_s3  ;;  %v12717_v38 = vld [vmem:[#allocation11 + $0x2c0] sm:$0xff] }
 0x61b   :  { %v11953_v11 = vpop.permute.xlu0 %11952 }
 0x61c   :  { %11956 = vst.msk [vmem:[#allocation4] sm:$0x1] %vm11955_vm8, %v11953_v11 }
 0x61d   :  { %12548 = vrot.lane.b32.xlu1 %v12547_v14, %s18147_s3 }
 0x61e   :  { %12562 = vrot.lane.b32.xlu0 %v12561_v41, %s18147_s3  ;;  %v12701_v41 = vld [vmem:[#allocation11 + $0x240] sm:$0xff] }
 0x620   :  { %v11969_v53 = vpop.permute.xlu0 %11968 }
 0x621   :  { %11971 = vst.msk [vmem:[#allocation4 + $0x2] sm:$0x1] %vm11955_vm8, %v11969_v53  ;;  %12591 = vrot.lane.b32.xlu1 %v12590_v49, %s18147_s3  ;;  %v12716_v53 = vld [vmem:[#allocation11 + $0x2b8] sm:$0xff] }
 0x622   :  { %12258 = vrot.lane.b32.xlu0 %v12257_v47, %s18147_s3 }
 0x624   :  { %v12012_v40 = vpop.permute.xlu1 %12011 }
 0x625   :  { %12014 = vst.msk [vmem:[#allocation4 + $0x6] sm:$0x1] %vm11955_vm8, %v12012_v40  ;;  %12272 = vrot.lane.b32.xlu1 %v12271_v16, %s18147_s3  ;;  %v12749_v16 = vld [vmem:[#allocation11 + $0x3c0] sm:$0xff] }
 0x626   :  { %12606 = vrot.lane.b32.xlu0 %v12605_v26, %s18147_s3  ;;  %v12700_v26 = vld [vmem:[#allocation11 + $0x238] sm:$0xff] }
 0x629   :  { %12620 = vrot.lane.b32.xlu1 %v12619_v32, %s18147_s3  ;;  %v12715_v32 = vld [vmem:[#allocation11 + $0x2b0] sm:$0xff] }
 0x65b   :  { %v12302_v17 = vpop.permute.xlu0 %12301 }
 0x65c   :  { %12304 = vst.msk [vmem:[#allocation4 + $0x1] sm:$0x1] %vm11955_vm8, %v12302_v17 }
 0x65d   :  { %v12317_v55 = vpop.permute.xlu1 %12316 }
 0x65e   :  { %12319 = vst.msk [vmem:[#allocation4 + $0x3] sm:$0x1] %vm11955_vm8, %v12317_v55  ;;  %v12748_v55 = vld [vmem:[#allocation11 + $0x3b8] sm:$0xff] }
 0x65f   :  { %v12331_v45 = vpop.permute.xlu0 %12330 }
 0x660   :  { %12333 = vst.msk [vmem:[#allocation4 + $0x5] sm:$0x1] %vm11955_vm8, %v12331_v45  ;;  %v12699_v45 = vld [vmem:[#allocation11 + $0x230] sm:$0xff] }
 0x663   :  { %v12360_v54 = vpop.permute.xlu1 %12359 }
 0x664   :  { %v12027_v2 = vpop.permute.xlu0 %12026  ;;  %12362 = vst.msk [vmem:[#allocation4 + $0x7] sm:$0x1] %vm11955_vm8, %v12360_v54  ;;  %v12732_v54 = vld [vmem:[#allocation11 + $0x338] sm:$0xff] }
 0x665   :  { %12029 = vst.msk [vmem:[#allocation4 + $0x8] sm:$0x1] %vm11955_vm8, %v12027_v2 }
 0x667   :  { %v12041_v58 = vpop.permute.xlu1 %12040 }
 0x668   :  { %v12070_v44 = vpop.permute.xlu0 %12069  ;;  %12043 = vst.msk [vmem:[#allocation4 + $0xa] sm:$0x1] %vm11955_vm8, %v12041_v58 }
 0x669   :  { %12072 = vst.msk [vmem:[#allocation4 + $0xc] sm:$0x1] %vm11955_vm8, %v12070_v44  ;;  %v12714_v44 = vld [vmem:[#allocation11 + $0x2a8] sm:$0xff] }
 0x66b   :  { %v12085_v9 = vpop.permute.xlu1 %12084  ;;  %v12624_v57 = vld [vmem:[#allocation4] sm:$0xff] }
 0x66c   :  { %v12375_v20 = vpop.permute.xlu0 %12374  ;;  %12087 = vst.msk [vmem:[#allocation4 + $0xe] sm:$0x1] %vm11955_vm8, %v12085_v9  ;;  %v12936_v48 = vrot.slane %v12624_v57, %v23751_v4  ;;  %v12929_v52 = vcombine.high %v12624_v57, %v12624_v57  ;;  %v12747_v9 = vld [vmem:[#allocation11 + $0x3b0] sm:$0xff] }
 0x66d   :  { %12377 = vst.msk [vmem:[#allocation4 + $0x9] sm:$0x1] %vm11955_vm8, %v12375_v20  ;;  %v12698_v20 = vld [vmem:[#allocation11 + $0x228] sm:$0xff]  ;;  %v12731_v57 = vld [vmem:[#allocation11 + $0x330] sm:$0xff] }
 0x66e   :  { %v12944_v18 = vcombine.high %v12936_v48, %v12936_v48  ;;  %v12943_v36 = vrot.slane %v12929_v52, %v23751_v4  ;;  %v12746_v52 = vld [vmem:[#allocation11 + $0x3a8] sm:$0xff] }
 0x66f   :  { %v12389_v27 = vpop.permute.xlu1 %12388 }
 0x670   :  { %v12418_v60 = vpop.permute.xlu0 %12417  ;;  %12391 = vst.msk [vmem:[#allocation4 + $0xb] sm:$0x1] %vm11955_vm8, %v12389_v27  ;;  %13087 = vmatprep.mubr.f32.mxu1 %v12944_v18  ;;  %v12945_v50 = vcombine.high %v12943_v36, %v12943_v36  ;;  %v12697_v18 = vld [vmem:[#allocation11 + $0x220] sm:$0xff] }
 0x671   :  { %12420 = vst.msk [vmem:[#allocation4 + $0xd] sm:$0x1] %vm11955_vm8, %v12418_v60  ;;  %13088 = vmatmul.mubr.f32.vlgmr.msra.gmra.mxu1 %v12936_v48  ;;  %v12713_v48 = vld [vmem:[#allocation11 + $0x2a0] sm:$0xff] }
 0x672   :  { %15998 = vmatpush3.msra.mxu1 %v12708_v23  ;;  %13157 = vmatprep.mubr.f32.mxu0 %v12945_v50  ;;  %v12712_v23 = vld [vmem:[#allocation11 + $0x298] sm:$0xff]  ;;  %v12745_v50 = vld [vmem:[#allocation11 + $0x3a0] sm:$0xff] }
 0x673   :  { %15999 = vmatprep.subr.mxu1 %v12723_v5  ;;  %v12433_v3 = vpop.permute.xlu1 %12432  ;;  %13158 = vmatmul.mubr.f32.vlgmr.msra.gmra.mxu0 %v12943_v36  ;;  %v12730_v36 = vld [vmem:[#allocation11 + $0x328] sm:$0xff]  ;;  %v12696_v5 = vld [vmem:[#allocation11 + $0x218] sm:$0xff] }
 0x674   :  { %v12099_v13 = vpop.permute.xlu0 %12098  ;;  %12435 = vst.msk [vmem:[#allocation4 + $0xf] sm:$0x1] %vm11955_vm8, %v12433_v3  ;;  %16000 = vmatpush3.msra.mxu1 %v12707_v6  ;;  %16033 = vmatpush3.msra.mxu0 %v12740_v29  ;;  %v12729_v6 = vld [vmem:[#allocation11 + $0x320] sm:$0xff]  ;;  %v12711_v29 = vld [vmem:[#allocation11 + $0x290] sm:$0xff]  ;;  %v12728_v3 = vld [vmem:[#allocation11 + $0x318] sm:$0xff] }
 0x675   :  { %12101 = vst.msk [vmem:[#allocation4 + $0x10] sm:$0x1] %vm11955_vm8, %v12099_v13  ;;  %16001 = vmatprep.subr.mxu1 %v12722_v35  ;;  %16034 = vmatprep.subr.mxu0 %v12755_v31  ;;  %v12744_v35 = vld [vmem:[#allocation11 + $0x398] sm:$0xff]  ;;  %v12695_v31 = vld [vmem:[#allocation11 + $0x210] sm:$0xff] }
 0x676   :  { %16002 = vmatpush3.msra.mxu1 %v12706_v8  ;;  %16035 = vmatpush3.msra.mxu0 %v12739_v21  ;;  %v12710_v21 = vld [vmem:[#allocation11 + $0x288] sm:$0xff] }
 0x677   :  { %16003 = vmatprep.subr.mxu1 %v12721_v61  ;;  %16036 = vmatprep.subr.mxu0 %v12754_v39  ;;  %v12128_v34 = vpop.permute.xlu1 %12127  ;;  %v12743_v61 = vld [vmem:[#allocation11 + $0x390] sm:$0xff] }
 0x678   :  { %v12143_v15 = vpop.permute.xlu0 %12142  ;;  %12130 = vst.msk [vmem:[#allocation4 + $0x12] sm:$0x1] %vm11955_vm8, %v12128_v34  ;;  %16004 = vmatpush3.msra.mxu1 %v12705_v51  ;;  %16037 = vmatpush3.msra.mxu0 %v12738_v62  ;;  %v12694_v51 = vld [vmem:[#allocation11 + $0x208] sm:$0xff]  ;;  %v12727_v62 = vld [vmem:[#allocation11 + $0x310] sm:$0xff]  ;;  %v12709_v34 = vld [vmem:[#allocation11 + $0x280] sm:$0xff] }
 0x679   :  { %12145 = vst.msk [vmem:[#allocation4 + $0x14] sm:$0x1] %vm11955_vm8, %v12143_v15  ;;  %16005 = vmatprep.subr.mxu1 %v12720_v19  ;;  %16038 = vmatprep.subr.mxu0 %v12753_v37  ;;  %v12742_v15 = vld [vmem:[#allocation11 + $0x388] sm:$0xff] }
 0x67a   :  { %16006 = vmatpush3.msra.mxu1 %v12704_v46  ;;  %16039 = vmatpush3.msra.mxu0 %v12737_v43  ;;  %v12693_v46 = vld [vmem:[#allocation11 + $0x200] sm:$0xff]  ;;  %v12726_v43 = vld [vmem:[#allocation11 + $0x308] sm:$0xff] }
 0x67b   :  { %16007 = vmatprep.subr.mxu1 %v12719_v1  ;;  %16040 = vmatprep.subr.mxu0 %v12752_v24  ;;  %v12157_v33 = vpop.permute.xlu1 %12156  ;;  %v12625_v63 = vld [vmem:[#allocation4 + $0x8] sm:$0xff] }
 0x67c   :  { %v12447_v22 = vpop.permute.xlu0 %12446  ;;  %12159 = vst.msk [vmem:[#allocation4 + $0x16] sm:$0x1] %vm11955_vm8, %v12157_v33  ;;  %16008 = vmatpush3.msra.mxu1 %v12703_v28  ;;  %16041 = vmatpush3.msra.mxu0 %v12736_v10  ;;  %v24266_v11 = vrot.slane %v12625_v63, %v23751_v4  ;;  %v12946_v14 = vcombine.high %v12625_v63, %v12625_v63  ;;  %v12741_v28 = vld [vmem:[#allocation11 + $0x380] sm:$0xff] }
 0x67d   :  { %12449 = vst.msk [vmem:[#allocation4 + $0x11] sm:$0x1] %vm11955_vm8, %v12447_v22  ;;  %16009 = vmatprep.subr.mxu1 %v12718_v0  ;;  %16042 = vmatprep.subr.mxu0 %v12751_v12  ;;  %v12788_v0 = vld [vmem:[#allocation11 + $0x4f8] sm:$0xff]  ;;  %v12725_v12 = vld [vmem:[#allocation11 + $0x300] sm:$0xff] }
 0x67e   :  { %16010 = vmatpush3.msra.mxu1 %v12702_v56  ;;  %16043 = vmatpush3.msra.mxu0 %v12735_v25  ;;  %v12961_v49 = vcombine.high %v24266_v11, %v24266_v11  ;;  %v24271_v47 = vrot.slane %v12946_v14, %v23751_v4  ;;  %v12772_v22 = vld [vmem:[#allocation11 + $0x478] sm:$0xff]  ;;  %v12787_v56 = vld [vmem:[#allocation11 + $0x4f0] sm:$0xff] }
 0x67f   :  { %16011 = vmatprep.subr.mxu1 %v12717_v38  ;;  %16044 = vmatprep.subr.mxu0 %v12750_v59  ;;  %v12476_v30 = vpop.permute.xlu1 %12475  ;;  %v12820_v25 = vld [vmem:[#allocation11 + $0x5f8] sm:$0xff]  ;;  %v12771_v59 = vld [vmem:[#allocation11 + $0x470] sm:$0xff] }
 0x680   :  { %v12491_v40 = vpop.permute.xlu0 %12490  ;;  %12478 = vst.msk [vmem:[#allocation4 + $0x13] sm:$0x1] %vm11955_vm8, %v12476_v30  ;;  %16012 = vmatpush3.msra.mxu1 %v12701_v41  ;;  %16045 = vmatpush3.msra.mxu0 %v12734_v7  ;;  %v12962_v17 = vcombine.high %v24271_v47, %v24271_v47  ;;  %v12804_v41 = vld [vmem:[#allocation11 + $0x578] sm:$0xff]  ;;  %v12819_v7 = vld [vmem:[#allocation11 + $0x5f0] sm:$0xff]  ;;  %v12785_v30 = vld [vmem:[#allocation11 + $0x4e0] sm:$0xff] }
 0x681   :  { %12493 = vst.msk [vmem:[#allocation4 + $0x15] sm:$0x1] %vm11955_vm8, %v12491_v40  ;;  %16013 = vmatprep.subr.mxu1 %v12716_v53  ;;  %13227 = vmatprep.mubr.f32.mxu1 %v12961_v49  ;;  %v12770_v53 = vld [vmem:[#allocation11 + $0x468] sm:$0xff]  ;;  %v12803_v49 = vld [vmem:[#allocation11 + $0x570] sm:$0xff] }
 0x682   :  { %16046 = vmatprep.subr.mxu0 %v12749_v16  ;;  %16014 = vmatpush3.msra.mxu1 %v12700_v26  ;;  %v12818_v40 = vld [vmem:[#allocation11 + $0x5e8] sm:$0xff] }
 0x683   :  { %16047 = vmatpush3.msra.mxu0 %v12733_v42  ;;  %16015 = vmatprep.subr.mxu1 %v12715_v32  ;;  %v12505_v2 = vpop.permute.xlu1 %12504  ;;  %v12802_v42 = vld [vmem:[#allocation11 + $0x568] sm:$0xff]  ;;  %v12784_v32 = vld [vmem:[#allocation11 + $0x4d8] sm:$0xff] }
 0x684   :  { %v12186_v58 = vpop.permute.xlu0 %12185  ;;  %16048 = vmatprep.subr.mxu0 %v12748_v55  ;;  %13297 = vmatprep.mubr.f32.mxu0 %v12962_v17  ;;  %12507 = vst.msk [vmem:[#allocation4 + $0x17] sm:$0x1] %vm11955_vm8, %v12505_v2  ;;  %v12817_v17 = vld [vmem:[#allocation11 + $0x5e0] sm:$0xff]  ;;  %v12768_v55 = vld [vmem:[#allocation11 + $0x458] sm:$0xff] }
 0x685   :  { %12188 = vst.msk [vmem:[#allocation4 + $0x18] sm:$0x1] %vm11955_vm8, %v12186_v58  ;;  %16016 = vmatpush3.msra.mxu1 %v12699_v45  ;;  %16049 = vmatpush3.msra.mxu0 %v12732_v54  ;;  %v12801_v45 = vld [vmem:[#allocation11 + $0x560] sm:$0xff]  ;;  %v12783_v54 = vld [vmem:[#allocation11 + $0x4d0] sm:$0xff]  ;;  %v12816_v2 = vld [vmem:[#allocation11 + $0x5d8] sm:$0xff] }
 0x686   :  { %16017 = vmatprep.subr.mxu1 %v12714_v44  ;;  %16050 = vmatprep.subr.mxu0 %v12747_v9  ;;  %v12767_v44 = vld [vmem:[#allocation11 + $0x450] sm:$0xff]  ;;  %v12800_v9 = vld [vmem:[#allocation11 + $0x558] sm:$0xff] }
 0x687   :  { %16018 = vmatpush3.msra.mxu1 %v12698_v20  ;;  %16051 = vmatpush3.msra.mxu0 %v12731_v57  ;;  %v12201_v27 = vpop.permute.xlu1 %12200  ;;  %v12782_v20 = vld [vmem:[#allocation11 + $0x4c8] sm:$0xff]  ;;  %v12815_v57 = vld [vmem:[#allocation11 + $0x5d0] sm:$0xff] }
 0x688   :  { %v12215_v60 = vpop.permute.xlu0 %12214  ;;  %16019 = vmatprep.subr.mxu1 %v12713_v48  ;;  %16052 = vmatprep.subr.mxu0 %v12746_v52  ;;  %12203 = vst.msk [vmem:[#allocation4 + $0x1a] sm:$0x1] %vm11955_vm8, %v12201_v27  ;;  %v12766_v48 = vld [vmem:[#allocation11 + $0x448] sm:$0xff]  ;;  %v12799_v52 = vld [vmem:[#allocation11 + $0x550] sm:$0xff]  ;;  %v12765_v27 = vld [vmem:[#allocation11 + $0x440] sm:$0xff] }
 0x689   :  { %12217 = vst.msk [vmem:[#allocation4 + $0x1c] sm:$0x1] %vm11955_vm8, %v12215_v60  ;;  %16020 = vmatpush3.msra.mxu1 %v12697_v18  ;;  %16053 = vmatpush3.msra.mxu0 %v12730_v36  ;;  %v12781_v18 = vld [vmem:[#allocation11 + $0x4c0] sm:$0xff]  ;;  %v12814_v36 = vld [vmem:[#allocation11 + $0x5c8] sm:$0xff] }
 0x68a   :  { %16021 = vmatprep.subr.mxu1 %v12712_v23  ;;  %16054 = vmatprep.subr.mxu0 %v12745_v50  ;;  %v12798_v60 = vld [vmem:[#allocation11 + $0x548] sm:$0xff]  ;;  %v12780_v23 = vld [vmem:[#allocation11 + $0x4b8] sm:$0xff]  ;;  %v12813_v50 = vld [vmem:[#allocation11 + $0x5c0] sm:$0xff] }
 0x68b   :  { %16022 = vmatpush3.msra.mxu1 %v12696_v5  ;;  %16055 = vmatpush3.msra.mxu0 %v12729_v6  ;;  %v12244_v13 = vpop.permute.xlu1 %12243  ;;  %v12626_v39 = vld [vmem:[#allocation4 + $0x10] sm:$0xff]  ;;  %v12764_v5 = vld [vmem:[#allocation11 + $0x438] sm:$0xff]  ;;  %v12797_v6 = vld [vmem:[#allocation11 + $0x540] sm:$0xff] }
 0x68c   :  { %v12534_v8 = vpop.permute.xlu0 %12533  ;;  %16023 = vmatprep.subr.mxu1 %v12711_v29  ;;  %16056 = vmatprep.subr.mxu0 %v12744_v35  ;;  %12246 = vst.msk [vmem:[#allocation4 + $0x1e] sm:$0x1] %vm11955_vm8, %v12244_v13  ;;  %v24284_v19 = vrot.slane %v12626_v39, %v23751_v4  ;;  %v12963_v37 = vcombine.high %v12626_v39, %v12626_v39  ;;  %v12779_v29 = vld [vmem:[#allocation11 + $0x4b0] sm:$0xff]  ;;  %v12812_v35 = vld [vmem:[#allocation11 + $0x5b8] sm:$0xff]  ;;  %v12778_v13 = vld [vmem:[#allocation11 + $0x4a8] sm:$0xff] }
 0x68d   :  { %12536 = vst.msk [vmem:[#allocation4 + $0x19] sm:$0x1] %vm11955_vm8, %v12534_v8  ;;  %16024 = vmatpush3.msra.mxu1 %v12695_v31  ;;  %16057 = vmatpush3.msra.mxu0 %v12728_v3  ;;  %v12763_v31 = vld [vmem:[#allocation11 + $0x430] sm:$0xff]  ;;  %v12796_v3 = vld [vmem:[#allocation11 + $0x538] sm:$0xff]  ;;  %v12777_v39 = vld [vmem:[#allocation11 + $0x4a0] sm:$0xff] }
 0x68e   :  { %16025 = vmatprep.subr.mxu1 %v12710_v21  ;;  %16058 = vmatprep.subr.mxu0 %v12743_v61  ;;  %v24287_v10 = vrot.slane %v12963_v37, %v23751_v4  ;;  %v12978_v33 = vcombine.high %v24284_v19, %v24284_v19  ;;  %v12811_v8 = vld [vmem:[#allocation11 + $0x5b0] sm:$0xff]  ;;  %v12762_v21 = vld [vmem:[#allocation11 + $0x428] sm:$0xff] }
 0x68f   :  { %16026 = vmatpush3.msra.mxu1 %v12694_v51  ;;  %16059 = vmatpush3.msra.mxu0 %v12727_v62  ;;  %v12549_v1 = vpop.permute.xlu1 %12548  ;;  %v12795_v61 = vld [vmem:[#allocation11 + $0x530] sm:$0xff]  ;;  %v12810_v51 = vld [vmem:[#allocation11 + $0x5a8] sm:$0xff]  ;;  %v12761_v62 = vld [vmem:[#allocation11 + $0x420] sm:$0xff] }
 0x690   :  { %v12563_v24 = vpop.permute.xlu0 %12562  ;;  %16027 = vmatprep.subr.mxu1 %v12709_v34  ;;  %16060 = vmatprep.subr.mxu0 %v12742_v15  ;;  %12551 = vst.msk [vmem:[#allocation4 + $0x1b] sm:$0x1] %vm11955_vm8, %v12549_v1  ;;  %v12979_v14 = vcombine.high %v24287_v10, %v24287_v10  ;;  %v12794_v37 = vld [vmem:[#allocation11 + $0x528] sm:$0xff]  ;;  %v12776_v34 = vld [vmem:[#allocation11 + $0x498] sm:$0xff]  ;;  %v12809_v15 = vld [vmem:[#allocation11 + $0x5a0] sm:$0xff] }
 0x691   :  { %12565 = vst.msk [vmem:[#allocation4 + $0x1d] sm:$0x1] %vm11955_vm8, %v12563_v24  ;;  %16028 = vmatpush3.msra.mxu1 %v12693_v46  ;;  %16061 = vmatpush3.msra.mxu0 %v12726_v43  ;;  %v12760_v46 = vld [vmem:[#allocation11 + $0x418] sm:$0xff]  ;;  %v12793_v43 = vld [vmem:[#allocation11 + $0x520] sm:$0xff]  ;;  %v12775_v1 = vld [vmem:[#allocation11 + $0x490] sm:$0xff] }
 0x692   :  { %13228 = vmatmul.mubr.f32.vlgmr.msra.gmra.mxu1 %v24266_v11  ;;  %16062 = vmatprep.subr.mxu0 %v12741_v28  ;;  %v12786_v11 = vld [vmem:[#allocation11 + $0x4e8] sm:$0xff]  ;;  %v12808_v24 = vld [vmem:[#allocation11 + $0x598] sm:$0xff]  ;;  %v12759_v28 = vld [vmem:[#allocation11 + $0x410] sm:$0xff] }
 0x693   :  { %16067 = vmatprep.subr.mxu1 %v12788_v0  ;;  %16063 = vmatpush3.msra.mxu0 %v12725_v12  ;;  %v12592_v63 = vpop.permute.xlu1 %12591  ;;  %v12792_v0 = vld [vmem:[#allocation11 + $0x518] sm:$0xff] }
 0x694   :  { %v12259_v38 = vpop.permute.xlu0 %12258  ;;  %16068 = vmatpush3.msra.mxu1 %v12772_v22  ;;  %13367 = vmatprep.mubr.f32.mxu1 %v12978_v33  ;;  %12594 = vst.msk [vmem:[#allocation4 + $0x1f] sm:$0x1] %vm11955_vm8, %v12592_v63  ;;  %v12774_v33 = vld [vmem:[#allocation11 + $0x488] sm:$0xff]  ;;  %v12807_v22 = vld [vmem:[#allocation11 + $0x590] sm:$0xff]  ;;  %v12773_v63 = vld [vmem:[#allocation11 + $0x480] sm:$0xff] }
 0x695   :  { %12261 = vst.msk [vmem:[#allocation4 + $0x20] sm:$0x1] %vm11955_vm8, %v12259_v38  ;;  %13298 = vmatmul.mubr.f32.vlgmr.msra.gmra.mxu0 %v24271_v47  ;;  %16069 = vmatprep.subr.mxu1 %v12787_v56  ;;  %v12769_v47 = vld [vmem:[#allocation11 + $0x460] sm:$0xff]  ;;  %v12758_v56 = vld [vmem:[#allocation11 + $0x408] sm:$0xff] }
 0x696   :  { %16102 = vmatprep.subr.mxu0 %v12820_v25  ;;  %16070 = vmatpush3.msra.mxu1 %v12771_v59  ;;  %v12791_v25 = vld [vmem:[#allocation11 + $0x510] sm:$0xff]  ;;  %v12806_v38 = vld [vmem:[#allocation11 + $0x588] sm:$0xff] }
 0x697   :  { %16103 = vmatpush3.msra.mxu0 %v12804_v41  ;;  %13437 = vmatprep.mubr.f32.mxu0 %v12979_v14  ;;  %v12273_v16 = vpop.permute.xlu1 %12272  ;;  %v12757_v14 = vld [vmem:[#allocation11 + $0x400] sm:$0xff]  ;;  %v12790_v41 = vld [vmem:[#allocation11 + $0x508] sm:$0xff] }
 0x698   :  { %v12607_v26 = vpop.permute.xlu0 %12606  ;;  %16071 = vmatprep.subr.mxu1 %v12786_v11  ;;  %16104 = vmatprep.subr.mxu0 %v12819_v7  ;;  %12275 = vst.msk [vmem:[#allocation4 + $0x22] sm:$0x1] %vm11955_vm8, %v12273_v16  ;;  %v12805_v7 = vld [vmem:[#allocation11 + $0x580] sm:$0xff] }
 0x699   :  { %12609 = vst.msk [vmem:[#allocation4 + $0x21] sm:$0x1] %vm11955_vm8, %v12607_v26  ;;  %16072 = vmatpush3.msra.mxu1 %v12770_v53  ;;  %16105 = vmatpush3.msra.mxu0 %v12803_v49  ;;  %v12852_v53 = vld [vmem:[#allocation11 + $0x6f8] sm:$0xff]  ;;  %v12789_v49 = vld [vmem:[#allocation11 + $0x500] sm:$0xff]  ;;  %v12851_v26 = vld [vmem:[#allocation11 + $0x6f0] sm:$0xff] }
 0x69a   :  { %16073 = vmatprep.subr.mxu1 %v12785_v30  ;;  %16106 = vmatprep.subr.mxu0 %v12818_v40  ;;  %v12836_v30 = vld [vmem:[#allocation11 + $0x678] sm:$0xff] }
 0x69b   :  { %16074 = vmatpush3.msra.mxu1 %v12769_v47  ;;  %16107 = vmatpush3.msra.mxu0 %v12802_v42  ;;  %v12621_v58 = vpop.permute.xlu1 %12620  ;;  %v12627_v12 = vld [vmem:[#allocation4 + $0x18] sm:$0xff]  ;;  %v12884_v47 = vld [vmem:[#allocation11 + $0x7f8] sm:$0xff] }
 0x69c   :  { %16075 = vmatprep.subr.mxu1 %v12784_v32  ;;  %16108 = vmatprep.subr.mxu0 %v12817_v17  ;;  %12623 = vst.msk [vmem:[#allocation4 + $0x23] sm:$0x1] %vm11955_vm8, %v12621_v58  ;;  %v12980_v59 = vcombine.high %v12627_v12, %v12627_v12  ;;  %v24303_v11 = vrot.slane %v12627_v12, %v23751_v4  ;;  %v12835_v42 = vld [vmem:[#allocation11 + $0x670] sm:$0xff]  ;;  %v12868_v32 = vld [vmem:[#allocation11 + $0x778] sm:$0xff]  ;;  %v12850_v17 = vld [vmem:[#allocation11 + $0x6e8] sm:$0xff] }
 0x69d   :  { %16076 = vmatpush3.msra.mxu1 %v12768_v55  ;;  %16109 = vmatpush3.msra.mxu0 %v12801_v45  ;;  %v12834_v55 = vld [vmem:[#allocation11 + $0x668] sm:$0xff]  ;;  %v12867_v45 = vld [vmem:[#allocation11 + $0x770] sm:$0xff]  ;;  %v12833_v58 = vld [vmem:[#allocation11 + $0x660] sm:$0xff] }
 0x69e   :  { %16077 = vmatprep.subr.mxu1 %v12783_v54  ;;  %16110 = vmatprep.subr.mxu0 %v12816_v2  ;;  %v24306_v40 = vrot.slane %v12980_v59, %v23751_v4  ;;  %v12995_v16 = vcombine.high %v24303_v11, %v24303_v11  ;;  %v12849_v54 = vld [vmem:[#allocation11 + $0x6e0] sm:$0xff]  ;;  %v12882_v2 = vld [vmem:[#allocation11 + $0x7e8] sm:$0xff]  ;;  %v12824_v12 = vld [vmem:[#allocation11 + $0x618] sm:$0xff] }
 0x69f   :  { %16078 = vmatpush3.msra.mxu1 %v12767_v44  ;;  %16111 = vmatpush3.msra.mxu0 %v12800_v9  ;;  %v12866_v44 = vld [vmem:[#allocation11 + $0x768] sm:$0xff]  ;;  %v12881_v9 = vld [vmem:[#allocation11 + $0x7e0] sm:$0xff]  ;;  %v12871_v59 = vld [vmem:[#allocation11 + $0x790] sm:$0xff] }
 0x6a0   :  { %16079 = vmatprep.subr.mxu1 %v12782_v20  ;;  %16112 = vmatprep.subr.mxu0 %v12815_v57  ;;  %v12996_v4 = vcombine.high %v24306_v40, %v24306_v40  ;;  %v12832_v20 = vld [vmem:[#allocation11 + $0x658] sm:$0xff]  ;;  %v12865_v57 = vld [vmem:[#allocation11 + $0x760] sm:$0xff] }
 0x6a1   :  { %16080 = vmatpush3.msra.mxu1 %v12766_v48  ;;  %16113 = vmatpush3.msra.mxu0 %v12799_v52  ;;  %v12847_v48 = vld [vmem:[#allocation11 + $0x6d0] sm:$0xff]  ;;  %v12880_v52 = vld [vmem:[#allocation11 + $0x7d8] sm:$0xff] }
 0x6a2   :  { %16081 = vmatprep.subr.mxu1 %v12781_v18  ;;  %16114 = vmatprep.subr.mxu0 %v12814_v36  ;;  %v12831_v18 = vld [vmem:[#allocation11 + $0x650] sm:$0xff]  ;;  %v12864_v36 = vld [vmem:[#allocation11 + $0x758] sm:$0xff] }
 0x6a3   :  { %16082 = vmatpush3.msra.mxu1 %v12765_v27  ;;  %16115 = vmatpush3.msra.mxu0 %v12798_v60  ;;  %v12846_v27 = vld [vmem:[#allocation11 + $0x6c8] sm:$0xff]  ;;  %v12879_v60 = vld [vmem:[#allocation11 + $0x7d0] sm:$0xff] }
 0x6a4   :  { %16083 = vmatprep.subr.mxu1 %v12780_v23  ;;  %16116 = vmatprep.subr.mxu0 %v12813_v50  ;;  %v12830_v23 = vld [vmem:[#allocation11 + $0x648] sm:$0xff]  ;;  %v12863_v50 = vld [vmem:[#allocation11 + $0x750] sm:$0xff] }
 0x6a5   :  { %16084 = vmatpush3.msra.mxu1 %v12764_v5  ;;  %16117 = vmatpush3.msra.mxu0 %v12797_v6  ;;  %v12845_v5 = vld [vmem:[#allocation11 + $0x6c0] sm:$0xff]  ;;  %v12878_v6 = vld [vmem:[#allocation11 + $0x7c8] sm:$0xff] }
 0x6a6   :  { %16085 = vmatprep.subr.mxu1 %v12779_v29  ;;  %16118 = vmatprep.subr.mxu0 %v12812_v35  ;;  %v12829_v29 = vld [vmem:[#allocation11 + $0x640] sm:$0xff]  ;;  %v12862_v35 = vld [vmem:[#allocation11 + $0x748] sm:$0xff] }
 0x6a7   :  { %16086 = vmatpush3.msra.mxu1 %v12763_v31  ;;  %16119 = vmatpush3.msra.mxu0 %v12796_v3  ;;  %v12844_v31 = vld [vmem:[#allocation11 + $0x6b8] sm:$0xff]  ;;  %v12877_v3 = vld [vmem:[#allocation11 + $0x7c0] sm:$0xff] }
 0x6a8   :  { %16087 = vmatprep.subr.mxu1 %v12778_v13  ;;  %16120 = vmatprep.subr.mxu0 %v12811_v8  ;;  %v12828_v13 = vld [vmem:[#allocation11 + $0x638] sm:$0xff]  ;;  %v12861_v8 = vld [vmem:[#allocation11 + $0x740] sm:$0xff] }
 0x6a9   :  { %16088 = vmatpush3.msra.mxu1 %v12762_v21  ;;  %16121 = vmatpush3.msra.mxu0 %v12795_v61  ;;  %v12843_v21 = vld [vmem:[#allocation11 + $0x6b0] sm:$0xff]  ;;  %v12876_v61 = vld [vmem:[#allocation11 + $0x7b8] sm:$0xff] }
 0x6aa   :  { %16089 = vmatprep.subr.mxu1 %v12777_v39  ;;  %16122 = vmatprep.subr.mxu0 %v12810_v51  ;;  %v12827_v39 = vld [vmem:[#allocation11 + $0x630] sm:$0xff]  ;;  %v12860_v51 = vld [vmem:[#allocation11 + $0x738] sm:$0xff] }
 0x6ab   :  { %16090 = vmatpush3.msra.mxu1 %v12761_v62  ;;  %16123 = vmatpush3.msra.mxu0 %v12794_v37  ;;  %v12842_v62 = vld [vmem:[#allocation11 + $0x6a8] sm:$0xff]  ;;  %v12875_v37 = vld [vmem:[#allocation11 + $0x7b0] sm:$0xff] }
 0x6ac   :  { %16091 = vmatprep.subr.mxu1 %v12776_v34  ;;  %16124 = vmatprep.subr.mxu0 %v12809_v15  ;;  %v12826_v34 = vld [vmem:[#allocation11 + $0x628] sm:$0xff]  ;;  %v12859_v15 = vld [vmem:[#allocation11 + $0x730] sm:$0xff] }
 0x6ad   :  { %16092 = vmatpush3.msra.mxu1 %v12760_v46  ;;  %16125 = vmatpush3.msra.mxu0 %v12793_v43  ;;  %v12841_v46 = vld [vmem:[#allocation11 + $0x6a0] sm:$0xff]  ;;  %v12874_v43 = vld [vmem:[#allocation11 + $0x7a8] sm:$0xff] }
 0x6ae   :  { %16093 = vmatprep.subr.mxu1 %v12775_v1  ;;  %16126 = vmatprep.subr.mxu0 %v12808_v24  ;;  %v12825_v1 = vld [vmem:[#allocation11 + $0x620] sm:$0xff]  ;;  %v12858_v24 = vld [vmem:[#allocation11 + $0x728] sm:$0xff] }
 0x6af   :  { %16094 = vmatpush3.msra.mxu1 %v12759_v28  ;;  %16127 = vmatpush3.msra.mxu0 %v12792_v0  ;;  %v12840_v28 = vld [vmem:[#allocation11 + $0x698] sm:$0xff]  ;;  %v12873_v0 = vld [vmem:[#allocation11 + $0x7a0] sm:$0xff] }
 0x6b0   :  { %16095 = vmatprep.subr.mxu1 %v12774_v33  ;;  %16128 = vmatprep.subr.mxu0 %v12807_v22  ;;  %v12857_v33 = vld [vmem:[#allocation11 + $0x720] sm:$0xff]  ;;  %v12839_v22 = vld [vmem:[#allocation11 + $0x690] sm:$0xff] }
 0x6b1   :  { %16096 = vmatpush3.msra.mxu1 %v12758_v56  ;;  %16129 = vmatpush3.msra.mxu0 %v12791_v25  ;;  %v12872_v56 = vld [vmem:[#allocation11 + $0x798] sm:$0xff]  ;;  %v12823_v25 = vld [vmem:[#allocation11 + $0x610] sm:$0xff] }
 0x6b2   :  { %16097 = vmatprep.subr.mxu1 %v12773_v63  ;;  %16130 = vmatprep.subr.mxu0 %v12806_v38  ;;  %v12856_v63 = vld [vmem:[#allocation11 + $0x718] sm:$0xff]  ;;  %v12838_v38 = vld [vmem:[#allocation11 + $0x688] sm:$0xff] }
 0x6b3   :  { %16098 = vmatpush3.msra.mxu1 %v12757_v14  ;;  %16131 = vmatpush3.msra.mxu0 %v12790_v41  ;;  %v12822_v14 = vld [vmem:[#allocation11 + $0x608] sm:$0xff]  ;;  %v12855_v41 = vld [vmem:[#allocation11 + $0x710] sm:$0xff] }
 0x6b4   :  { %13368 = vmatmul.mubr.f32.vlgmr.msra.gmra.mxu1 %v24284_v19  ;;  %16132 = vmatprep.subr.mxu0 %v12805_v7  ;;  %v12883_v19 = vld [vmem:[#allocation11 + $0x7f0] sm:$0xff]  ;;  %v12837_v7 = vld [vmem:[#allocation11 + $0x680] sm:$0xff] }
 0x6b5   :  { %16137 = vmatprep.subr.mxu1 %v12852_v53  ;;  %16133 = vmatpush3.msra.mxu0 %v12789_v49  ;;  %v12870_v53 = vld [vmem:[#allocation11 + $0x788] sm:$0xff]  ;;  %v12821_v49 = vld [vmem:[#allocation11 + $0x600] sm:$0xff] }
 0x6b6   :  { %16138 = vmatpush3.msra.mxu1 %v12836_v30  ;;  %13507 = vmatprep.mubr.f32.mxu1 %v12995_v16  ;;  %v12854_v30 = vld [vmem:[#allocation11 + $0x708] sm:$0xff]  ;;  %v12869_v16 = vld [vmem:[#allocation11 + $0x780] sm:$0xff] }
 0x6b7   :  { %13438 = vmatmul.mubr.f32.vlgmr.msra.gmra.mxu0 %v24287_v10  ;;  %16139 = vmatprep.subr.mxu1 %v12851_v26  ;;  %v12848_v10 = vld [vmem:[#allocation11 + $0x6d8] sm:$0xff] }
 0x6b8   :  { %16172 = vmatprep.subr.mxu0 %v12884_v47  ;;  %16140 = vmatpush3.msra.mxu1 %v12835_v42  ;;  %v24314_v26 = vld.sshfl [vmem:[#allocation4 + $0x20] sm:$0x33 pattern:$0x76325410]  ;;  %v12853_v42 = vld [vmem:[#allocation11 + $0x700] sm:$0xff] }
 0x6b9   :  { %16173 = vmatpush3.msra.mxu0 %v12868_v32  ;;  %13577 = vmatprep.mubr.f32.mxu0 %v12996_v4  ;;  %v12916_v47 = vld [vmem:[#allocation11 + $0x8f8] sm:$0xff]  ;;  %v13004_v4 = vcombine.high %v24314_v26, %v24314_v26 }
 0x6ba   :  { %16141 = vmatprep.subr.mxu1 %v12850_v17  ;;  %16174 = vmatprep.subr.mxu0 %v12883_v19  ;;  %v12900_v32 = vld [vmem:[#allocation11 + $0x878] sm:$0xff]  ;;  %v12915_v17 = vld [vmem:[#allocation11 + $0x8f0] sm:$0xff] }
 0x6bb   :  { %16142 = vmatpush3.msra.mxu1 %v12834_v55  ;;  %16175 = vmatpush3.msra.mxu0 %v12867_v45  ;;  %v12899_v19 = vld [vmem:[#allocation11 + $0x870] sm:$0xff]  ;;  %v12914_v55 = vld [vmem:[#allocation11 + $0x8e8] sm:$0xff] }
 0x6bc   :  { %16143 = vmatprep.subr.mxu1 %v12849_v54  ;;  %16176 = vmatprep.subr.mxu0 %v12882_v2  ;;  %v12898_v45 = vld [vmem:[#allocation11 + $0x868] sm:$0xff]  ;;  %v12913_v54 = vld [vmem:[#allocation11 + $0x8e0] sm:$0xff] }
 0x6bd   :  { %16144 = vmatpush3.msra.mxu1 %v12833_v58  ;;  %16177 = vmatpush3.msra.mxu0 %v12866_v44  ;;  %v12897_v2 = vld [vmem:[#allocation11 + $0x860] sm:$0xff]  ;;  %v12896_v58 = vld [vmem:[#allocation11 + $0x858] sm:$0xff]  ;;  %v12911_v44 = vld [vmem:[#allocation11 + $0x8d0] sm:$0xff] }
 0x6be   :  { %16145 = vmatprep.subr.mxu1 %v12848_v10  ;;  %16178 = vmatprep.subr.mxu0 %v12881_v9  ;;  %v12895_v10 = vld [vmem:[#allocation11 + $0x850] sm:$0xff]  ;;  %v12910_v9 = vld [vmem:[#allocation11 + $0x8c8] sm:$0xff] }
 0x6bf   :  { %16146 = vmatpush3.msra.mxu1 %v12832_v20  ;;  %16179 = vmatpush3.msra.mxu0 %v12865_v57  ;;  %v12894_v20 = vld [vmem:[#allocation11 + $0x848] sm:$0xff]  ;;  %v12893_v57 = vld [vmem:[#allocation11 + $0x840] sm:$0xff] }
 0x6c0   :  { %16147 = vmatprep.subr.mxu1 %v12847_v48  ;;  %16180 = vmatprep.subr.mxu0 %v12880_v52  ;;  %v12908_v48 = vld [vmem:[#allocation11 + $0x8b8] sm:$0xff] }
 0x6c1   :  { %16148 = vmatpush3.msra.mxu1 %v12831_v18  ;;  %16181 = vmatpush3.msra.mxu0 %v12864_v36  ;;  %v12892_v52 = vld [vmem:[#allocation11 + $0x838] sm:$0xff]  ;;  %v12907_v18 = vld [vmem:[#allocation11 + $0x8b0] sm:$0xff] }
 0x6c2   :  { %16149 = vmatprep.subr.mxu1 %v12846_v27  ;;  %16182 = vmatprep.subr.mxu0 %v12879_v60  ;;  %v12891_v36 = vld [vmem:[#allocation11 + $0x830] sm:$0xff]  ;;  %v12906_v27 = vld [vmem:[#allocation11 + $0x8a8] sm:$0xff] }
 0x6c3   :  { %16150 = vmatpush3.msra.mxu1 %v12830_v23  ;;  %16183 = vmatpush3.msra.mxu0 %v12863_v50  ;;  %v12890_v60 = vld [vmem:[#allocation11 + $0x828] sm:$0xff]  ;;  %v12905_v23 = vld [vmem:[#allocation11 + $0x8a0] sm:$0xff] }
 0x6c4   :  { %16151 = vmatprep.subr.mxu1 %v12845_v5  ;;  %16184 = vmatprep.subr.mxu0 %v12878_v6  ;;  %v12889_v50 = vld [vmem:[#allocation11 + $0x820] sm:$0xff]  ;;  %v12904_v5 = vld [vmem:[#allocation11 + $0x898] sm:$0xff] }
 0x6c5   :  { %16152 = vmatpush3.msra.mxu1 %v12829_v29  ;;  %16185 = vmatpush3.msra.mxu0 %v12862_v35  ;;  %v12888_v6 = vld [vmem:[#allocation11 + $0x818] sm:$0xff]  ;;  %v12903_v29 = vld [vmem:[#allocation11 + $0x890] sm:$0xff] }
 0x6c6   :  { %16153 = vmatprep.subr.mxu1 %v12844_v31  ;;  %16186 = vmatprep.subr.mxu0 %v12877_v3  ;;  %v12887_v35 = vld [vmem:[#allocation11 + $0x810] sm:$0xff]  ;;  %v12902_v31 = vld [vmem:[#allocation11 + $0x888] sm:$0xff] }
 0x6c7   :  { %16154 = vmatpush3.msra.mxu1 %v12828_v13  ;;  %16187 = vmatpush3.msra.mxu0 %v12861_v8  ;;  %v12886_v3 = vld [vmem:[#allocation11 + $0x808] sm:$0xff]  ;;  %v12901_v13 = vld [vmem:[#allocation11 + $0x880] sm:$0xff] }
 0x6c8   :  { %16155 = vmatprep.subr.mxu1 %v12843_v21  ;;  %16188 = vmatprep.subr.mxu0 %v12876_v61  ;;  %v12885_v8 = vld [vmem:[#allocation11 + $0x800] sm:$0xff]  ;;  %v13669_v21 = vld [vmem:[%s24382_s7 + $0x78] sm:$0xff]  ;;  %v18148_v61 = vmov 0.0  }
 0x6c9   :  { %16156 = vmatpush3.msra.mxu1 %v12827_v39  ;;  %16189 = vmatpush3.msra.mxu0 %v12860_v51  ;;  %v13668_v39 = vld [vmem:[%s24382_s7 + $0x70] sm:$0xff]  ;;  %v13667_v51 = vld [vmem:[%s24382_s7 + $0x68] sm:$0xff] }
 0x6ca   :  { %16157 = vmatprep.subr.mxu1 %v12842_v62  ;;  %16190 = vmatprep.subr.mxu0 %v12875_v37  ;;  %v13666_v62 = vld [vmem:[%s24382_s7 + $0x60] sm:$0xff]  ;;  %v13665_v37 = vld [vmem:[%s24382_s7 + $0x58] sm:$0xff] }
 0x6cb   :  { %16158 = vmatpush3.msra.mxu1 %v12826_v34  ;;  %16191 = vmatpush3.msra.mxu0 %v12859_v15  ;;  %v13664_v34 = vld [vmem:[%s24382_s7 + $0x50] sm:$0xff]  ;;  %v13663_v15 = vld [vmem:[%s24382_s7 + $0x48] sm:$0xff] }
 0x6cc   :  { %16159 = vmatprep.subr.mxu1 %v12841_v46  ;;  %16192 = vmatprep.subr.mxu0 %v12874_v43  ;;  %v13662_v46 = vld [vmem:[%s24382_s7 + $0x40] sm:$0xff]  ;;  %v13661_v43 = vld [vmem:[%s24382_s7 + $0x38] sm:$0xff] }
 0x6cd   :  { %16160 = vmatpush3.msra.mxu1 %v12825_v1  ;;  %16193 = vmatpush3.msra.mxu0 %v12858_v24  ;;  %v13660_v1 = vld [vmem:[%s24382_s7 + $0x30] sm:$0xff]  ;;  %v13659_v24 = vld [vmem:[%s24382_s7 + $0x28] sm:$0xff] }
 0x6ce   :  { %16161 = vmatprep.subr.mxu1 %v12840_v28  ;;  %16194 = vmatprep.subr.mxu0 %v12873_v0  ;;  %v13658_v28 = vld [vmem:[%s24382_s7 + $0x20] sm:$0xff]  ;;  %v13657_v0 = vld [vmem:[%s24382_s7 + $0x18] sm:$0xff] }
 0x6cf   :  { %16162 = vmatpush3.msra.mxu1 %v12824_v12  ;;  %16195 = vmatpush3.msra.mxu0 %v12857_v33  ;;  %v13656_v12 = vld [vmem:[%s24382_s7 + $0x10] sm:$0xff]  ;;  %v13655_v33 = vld [vmem:[%s24382_s7 + $0x8] sm:$0xff] }
 0x6d0   :  { %16163 = vmatprep.subr.mxu1 %v12839_v22  ;;  %16196 = vmatprep.subr.mxu0 %v12872_v56  ;;  %v13654_v22 = vld [vmem:[%s24382_s7] sm:$0xff]  ;;  %s18150_s7 = smov [#allocation16]  }
 0x6d1   :  { %16164 = vmatpush3.msra.mxu1 %v12823_v25  ;;  %16197 = vmatpush3.msra.mxu0 %v12856_v63  ;;  %s13768_s21 = sshll.u32 %s18150_s7, 4  ;;  %s13769_s21 = int_to_ptr.vmem [resolvable:$true] %s13768_s21 }
 0x6d2   :  { %16165 = vmatprep.subr.mxu1 %v12838_v38  ;;  %16198 = vmatprep.subr.mxu0 %v12871_v59  ;;  %s18108_s22 = scalar_lea.vmem %s13769_s21, 32  ;;  %p18113_p3 = scmp.lt.s32.totalorder %s13769_s21, %s13769_s21 }
 0x6d3   :  { %16166 = vmatpush3.msra.mxu1 %v12822_v14  ;;  %16199 = vmatpush3.msra.mxu0 %v12855_v41  ;;  %v14835_v14 = vld [vmem:[#allocation13] ss:$0 sm:$0xff]  ;;  %p18109_p2 = scmp.ne.s32.totalorder %s13769_s21, %s18108_s22  ;;  %p18114_p4 = scmp.lt.s32.totalorder %s18108_s22, %s18108_s22 }
 0x6d4   :  { %16167 = vmatprep.subr.mxu1 %v12837_v7  ;;  %16200 = vmatprep.subr.mxu0 %v12870_v53 }
 0x6d5   :  { %16168 = vmatpush3.msra.mxu1 %v12821_v49  ;;  %16201 = vmatpush3.msra.mxu0 %v12854_v30  ;;  %p18115_p5 = por %p18114_p4, %p18113_p3 }
 0x6d6   :  { %13508 = vmatmul.mubr.f32.vlgmr.msra.gmra.mxu1 %v24303_v11  ;;  %16202 = vmatprep.subr.mxu0 %v12869_v16  ;;  %v12912_v11 = vld [vmem:[#allocation11 + $0x8d8] sm:$0xff] }
 0x6d7   :  { %16207 = vmatprep.subr.mxu1 %v12916_v47  ;;  %16203 = vmatpush3.msra.mxu0 %v12853_v42  ;;  %p18116_p6 = pnand %p18115_p5, %p18109_p2 }
 0x6d8   :  { %16208 = vmatpush3.msra.mxu1 %v12900_v32  ;;  %13647 = vmatprep.mubr.f32.mxu1 %v13004_v4 }
 0x6d9   :  { %13578 = vmatmul.mubr.f32.vlgmr.msra.gmra.mxu0 %v24306_v40  ;;  %16209 = vmatprep.subr.mxu1 %v12915_v17  ;;  %v12909_v40 = vld [vmem:[#allocation11 + $0x8c0] sm:$0xff] }
 0x6da   :  { %16210 = vmatpush3.msra.mxu1 %v12899_v19  ;;  %17915 = vmatprep.subr.mxu0 %v18148_v61 }
 0x6db   :  { %16211 = vmatprep.subr.mxu1 %v12914_v55  ;;  %17916 = vmatpush3.msra.mxu0 %v13669_v21 }
 0x6dc   :  { %16212 = vmatpush3.msra.mxu1 %v12898_v45  ;;  %17917 = vmatprep.subr.mxu0 %v18148_v61 }
 0x6dd   :  { %16213 = vmatprep.subr.mxu1 %v12913_v54  ;;  %17918 = vmatpush3.msra.mxu0 %v13668_v39 }
 0x6de   :  { %16214 = vmatpush3.msra.mxu1 %v12897_v2  ;;  %17919 = vmatprep.subr.mxu0 %v18148_v61 }
 0x6df   :  { %16215 = vmatprep.subr.mxu1 %v12912_v11  ;;  %17920 = vmatpush3.msra.mxu0 %v13667_v51 }
 0x6e0   :  { %16216 = vmatpush3.msra.mxu1 %v12896_v58  ;;  %17921 = vmatprep.subr.mxu0 %v18148_v61 }
 0x6e1   :  { %16217 = vmatprep.subr.mxu1 %v12911_v44  ;;  %17922 = vmatpush3.msra.mxu0 %v13666_v62 }
 0x6e2   :  { %16218 = vmatpush3.msra.mxu1 %v12895_v10  ;;  %17923 = vmatprep.subr.mxu0 %v18148_v61 }
 0x6e3   :  { %16219 = vmatprep.subr.mxu1 %v12910_v9  ;;  %17924 = vmatpush3.msra.mxu0 %v13665_v37 }
 0x6e4   :  { %16220 = vmatpush3.msra.mxu1 %v12894_v20  ;;  %17925 = vmatprep.subr.mxu0 %v18148_v61 }
 0x6e5   :  { %16221 = vmatprep.subr.mxu1 %v12909_v40  ;;  %17926 = vmatpush3.msra.mxu0 %v13664_v34 }
 0x6e6   :  { %16222 = vmatpush3.msra.mxu1 %v12893_v57  ;;  %17927 = vmatprep.subr.mxu0 %v18148_v61 }
 0x6e7   :  { %16223 = vmatprep.subr.mxu1 %v12908_v48  ;;  %17928 = vmatpush3.msra.mxu0 %v13663_v15 }
 0x6e8   :  { %16224 = vmatpush3.msra.mxu1 %v12892_v52  ;;  %17929 = vmatprep.subr.mxu0 %v18148_v61 }
 0x6e9   :  { %16225 = vmatprep.subr.mxu1 %v12907_v18  ;;  %17930 = vmatpush3.msra.mxu0 %v13662_v46 }
 0x6ea   :  { %16226 = vmatpush3.msra.mxu1 %v12891_v36  ;;  %17931 = vmatprep.subr.mxu0 %v18148_v61 }
 0x6eb   :  { %16227 = vmatprep.subr.mxu1 %v12906_v27  ;;  %17932 = vmatpush3.msra.mxu0 %v13661_v43 }
 0x6ec   :  { %16228 = vmatpush3.msra.mxu1 %v12890_v60  ;;  %17933 = vmatprep.subr.mxu0 %v18148_v61 }
 0x6ed   :  { %16229 = vmatprep.subr.mxu1 %v12905_v23  ;;  %17934 = vmatpush3.msra.mxu0 %v13660_v1 }
 0x6ee   :  { %16230 = vmatpush3.msra.mxu1 %v12889_v50  ;;  %17935 = vmatprep.subr.mxu0 %v18148_v61  ;;  %v14837_v50 = vld [vmem:[#allocation14] ss:$0 sm:$0xff] }
 0x6ef   :  { %16231 = vmatprep.subr.mxu1 %v12904_v5  ;;  %17936 = vmatpush3.msra.mxu0 %v13659_v24 }
 0x6f0   :  { %16232 = vmatpush3.msra.mxu1 %v12888_v6  ;;  %17937 = vmatprep.subr.mxu0 %v18148_v61 }
 0x6f1   :  { %16233 = vmatprep.subr.mxu1 %v12903_v29  ;;  %17938 = vmatpush3.msra.mxu0 %v13658_v28 }
 0x6f2   :  { %16234 = vmatpush3.msra.mxu1 %v12887_v35  ;;  %17939 = vmatprep.subr.mxu0 %v18148_v61 }
 0x6f3   :  { %16235 = vmatprep.subr.mxu1 %v12902_v31  ;;  %17940 = vmatpush3.msra.mxu0 %v13657_v0 }
 0x6f4   :  { %16236 = vmatpush3.msra.mxu1 %v12886_v3  ;;  %17941 = vmatprep.subr.mxu0 %v18148_v61 }
 0x6f5   :  { %16237 = vmatprep.subr.mxu1 %v12901_v13  ;;  %17942 = vmatpush3.msra.mxu0 %v13656_v12 }
 0x6f6   :  { %16238 = vmatpush3.msra.mxu1 %v12885_v8  ;;  %17943 = vmatprep.subr.mxu0 %v18148_v61 }
 0x6f7   :  { %13648 = vmatmul.mubr.f32.vlgmr.msra.gmra.mxu1 %v24314_v26  ;;  %17944 = vmatpush3.msra.mxu0 %v13655_v33 }
 0x6f8   :  { %17945 = vmatprep.subr.mxu0 %v18148_v61  ;;  %17947 = vmatprep.mubr.msk.f32.mxu0 %vm18149_vm9, %v18148_v61 }
 0x6f9   :  { %17946 = vmatpush3.msra.mxu0 %v13654_v22 }
 0x731   :  { %v15959_v56 = vpop.f32.mrf.mxu1 }
 0x733   :  { %v15960_v25 = vpop.f32.mrf.mxu1  ;;  %v15994_v63 = vpop.f32.mrf.mxu0 }
 0x734   :  { %v15961_v59 = vadd.f32 %v15960_v25, %v15959_v56 }
 0x735   :  { %v15995_v41 = vpop.f32.mrf.mxu0 }
 0x736   :  { %v13090_v49 = vadd.f32 %v15961_v59, %v14835_v14  ;;  %v15996_v30 = vadd.f32 %v15995_v41, %v15994_v63 }
 0x738   :  { %v13160_v42 = vadd.f32 %v15996_v30, %v13090_v49 }
 0x752   :  { %v16029_v38 = vpop.f32.mrf.mxu1 }
 0x754   :  { %v16030_v7 = vpop.f32.mrf.mxu1 }
 0x755   :  { %v16064_v53 = vpop.f32.mrf.mxu0  ;;  %v16031_v26 = vadd.f32 %v16030_v7, %v16029_v38 }
 0x757   :  { %v16065_v47 = vpop.f32.mrf.mxu0  ;;  %v13230_v17 = vadd.f32 %v16031_v26, %v13160_v42 }
 0x758   :  { %v16066_v19 = vadd.f32 %v16065_v47, %v16064_v53 }
 0x75a   :  { %v13300_v2 = vadd.f32 %v16066_v19, %v13230_v17 }
 0x774   :  { %v16099_v16 = vpop.f32.mrf.mxu1 }
 0x776   :  { %v16100_v32 = vpop.f32.mrf.mxu1 }
 0x777   :  { %v16134_v4 = vpop.f32.mrf.mxu0  ;;  %v16101_v45 = vadd.f32 %v16100_v32, %v16099_v16 }
 0x779   :  { %v16135_v54 = vpop.f32.mrf.mxu0  ;;  %v13370_v44 = vadd.f32 %v16101_v45, %v13300_v2 }
 0x77a   :  { %v16136_v10 = vadd.f32 %v16135_v54, %v16134_v4 }
 0x77c   :  { %v13440_v40 = vadd.f32 %v16136_v10, %v13370_v44 }
 0x796   :  { %v16169_v55 = vpop.f32.mrf.mxu1 }
 0x798   :  { %v16170_v11 = vpop.f32.mrf.mxu1 }
 0x799   :  { %v16204_v58 = vpop.f32.mrf.mxu0  ;;  %v16171_v9 = vadd.f32 %v16170_v11, %v16169_v55 }
 0x79b   :  { %v16205_v20 = vpop.f32.mrf.mxu0  ;;  %v13510_v57 = vadd.f32 %v16171_v9, %v13440_v40 }
 0x79c   :  { %v16206_v48 = vadd.f32 %v16205_v20, %v16204_v58 }
 0x79e   :  { %v13580_v36 = vadd.f32 %v16206_v48, %v13510_v57 }
 0x7b7   :  { %v16239_v52 = vpop.f32.mrf.mxu1 }
 0x7b9   :  { %v16240_v18 = vpop.f32.mrf.mxu1 }
 0x7ba   :  { %v16241_v27 = vadd.f32 %v16240_v18, %v16239_v52 }
 0x7bc   :  { %v13650_v60 = vadd.f32 %v16241_v27, %v13580_v36 }
 0x7be   :  { %v13653_v23 = vmax.f32 %v13650_v60, 0.0 }
 0x7c0   :  { %17948 = vmatmul.mubr.f32.vlgmr.msra.gmra.mxu0 %v13653_v23 }
 0x880   :  { %v13743_v5 = vpop.f32.mrf.mxu0 }
 0x881   :  { %v13744_v6 = vadd.f32 %v14837_v50, %v13743_v5 }
 0x882   :  { %v17949_v29 = vpop.f32.mrf.mxu0 }
 0x883   :  { %v13748_v35 = vsel %vm13747_vm10, %v13744_v6, -inf }
 0x884   :  { %13749 = vmax.xlane.f32.xlu0 %v13748_v35 }
 0x90d   :  { %v13750_v31 = vpop.xlane.xlu0 %13749 }
 0x90e   :  { %v13751_v3 = vsub.f32 %v13744_v6, %v13750_v31 }
 0x910   :  { %v13752_v13 = vmul.f32 1.442695, %v13751_v3 }
 0x912   :  { %17968 = vpow2.f32 %v13752_v13 }
 0x91f   :  { %v17969_v8 = vpop.eup %17968 }
 0x920   :  { %v13754_v21 = vsel %vm13747_vm10, %v17969_v8, 0.0 }
 0x921   :  { %13755 = vadd.xlane.f32.xlu1 %v13754_v21 }
 0x9aa   :  { %v13756_v61 = vpop.xlane.xlu1 %13755 }
 0x9ab   :  { %17970 = vlog2.f32 %v13756_v61 }
 0x9b8   :  { %v17971_v39 = vpop.eup %17970 }
 0x9b9   :  { %v13758_v51 = vmul.f32 0.6931472, %v17971_v39 }
 0x9bb   :  { %v13759_v62 = vadd.f32 %v13758_v51, %v13750_v31 }
 0x9bd   :  { %v13760_v37 = vsub.f32 %v13744_v6, %v13759_v62 }
 0x9bf   :  { %13761 = vst.msk [vmem:[#allocation16] sm:$0x3] %vm13747_vm10, %v13760_v37 }
 0x9c0   :  { %18119 = shalt.err (!%p18116_p6)
}
 0x9c1   :  { %13771 = dma.vmem_to_hbm [thread:$0]  %s13769_s21, 32, %s24384_s9, [#allocation7]  }
 0x9c2   :  { %18136 = dma.done.wait [#allocation7], 32  }
 0x9c3   :  { %18137 = vsyncadd [#allocation7], 4294967264 }
 0x9c4   :  { %13775 = vsyncpa [#allocation6], 1 }
 0x9c5   :  { %13776 = vsyncpa [#allocation9], 1 }
 0x9c6   :  { %13777 = vsyncpa [#allocation12], 1 }
 0x9c7   :  { %13778 = vsyncpa [#allocation15], 1 }
 0x9c8   :  { %13779 = vsyncpa [#allocation7], 1 }

</bundles_post_ra>
